<compile_context>
chip_gen: v7x
topology: tpu7x:2x2x1
jax: 0.10.0
libtpu: 0.0.40
codegen_flags: <defaults>
</compile_context>

<pallas_src>
import functools

import jax
import jax.numpy as jnp
from jax.experimental import pallas as pl
from jax.experimental.pallas import tpu as pltpu

NUM_RELATIONS = 5
NUM_LAYERS = 4


# ----------------------------------------------------------------------------
# The single fused kernel: 4 graph layers + molecule head, B_TILE molecules/step
# ----------------------------------------------------------------------------

def _eagcn_kernel(att_ref, adj_ref, x0_ref, attw_ref, attb_ref,
                  w1_ref, c1_ref, w2_ref, c2_ref, w3_ref, c3_ref, w4_ref, c4_ref,
                  dw1_ref, db1_ref, dw2_ref, db2_ref, ds2_ref, dt2_ref, dw3_ref, db3_ref,
                  out_ref, atom_ref, grep_ref,
                  *, rel_channels, layer_out_dims):
    """att_ref:(BT,C,N,N) adj_ref:(BT,N,N) x0_ref:(BT,N,K0); attw/attb in SMEM;
    w*_ref:(K_l,Mtot_l) bf16, c*_ref:(1,Mtot_l) f32; d*: head weights (bf16) / affines (f32)."""
    att = att_ref[...]                      # loaded once, reused by all 4 layers
    adj = adj_ref[...]
    bt, _, n, _ = att.shape

    # Additive adjacency mask: one compare+select total (shared by all relations & layers).
    neg = jnp.where(adj > 0.0, 0.0, -1e9)   # (BT, N, N) f32

    def graph_layer(x, li, w_ref, b_ref, relu):
        k = x.shape[-1]
        mtot = w_ref.shape[-1]
        # One lane/sublane-dense MXU matmul for every relation's feature transform.
        xw = jnp.dot(x.reshape(bt * n, k).astype(jnp.bfloat16), w_ref[...],
                     preferred_element_type=jnp.float32).reshape(bt, n, mtot)
        parts = []
        c_off = 0
        m_off = 0
        for r in range(NUM_RELATIONS):
            cr = rel_channels[r]
            mr = layer_out_dims[li][r]
            # Edge scores: tiny VPU weighted sum over this relation's channels
            # (replaces the kron-expanded MXU matmul; weights are SMEM scalars).
            sc = attw_ref[li, c_off] * att[:, c_off]
            for c in range(c_off + 1, c_off + cr):
                sc = sc + attw_ref[li, c] * att[:, c]
            sc = sc + attb_ref[li, r] + neg
            # Adjacency-masked softmax over neighbours (lane axis); stats in f32.
            m = jnp.max(sc, axis=-1, keepdims=True)
            p = jnp.exp(sc - m)
            a = p * pl.reciprocal(jnp.sum(p, axis=-1, keepdims=True), approx=True)
            # Per-relation aggregation on its own output columns only (no block-diag mask).
            h = jnp.einsum('bij,bjm->bim',
                           a.astype(jnp.bfloat16),
                           xw[:, :, m_off:m_off + mr].astype(jnp.bfloat16),
                           preferred_element_type=jnp.float32)
            parts.append(h)
            c_off += cr
            m_off += mr
        out = jnp.concatenate(parts, axis=-1) + b_ref[...]      # bias after aggregation
        return jnp.maximum(out, 0.0) if relu else out

    x = x0_ref[...]
    x = graph_layer(x, 0, w1_ref, c1_ref, True)
    x = graph_layer(x, 1, w2_ref, c2_ref, True)
    x = graph_layer(x, 2, w3_ref, c3_ref, True)
    x = graph_layer(x, 3, w4_ref, c4_ref, False)                # last=True -> no ReLU
    atom_ref[...] = x                                           # atom_representations

    # Fused head: sum-over-atoms -> (Graph_BN & bn_den1 folded into den1) -> relu
    #             -> den2 -> bn_den2 affine -> relu -> den3.
    s = jnp.sum(x, axis=1)                                      # (BT, F)
    h1 = jnp.dot(s.astype(jnp.bfloat16), dw1_ref[...],
                 preferred_element_type=jnp.float32) + db1_ref[...]
    h1 = jnp.maximum(h1, 0.0)
    g = jnp.dot(h1.astype(jnp.bfloat16), dw2_ref[...],
                preferred_element_type=jnp.float32) + db2_ref[...]
    grep_ref[...] = g[:, None, :]                               # graph_representation
    h2 = jnp.maximum(g * ds2_ref[...] + dt2_ref[...], 0.0)
    out_ref[...] = (jnp.dot(h2.astype(jnp.bfloat16), dw3_ref[...],
                            preferred_element_type=jnp.float32) + db3_ref[...])[:, None, :]


# ----------------------------------------------------------------------------
# Parameter preparation (weight concat, SMEM scalar tables, eval-mode BN folding)
# ----------------------------------------------------------------------------

def _prepare_layers(params, rel_channels):
    C = sum(rel_channels)
    attw = jnp.zeros((NUM_LAYERS, C), jnp.float32)
    attb = jnp.zeros((NUM_LAYERS, NUM_RELATIONS), jnp.float32)
    w_list, b_list, out_dims = [], [], []
    for li, name in enumerate(("layer1", "layer2", "layer3", "layer4")):
        lp = params[name]
        c_off = 0
        for r in range(NUM_RELATIONS):
            attw = attw.at[li, c_off:c_off + rel_channels[r]].set(lp["att_w"][r])
            attb = attb.at[li, r].set(lp["att_b"][r][0])
            c_off += rel_channels[r]
        w_list.append(jnp.concatenate(lp["w"], axis=1).astype(jnp.bfloat16))
        b_list.append(jnp.concatenate(lp["b"], axis=1).astype(jnp.float32))
        out_dims.append(tuple(int(w.shape[1]) for w in lp["w"]))
    return attw, attb, w_list, b_list, tuple(out_dims)


def _bn_affine(bn, eps=1e-5):
    gamma, beta, mean, var = bn
    scale = gamma * jax.lax.rsqrt(var + eps)
    return scale, beta - mean * scale


def _prepare_head(params):
    sg, tg = _bn_affine(params["graph_bn"])
    s1, t1 = _bn_affine(params["bn_den1"])
    s2, t2 = _bn_affine(params["bn_den2"])
    w1, b1 = params["den1"]
    w2, b2 = params["den2"]
    w3, b3 = params["den3"]
    # Fold Graph_BN (input side) and bn_den1 (output side) into den1.
    w1f = (sg.reshape(-1, 1) * w1) * s1
    b1f = (tg @ w1 + b1) * s1 + t1
    return {"w1": w1f.astype(jnp.bfloat16), "b1": b1f,
            "w2": w2.astype(jnp.bfloat16), "b2": b2, "s2": s2, "t2": t2,
            "w3": w3.astype(jnp.bfloat16), "b3": b3}


# ----------------------------------------------------------------------------
# Forward pass (single pallas_call)
# ----------------------------------------------------------------------------

def eagcn_forward(params, adjs, afms, TypeAtt, OrderAtt, AromAtt, ConjAtt, RingAtt, size,
                  *, rel_channels, b_tile=4):
    del size  # molfp_mode='sum': size is only used for 'ave'
    B, N, _ = adjs.shape  # N should be padded to a multiple of 8 for best layout
    att = jnp.concatenate([TypeAtt, OrderAtt, AromAtt, ConjAtt, RingAtt], axis=1)  # (B,C,N,N)
    C = att.shape[1]
    K0 = afms.shape[2]

    attw, attb, w_list, b_list, out_dims = _prepare_layers(params, rel_channels)
    head = _prepare_head(params)

    bt = max(1, min(b_tile, B))
    nblk = pl.cdiv(B, bt)
    Bp = nblk * bt
    if Bp != B:                      # pad batch to a multiple of the batch block
        padn = Bp - B
        att = jnp.pad(att, ((0, padn), (0, 0), (0, 0), (0, 0)))
        adjs = jnp.pad(adjs, ((0, padn), (0, 0), (0, 0)))
        afms = jnp.pad(afms, ((0, padn), (0, 0), (0, 0)))

    F = int(w_list[3].shape[1])
    n_den2 = int(head["w2"].shape[1])
    nclass = int(head["w3"].shape[1])

    kernel = functools.partial(_eagcn_kernel,
                               rel_channels=tuple(int(c) for c in rel_channels),
                               layer_out_dims=out_dims)

    const = lambda g: (0, 0)
    in_specs = [
        pl.BlockSpec((bt, C, N, N), lambda g: (g, 0, 0, 0)),
        pl.BlockSpec((bt, N, N), lambda g: (g, 0, 0)),
        pl.BlockSpec((bt, N, K0), lambda g: (g, 0, 0)),
        pl.BlockSpec(memory_space=pltpu.MemorySpace.SMEM),   # attw scalar table
        pl.BlockSpec(memory_space=pltpu.MemorySpace.SMEM),   # attb scalar table
    ]
    args = [att, adjs, afms, attw, attb]
    for wl, bl in zip(w_list, b_list):
        in_specs += [pl.BlockSpec(wl.shape, const), pl.BlockSpec(bl.shape, const)]
        args += [wl, bl]
    for name in ("w1", "b1", "w2", "b2", "s2", "t2", "w3", "b3"):
        in_specs.append(pl.BlockSpec(head[name].shape, const))
        args.append(head[name])

    out, atom_rep, grep = pl.pallas_call(
        kernel,
        grid=(nblk,),
        in_specs=in_specs,
        out_specs=[
            pl.BlockSpec((bt, 1, nclass), lambda g: (g, 0, 0)),
            pl.BlockSpec((bt, N, F), lambda g: (g, 0, 0)),
            pl.BlockSpec((bt, 1, n_den2), lambda g: (g, 0, 0)),
        ],
        out_shape=[
            jax.ShapeDtypeStruct((Bp, 1, nclass), jnp.float32),
            jax.ShapeDtypeStruct((Bp, N, F), jnp.float32),
            jax.ShapeDtypeStruct((Bp, 1, n_den2), jnp.float32),
        ],
        compiler_params=pltpu.CompilerParams(
            dimension_semantics=("parallel",),            # megacore split of batch blocks on v7x
            vmem_limit_bytes=32 * 1024 * 1024,
        ),
    )(*args)
    return out[:B, 0, :], atom_rep[:B], grep[:B, 0, :]


# ----------------------------------------------------------------------------
# Deterministic parameter init (mirrors the PyTorch module structure)
# ----------------------------------------------------------------------------

def _nrm(key, shape, scale=0.1):
    return (scale * jax.random.normal(key, shape)).astype(jnp.float32)


def _bn_params(feat):
    return (
        jnp.ones((1, feat), jnp.float32),   # gamma
        jnp.zeros((1, feat), jnp.float32),  # beta
        jnp.zeros((1, feat), jnp.float32),  # running mean
        jnp.ones((1, feat), jnp.float32),   # running var
    )


def init_graph_layer(key, in_dim, out_dims, rel_channels):
    keys = jax.random.split(key, 2 * NUM_RELATIONS)
    att_w, att_b, w, b = [], [], [], []
    for r in range(NUM_RELATIONS):
        att_w.append(_nrm(keys[2 * r], (rel_channels[r],)))
        att_b.append(jnp.zeros((1,), jnp.float32))
        w.append(_nrm(keys[2 * r + 1], (in_dim, out_dims[r])))
        b.append(jnp.zeros((1, out_dims[r]), jnp.float32))
    return {"att_w": att_w, "att_b": att_b, "w": w, "b": b}


def init_params(key, n_bfeat, n_afeat, sgc1, sgc2, n_den1, n_den2, nclass):
    rel_channels = (n_bfeat, 4, 2, 2, 2)   # TypeAtt, OrderAtt, AromAtt, ConjAtt, RingAtt
    ngc1 = sum(sgc1)
    ngc2 = sum(sgc2)
    ks = jax.random.split(key, 10)
    params = {
        "layer1": init_graph_layer(ks[0], n_afeat, list(sgc1), rel_channels),
        "layer2": init_graph_layer(ks[1], ngc1, list(sgc2), rel_channels),
        "layer3": init_graph_layer(ks[2], ngc2, [2 * d for d in sgc2], rel_channels),
        "layer4": init_graph_layer(ks[3], 2 * ngc2, [2 * d for d in sgc2], rel_channels),
        "graph_bn": _bn_params(2 * ngc2),
        "den1": (_nrm(ks[4], (2 * ngc2, n_den1)), jnp.zeros((1, n_den1), jnp.float32)),
        "bn_den1": _bn_params(n_den1),
        "den2": (_nrm(ks[5], (n_den1, n_den2)), jnp.zeros((1, n_den2), jnp.float32)),
        "bn_den2": _bn_params(n_den2),
        "den3": (_nrm(ks[6], (n_den2, nclass)), jnp.zeros((1, nclass), jnp.float32)),
    }
    return params, rel_channels


# ----------------------------------------------------------------------------
# Example run
# ----------------------------------------------------------------------------

if __name__ == "__main__":
    B, N = 8, 16            # batch of molecules, atoms per molecule (padded, multiple of 8)
    n_bfeat, n_afeat = 6, 8
    sgc1 = (4, 4, 4, 4, 4)  # ngc1 = 20
    sgc2 = (4, 4, 4, 4, 4)  # ngc2 = 20 -> final atom feature 2*ngc2 = 40
    n_den1, n_den2, nclass = 32, 16, 2

    key = jax.random.PRNGKey(0)
    kp, ka, kf, k1, k2, k3, k4, k5 = jax.random.split(key, 8)

    params, rel_channels = init_params(kp, n_bfeat, n_afeat, sgc1, sgc2, n_den1, n_den2, nclass)

    # adjacency: random symmetric binary with self-loops
    a = (jax.random.uniform(ka, (B, N, N)) > 0.6).astype(jnp.float32)
    adjs = jnp.maximum(a, jnp.transpose(a, (0, 2, 1)))
    adjs = jnp.maximum(adjs, jnp.eye(N, dtype=jnp.float32)[None])

    afms = jax.random.normal(kf, (B, N, n_afeat)).astype(jnp.float32)
    TypeAtt = jax.random.uniform(k1, (B, n_bfeat, N, N)).astype(jnp.float32)
    OrderAtt = jax.random.uniform(k2, (B, 4, N, N)).astype(jnp.float32)
    AromAtt = jax.random.uniform(k3, (B, 2, N, N)).astype(jnp.float32)
    ConjAtt = jax.random.uniform(k4, (B, 2, N, N)).astype(jnp.float32)
    RingAtt = jax.random.uniform(k5, (B, 2, N, N)).astype(jnp.float32)
    size = jnp.full((B,), float(N), dtype=jnp.float32)

    forward = jax.jit(functools.partial(eagcn_forward, rel_channels=rel_channels, b_tile=4))
    out, atom_rep, graph_rep = forward(
        params, adjs, afms, TypeAtt, OrderAtt, AromAtt, ConjAtt, RingAtt, size
    )
    jax.block_until_ready((out, atom_rep, graph_rep))

    assert out.shape == (B, nclass)
    assert atom_rep.shape == (B, N, 2 * sum(sgc2))
    assert graph_rep.shape == (B, n_den2)
    print("KERNEL_OK")
</pallas_src>

<mosaic_0001>
module attributes {stable_mosaic.version = 11 : i64} {
  func.func @_eagcn_kernel(%arg0: i32, %arg1: memref<4x16x16x16xf32, #tpu.memory_space<vmem>>, %arg2: memref<4x16x16xf32, #tpu.memory_space<vmem>>, %arg3: memref<4x16x8xf32, #tpu.memory_space<vmem>>, %arg4: memref<4x16xf32, #tpu.memory_space<smem>>, %arg5: memref<4x5xf32, #tpu.memory_space<smem>>, %arg6: memref<8x20xbf16, #tpu.memory_space<vmem>>, %arg7: memref<1x20xf32, #tpu.memory_space<vmem>>, %arg8: memref<20x20xbf16, #tpu.memory_space<vmem>>, %arg9: memref<1x20xf32, #tpu.memory_space<vmem>>, %arg10: memref<20x40xbf16, #tpu.memory_space<vmem>>, %arg11: memref<1x40xf32, #tpu.memory_space<vmem>>, %arg12: memref<40x40xbf16, #tpu.memory_space<vmem>>, %arg13: memref<1x40xf32, #tpu.memory_space<vmem>>, %arg14: memref<40x32xbf16, #tpu.memory_space<vmem>>, %arg15: memref<1x32xf32, #tpu.memory_space<vmem>>, %arg16: memref<32x16xbf16, #tpu.memory_space<vmem>>, %arg17: memref<1x16xf32, #tpu.memory_space<vmem>>, %arg18: memref<1x16xf32, #tpu.memory_space<vmem>>, %arg19: memref<1x16xf32, #tpu.memory_space<vmem>>, %arg20: memref<16x2xbf16, #tpu.memory_space<vmem>>, %arg21: memref<1x2xf32, #tpu.memory_space<vmem>>, %arg22: memref<4x1x2xf32, #tpu.memory_space<vmem>>, %arg23: memref<4x16x40xf32, #tpu.memory_space<vmem>>, %arg24: memref<4x1x16xf32, #tpu.memory_space<vmem>>) attributes {dimension_semantics = [#tpu.dimension_semantics<parallel>], iteration_bounds = array<i64: 2>, scalar_prefetch = 0 : i64, scratch_operands = 0 : i64, tpu.core_type = #tpu.core_type<tc>, window_params = [{transform_indices = @transform_0, window_bounds = array<i64: 4, 16, 16, 16>}, {transform_indices = @transform_1, window_bounds = array<i64: 4, 16, 16>}, {transform_indices = @transform_2, window_bounds = array<i64: 4, 16, 8>}, {transform_indices = @transform_3, window_bounds = array<i64: 4, 16>}, {transform_indices = @transform_4, window_bounds = array<i64: 4, 5>}, {pipeline_mode = #tpu.pipeline_mode<synchronous>, transform_indices = @transform_5, window_bounds = array<i64: 8, 20>}, {pipeline_mode = #tpu.pipeline_mode<synchronous>, transform_indices = @transform_6, window_bounds = array<i64: 1, 20>}, {pipeline_mode = #tpu.pipeline_mode<synchronous>, transform_indices = @transform_7, window_bounds = array<i64: 20, 20>}, {pipeline_mode = #tpu.pipeline_mode<synchronous>, transform_indices = @transform_8, window_bounds = array<i64: 1, 20>}, {pipeline_mode = #tpu.pipeline_mode<synchronous>, transform_indices = @transform_9, window_bounds = array<i64: 20, 40>}, {pipeline_mode = #tpu.pipeline_mode<synchronous>, transform_indices = @transform_10, window_bounds = array<i64: 1, 40>}, {pipeline_mode = #tpu.pipeline_mode<synchronous>, transform_indices = @transform_11, window_bounds = array<i64: 40, 40>}, {pipeline_mode = #tpu.pipeline_mode<synchronous>, transform_indices = @transform_12, window_bounds = array<i64: 1, 40>}, {pipeline_mode = #tpu.pipeline_mode<synchronous>, transform_indices = @transform_13, window_bounds = array<i64: 40, 32>}, {pipeline_mode = #tpu.pipeline_mode<synchronous>, transform_indices = @transform_14, window_bounds = array<i64: 1, 32>}, {pipeline_mode = #tpu.pipeline_mode<synchronous>, transform_indices = @transform_15, window_bounds = array<i64: 32, 16>}, {pipeline_mode = #tpu.pipeline_mode<synchronous>, transform_indices = @transform_16, window_bounds = array<i64: 1, 16>}, {pipeline_mode = #tpu.pipeline_mode<synchronous>, transform_indices = @transform_17, window_bounds = array<i64: 1, 16>}, {pipeline_mode = #tpu.pipeline_mode<synchronous>, transform_indices = @transform_18, window_bounds = array<i64: 1, 16>}, {pipeline_mode = #tpu.pipeline_mode<synchronous>, transform_indices = @transform_19, window_bounds = array<i64: 16, 2>}, {pipeline_mode = #tpu.pipeline_mode<synchronous>, transform_indices = @transform_20, window_bounds = array<i64: 1, 2>}, {transform_indices = @transform_21, window_bounds = array<i64: 4, 1, 2>}, {transform_indices = @transform_22, window_bounds = array<i64: 4, 16, 40>}, {transform_indices = @transform_23, window_bounds = array<i64: 4, 1, 16>}]} {
    %c0 = arith.constant 0 : index
    %c0_0 = arith.constant 0 : index
    %c0_1 = arith.constant 0 : index
    %c0_2 = arith.constant 0 : index
    %0 = vector.load %arg1[%c0, %c0_0, %c0_1, %c0_2] : memref<4x16x16x16xf32, #tpu.memory_space<vmem>>, vector<4x16x16x16xf32>
    %c0_3 = arith.constant 0 : index
    %c0_4 = arith.constant 0 : index
    %c0_5 = arith.constant 0 : index
    %1 = vector.load %arg2[%c0_3, %c0_4, %c0_5] : memref<4x16x16xf32, #tpu.memory_space<vmem>>, vector<4x16x16xf32>
    %cst = arith.constant 0.000000e+00 : f32
    %2 = vector.broadcast %cst : f32 to vector<4x16x16xf32>
    %3 = arith.cmpf ogt, %1, %2 : vector<4x16x16xf32>
    %cst_6 = arith.constant 0.000000e+00 : f32
    %cst_7 = arith.constant -1.000000e+09 : f32
    %4 = vector.broadcast %cst_6 : f32 to vector<4x16x16xf32>
    %5 = vector.broadcast %cst_7 : f32 to vector<4x16x16xf32>
    %6 = arith.select %3, %4, %5 : vector<4x16x16xi1>, vector<4x16x16xf32>
    %c0_8 = arith.constant 0 : index
    %c0_9 = arith.constant 0 : index
    %c0_10 = arith.constant 0 : index
    %7 = vector.load %arg3[%c0_8, %c0_9, %c0_10] : memref<4x16x8xf32, #tpu.memory_space<vmem>>, vector<4x16x8xf32>
    %8 = vector.shape_cast %7 : vector<4x16x8xf32> to vector<64x8xf32>
    %9 = arith.truncf %8 : vector<64x8xf32> to vector<64x8xbf16>
    %c0_11 = arith.constant 0 : index
    %c0_12 = arith.constant 0 : index
    %10 = vector.load %arg6[%c0_11, %c0_12] : memref<8x20xbf16, #tpu.memory_space<vmem>>, vector<8x20xbf16>
    %cst_13 = arith.constant dense<0.000000e+00> : vector<64x20xf32>
    %11 = tpu.matmul %9, %10, %cst_13 {dimension_numbers = #tpu.dot_dimension_numbers<[1], [0], [0], [1], [0, 0, 1, 1], [], []>} : vector<64x8xbf16>, vector<8x20xbf16>, vector<64x20xf32> -> vector<64x20xf32>
    %12 = vector.shape_cast %11 : vector<64x20xf32> to vector<4x16x20xf32>
    %c0_14 = arith.constant 0 : index
    %c0_15 = arith.constant 0 : index
    %13 = memref.load %arg4[%c0_14, %c0_15] : memref<4x16xf32, #tpu.memory_space<smem>>
    %14 = vector.extract_strided_slice %0 {offsets = [0, 0, 0, 0], sizes = [4, 1, 16, 16], strides = [1, 1, 1, 1]} : vector<4x16x16x16xf32> to vector<4x1x16x16xf32>
    %15 = vector.shape_cast %14 : vector<4x1x16x16xf32> to vector<4x16x16xf32>
    %16 = vector.broadcast %13 : f32 to vector<4x16x16xf32>
    %17 = arith.mulf %16, %15 : vector<4x16x16xf32>
    %c0_16 = arith.constant 0 : index
    %c1 = arith.constant 1 : index
    %18 = memref.load %arg4[%c0_16, %c1] : memref<4x16xf32, #tpu.memory_space<smem>>
    %19 = vector.extract_strided_slice %0 {offsets = [0, 1, 0, 0], sizes = [4, 1, 16, 16], strides = [1, 1, 1, 1]} : vector<4x16x16x16xf32> to vector<4x1x16x16xf32>
    %20 = vector.shape_cast %19 : vector<4x1x16x16xf32> to vector<4x16x16xf32>
    %21 = vector.broadcast %18 : f32 to vector<4x16x16xf32>
    %22 = arith.mulf %21, %20 : vector<4x16x16xf32>
    %23 = arith.addf %17, %22 : vector<4x16x16xf32>
    %c0_17 = arith.constant 0 : index
    %c2 = arith.constant 2 : index
    %24 = memref.load %arg4[%c0_17, %c2] : memref<4x16xf32, #tpu.memory_space<smem>>
    %25 = vector.extract_strided_slice %0 {offsets = [0, 2, 0, 0], sizes = [4, 1, 16, 16], strides = [1, 1, 1, 1]} : vector<4x16x16x16xf32> to vector<4x1x16x16xf32>
    %26 = vector.shape_cast %25 : vector<4x1x16x16xf32> to vector<4x16x16xf32>
    %27 = vector.broadcast %24 : f32 to vector<4x16x16xf32>
    %28 = arith.mulf %27, %26 : vector<4x16x16xf32>
    %29 = arith.addf %23, %28 : vector<4x16x16xf32>
    %c0_18 = arith.constant 0 : index
    %c3 = arith.constant 3 : index
    %30 = memref.load %arg4[%c0_18, %c3] : memref<4x16xf32, #tpu.memory_space<smem>>
    %31 = vector.extract_strided_slice %0 {offsets = [0, 3, 0, 0], sizes = [4, 1, 16, 16], strides = [1, 1, 1, 1]} : vector<4x16x16x16xf32> to vector<4x1x16x16xf32>
    %32 = vector.shape_cast %31 : vector<4x1x16x16xf32> to vector<4x16x16xf32>
    %33 = vector.broadcast %30 : f32 to vector<4x16x16xf32>
    %34 = arith.mulf %33, %32 : vector<4x16x16xf32>
    %35 = arith.addf %29, %34 : vector<4x16x16xf32>
    %c0_19 = arith.constant 0 : index
    %c4 = arith.constant 4 : index
    %36 = memref.load %arg4[%c0_19, %c4] : memref<4x16xf32, #tpu.memory_space<smem>>
    %37 = vector.extract_strided_slice %0 {offsets = [0, 4, 0, 0], sizes = [4, 1, 16, 16], strides = [1, 1, 1, 1]} : vector<4x16x16x16xf32> to vector<4x1x16x16xf32>
    %38 = vector.shape_cast %37 : vector<4x1x16x16xf32> to vector<4x16x16xf32>
    %39 = vector.broadcast %36 : f32 to vector<4x16x16xf32>
    %40 = arith.mulf %39, %38 : vector<4x16x16xf32>
    %41 = arith.addf %35, %40 : vector<4x16x16xf32>
    %c0_20 = arith.constant 0 : index
    %c5 = arith.constant 5 : index
    %42 = memref.load %arg4[%c0_20, %c5] : memref<4x16xf32, #tpu.memory_space<smem>>
    %43 = vector.extract_strided_slice %0 {offsets = [0, 5, 0, 0], sizes = [4, 1, 16, 16], strides = [1, 1, 1, 1]} : vector<4x16x16x16xf32> to vector<4x1x16x16xf32>
    %44 = vector.shape_cast %43 : vector<4x1x16x16xf32> to vector<4x16x16xf32>
    %45 = vector.broadcast %42 : f32 to vector<4x16x16xf32>
    %46 = arith.mulf %45, %44 : vector<4x16x16xf32>
    %47 = arith.addf %41, %46 : vector<4x16x16xf32>
    %c0_21 = arith.constant 0 : index
    %c0_22 = arith.constant 0 : index
    %48 = memref.load %arg5[%c0_21, %c0_22] : memref<4x5xf32, #tpu.memory_space<smem>>
    %49 = vector.broadcast %48 : f32 to vector<4x16x16xf32>
    %50 = arith.addf %47, %49 : vector<4x16x16xf32>
    %51 = arith.addf %50, %6 : vector<4x16x16xf32>
    %cst_23 = arith.constant dense<0xFF800000> : vector<4x16xf32>
    %52 = vector.multi_reduction <maximumf>, %51, %cst_23 [2] : vector<4x16x16xf32> to vector<4x16xf32>
    %53 = vector.shape_cast %52 : vector<4x16xf32> to vector<4x16x1xf32>
    %54 = vector.broadcast %53 : vector<4x16x1xf32> to vector<4x16x16xf32>
    %55 = arith.subf %51, %54 : vector<4x16x16xf32>
    %56 = math.exp %55 : vector<4x16x16xf32>
    %cst_24 = arith.constant dense<0.000000e+00> : vector<4x16xf32>
    %57 = vector.multi_reduction <add>, %56, %cst_24 [2] : vector<4x16x16xf32> to vector<4x16xf32>
    %58 = vector.shape_cast %57 : vector<4x16xf32> to vector<4x16x1xf32>
    %59 = tpu.reciprocal %58 {approx = true} : vector<4x16x1xf32> -> vector<4x16x1xf32>
    %60 = vector.broadcast %59 : vector<4x16x1xf32> to vector<4x16x16xf32>
    %61 = arith.mulf %56, %60 : vector<4x16x16xf32>
    %62 = arith.truncf %61 : vector<4x16x16xf32> to vector<4x16x16xbf16>
    %63 = vector.extract_strided_slice %12 {offsets = [0, 0, 0], sizes = [4, 16, 4], strides = [1, 1, 1]} : vector<4x16x20xf32> to vector<4x16x4xf32>
    %64 = arith.truncf %63 : vector<4x16x4xf32> to vector<4x16x4xbf16>
    "tpu.trace_start"() <{level = 10 : i32, message = "bij,bjm->bim"}> : () -> ()
    %cst_25 = arith.constant dense<0.000000e+00> : vector<4x16x4xf32>
    %65 = tpu.matmul %62, %64, %cst_25 {dimension_numbers = #tpu.dot_dimension_numbers<[2], [1], [1], [2], [0, 0, 0, 1, 1, 2], [0], [0]>} : vector<4x16x16xbf16>, vector<4x16x4xbf16>, vector<4x16x4xf32> -> vector<4x16x4xf32>
    "tpu.trace_stop"() : () -> ()
    %c0_26 = arith.constant 0 : index
    %c6 = arith.constant 6 : index
    %66 = memref.load %arg4[%c0_26, %c6] : memref<4x16xf32, #tpu.memory_space<smem>>
    %67 = vector.extract_strided_slice %0 {offsets = [0, 6, 0, 0], sizes = [4, 1, 16, 16], strides = [1, 1, 1, 1]} : vector<4x16x16x16xf32> to vector<4x1x16x16xf32>
    %68 = vector.shape_cast %67 : vector<4x1x16x16xf32> to vector<4x16x16xf32>
    %69 = vector.broadcast %66 : f32 to vector<4x16x16xf32>
    %70 = arith.mulf %69, %68 : vector<4x16x16xf32>
    %c0_27 = arith.constant 0 : index
    %c7 = arith.constant 7 : index
    %71 = memref.load %arg4[%c0_27, %c7] : memref<4x16xf32, #tpu.memory_space<smem>>
    %72 = vector.extract_strided_slice %0 {offsets = [0, 7, 0, 0], sizes = [4, 1, 16, 16], strides = [1, 1, 1, 1]} : vector<4x16x16x16xf32> to vector<4x1x16x16xf32>
    %73 = vector.shape_cast %72 : vector<4x1x16x16xf32> to vector<4x16x16xf32>
    %74 = vector.broadcast %71 : f32 to vector<4x16x16xf32>
    %75 = arith.mulf %74, %73 : vector<4x16x16xf32>
    %76 = arith.addf %70, %75 : vector<4x16x16xf32>
    %c0_28 = arith.constant 0 : index
    %c8 = arith.constant 8 : index
    %77 = memref.load %arg4[%c0_28, %c8] : memref<4x16xf32, #tpu.memory_space<smem>>
    %78 = vector.extract_strided_slice %0 {offsets = [0, 8, 0, 0], sizes = [4, 1, 16, 16], strides = [1, 1, 1, 1]} : vector<4x16x16x16xf32> to vector<4x1x16x16xf32>
    %79 = vector.shape_cast %78 : vector<4x1x16x16xf32> to vector<4x16x16xf32>
    %80 = vector.broadcast %77 : f32 to vector<4x16x16xf32>
    %81 = arith.mulf %80, %79 : vector<4x16x16xf32>
    %82 = arith.addf %76, %81 : vector<4x16x16xf32>
    %c0_29 = arith.constant 0 : index
    %c9 = arith.constant 9 : index
    %83 = memref.load %arg4[%c0_29, %c9] : memref<4x16xf32, #tpu.memory_space<smem>>
    %84 = vector.extract_strided_slice %0 {offsets = [0, 9, 0, 0], sizes = [4, 1, 16, 16], strides = [1, 1, 1, 1]} : vector<4x16x16x16xf32> to vector<4x1x16x16xf32>
    %85 = vector.shape_cast %84 : vector<4x1x16x16xf32> to vector<4x16x16xf32>
    %86 = vector.broadcast %83 : f32 to vector<4x16x16xf32>
    %87 = arith.mulf %86, %85 : vector<4x16x16xf32>
    %88 = arith.addf %82, %87 : vector<4x16x16xf32>
    %c0_30 = arith.constant 0 : index
    %c1_31 = arith.constant 1 : index
    %89 = memref.load %arg5[%c0_30, %c1_31] : memref<4x5xf32, #tpu.memory_space<smem>>
    %90 = vector.broadcast %89 : f32 to vector<4x16x16xf32>
    %91 = arith.addf %88, %90 : vector<4x16x16xf32>
    %92 = arith.addf %91, %6 : vector<4x16x16xf32>
    %cst_32 = arith.constant dense<0xFF800000> : vector<4x16xf32>
    %93 = vector.multi_reduction <maximumf>, %92, %cst_32 [2] : vector<4x16x16xf32> to vector<4x16xf32>
    %94 = vector.shape_cast %93 : vector<4x16xf32> to vector<4x16x1xf32>
    %95 = vector.broadcast %94 : vector<4x16x1xf32> to vector<4x16x16xf32>
    %96 = arith.subf %92, %95 : vector<4x16x16xf32>
    %97 = math.exp %96 : vector<4x16x16xf32>
    %cst_33 = arith.constant dense<0.000000e+00> : vector<4x16xf32>
    %98 = vector.multi_reduction <add>, %97, %cst_33 [2] : vector<4x16x16xf32> to vector<4x16xf32>
    %99 = vector.shape_cast %98 : vector<4x16xf32> to vector<4x16x1xf32>
    %100 = tpu.reciprocal %99 {approx = true} : vector<4x16x1xf32> -> vector<4x16x1xf32>
    %101 = vector.broadcast %100 : vector<4x16x1xf32> to vector<4x16x16xf32>
    %102 = arith.mulf %97, %101 : vector<4x16x16xf32>
    %103 = arith.truncf %102 : vector<4x16x16xf32> to vector<4x16x16xbf16>
    %104 = vector.extract_strided_slice %12 {offsets = [0, 0, 4], sizes = [4, 16, 4], strides = [1, 1, 1]} : vector<4x16x20xf32> to vector<4x16x4xf32>
    %105 = arith.truncf %104 : vector<4x16x4xf32> to vector<4x16x4xbf16>
    "tpu.trace_start"() <{level = 10 : i32, message = "bij,bjm->bim"}> : () -> ()
    %cst_34 = arith.constant dense<0.000000e+00> : vector<4x16x4xf32>
    %106 = tpu.matmul %103, %105, %cst_34 {dimension_numbers = #tpu.dot_dimension_numbers<[2], [1], [1], [2], [0, 0, 0, 1, 1, 2], [0], [0]>} : vector<4x16x16xbf16>, vector<4x16x4xbf16>, vector<4x16x4xf32> -> vector<4x16x4xf32>
    "tpu.trace_stop"() : () -> ()
    %c0_35 = arith.constant 0 : index
    %c10 = arith.constant 10 : index
    %107 = memref.load %arg4[%c0_35, %c10] : memref<4x16xf32, #tpu.memory_space<smem>>
    %108 = vector.extract_strided_slice %0 {offsets = [0, 10, 0, 0], sizes = [4, 1, 16, 16], strides = [1, 1, 1, 1]} : vector<4x16x16x16xf32> to vector<4x1x16x16xf32>
    %109 = vector.shape_cast %108 : vector<4x1x16x16xf32> to vector<4x16x16xf32>
    %110 = vector.broadcast %107 : f32 to vector<4x16x16xf32>
    %111 = arith.mulf %110, %109 : vector<4x16x16xf32>
    %c0_36 = arith.constant 0 : index
    %c11 = arith.constant 11 : index
    %112 = memref.load %arg4[%c0_36, %c11] : memref<4x16xf32, #tpu.memory_space<smem>>
    %113 = vector.extract_strided_slice %0 {offsets = [0, 11, 0, 0], sizes = [4, 1, 16, 16], strides = [1, 1, 1, 1]} : vector<4x16x16x16xf32> to vector<4x1x16x16xf32>
    %114 = vector.shape_cast %113 : vector<4x1x16x16xf32> to vector<4x16x16xf32>
    %115 = vector.broadcast %112 : f32 to vector<4x16x16xf32>
    %116 = arith.mulf %115, %114 : vector<4x16x16xf32>
    %117 = arith.addf %111, %116 : vector<4x16x16xf32>
    %c0_37 = arith.constant 0 : index
    %c2_38 = arith.constant 2 : index
    %118 = memref.load %arg5[%c0_37, %c2_38] : memref<4x5xf32, #tpu.memory_space<smem>>
    %119 = vector.broadcast %118 : f32 to vector<4x16x16xf32>
    %120 = arith.addf %117, %119 : vector<4x16x16xf32>
    %121 = arith.addf %120, %6 : vector<4x16x16xf32>
    %cst_39 = arith.constant dense<0xFF800000> : vector<4x16xf32>
    %122 = vector.multi_reduction <maximumf>, %121, %cst_39 [2] : vector<4x16x16xf32> to vector<4x16xf32>
    %123 = vector.shape_cast %122 : vector<4x16xf32> to vector<4x16x1xf32>
    %124 = vector.broadcast %123 : vector<4x16x1xf32> to vector<4x16x16xf32>
    %125 = arith.subf %121, %124 : vector<4x16x16xf32>
    %126 = math.exp %125 : vector<4x16x16xf32>
    %cst_40 = arith.constant dense<0.000000e+00> : vector<4x16xf32>
    %127 = vector.multi_reduction <add>, %126, %cst_40 [2] : vector<4x16x16xf32> to vector<4x16xf32>
    %128 = vector.shape_cast %127 : vector<4x16xf32> to vector<4x16x1xf32>
    %129 = tpu.reciprocal %128 {approx = true} : vector<4x16x1xf32> -> vector<4x16x1xf32>
    %130 = vector.broadcast %129 : vector<4x16x1xf32> to vector<4x16x16xf32>
    %131 = arith.mulf %126, %130 : vector<4x16x16xf32>
    %132 = arith.truncf %131 : vector<4x16x16xf32> to vector<4x16x16xbf16>
    %133 = vector.extract_strided_slice %12 {offsets = [0, 0, 8], sizes = [4, 16, 4], strides = [1, 1, 1]} : vector<4x16x20xf32> to vector<4x16x4xf32>
    %134 = arith.truncf %133 : vector<4x16x4xf32> to vector<4x16x4xbf16>
    "tpu.trace_start"() <{level = 10 : i32, message = "bij,bjm->bim"}> : () -> ()
    %cst_41 = arith.constant dense<0.000000e+00> : vector<4x16x4xf32>
    %135 = tpu.matmul %132, %134, %cst_41 {dimension_numbers = #tpu.dot_dimension_numbers<[2], [1], [1], [2], [0, 0, 0, 1, 1, 2], [0], [0]>} : vector<4x16x16xbf16>, vector<4x16x4xbf16>, vector<4x16x4xf32> -> vector<4x16x4xf32>
    "tpu.trace_stop"() : () -> ()
    %c0_42 = arith.constant 0 : index
    %c12 = arith.constant 12 : index
    %136 = memref.load %arg4[%c0_42, %c12] : memref<4x16xf32, #tpu.memory_space<smem>>
    %137 = vector.extract_strided_slice %0 {offsets = [0, 12, 0, 0], sizes = [4, 1, 16, 16], strides = [1, 1, 1, 1]} : vector<4x16x16x16xf32> to vector<4x1x16x16xf32>
    %138 = vector.shape_cast %137 : vector<4x1x16x16xf32> to vector<4x16x16xf32>
    %139 = vector.broadcast %136 : f32 to vector<4x16x16xf32>
    %140 = arith.mulf %139, %138 : vector<4x16x16xf32>
    %c0_43 = arith.constant 0 : index
    %c13 = arith.constant 13 : index
    %141 = memref.load %arg4[%c0_43, %c13] : memref<4x16xf32, #tpu.memory_space<smem>>
    %142 = vector.extract_strided_slice %0 {offsets = [0, 13, 0, 0], sizes = [4, 1, 16, 16], strides = [1, 1, 1, 1]} : vector<4x16x16x16xf32> to vector<4x1x16x16xf32>
    %143 = vector.shape_cast %142 : vector<4x1x16x16xf32> to vector<4x16x16xf32>
    %144 = vector.broadcast %141 : f32 to vector<4x16x16xf32>
    %145 = arith.mulf %144, %143 : vector<4x16x16xf32>
    %146 = arith.addf %140, %145 : vector<4x16x16xf32>
    %c0_44 = arith.constant 0 : index
    %c3_45 = arith.constant 3 : index
    %147 = memref.load %arg5[%c0_44, %c3_45] : memref<4x5xf32, #tpu.memory_space<smem>>
    %148 = vector.broadcast %147 : f32 to vector<4x16x16xf32>
    %149 = arith.addf %146, %148 : vector<4x16x16xf32>
    %150 = arith.addf %149, %6 : vector<4x16x16xf32>
    %cst_46 = arith.constant dense<0xFF800000> : vector<4x16xf32>
    %151 = vector.multi_reduction <maximumf>, %150, %cst_46 [2] : vector<4x16x16xf32> to vector<4x16xf32>
    %152 = vector.shape_cast %151 : vector<4x16xf32> to vector<4x16x1xf32>
    %153 = vector.broadcast %152 : vector<4x16x1xf32> to vector<4x16x16xf32>
    %154 = arith.subf %150, %153 : vector<4x16x16xf32>
    %155 = math.exp %154 : vector<4x16x16xf32>
    %cst_47 = arith.constant dense<0.000000e+00> : vector<4x16xf32>
    %156 = vector.multi_reduction <add>, %155, %cst_47 [2] : vector<4x16x16xf32> to vector<4x16xf32>
    %157 = vector.shape_cast %156 : vector<4x16xf32> to vector<4x16x1xf32>
    %158 = tpu.reciprocal %157 {approx = true} : vector<4x16x1xf32> -> vector<4x16x1xf32>
    %159 = vector.broadcast %158 : vector<4x16x1xf32> to vector<4x16x16xf32>
    %160 = arith.mulf %155, %159 : vector<4x16x16xf32>
    %161 = arith.truncf %160 : vector<4x16x16xf32> to vector<4x16x16xbf16>
    %162 = vector.extract_strided_slice %12 {offsets = [0, 0, 12], sizes = [4, 16, 4], strides = [1, 1, 1]} : vector<4x16x20xf32> to vector<4x16x4xf32>
    %163 = arith.truncf %162 : vector<4x16x4xf32> to vector<4x16x4xbf16>
    "tpu.trace_start"() <{level = 10 : i32, message = "bij,bjm->bim"}> : () -> ()
    %cst_48 = arith.constant dense<0.000000e+00> : vector<4x16x4xf32>
    %164 = tpu.matmul %161, %163, %cst_48 {dimension_numbers = #tpu.dot_dimension_numbers<[2], [1], [1], [2], [0, 0, 0, 1, 1, 2], [0], [0]>} : vector<4x16x16xbf16>, vector<4x16x4xbf16>, vector<4x16x4xf32> -> vector<4x16x4xf32>
    "tpu.trace_stop"() : () -> ()
    %c0_49 = arith.constant 0 : index
    %c14 = arith.constant 14 : index
    %165 = memref.load %arg4[%c0_49, %c14] : memref<4x16xf32, #tpu.memory_space<smem>>
    %166 = vector.extract_strided_slice %0 {offsets = [0, 14, 0, 0], sizes = [4, 1, 16, 16], strides = [1, 1, 1, 1]} : vector<4x16x16x16xf32> to vector<4x1x16x16xf32>
    %167 = vector.shape_cast %166 : vector<4x1x16x16xf32> to vector<4x16x16xf32>
    %168 = vector.broadcast %165 : f32 to vector<4x16x16xf32>
    %169 = arith.mulf %168, %167 : vector<4x16x16xf32>
    %c0_50 = arith.constant 0 : index
    %c15 = arith.constant 15 : index
    %170 = memref.load %arg4[%c0_50, %c15] : memref<4x16xf32, #tpu.memory_space<smem>>
    %171 = vector.extract_strided_slice %0 {offsets = [0, 15, 0, 0], sizes = [4, 1, 16, 16], strides = [1, 1, 1, 1]} : vector<4x16x16x16xf32> to vector<4x1x16x16xf32>
    %172 = vector.shape_cast %171 : vector<4x1x16x16xf32> to vector<4x16x16xf32>
    %173 = vector.broadcast %170 : f32 to vector<4x16x16xf32>
    %174 = arith.mulf %173, %172 : vector<4x16x16xf32>
    %175 = arith.addf %169, %174 : vector<4x16x16xf32>
    %c0_51 = arith.constant 0 : index
    %c4_52 = arith.constant 4 : index
    %176 = memref.load %arg5[%c0_51, %c4_52] : memref<4x5xf32, #tpu.memory_space<smem>>
    %177 = vector.broadcast %176 : f32 to vector<4x16x16xf32>
    %178 = arith.addf %175, %177 : vector<4x16x16xf32>
    %179 = arith.addf %178, %6 : vector<4x16x16xf32>
    %cst_53 = arith.constant dense<0xFF800000> : vector<4x16xf32>
    %180 = vector.multi_reduction <maximumf>, %179, %cst_53 [2] : vector<4x16x16xf32> to vector<4x16xf32>
    %181 = vector.shape_cast %180 : vector<4x16xf32> to vector<4x16x1xf32>
    %182 = vector.broadcast %181 : vector<4x16x1xf32> to vector<4x16x16xf32>
    %183 = arith.subf %179, %182 : vector<4x16x16xf32>
    %184 = math.exp %183 : vector<4x16x16xf32>
    %cst_54 = arith.constant dense<0.000000e+00> : vector<4x16xf32>
    %185 = vector.multi_reduction <add>, %184, %cst_54 [2] : vector<4x16x16xf32> to vector<4x16xf32>
    %186 = vector.shape_cast %185 : vector<4x16xf32> to vector<4x16x1xf32>
    %187 = tpu.reciprocal %186 {approx = true} : vector<4x16x1xf32> -> vector<4x16x1xf32>
    %188 = vector.broadcast %187 : vector<4x16x1xf32> to vector<4x16x16xf32>
    %189 = arith.mulf %184, %188 : vector<4x16x16xf32>
    %190 = arith.truncf %189 : vector<4x16x16xf32> to vector<4x16x16xbf16>
    %191 = vector.extract_strided_slice %12 {offsets = [0, 0, 16], sizes = [4, 16, 4], strides = [1, 1, 1]} : vector<4x16x20xf32> to vector<4x16x4xf32>
    %192 = arith.truncf %191 : vector<4x16x4xf32> to vector<4x16x4xbf16>
    "tpu.trace_start"() <{level = 10 : i32, message = "bij,bjm->bim"}> : () -> ()
    %cst_55 = arith.constant dense<0.000000e+00> : vector<4x16x4xf32>
    %193 = tpu.matmul %190, %192, %cst_55 {dimension_numbers = #tpu.dot_dimension_numbers<[2], [1], [1], [2], [0, 0, 0, 1, 1, 2], [0], [0]>} : vector<4x16x16xbf16>, vector<4x16x4xbf16>, vector<4x16x4xf32> -> vector<4x16x4xf32>
    "tpu.trace_stop"() : () -> ()
    %194 = tpu.concatenate %65, %106, %135, %164, %193 in 2 : vector<4x16x4xf32>, vector<4x16x4xf32>, vector<4x16x4xf32>, vector<4x16x4xf32>, vector<4x16x4xf32> -> vector<4x16x20xf32>
    %c0_56 = arith.constant 0 : index
    %c0_57 = arith.constant 0 : index
    %195 = vector.load %arg7[%c0_56, %c0_57] : memref<1x20xf32, #tpu.memory_space<vmem>>, vector<1x20xf32>
    %196 = vector.shape_cast %195 : vector<1x20xf32> to vector<1x1x20xf32>
    %197 = vector.broadcast %196 : vector<1x1x20xf32> to vector<4x16x20xf32>
    %198 = arith.addf %194, %197 : vector<4x16x20xf32>
    %cst_58 = arith.constant 0.000000e+00 : f32
    %199 = vector.broadcast %cst_58 : f32 to vector<4x16x20xf32>
    %200 = arith.maximumf %198, %199 : vector<4x16x20xf32>
    %201 = vector.shape_cast %200 : vector<4x16x20xf32> to vector<64x20xf32>
    %202 = arith.truncf %201 : vector<64x20xf32> to vector<64x20xbf16>
    %c0_59 = arith.constant 0 : index
    %c0_60 = arith.constant 0 : index
    %203 = vector.load %arg8[%c0_59, %c0_60] : memref<20x20xbf16, #tpu.memory_space<vmem>>, vector<20x20xbf16>
    %cst_61 = arith.constant dense<0.000000e+00> : vector<64x20xf32>
    %204 = tpu.matmul %202, %203, %cst_61 {dimension_numbers = #tpu.dot_dimension_numbers<[1], [0], [0], [1], [0, 0, 1, 1], [], []>} : vector<64x20xbf16>, vector<20x20xbf16>, vector<64x20xf32> -> vector<64x20xf32>
    %205 = vector.shape_cast %204 : vector<64x20xf32> to vector<4x16x20xf32>
    %c1_62 = arith.constant 1 : index
    %c0_63 = arith.constant 0 : index
    %206 = memref.load %arg4[%c1_62, %c0_63] : memref<4x16xf32, #tpu.memory_space<smem>>
    %207 = vector.extract_strided_slice %0 {offsets = [0, 0, 0, 0], sizes = [4, 1, 16, 16], strides = [1, 1, 1, 1]} : vector<4x16x16x16xf32> to vector<4x1x16x16xf32>
    %208 = vector.shape_cast %207 : vector<4x1x16x16xf32> to vector<4x16x16xf32>
    %209 = vector.broadcast %206 : f32 to vector<4x16x16xf32>
    %210 = arith.mulf %209, %208 : vector<4x16x16xf32>
    %c1_64 = arith.constant 1 : index
    %c1_65 = arith.constant 1 : index
    %211 = memref.load %arg4[%c1_64, %c1_65] : memref<4x16xf32, #tpu.memory_space<smem>>
    %212 = vector.extract_strided_slice %0 {offsets = [0, 1, 0, 0], sizes = [4, 1, 16, 16], strides = [1, 1, 1, 1]} : vector<4x16x16x16xf32> to vector<4x1x16x16xf32>
    %213 = vector.shape_cast %212 : vector<4x1x16x16xf32> to vector<4x16x16xf32>
    %214 = vector.broadcast %211 : f32 to vector<4x16x16xf32>
    %215 = arith.mulf %214, %213 : vector<4x16x16xf32>
    %216 = arith.addf %210, %215 : vector<4x16x16xf32>
    %c1_66 = arith.constant 1 : index
    %c2_67 = arith.constant 2 : index
    %217 = memref.load %arg4[%c1_66, %c2_67] : memref<4x16xf32, #tpu.memory_space<smem>>
    %218 = vector.extract_strided_slice %0 {offsets = [0, 2, 0, 0], sizes = [4, 1, 16, 16], strides = [1, 1, 1, 1]} : vector<4x16x16x16xf32> to vector<4x1x16x16xf32>
    %219 = vector.shape_cast %218 : vector<4x1x16x16xf32> to vector<4x16x16xf32>
    %220 = vector.broadcast %217 : f32 to vector<4x16x16xf32>
    %221 = arith.mulf %220, %219 : vector<4x16x16xf32>
    %222 = arith.addf %216, %221 : vector<4x16x16xf32>
    %c1_68 = arith.constant 1 : index
    %c3_69 = arith.constant 3 : index
    %223 = memref.load %arg4[%c1_68, %c3_69] : memref<4x16xf32, #tpu.memory_space<smem>>
    %224 = vector.extract_strided_slice %0 {offsets = [0, 3, 0, 0], sizes = [4, 1, 16, 16], strides = [1, 1, 1, 1]} : vector<4x16x16x16xf32> to vector<4x1x16x16xf32>
    %225 = vector.shape_cast %224 : vector<4x1x16x16xf32> to vector<4x16x16xf32>
    %226 = vector.broadcast %223 : f32 to vector<4x16x16xf32>
    %227 = arith.mulf %226, %225 : vector<4x16x16xf32>
    %228 = arith.addf %222, %227 : vector<4x16x16xf32>
    %c1_70 = arith.constant 1 : index
    %c4_71 = arith.constant 4 : index
    %229 = memref.load %arg4[%c1_70, %c4_71] : memref<4x16xf32, #tpu.memory_space<smem>>
    %230 = vector.extract_strided_slice %0 {offsets = [0, 4, 0, 0], sizes = [4, 1, 16, 16], strides = [1, 1, 1, 1]} : vector<4x16x16x16xf32> to vector<4x1x16x16xf32>
    %231 = vector.shape_cast %230 : vector<4x1x16x16xf32> to vector<4x16x16xf32>
    %232 = vector.broadcast %229 : f32 to vector<4x16x16xf32>
    %233 = arith.mulf %232, %231 : vector<4x16x16xf32>
    %234 = arith.addf %228, %233 : vector<4x16x16xf32>
    %c1_72 = arith.constant 1 : index
    %c5_73 = arith.constant 5 : index
    %235 = memref.load %arg4[%c1_72, %c5_73] : memref<4x16xf32, #tpu.memory_space<smem>>
    %236 = vector.extract_strided_slice %0 {offsets = [0, 5, 0, 0], sizes = [4, 1, 16, 16], strides = [1, 1, 1, 1]} : vector<4x16x16x16xf32> to vector<4x1x16x16xf32>
    %237 = vector.shape_cast %236 : vector<4x1x16x16xf32> to vector<4x16x16xf32>
    %238 = vector.broadcast %235 : f32 to vector<4x16x16xf32>
    %239 = arith.mulf %238, %237 : vector<4x16x16xf32>
    %240 = arith.addf %234, %239 : vector<4x16x16xf32>
    %c1_74 = arith.constant 1 : index
    %c0_75 = arith.constant 0 : index
    %241 = memref.load %arg5[%c1_74, %c0_75] : memref<4x5xf32, #tpu.memory_space<smem>>
    %242 = vector.broadcast %241 : f32 to vector<4x16x16xf32>
    %243 = arith.addf %240, %242 : vector<4x16x16xf32>
    %244 = arith.addf %243, %6 : vector<4x16x16xf32>
    %cst_76 = arith.constant dense<0xFF800000> : vector<4x16xf32>
    %245 = vector.multi_reduction <maximumf>, %244, %cst_76 [2] : vector<4x16x16xf32> to vector<4x16xf32>
    %246 = vector.shape_cast %245 : vector<4x16xf32> to vector<4x16x1xf32>
    %247 = vector.broadcast %246 : vector<4x16x1xf32> to vector<4x16x16xf32>
    %248 = arith.subf %244, %247 : vector<4x16x16xf32>
    %249 = math.exp %248 : vector<4x16x16xf32>
    %cst_77 = arith.constant dense<0.000000e+00> : vector<4x16xf32>
    %250 = vector.multi_reduction <add>, %249, %cst_77 [2] : vector<4x16x16xf32> to vector<4x16xf32>
    %251 = vector.shape_cast %250 : vector<4x16xf32> to vector<4x16x1xf32>
    %252 = tpu.reciprocal %251 {approx = true} : vector<4x16x1xf32> -> vector<4x16x1xf32>
    %253 = vector.broadcast %252 : vector<4x16x1xf32> to vector<4x16x16xf32>
    %254 = arith.mulf %249, %253 : vector<4x16x16xf32>
    %255 = arith.truncf %254 : vector<4x16x16xf32> to vector<4x16x16xbf16>
    %256 = vector.extract_strided_slice %205 {offsets = [0, 0, 0], sizes = [4, 16, 4], strides = [1, 1, 1]} : vector<4x16x20xf32> to vector<4x16x4xf32>
    %257 = arith.truncf %256 : vector<4x16x4xf32> to vector<4x16x4xbf16>
    "tpu.trace_start"() <{level = 10 : i32, message = "bij,bjm->bim"}> : () -> ()
    %cst_78 = arith.constant dense<0.000000e+00> : vector<4x16x4xf32>
    %258 = tpu.matmul %255, %257, %cst_78 {dimension_numbers = #tpu.dot_dimension_numbers<[2], [1], [1], [2], [0, 0, 0, 1, 1, 2], [0], [0]>} : vector<4x16x16xbf16>, vector<4x16x4xbf16>, vector<4x16x4xf32> -> vector<4x16x4xf32>
    "tpu.trace_stop"() : () -> ()
    %c1_79 = arith.constant 1 : index
    %c6_80 = arith.constant 6 : index
    %259 = memref.load %arg4[%c1_79, %c6_80] : memref<4x16xf32, #tpu.memory_space<smem>>
    %260 = vector.extract_strided_slice %0 {offsets = [0, 6, 0, 0], sizes = [4, 1, 16, 16], strides = [1, 1, 1, 1]} : vector<4x16x16x16xf32> to vector<4x1x16x16xf32>
    %261 = vector.shape_cast %260 : vector<4x1x16x16xf32> to vector<4x16x16xf32>
    %262 = vector.broadcast %259 : f32 to vector<4x16x16xf32>
    %263 = arith.mulf %262, %261 : vector<4x16x16xf32>
    %c1_81 = arith.constant 1 : index
    %c7_82 = arith.constant 7 : index
    %264 = memref.load %arg4[%c1_81, %c7_82] : memref<4x16xf32, #tpu.memory_space<smem>>
    %265 = vector.extract_strided_slice %0 {offsets = [0, 7, 0, 0], sizes = [4, 1, 16, 16], strides = [1, 1, 1, 1]} : vector<4x16x16x16xf32> to vector<4x1x16x16xf32>
    %266 = vector.shape_cast %265 : vector<4x1x16x16xf32> to vector<4x16x16xf32>
    %267 = vector.broadcast %264 : f32 to vector<4x16x16xf32>
    %268 = arith.mulf %267, %266 : vector<4x16x16xf32>
    %269 = arith.addf %263, %268 : vector<4x16x16xf32>
    %c1_83 = arith.constant 1 : index
    %c8_84 = arith.constant 8 : index
    %270 = memref.load %arg4[%c1_83, %c8_84] : memref<4x16xf32, #tpu.memory_space<smem>>
    %271 = vector.extract_strided_slice %0 {offsets = [0, 8, 0, 0], sizes = [4, 1, 16, 16], strides = [1, 1, 1, 1]} : vector<4x16x16x16xf32> to vector<4x1x16x16xf32>
    %272 = vector.shape_cast %271 : vector<4x1x16x16xf32> to vector<4x16x16xf32>
    %273 = vector.broadcast %270 : f32 to vector<4x16x16xf32>
    %274 = arith.mulf %273, %272 : vector<4x16x16xf32>
    %275 = arith.addf %269, %274 : vector<4x16x16xf32>
    %c1_85 = arith.constant 1 : index
    %c9_86 = arith.constant 9 : index
    %276 = memref.load %arg4[%c1_85, %c9_86] : memref<4x16xf32, #tpu.memory_space<smem>>
    %277 = vector.extract_strided_slice %0 {offsets = [0, 9, 0, 0], sizes = [4, 1, 16, 16], strides = [1, 1, 1, 1]} : vector<4x16x16x16xf32> to vector<4x1x16x16xf32>
    %278 = vector.shape_cast %277 : vector<4x1x16x16xf32> to vector<4x16x16xf32>
    %279 = vector.broadcast %276 : f32 to vector<4x16x16xf32>
    %280 = arith.mulf %279, %278 : vector<4x16x16xf32>
    %281 = arith.addf %275, %280 : vector<4x16x16xf32>
    %c1_87 = arith.constant 1 : index
    %c1_88 = arith.constant 1 : index
    %282 = memref.load %arg5[%c1_87, %c1_88] : memref<4x5xf32, #tpu.memory_space<smem>>
    %283 = vector.broadcast %282 : f32 to vector<4x16x16xf32>
    %284 = arith.addf %281, %283 : vector<4x16x16xf32>
    %285 = arith.addf %284, %6 : vector<4x16x16xf32>
    %cst_89 = arith.constant dense<0xFF800000> : vector<4x16xf32>
    %286 = vector.multi_reduction <maximumf>, %285, %cst_89 [2] : vector<4x16x16xf32> to vector<4x16xf32>
    %287 = vector.shape_cast %286 : vector<4x16xf32> to vector<4x16x1xf32>
    %288 = vector.broadcast %287 : vector<4x16x1xf32> to vector<4x16x16xf32>
    %289 = arith.subf %285, %288 : vector<4x16x16xf32>
    %290 = math.exp %289 : vector<4x16x16xf32>
    %cst_90 = arith.constant dense<0.000000e+00> : vector<4x16xf32>
    %291 = vector.multi_reduction <add>, %290, %cst_90 [2] : vector<4x16x16xf32> to vector<4x16xf32>
    %292 = vector.shape_cast %291 : vector<4x16xf32> to vector<4x16x1xf32>
    %293 = tpu.reciprocal %292 {approx = true} : vector<4x16x1xf32> -> vector<4x16x1xf32>
    %294 = vector.broadcast %293 : vector<4x16x1xf32> to vector<4x16x16xf32>
    %295 = arith.mulf %290, %294 : vector<4x16x16xf32>
    %296 = arith.truncf %295 : vector<4x16x16xf32> to vector<4x16x16xbf16>
    %297 = vector.extract_strided_slice %205 {offsets = [0, 0, 4], sizes = [4, 16, 4], strides = [1, 1, 1]} : vector<4x16x20xf32> to vector<4x16x4xf32>
    %298 = arith.truncf %297 : vector<4x16x4xf32> to vector<4x16x4xbf16>
    "tpu.trace_start"() <{level = 10 : i32, message = "bij,bjm->bim"}> : () -> ()
    %cst_91 = arith.constant dense<0.000000e+00> : vector<4x16x4xf32>
    %299 = tpu.matmul %296, %298, %cst_91 {dimension_numbers = #tpu.dot_dimension_numbers<[2], [1], [1], [2], [0, 0, 0, 1, 1, 2], [0], [0]>} : vector<4x16x16xbf16>, vector<4x16x4xbf16>, vector<4x16x4xf32> -> vector<4x16x4xf32>
    "tpu.trace_stop"() : () -> ()
    %c1_92 = arith.constant 1 : index
    %c10_93 = arith.constant 10 : index
    %300 = memref.load %arg4[%c1_92, %c10_93] : memref<4x16xf32, #tpu.memory_space<smem>>
    %301 = vector.extract_strided_slice %0 {offsets = [0, 10, 0, 0], sizes = [4, 1, 16, 16], strides = [1, 1, 1, 1]} : vector<4x16x16x16xf32> to vector<4x1x16x16xf32>
    %302 = vector.shape_cast %301 : vector<4x1x16x16xf32> to vector<4x16x16xf32>
    %303 = vector.broadcast %300 : f32 to vector<4x16x16xf32>
    %304 = arith.mulf %303, %302 : vector<4x16x16xf32>
    %c1_94 = arith.constant 1 : index
    %c11_95 = arith.constant 11 : index
    %305 = memref.load %arg4[%c1_94, %c11_95] : memref<4x16xf32, #tpu.memory_space<smem>>
    %306 = vector.extract_strided_slice %0 {offsets = [0, 11, 0, 0], sizes = [4, 1, 16, 16], strides = [1, 1, 1, 1]} : vector<4x16x16x16xf32> to vector<4x1x16x16xf32>
    %307 = vector.shape_cast %306 : vector<4x1x16x16xf32> to vector<4x16x16xf32>
    %308 = vector.broadcast %305 : f32 to vector<4x16x16xf32>
    %309 = arith.mulf %308, %307 : vector<4x16x16xf32>
    %310 = arith.addf %304, %309 : vector<4x16x16xf32>
    %c1_96 = arith.constant 1 : index
    %c2_97 = arith.constant 2 : index
    %311 = memref.load %arg5[%c1_96, %c2_97] : memref<4x5xf32, #tpu.memory_space<smem>>
    %312 = vector.broadcast %311 : f32 to vector<4x16x16xf32>
    %313 = arith.addf %310, %312 : vector<4x16x16xf32>
    %314 = arith.addf %313, %6 : vector<4x16x16xf32>
    %cst_98 = arith.constant dense<0xFF800000> : vector<4x16xf32>
    %315 = vector.multi_reduction <maximumf>, %314, %cst_98 [2] : vector<4x16x16xf32> to vector<4x16xf32>
    %316 = vector.shape_cast %315 : vector<4x16xf32> to vector<4x16x1xf32>
    %317 = vector.broadcast %316 : vector<4x16x1xf32> to vector<4x16x16xf32>
    %318 = arith.subf %314, %317 : vector<4x16x16xf32>
    %319 = math.exp %318 : vector<4x16x16xf32>
    %cst_99 = arith.constant dense<0.000000e+00> : vector<4x16xf32>
    %320 = vector.multi_reduction <add>, %319, %cst_99 [2] : vector<4x16x16xf32> to vector<4x16xf32>
    %321 = vector.shape_cast %320 : vector<4x16xf32> to vector<4x16x1xf32>
    %322 = tpu.reciprocal %321 {approx = true} : vector<4x16x1xf32> -> vector<4x16x1xf32>
    %323 = vector.broadcast %322 : vector<4x16x1xf32> to vector<4x16x16xf32>
    %324 = arith.mulf %319, %323 : vector<4x16x16xf32>
    %325 = arith.truncf %324 : vector<4x16x16xf32> to vector<4x16x16xbf16>
    %326 = vector.extract_strided_slice %205 {offsets = [0, 0, 8], sizes = [4, 16, 4], strides = [1, 1, 1]} : vector<4x16x20xf32> to vector<4x16x4xf32>
    %327 = arith.truncf %326 : vector<4x16x4xf32> to vector<4x16x4xbf16>
    "tpu.trace_start"() <{level = 10 : i32, message = "bij,bjm->bim"}> : () -> ()
    %cst_100 = arith.constant dense<0.000000e+00> : vector<4x16x4xf32>
    %328 = tpu.matmul %325, %327, %cst_100 {dimension_numbers = #tpu.dot_dimension_numbers<[2], [1], [1], [2], [0, 0, 0, 1, 1, 2], [0], [0]>} : vector<4x16x16xbf16>, vector<4x16x4xbf16>, vector<4x16x4xf32> -> vector<4x16x4xf32>
    "tpu.trace_stop"() : () -> ()
    %c1_101 = arith.constant 1 : index
    %c12_102 = arith.constant 12 : index
    %329 = memref.load %arg4[%c1_101, %c12_102] : memref<4x16xf32, #tpu.memory_space<smem>>
    %330 = vector.extract_strided_slice %0 {offsets = [0, 12, 0, 0], sizes = [4, 1, 16, 16], strides = [1, 1, 1, 1]} : vector<4x16x16x16xf32> to vector<4x1x16x16xf32>
    %331 = vector.shape_cast %330 : vector<4x1x16x16xf32> to vector<4x16x16xf32>
    %332 = vector.broadcast %329 : f32 to vector<4x16x16xf32>
    %333 = arith.mulf %332, %331 : vector<4x16x16xf32>
    %c1_103 = arith.constant 1 : index
    %c13_104 = arith.constant 13 : index
    %334 = memref.load %arg4[%c1_103, %c13_104] : memref<4x16xf32, #tpu.memory_space<smem>>
    %335 = vector.extract_strided_slice %0 {offsets = [0, 13, 0, 0], sizes = [4, 1, 16, 16], strides = [1, 1, 1, 1]} : vector<4x16x16x16xf32> to vector<4x1x16x16xf32>
    %336 = vector.shape_cast %335 : vector<4x1x16x16xf32> to vector<4x16x16xf32>
    %337 = vector.broadcast %334 : f32 to vector<4x16x16xf32>
    %338 = arith.mulf %337, %336 : vector<4x16x16xf32>
    %339 = arith.addf %333, %338 : vector<4x16x16xf32>
    %c1_105 = arith.constant 1 : index
    %c3_106 = arith.constant 3 : index
    %340 = memref.load %arg5[%c1_105, %c3_106] : memref<4x5xf32, #tpu.memory_space<smem>>
    %341 = vector.broadcast %340 : f32 to vector<4x16x16xf32>
    %342 = arith.addf %339, %341 : vector<4x16x16xf32>
    %343 = arith.addf %342, %6 : vector<4x16x16xf32>
    %cst_107 = arith.constant dense<0xFF800000> : vector<4x16xf32>
    %344 = vector.multi_reduction <maximumf>, %343, %cst_107 [2] : vector<4x16x16xf32> to vector<4x16xf32>
    %345 = vector.shape_cast %344 : vector<4x16xf32> to vector<4x16x1xf32>
    %346 = vector.broadcast %345 : vector<4x16x1xf32> to vector<4x16x16xf32>
    %347 = arith.subf %343, %346 : vector<4x16x16xf32>
    %348 = math.exp %347 : vector<4x16x16xf32>
    %cst_108 = arith.constant dense<0.000000e+00> : vector<4x16xf32>
    %349 = vector.multi_reduction <add>, %348, %cst_108 [2] : vector<4x16x16xf32> to vector<4x16xf32>
    %350 = vector.shape_cast %349 : vector<4x16xf32> to vector<4x16x1xf32>
    %351 = tpu.reciprocal %350 {approx = true} : vector<4x16x1xf32> -> vector<4x16x1xf32>
    %352 = vector.broadcast %351 : vector<4x16x1xf32> to vector<4x16x16xf32>
    %353 = arith.mulf %348, %352 : vector<4x16x16xf32>
    %354 = arith.truncf %353 : vector<4x16x16xf32> to vector<4x16x16xbf16>
    %355 = vector.extract_strided_slice %205 {offsets = [0, 0, 12], sizes = [4, 16, 4], strides = [1, 1, 1]} : vector<4x16x20xf32> to vector<4x16x4xf32>
    %356 = arith.truncf %355 : vector<4x16x4xf32> to vector<4x16x4xbf16>
    "tpu.trace_start"() <{level = 10 : i32, message = "bij,bjm->bim"}> : () -> ()
    %cst_109 = arith.constant dense<0.000000e+00> : vector<4x16x4xf32>
    %357 = tpu.matmul %354, %356, %cst_109 {dimension_numbers = #tpu.dot_dimension_numbers<[2], [1], [1], [2], [0, 0, 0, 1, 1, 2], [0], [0]>} : vector<4x16x16xbf16>, vector<4x16x4xbf16>, vector<4x16x4xf32> -> vector<4x16x4xf32>
    "tpu.trace_stop"() : () -> ()
    %c1_110 = arith.constant 1 : index
    %c14_111 = arith.constant 14 : index
    %358 = memref.load %arg4[%c1_110, %c14_111] : memref<4x16xf32, #tpu.memory_space<smem>>
    %359 = vector.extract_strided_slice %0 {offsets = [0, 14, 0, 0], sizes = [4, 1, 16, 16], strides = [1, 1, 1, 1]} : vector<4x16x16x16xf32> to vector<4x1x16x16xf32>
    %360 = vector.shape_cast %359 : vector<4x1x16x16xf32> to vector<4x16x16xf32>
    %361 = vector.broadcast %358 : f32 to vector<4x16x16xf32>
    %362 = arith.mulf %361, %360 : vector<4x16x16xf32>
    %c1_112 = arith.constant 1 : index
    %c15_113 = arith.constant 15 : index
    %363 = memref.load %arg4[%c1_112, %c15_113] : memref<4x16xf32, #tpu.memory_space<smem>>
    %364 = vector.extract_strided_slice %0 {offsets = [0, 15, 0, 0], sizes = [4, 1, 16, 16], strides = [1, 1, 1, 1]} : vector<4x16x16x16xf32> to vector<4x1x16x16xf32>
    %365 = vector.shape_cast %364 : vector<4x1x16x16xf32> to vector<4x16x16xf32>
    %366 = vector.broadcast %363 : f32 to vector<4x16x16xf32>
    %367 = arith.mulf %366, %365 : vector<4x16x16xf32>
    %368 = arith.addf %362, %367 : vector<4x16x16xf32>
    %c1_114 = arith.constant 1 : index
    %c4_115 = arith.constant 4 : index
    %369 = memref.load %arg5[%c1_114, %c4_115] : memref<4x5xf32, #tpu.memory_space<smem>>
    %370 = vector.broadcast %369 : f32 to vector<4x16x16xf32>
    %371 = arith.addf %368, %370 : vector<4x16x16xf32>
    %372 = arith.addf %371, %6 : vector<4x16x16xf32>
    %cst_116 = arith.constant dense<0xFF800000> : vector<4x16xf32>
    %373 = vector.multi_reduction <maximumf>, %372, %cst_116 [2] : vector<4x16x16xf32> to vector<4x16xf32>
    %374 = vector.shape_cast %373 : vector<4x16xf32> to vector<4x16x1xf32>
    %375 = vector.broadcast %374 : vector<4x16x1xf32> to vector<4x16x16xf32>
    %376 = arith.subf %372, %375 : vector<4x16x16xf32>
    %377 = math.exp %376 : vector<4x16x16xf32>
    %cst_117 = arith.constant dense<0.000000e+00> : vector<4x16xf32>
    %378 = vector.multi_reduction <add>, %377, %cst_117 [2] : vector<4x16x16xf32> to vector<4x16xf32>
    %379 = vector.shape_cast %378 : vector<4x16xf32> to vector<4x16x1xf32>
    %380 = tpu.reciprocal %379 {approx = true} : vector<4x16x1xf32> -> vector<4x16x1xf32>
    %381 = vector.broadcast %380 : vector<4x16x1xf32> to vector<4x16x16xf32>
    %382 = arith.mulf %377, %381 : vector<4x16x16xf32>
    %383 = arith.truncf %382 : vector<4x16x16xf32> to vector<4x16x16xbf16>
    %384 = vector.extract_strided_slice %205 {offsets = [0, 0, 16], sizes = [4, 16, 4], strides = [1, 1, 1]} : vector<4x16x20xf32> to vector<4x16x4xf32>
    %385 = arith.truncf %384 : vector<4x16x4xf32> to vector<4x16x4xbf16>
    "tpu.trace_start"() <{level = 10 : i32, message = "bij,bjm->bim"}> : () -> ()
    %cst_118 = arith.constant dense<0.000000e+00> : vector<4x16x4xf32>
    %386 = tpu.matmul %383, %385, %cst_118 {dimension_numbers = #tpu.dot_dimension_numbers<[2], [1], [1], [2], [0, 0, 0, 1, 1, 2], [0], [0]>} : vector<4x16x16xbf16>, vector<4x16x4xbf16>, vector<4x16x4xf32> -> vector<4x16x4xf32>
    "tpu.trace_stop"() : () -> ()
    %387 = tpu.concatenate %258, %299, %328, %357, %386 in 2 : vector<4x16x4xf32>, vector<4x16x4xf32>, vector<4x16x4xf32>, vector<4x16x4xf32>, vector<4x16x4xf32> -> vector<4x16x20xf32>
    %c0_119 = arith.constant 0 : index
    %c0_120 = arith.constant 0 : index
    %388 = vector.load %arg9[%c0_119, %c0_120] : memref<1x20xf32, #tpu.memory_space<vmem>>, vector<1x20xf32>
    %389 = vector.shape_cast %388 : vector<1x20xf32> to vector<1x1x20xf32>
    %390 = vector.broadcast %389 : vector<1x1x20xf32> to vector<4x16x20xf32>
    %391 = arith.addf %387, %390 : vector<4x16x20xf32>
    %cst_121 = arith.constant 0.000000e+00 : f32
    %392 = vector.broadcast %cst_121 : f32 to vector<4x16x20xf32>
    %393 = arith.maximumf %391, %392 : vector<4x16x20xf32>
    %394 = vector.shape_cast %393 : vector<4x16x20xf32> to vector<64x20xf32>
    %395 = arith.truncf %394 : vector<64x20xf32> to vector<64x20xbf16>
    %c0_122 = arith.constant 0 : index
    %c0_123 = arith.constant 0 : index
    %396 = vector.load %arg10[%c0_122, %c0_123] : memref<20x40xbf16, #tpu.memory_space<vmem>>, vector<20x40xbf16>
    %cst_124 = arith.constant dense<0.000000e+00> : vector<64x40xf32>
    %397 = tpu.matmul %395, %396, %cst_124 {dimension_numbers = #tpu.dot_dimension_numbers<[1], [0], [0], [1], [0, 0, 1, 1], [], []>} : vector<64x20xbf16>, vector<20x40xbf16>, vector<64x40xf32> -> vector<64x40xf32>
    %398 = vector.shape_cast %397 : vector<64x40xf32> to vector<4x16x40xf32>
    %c2_125 = arith.constant 2 : index
    %c0_126 = arith.constant 0 : index
    %399 = memref.load %arg4[%c2_125, %c0_126] : memref<4x16xf32, #tpu.memory_space<smem>>
    %400 = vector.extract_strided_slice %0 {offsets = [0, 0, 0, 0], sizes = [4, 1, 16, 16], strides = [1, 1, 1, 1]} : vector<4x16x16x16xf32> to vector<4x1x16x16xf32>
    %401 = vector.shape_cast %400 : vector<4x1x16x16xf32> to vector<4x16x16xf32>
    %402 = vector.broadcast %399 : f32 to vector<4x16x16xf32>
    %403 = arith.mulf %402, %401 : vector<4x16x16xf32>
    %c2_127 = arith.constant 2 : index
    %c1_128 = arith.constant 1 : index
    %404 = memref.load %arg4[%c2_127, %c1_128] : memref<4x16xf32, #tpu.memory_space<smem>>
    %405 = vector.extract_strided_slice %0 {offsets = [0, 1, 0, 0], sizes = [4, 1, 16, 16], strides = [1, 1, 1, 1]} : vector<4x16x16x16xf32> to vector<4x1x16x16xf32>
    %406 = vector.shape_cast %405 : vector<4x1x16x16xf32> to vector<4x16x16xf32>
    %407 = vector.broadcast %404 : f32 to vector<4x16x16xf32>
    %408 = arith.mulf %407, %406 : vector<4x16x16xf32>
    %409 = arith.addf %403, %408 : vector<4x16x16xf32>
    %c2_129 = arith.constant 2 : index
    %c2_130 = arith.constant 2 : index
    %410 = memref.load %arg4[%c2_129, %c2_130] : memref<4x16xf32, #tpu.memory_space<smem>>
    %411 = vector.extract_strided_slice %0 {offsets = [0, 2, 0, 0], sizes = [4, 1, 16, 16], strides = [1, 1, 1, 1]} : vector<4x16x16x16xf32> to vector<4x1x16x16xf32>
    %412 = vector.shape_cast %411 : vector<4x1x16x16xf32> to vector<4x16x16xf32>
    %413 = vector.broadcast %410 : f32 to vector<4x16x16xf32>
    %414 = arith.mulf %413, %412 : vector<4x16x16xf32>
    %415 = arith.addf %409, %414 : vector<4x16x16xf32>
    %c2_131 = arith.constant 2 : index
    %c3_132 = arith.constant 3 : index
    %416 = memref.load %arg4[%c2_131, %c3_132] : memref<4x16xf32, #tpu.memory_space<smem>>
    %417 = vector.extract_strided_slice %0 {offsets = [0, 3, 0, 0], sizes = [4, 1, 16, 16], strides = [1, 1, 1, 1]} : vector<4x16x16x16xf32> to vector<4x1x16x16xf32>
    %418 = vector.shape_cast %417 : vector<4x1x16x16xf32> to vector<4x16x16xf32>
    %419 = vector.broadcast %416 : f32 to vector<4x16x16xf32>
    %420 = arith.mulf %419, %418 : vector<4x16x16xf32>
    %421 = arith.addf %415, %420 : vector<4x16x16xf32>
    %c2_133 = arith.constant 2 : index
    %c4_134 = arith.constant 4 : index
    %422 = memref.load %arg4[%c2_133, %c4_134] : memref<4x16xf32, #tpu.memory_space<smem>>
    %423 = vector.extract_strided_slice %0 {offsets = [0, 4, 0, 0], sizes = [4, 1, 16, 16], strides = [1, 1, 1, 1]} : vector<4x16x16x16xf32> to vector<4x1x16x16xf32>
    %424 = vector.shape_cast %423 : vector<4x1x16x16xf32> to vector<4x16x16xf32>
    %425 = vector.broadcast %422 : f32 to vector<4x16x16xf32>
    %426 = arith.mulf %425, %424 : vector<4x16x16xf32>
    %427 = arith.addf %421, %426 : vector<4x16x16xf32>
    %c2_135 = arith.constant 2 : index
    %c5_136 = arith.constant 5 : index
    %428 = memref.load %arg4[%c2_135, %c5_136] : memref<4x16xf32, #tpu.memory_space<smem>>
    %429 = vector.extract_strided_slice %0 {offsets = [0, 5, 0, 0], sizes = [4, 1, 16, 16], strides = [1, 1, 1, 1]} : vector<4x16x16x16xf32> to vector<4x1x16x16xf32>
    %430 = vector.shape_cast %429 : vector<4x1x16x16xf32> to vector<4x16x16xf32>
    %431 = vector.broadcast %428 : f32 to vector<4x16x16xf32>
    %432 = arith.mulf %431, %430 : vector<4x16x16xf32>
    %433 = arith.addf %427, %432 : vector<4x16x16xf32>
    %c2_137 = arith.constant 2 : index
    %c0_138 = arith.constant 0 : index
    %434 = memref.load %arg5[%c2_137, %c0_138] : memref<4x5xf32, #tpu.memory_space<smem>>
    %435 = vector.broadcast %434 : f32 to vector<4x16x16xf32>
    %436 = arith.addf %433, %435 : vector<4x16x16xf32>
    %437 = arith.addf %436, %6 : vector<4x16x16xf32>
    %cst_139 = arith.constant dense<0xFF800000> : vector<4x16xf32>
    %438 = vector.multi_reduction <maximumf>, %437, %cst_139 [2] : vector<4x16x16xf32> to vector<4x16xf32>
    %439 = vector.shape_cast %438 : vector<4x16xf32> to vector<4x16x1xf32>
    %440 = vector.broadcast %439 : vector<4x16x1xf32> to vector<4x16x16xf32>
    %441 = arith.subf %437, %440 : vector<4x16x16xf32>
    %442 = math.exp %441 : vector<4x16x16xf32>
    %cst_140 = arith.constant dense<0.000000e+00> : vector<4x16xf32>
    %443 = vector.multi_reduction <add>, %442, %cst_140 [2] : vector<4x16x16xf32> to vector<4x16xf32>
    %444 = vector.shape_cast %443 : vector<4x16xf32> to vector<4x16x1xf32>
    %445 = tpu.reciprocal %444 {approx = true} : vector<4x16x1xf32> -> vector<4x16x1xf32>
    %446 = vector.broadcast %445 : vector<4x16x1xf32> to vector<4x16x16xf32>
    %447 = arith.mulf %442, %446 : vector<4x16x16xf32>
    %448 = arith.truncf %447 : vector<4x16x16xf32> to vector<4x16x16xbf16>
    %449 = vector.extract_strided_slice %398 {offsets = [0, 0, 0], sizes = [4, 16, 8], strides = [1, 1, 1]} : vector<4x16x40xf32> to vector<4x16x8xf32>
    %450 = arith.truncf %449 : vector<4x16x8xf32> to vector<4x16x8xbf16>
    "tpu.trace_start"() <{level = 10 : i32, message = "bij,bjm->bim"}> : () -> ()
    %cst_141 = arith.constant dense<0.000000e+00> : vector<4x16x8xf32>
    %451 = tpu.matmul %448, %450, %cst_141 {dimension_numbers = #tpu.dot_dimension_numbers<[2], [1], [1], [2], [0, 0, 0, 1, 1, 2], [0], [0]>} : vector<4x16x16xbf16>, vector<4x16x8xbf16>, vector<4x16x8xf32> -> vector<4x16x8xf32>
    "tpu.trace_stop"() : () -> ()
    %c2_142 = arith.constant 2 : index
    %c6_143 = arith.constant 6 : index
    %452 = memref.load %arg4[%c2_142, %c6_143] : memref<4x16xf32, #tpu.memory_space<smem>>
    %453 = vector.extract_strided_slice %0 {offsets = [0, 6, 0, 0], sizes = [4, 1, 16, 16], strides = [1, 1, 1, 1]} : vector<4x16x16x16xf32> to vector<4x1x16x16xf32>
    %454 = vector.shape_cast %453 : vector<4x1x16x16xf32> to vector<4x16x16xf32>
    %455 = vector.broadcast %452 : f32 to vector<4x16x16xf32>
    %456 = arith.mulf %455, %454 : vector<4x16x16xf32>
    %c2_144 = arith.constant 2 : index
    %c7_145 = arith.constant 7 : index
    %457 = memref.load %arg4[%c2_144, %c7_145] : memref<4x16xf32, #tpu.memory_space<smem>>
    %458 = vector.extract_strided_slice %0 {offsets = [0, 7, 0, 0], sizes = [4, 1, 16, 16], strides = [1, 1, 1, 1]} : vector<4x16x16x16xf32> to vector<4x1x16x16xf32>
    %459 = vector.shape_cast %458 : vector<4x1x16x16xf32> to vector<4x16x16xf32>
    %460 = vector.broadcast %457 : f32 to vector<4x16x16xf32>
    %461 = arith.mulf %460, %459 : vector<4x16x16xf32>
    %462 = arith.addf %456, %461 : vector<4x16x16xf32>
    %c2_146 = arith.constant 2 : index
    %c8_147 = arith.constant 8 : index
    %463 = memref.load %arg4[%c2_146, %c8_147] : memref<4x16xf32, #tpu.memory_space<smem>>
    %464 = vector.extract_strided_slice %0 {offsets = [0, 8, 0, 0], sizes = [4, 1, 16, 16], strides = [1, 1, 1, 1]} : vector<4x16x16x16xf32> to vector<4x1x16x16xf32>
    %465 = vector.shape_cast %464 : vector<4x1x16x16xf32> to vector<4x16x16xf32>
    %466 = vector.broadcast %463 : f32 to vector<4x16x16xf32>
    %467 = arith.mulf %466, %465 : vector<4x16x16xf32>
    %468 = arith.addf %462, %467 : vector<4x16x16xf32>
    %c2_148 = arith.constant 2 : index
    %c9_149 = arith.constant 9 : index
    %469 = memref.load %arg4[%c2_148, %c9_149] : memref<4x16xf32, #tpu.memory_space<smem>>
    %470 = vector.extract_strided_slice %0 {offsets = [0, 9, 0, 0], sizes = [4, 1, 16, 16], strides = [1, 1, 1, 1]} : vector<4x16x16x16xf32> to vector<4x1x16x16xf32>
    %471 = vector.shape_cast %470 : vector<4x1x16x16xf32> to vector<4x16x16xf32>
    %472 = vector.broadcast %469 : f32 to vector<4x16x16xf32>
    %473 = arith.mulf %472, %471 : vector<4x16x16xf32>
    %474 = arith.addf %468, %473 : vector<4x16x16xf32>
    %c2_150 = arith.constant 2 : index
    %c1_151 = arith.constant 1 : index
    %475 = memref.load %arg5[%c2_150, %c1_151] : memref<4x5xf32, #tpu.memory_space<smem>>
    %476 = vector.broadcast %475 : f32 to vector<4x16x16xf32>
    %477 = arith.addf %474, %476 : vector<4x16x16xf32>
    %478 = arith.addf %477, %6 : vector<4x16x16xf32>
    %cst_152 = arith.constant dense<0xFF800000> : vector<4x16xf32>
    %479 = vector.multi_reduction <maximumf>, %478, %cst_152 [2] : vector<4x16x16xf32> to vector<4x16xf32>
    %480 = vector.shape_cast %479 : vector<4x16xf32> to vector<4x16x1xf32>
    %481 = vector.broadcast %480 : vector<4x16x1xf32> to vector<4x16x16xf32>
    %482 = arith.subf %478, %481 : vector<4x16x16xf32>
    %483 = math.exp %482 : vector<4x16x16xf32>
    %cst_153 = arith.constant dense<0.000000e+00> : vector<4x16xf32>
    %484 = vector.multi_reduction <add>, %483, %cst_153 [2] : vector<4x16x16xf32> to vector<4x16xf32>
    %485 = vector.shape_cast %484 : vector<4x16xf32> to vector<4x16x1xf32>
    %486 = tpu.reciprocal %485 {approx = true} : vector<4x16x1xf32> -> vector<4x16x1xf32>
    %487 = vector.broadcast %486 : vector<4x16x1xf32> to vector<4x16x16xf32>
    %488 = arith.mulf %483, %487 : vector<4x16x16xf32>
    %489 = arith.truncf %488 : vector<4x16x16xf32> to vector<4x16x16xbf16>
    %490 = vector.extract_strided_slice %398 {offsets = [0, 0, 8], sizes = [4, 16, 8], strides = [1, 1, 1]} : vector<4x16x40xf32> to vector<4x16x8xf32>
    %491 = arith.truncf %490 : vector<4x16x8xf32> to vector<4x16x8xbf16>
    "tpu.trace_start"() <{level = 10 : i32, message = "bij,bjm->bim"}> : () -> ()
    %cst_154 = arith.constant dense<0.000000e+00> : vector<4x16x8xf32>
    %492 = tpu.matmul %489, %491, %cst_154 {dimension_numbers = #tpu.dot_dimension_numbers<[2], [1], [1], [2], [0, 0, 0, 1, 1, 2], [0], [0]>} : vector<4x16x16xbf16>, vector<4x16x8xbf16>, vector<4x16x8xf32> -> vector<4x16x8xf32>
    "tpu.trace_stop"() : () -> ()
    %c2_155 = arith.constant 2 : index
    %c10_156 = arith.constant 10 : index
    %493 = memref.load %arg4[%c2_155, %c10_156] : memref<4x16xf32, #tpu.memory_space<smem>>
    %494 = vector.extract_strided_slice %0 {offsets = [0, 10, 0, 0], sizes = [4, 1, 16, 16], strides = [1, 1, 1, 1]} : vector<4x16x16x16xf32> to vector<4x1x16x16xf32>
    %495 = vector.shape_cast %494 : vector<4x1x16x16xf32> to vector<4x16x16xf32>
    %496 = vector.broadcast %493 : f32 to vector<4x16x16xf32>
    %497 = arith.mulf %496, %495 : vector<4x16x16xf32>
    %c2_157 = arith.constant 2 : index
    %c11_158 = arith.constant 11 : index
    %498 = memref.load %arg4[%c2_157, %c11_158] : memref<4x16xf32, #tpu.memory_space<smem>>
    %499 = vector.extract_strided_slice %0 {offsets = [0, 11, 0, 0], sizes = [4, 1, 16, 16], strides = [1, 1, 1, 1]} : vector<4x16x16x16xf32> to vector<4x1x16x16xf32>
    %500 = vector.shape_cast %499 : vector<4x1x16x16xf32> to vector<4x16x16xf32>
    %501 = vector.broadcast %498 : f32 to vector<4x16x16xf32>
    %502 = arith.mulf %501, %500 : vector<4x16x16xf32>
    %503 = arith.addf %497, %502 : vector<4x16x16xf32>
    %c2_159 = arith.constant 2 : index
    %c2_160 = arith.constant 2 : index
    %504 = memref.load %arg5[%c2_159, %c2_160] : memref<4x5xf32, #tpu.memory_space<smem>>
    %505 = vector.broadcast %504 : f32 to vector<4x16x16xf32>
    %506 = arith.addf %503, %505 : vector<4x16x16xf32>
    %507 = arith.addf %506, %6 : vector<4x16x16xf32>
    %cst_161 = arith.constant dense<0xFF800000> : vector<4x16xf32>
    %508 = vector.multi_reduction <maximumf>, %507, %cst_161 [2] : vector<4x16x16xf32> to vector<4x16xf32>
    %509 = vector.shape_cast %508 : vector<4x16xf32> to vector<4x16x1xf32>
    %510 = vector.broadcast %509 : vector<4x16x1xf32> to vector<4x16x16xf32>
    %511 = arith.subf %507, %510 : vector<4x16x16xf32>
    %512 = math.exp %511 : vector<4x16x16xf32>
    %cst_162 = arith.constant dense<0.000000e+00> : vector<4x16xf32>
    %513 = vector.multi_reduction <add>, %512, %cst_162 [2] : vector<4x16x16xf32> to vector<4x16xf32>
    %514 = vector.shape_cast %513 : vector<4x16xf32> to vector<4x16x1xf32>
    %515 = tpu.reciprocal %514 {approx = true} : vector<4x16x1xf32> -> vector<4x16x1xf32>
    %516 = vector.broadcast %515 : vector<4x16x1xf32> to vector<4x16x16xf32>
    %517 = arith.mulf %512, %516 : vector<4x16x16xf32>
    %518 = arith.truncf %517 : vector<4x16x16xf32> to vector<4x16x16xbf16>
    %519 = vector.extract_strided_slice %398 {offsets = [0, 0, 16], sizes = [4, 16, 8], strides = [1, 1, 1]} : vector<4x16x40xf32> to vector<4x16x8xf32>
    %520 = arith.truncf %519 : vector<4x16x8xf32> to vector<4x16x8xbf16>
    "tpu.trace_start"() <{level = 10 : i32, message = "bij,bjm->bim"}> : () -> ()
    %cst_163 = arith.constant dense<0.000000e+00> : vector<4x16x8xf32>
    %521 = tpu.matmul %518, %520, %cst_163 {dimension_numbers = #tpu.dot_dimension_numbers<[2], [1], [1], [2], [0, 0, 0, 1, 1, 2], [0], [0]>} : vector<4x16x16xbf16>, vector<4x16x8xbf16>, vector<4x16x8xf32> -> vector<4x16x8xf32>
    "tpu.trace_stop"() : () -> ()
    %c2_164 = arith.constant 2 : index
    %c12_165 = arith.constant 12 : index
    %522 = memref.load %arg4[%c2_164, %c12_165] : memref<4x16xf32, #tpu.memory_space<smem>>
    %523 = vector.extract_strided_slice %0 {offsets = [0, 12, 0, 0], sizes = [4, 1, 16, 16], strides = [1, 1, 1, 1]} : vector<4x16x16x16xf32> to vector<4x1x16x16xf32>
    %524 = vector.shape_cast %523 : vector<4x1x16x16xf32> to vector<4x16x16xf32>
    %525 = vector.broadcast %522 : f32 to vector<4x16x16xf32>
    %526 = arith.mulf %525, %524 : vector<4x16x16xf32>
    %c2_166 = arith.constant 2 : index
    %c13_167 = arith.constant 13 : index
    %527 = memref.load %arg4[%c2_166, %c13_167] : memref<4x16xf32, #tpu.memory_space<smem>>
    %528 = vector.extract_strided_slice %0 {offsets = [0, 13, 0, 0], sizes = [4, 1, 16, 16], strides = [1, 1, 1, 1]} : vector<4x16x16x16xf32> to vector<4x1x16x16xf32>
    %529 = vector.shape_cast %528 : vector<4x1x16x16xf32> to vector<4x16x16xf32>
    %530 = vector.broadcast %527 : f32 to vector<4x16x16xf32>
    %531 = arith.mulf %530, %529 : vector<4x16x16xf32>
    %532 = arith.addf %526, %531 : vector<4x16x16xf32>
    %c2_168 = arith.constant 2 : index
    %c3_169 = arith.constant 3 : index
    %533 = memref.load %arg5[%c2_168, %c3_169] : memref<4x5xf32, #tpu.memory_space<smem>>
    %534 = vector.broadcast %533 : f32 to vector<4x16x16xf32>
    %535 = arith.addf %532, %534 : vector<4x16x16xf32>
    %536 = arith.addf %535, %6 : vector<4x16x16xf32>
    %cst_170 = arith.constant dense<0xFF800000> : vector<4x16xf32>
    %537 = vector.multi_reduction <maximumf>, %536, %cst_170 [2] : vector<4x16x16xf32> to vector<4x16xf32>
    %538 = vector.shape_cast %537 : vector<4x16xf32> to vector<4x16x1xf32>
    %539 = vector.broadcast %538 : vector<4x16x1xf32> to vector<4x16x16xf32>
    %540 = arith.subf %536, %539 : vector<4x16x16xf32>
    %541 = math.exp %540 : vector<4x16x16xf32>
    %cst_171 = arith.constant dense<0.000000e+00> : vector<4x16xf32>
    %542 = vector.multi_reduction <add>, %541, %cst_171 [2] : vector<4x16x16xf32> to vector<4x16xf32>
    %543 = vector.shape_cast %542 : vector<4x16xf32> to vector<4x16x1xf32>
    %544 = tpu.reciprocal %543 {approx = true} : vector<4x16x1xf32> -> vector<4x16x1xf32>
    %545 = vector.broadcast %544 : vector<4x16x1xf32> to vector<4x16x16xf32>
    %546 = arith.mulf %541, %545 : vector<4x16x16xf32>
    %547 = arith.truncf %546 : vector<4x16x16xf32> to vector<4x16x16xbf16>
    %548 = vector.extract_strided_slice %398 {offsets = [0, 0, 24], sizes = [4, 16, 8], strides = [1, 1, 1]} : vector<4x16x40xf32> to vector<4x16x8xf32>
    %549 = arith.truncf %548 : vector<4x16x8xf32> to vector<4x16x8xbf16>
    "tpu.trace_start"() <{level = 10 : i32, message = "bij,bjm->bim"}> : () -> ()
    %cst_172 = arith.constant dense<0.000000e+00> : vector<4x16x8xf32>
    %550 = tpu.matmul %547, %549, %cst_172 {dimension_numbers = #tpu.dot_dimension_numbers<[2], [1], [1], [2], [0, 0, 0, 1, 1, 2], [0], [0]>} : vector<4x16x16xbf16>, vector<4x16x8xbf16>, vector<4x16x8xf32> -> vector<4x16x8xf32>
    "tpu.trace_stop"() : () -> ()
    %c2_173 = arith.constant 2 : index
    %c14_174 = arith.constant 14 : index
    %551 = memref.load %arg4[%c2_173, %c14_174] : memref<4x16xf32, #tpu.memory_space<smem>>
    %552 = vector.extract_strided_slice %0 {offsets = [0, 14, 0, 0], sizes = [4, 1, 16, 16], strides = [1, 1, 1, 1]} : vector<4x16x16x16xf32> to vector<4x1x16x16xf32>
    %553 = vector.shape_cast %552 : vector<4x1x16x16xf32> to vector<4x16x16xf32>
    %554 = vector.broadcast %551 : f32 to vector<4x16x16xf32>
    %555 = arith.mulf %554, %553 : vector<4x16x16xf32>
    %c2_175 = arith.constant 2 : index
    %c15_176 = arith.constant 15 : index
    %556 = memref.load %arg4[%c2_175, %c15_176] : memref<4x16xf32, #tpu.memory_space<smem>>
    %557 = vector.extract_strided_slice %0 {offsets = [0, 15, 0, 0], sizes = [4, 1, 16, 16], strides = [1, 1, 1, 1]} : vector<4x16x16x16xf32> to vector<4x1x16x16xf32>
    %558 = vector.shape_cast %557 : vector<4x1x16x16xf32> to vector<4x16x16xf32>
    %559 = vector.broadcast %556 : f32 to vector<4x16x16xf32>
    %560 = arith.mulf %559, %558 : vector<4x16x16xf32>
    %561 = arith.addf %555, %560 : vector<4x16x16xf32>
    %c2_177 = arith.constant 2 : index
    %c4_178 = arith.constant 4 : index
    %562 = memref.load %arg5[%c2_177, %c4_178] : memref<4x5xf32, #tpu.memory_space<smem>>
    %563 = vector.broadcast %562 : f32 to vector<4x16x16xf32>
    %564 = arith.addf %561, %563 : vector<4x16x16xf32>
    %565 = arith.addf %564, %6 : vector<4x16x16xf32>
    %cst_179 = arith.constant dense<0xFF800000> : vector<4x16xf32>
    %566 = vector.multi_reduction <maximumf>, %565, %cst_179 [2] : vector<4x16x16xf32> to vector<4x16xf32>
    %567 = vector.shape_cast %566 : vector<4x16xf32> to vector<4x16x1xf32>
    %568 = vector.broadcast %567 : vector<4x16x1xf32> to vector<4x16x16xf32>
    %569 = arith.subf %565, %568 : vector<4x16x16xf32>
    %570 = math.exp %569 : vector<4x16x16xf32>
    %cst_180 = arith.constant dense<0.000000e+00> : vector<4x16xf32>
    %571 = vector.multi_reduction <add>, %570, %cst_180 [2] : vector<4x16x16xf32> to vector<4x16xf32>
    %572 = vector.shape_cast %571 : vector<4x16xf32> to vector<4x16x1xf32>
    %573 = tpu.reciprocal %572 {approx = true} : vector<4x16x1xf32> -> vector<4x16x1xf32>
    %574 = vector.broadcast %573 : vector<4x16x1xf32> to vector<4x16x16xf32>
    %575 = arith.mulf %570, %574 : vector<4x16x16xf32>
    %576 = arith.truncf %575 : vector<4x16x16xf32> to vector<4x16x16xbf16>
    %577 = vector.extract_strided_slice %398 {offsets = [0, 0, 32], sizes = [4, 16, 8], strides = [1, 1, 1]} : vector<4x16x40xf32> to vector<4x16x8xf32>
    %578 = arith.truncf %577 : vector<4x16x8xf32> to vector<4x16x8xbf16>
    "tpu.trace_start"() <{level = 10 : i32, message = "bij,bjm->bim"}> : () -> ()
    %cst_181 = arith.constant dense<0.000000e+00> : vector<4x16x8xf32>
    %579 = tpu.matmul %576, %578, %cst_181 {dimension_numbers = #tpu.dot_dimension_numbers<[2], [1], [1], [2], [0, 0, 0, 1, 1, 2], [0], [0]>} : vector<4x16x16xbf16>, vector<4x16x8xbf16>, vector<4x16x8xf32> -> vector<4x16x8xf32>
    "tpu.trace_stop"() : () -> ()
    %580 = tpu.concatenate %451, %492, %521, %550, %579 in 2 : vector<4x16x8xf32>, vector<4x16x8xf32>, vector<4x16x8xf32>, vector<4x16x8xf32>, vector<4x16x8xf32> -> vector<4x16x40xf32>
    %c0_182 = arith.constant 0 : index
    %c0_183 = arith.constant 0 : index
    %581 = vector.load %arg11[%c0_182, %c0_183] : memref<1x40xf32, #tpu.memory_space<vmem>>, vector<1x40xf32>
    %582 = vector.shape_cast %581 : vector<1x40xf32> to vector<1x1x40xf32>
    %583 = vector.broadcast %582 : vector<1x1x40xf32> to vector<4x16x40xf32>
    %584 = arith.addf %580, %583 : vector<4x16x40xf32>
    %cst_184 = arith.constant 0.000000e+00 : f32
    %585 = vector.broadcast %cst_184 : f32 to vector<4x16x40xf32>
    %586 = arith.maximumf %584, %585 : vector<4x16x40xf32>
    %587 = vector.shape_cast %586 : vector<4x16x40xf32> to vector<64x40xf32>
    %588 = arith.truncf %587 : vector<64x40xf32> to vector<64x40xbf16>
    %c0_185 = arith.constant 0 : index
    %c0_186 = arith.constant 0 : index
    %589 = vector.load %arg12[%c0_185, %c0_186] : memref<40x40xbf16, #tpu.memory_space<vmem>>, vector<40x40xbf16>
    %cst_187 = arith.constant dense<0.000000e+00> : vector<64x40xf32>
    %590 = tpu.matmul %588, %589, %cst_187 {dimension_numbers = #tpu.dot_dimension_numbers<[1], [0], [0], [1], [0, 0, 1, 1], [], []>} : vector<64x40xbf16>, vector<40x40xbf16>, vector<64x40xf32> -> vector<64x40xf32>
    %591 = vector.shape_cast %590 : vector<64x40xf32> to vector<4x16x40xf32>
    %c3_188 = arith.constant 3 : index
    %c0_189 = arith.constant 0 : index
    %592 = memref.load %arg4[%c3_188, %c0_189] : memref<4x16xf32, #tpu.memory_space<smem>>
    %593 = vector.extract_strided_slice %0 {offsets = [0, 0, 0, 0], sizes = [4, 1, 16, 16], strides = [1, 1, 1, 1]} : vector<4x16x16x16xf32> to vector<4x1x16x16xf32>
    %594 = vector.shape_cast %593 : vector<4x1x16x16xf32> to vector<4x16x16xf32>
    %595 = vector.broadcast %592 : f32 to vector<4x16x16xf32>
    %596 = arith.mulf %595, %594 : vector<4x16x16xf32>
    %c3_190 = arith.constant 3 : index
    %c1_191 = arith.constant 1 : index
    %597 = memref.load %arg4[%c3_190, %c1_191] : memref<4x16xf32, #tpu.memory_space<smem>>
    %598 = vector.extract_strided_slice %0 {offsets = [0, 1, 0, 0], sizes = [4, 1, 16, 16], strides = [1, 1, 1, 1]} : vector<4x16x16x16xf32> to vector<4x1x16x16xf32>
    %599 = vector.shape_cast %598 : vector<4x1x16x16xf32> to vector<4x16x16xf32>
    %600 = vector.broadcast %597 : f32 to vector<4x16x16xf32>
    %601 = arith.mulf %600, %599 : vector<4x16x16xf32>
    %602 = arith.addf %596, %601 : vector<4x16x16xf32>
    %c3_192 = arith.constant 3 : index
    %c2_193 = arith.constant 2 : index
    %603 = memref.load %arg4[%c3_192, %c2_193] : memref<4x16xf32, #tpu.memory_space<smem>>
    %604 = vector.extract_strided_slice %0 {offsets = [0, 2, 0, 0], sizes = [4, 1, 16, 16], strides = [1, 1, 1, 1]} : vector<4x16x16x16xf32> to vector<4x1x16x16xf32>
    %605 = vector.shape_cast %604 : vector<4x1x16x16xf32> to vector<4x16x16xf32>
    %606 = vector.broadcast %603 : f32 to vector<4x16x16xf32>
    %607 = arith.mulf %606, %605 : vector<4x16x16xf32>
    %608 = arith.addf %602, %607 : vector<4x16x16xf32>
    %c3_194 = arith.constant 3 : index
    %c3_195 = arith.constant 3 : index
    %609 = memref.load %arg4[%c3_194, %c3_195] : memref<4x16xf32, #tpu.memory_space<smem>>
    %610 = vector.extract_strided_slice %0 {offsets = [0, 3, 0, 0], sizes = [4, 1, 16, 16], strides = [1, 1, 1, 1]} : vector<4x16x16x16xf32> to vector<4x1x16x16xf32>
    %611 = vector.shape_cast %610 : vector<4x1x16x16xf32> to vector<4x16x16xf32>
    %612 = vector.broadcast %609 : f32 to vector<4x16x16xf32>
    %613 = arith.mulf %612, %611 : vector<4x16x16xf32>
    %614 = arith.addf %608, %613 : vector<4x16x16xf32>
    %c3_196 = arith.constant 3 : index
    %c4_197 = arith.constant 4 : index
    %615 = memref.load %arg4[%c3_196, %c4_197] : memref<4x16xf32, #tpu.memory_space<smem>>
    %616 = vector.extract_strided_slice %0 {offsets = [0, 4, 0, 0], sizes = [4, 1, 16, 16], strides = [1, 1, 1, 1]} : vector<4x16x16x16xf32> to vector<4x1x16x16xf32>
    %617 = vector.shape_cast %616 : vector<4x1x16x16xf32> to vector<4x16x16xf32>
    %618 = vector.broadcast %615 : f32 to vector<4x16x16xf32>
    %619 = arith.mulf %618, %617 : vector<4x16x16xf32>
    %620 = arith.addf %614, %619 : vector<4x16x16xf32>
    %c3_198 = arith.constant 3 : index
    %c5_199 = arith.constant 5 : index
    %621 = memref.load %arg4[%c3_198, %c5_199] : memref<4x16xf32, #tpu.memory_space<smem>>
    %622 = vector.extract_strided_slice %0 {offsets = [0, 5, 0, 0], sizes = [4, 1, 16, 16], strides = [1, 1, 1, 1]} : vector<4x16x16x16xf32> to vector<4x1x16x16xf32>
    %623 = vector.shape_cast %622 : vector<4x1x16x16xf32> to vector<4x16x16xf32>
    %624 = vector.broadcast %621 : f32 to vector<4x16x16xf32>
    %625 = arith.mulf %624, %623 : vector<4x16x16xf32>
    %626 = arith.addf %620, %625 : vector<4x16x16xf32>
    %c3_200 = arith.constant 3 : index
    %c0_201 = arith.constant 0 : index
    %627 = memref.load %arg5[%c3_200, %c0_201] : memref<4x5xf32, #tpu.memory_space<smem>>
    %628 = vector.broadcast %627 : f32 to vector<4x16x16xf32>
    %629 = arith.addf %626, %628 : vector<4x16x16xf32>
    %630 = arith.addf %629, %6 : vector<4x16x16xf32>
    %cst_202 = arith.constant dense<0xFF800000> : vector<4x16xf32>
    %631 = vector.multi_reduction <maximumf>, %630, %cst_202 [2] : vector<4x16x16xf32> to vector<4x16xf32>
    %632 = vector.shape_cast %631 : vector<4x16xf32> to vector<4x16x1xf32>
    %633 = vector.broadcast %632 : vector<4x16x1xf32> to vector<4x16x16xf32>
    %634 = arith.subf %630, %633 : vector<4x16x16xf32>
    %635 = math.exp %634 : vector<4x16x16xf32>
    %cst_203 = arith.constant dense<0.000000e+00> : vector<4x16xf32>
    %636 = vector.multi_reduction <add>, %635, %cst_203 [2] : vector<4x16x16xf32> to vector<4x16xf32>
    %637 = vector.shape_cast %636 : vector<4x16xf32> to vector<4x16x1xf32>
    %638 = tpu.reciprocal %637 {approx = true} : vector<4x16x1xf32> -> vector<4x16x1xf32>
    %639 = vector.broadcast %638 : vector<4x16x1xf32> to vector<4x16x16xf32>
    %640 = arith.mulf %635, %639 : vector<4x16x16xf32>
    %641 = arith.truncf %640 : vector<4x16x16xf32> to vector<4x16x16xbf16>
    %642 = vector.extract_strided_slice %591 {offsets = [0, 0, 0], sizes = [4, 16, 8], strides = [1, 1, 1]} : vector<4x16x40xf32> to vector<4x16x8xf32>
    %643 = arith.truncf %642 : vector<4x16x8xf32> to vector<4x16x8xbf16>
    "tpu.trace_start"() <{level = 10 : i32, message = "bij,bjm->bim"}> : () -> ()
    %cst_204 = arith.constant dense<0.000000e+00> : vector<4x16x8xf32>
    %644 = tpu.matmul %641, %643, %cst_204 {dimension_numbers = #tpu.dot_dimension_numbers<[2], [1], [1], [2], [0, 0, 0, 1, 1, 2], [0], [0]>} : vector<4x16x16xbf16>, vector<4x16x8xbf16>, vector<4x16x8xf32> -> vector<4x16x8xf32>
    "tpu.trace_stop"() : () -> ()
    %c3_205 = arith.constant 3 : index
    %c6_206 = arith.constant 6 : index
    %645 = memref.load %arg4[%c3_205, %c6_206] : memref<4x16xf32, #tpu.memory_space<smem>>
    %646 = vector.extract_strided_slice %0 {offsets = [0, 6, 0, 0], sizes = [4, 1, 16, 16], strides = [1, 1, 1, 1]} : vector<4x16x16x16xf32> to vector<4x1x16x16xf32>
    %647 = vector.shape_cast %646 : vector<4x1x16x16xf32> to vector<4x16x16xf32>
    %648 = vector.broadcast %645 : f32 to vector<4x16x16xf32>
    %649 = arith.mulf %648, %647 : vector<4x16x16xf32>
    %c3_207 = arith.constant 3 : index
    %c7_208 = arith.constant 7 : index
    %650 = memref.load %arg4[%c3_207, %c7_208] : memref<4x16xf32, #tpu.memory_space<smem>>
    %651 = vector.extract_strided_slice %0 {offsets = [0, 7, 0, 0], sizes = [4, 1, 16, 16], strides = [1, 1, 1, 1]} : vector<4x16x16x16xf32> to vector<4x1x16x16xf32>
    %652 = vector.shape_cast %651 : vector<4x1x16x16xf32> to vector<4x16x16xf32>
    %653 = vector.broadcast %650 : f32 to vector<4x16x16xf32>
    %654 = arith.mulf %653, %652 : vector<4x16x16xf32>
    %655 = arith.addf %649, %654 : vector<4x16x16xf32>
    %c3_209 = arith.constant 3 : index
    %c8_210 = arith.constant 8 : index
    %656 = memref.load %arg4[%c3_209, %c8_210] : memref<4x16xf32, #tpu.memory_space<smem>>
    %657 = vector.extract_strided_slice %0 {offsets = [0, 8, 0, 0], sizes = [4, 1, 16, 16], strides = [1, 1, 1, 1]} : vector<4x16x16x16xf32> to vector<4x1x16x16xf32>
    %658 = vector.shape_cast %657 : vector<4x1x16x16xf32> to vector<4x16x16xf32>
    %659 = vector.broadcast %656 : f32 to vector<4x16x16xf32>
    %660 = arith.mulf %659, %658 : vector<4x16x16xf32>
    %661 = arith.addf %655, %660 : vector<4x16x16xf32>
    %c3_211 = arith.constant 3 : index
    %c9_212 = arith.constant 9 : index
    %662 = memref.load %arg4[%c3_211, %c9_212] : memref<4x16xf32, #tpu.memory_space<smem>>
    %663 = vector.extract_strided_slice %0 {offsets = [0, 9, 0, 0], sizes = [4, 1, 16, 16], strides = [1, 1, 1, 1]} : vector<4x16x16x16xf32> to vector<4x1x16x16xf32>
    %664 = vector.shape_cast %663 : vector<4x1x16x16xf32> to vector<4x16x16xf32>
    %665 = vector.broadcast %662 : f32 to vector<4x16x16xf32>
    %666 = arith.mulf %665, %664 : vector<4x16x16xf32>
    %667 = arith.addf %661, %666 : vector<4x16x16xf32>
    %c3_213 = arith.constant 3 : index
    %c1_214 = arith.constant 1 : index
    %668 = memref.load %arg5[%c3_213, %c1_214] : memref<4x5xf32, #tpu.memory_space<smem>>
    %669 = vector.broadcast %668 : f32 to vector<4x16x16xf32>
    %670 = arith.addf %667, %669 : vector<4x16x16xf32>
    %671 = arith.addf %670, %6 : vector<4x16x16xf32>
    %cst_215 = arith.constant dense<0xFF800000> : vector<4x16xf32>
    %672 = vector.multi_reduction <maximumf>, %671, %cst_215 [2] : vector<4x16x16xf32> to vector<4x16xf32>
    %673 = vector.shape_cast %672 : vector<4x16xf32> to vector<4x16x1xf32>
    %674 = vector.broadcast %673 : vector<4x16x1xf32> to vector<4x16x16xf32>
    %675 = arith.subf %671, %674 : vector<4x16x16xf32>
    %676 = math.exp %675 : vector<4x16x16xf32>
    %cst_216 = arith.constant dense<0.000000e+00> : vector<4x16xf32>
    %677 = vector.multi_reduction <add>, %676, %cst_216 [2] : vector<4x16x16xf32> to vector<4x16xf32>
    %678 = vector.shape_cast %677 : vector<4x16xf32> to vector<4x16x1xf32>
    %679 = tpu.reciprocal %678 {approx = true} : vector<4x16x1xf32> -> vector<4x16x1xf32>
    %680 = vector.broadcast %679 : vector<4x16x1xf32> to vector<4x16x16xf32>
    %681 = arith.mulf %676, %680 : vector<4x16x16xf32>
    %682 = arith.truncf %681 : vector<4x16x16xf32> to vector<4x16x16xbf16>
    %683 = vector.extract_strided_slice %591 {offsets = [0, 0, 8], sizes = [4, 16, 8], strides = [1, 1, 1]} : vector<4x16x40xf32> to vector<4x16x8xf32>
    %684 = arith.truncf %683 : vector<4x16x8xf32> to vector<4x16x8xbf16>
    "tpu.trace_start"() <{level = 10 : i32, message = "bij,bjm->bim"}> : () -> ()
    %cst_217 = arith.constant dense<0.000000e+00> : vector<4x16x8xf32>
    %685 = tpu.matmul %682, %684, %cst_217 {dimension_numbers = #tpu.dot_dimension_numbers<[2], [1], [1], [2], [0, 0, 0, 1, 1, 2], [0], [0]>} : vector<4x16x16xbf16>, vector<4x16x8xbf16>, vector<4x16x8xf32> -> vector<4x16x8xf32>
    "tpu.trace_stop"() : () -> ()
    %c3_218 = arith.constant 3 : index
    %c10_219 = arith.constant 10 : index
    %686 = memref.load %arg4[%c3_218, %c10_219] : memref<4x16xf32, #tpu.memory_space<smem>>
    %687 = vector.extract_strided_slice %0 {offsets = [0, 10, 0, 0], sizes = [4, 1, 16, 16], strides = [1, 1, 1, 1]} : vector<4x16x16x16xf32> to vector<4x1x16x16xf32>
    %688 = vector.shape_cast %687 : vector<4x1x16x16xf32> to vector<4x16x16xf32>
    %689 = vector.broadcast %686 : f32 to vector<4x16x16xf32>
    %690 = arith.mulf %689, %688 : vector<4x16x16xf32>
    %c3_220 = arith.constant 3 : index
    %c11_221 = arith.constant 11 : index
    %691 = memref.load %arg4[%c3_220, %c11_221] : memref<4x16xf32, #tpu.memory_space<smem>>
    %692 = vector.extract_strided_slice %0 {offsets = [0, 11, 0, 0], sizes = [4, 1, 16, 16], strides = [1, 1, 1, 1]} : vector<4x16x16x16xf32> to vector<4x1x16x16xf32>
    %693 = vector.shape_cast %692 : vector<4x1x16x16xf32> to vector<4x16x16xf32>
    %694 = vector.broadcast %691 : f32 to vector<4x16x16xf32>
    %695 = arith.mulf %694, %693 : vector<4x16x16xf32>
    %696 = arith.addf %690, %695 : vector<4x16x16xf32>
    %c3_222 = arith.constant 3 : index
    %c2_223 = arith.constant 2 : index
    %697 = memref.load %arg5[%c3_222, %c2_223] : memref<4x5xf32, #tpu.memory_space<smem>>
    %698 = vector.broadcast %697 : f32 to vector<4x16x16xf32>
    %699 = arith.addf %696, %698 : vector<4x16x16xf32>
    %700 = arith.addf %699, %6 : vector<4x16x16xf32>
    %cst_224 = arith.constant dense<0xFF800000> : vector<4x16xf32>
    %701 = vector.multi_reduction <maximumf>, %700, %cst_224 [2] : vector<4x16x16xf32> to vector<4x16xf32>
    %702 = vector.shape_cast %701 : vector<4x16xf32> to vector<4x16x1xf32>
    %703 = vector.broadcast %702 : vector<4x16x1xf32> to vector<4x16x16xf32>
    %704 = arith.subf %700, %703 : vector<4x16x16xf32>
    %705 = math.exp %704 : vector<4x16x16xf32>
    %cst_225 = arith.constant dense<0.000000e+00> : vector<4x16xf32>
    %706 = vector.multi_reduction <add>, %705, %cst_225 [2] : vector<4x16x16xf32> to vector<4x16xf32>
    %707 = vector.shape_cast %706 : vector<4x16xf32> to vector<4x16x1xf32>
    %708 = tpu.reciprocal %707 {approx = true} : vector<4x16x1xf32> -> vector<4x16x1xf32>
    %709 = vector.broadcast %708 : vector<4x16x1xf32> to vector<4x16x16xf32>
    %710 = arith.mulf %705, %709 : vector<4x16x16xf32>
    %711 = arith.truncf %710 : vector<4x16x16xf32> to vector<4x16x16xbf16>
    %712 = vector.extract_strided_slice %591 {offsets = [0, 0, 16], sizes = [4, 16, 8], strides = [1, 1, 1]} : vector<4x16x40xf32> to vector<4x16x8xf32>
    %713 = arith.truncf %712 : vector<4x16x8xf32> to vector<4x16x8xbf16>
    "tpu.trace_start"() <{level = 10 : i32, message = "bij,bjm->bim"}> : () -> ()
    %cst_226 = arith.constant dense<0.000000e+00> : vector<4x16x8xf32>
    %714 = tpu.matmul %711, %713, %cst_226 {dimension_numbers = #tpu.dot_dimension_numbers<[2], [1], [1], [2], [0, 0, 0, 1, 1, 2], [0], [0]>} : vector<4x16x16xbf16>, vector<4x16x8xbf16>, vector<4x16x8xf32> -> vector<4x16x8xf32>
    "tpu.trace_stop"() : () -> ()
    %c3_227 = arith.constant 3 : index
    %c12_228 = arith.constant 12 : index
    %715 = memref.load %arg4[%c3_227, %c12_228] : memref<4x16xf32, #tpu.memory_space<smem>>
    %716 = vector.extract_strided_slice %0 {offsets = [0, 12, 0, 0], sizes = [4, 1, 16, 16], strides = [1, 1, 1, 1]} : vector<4x16x16x16xf32> to vector<4x1x16x16xf32>
    %717 = vector.shape_cast %716 : vector<4x1x16x16xf32> to vector<4x16x16xf32>
    %718 = vector.broadcast %715 : f32 to vector<4x16x16xf32>
    %719 = arith.mulf %718, %717 : vector<4x16x16xf32>
    %c3_229 = arith.constant 3 : index
    %c13_230 = arith.constant 13 : index
    %720 = memref.load %arg4[%c3_229, %c13_230] : memref<4x16xf32, #tpu.memory_space<smem>>
    %721 = vector.extract_strided_slice %0 {offsets = [0, 13, 0, 0], sizes = [4, 1, 16, 16], strides = [1, 1, 1, 1]} : vector<4x16x16x16xf32> to vector<4x1x16x16xf32>
    %722 = vector.shape_cast %721 : vector<4x1x16x16xf32> to vector<4x16x16xf32>
    %723 = vector.broadcast %720 : f32 to vector<4x16x16xf32>
    %724 = arith.mulf %723, %722 : vector<4x16x16xf32>
    %725 = arith.addf %719, %724 : vector<4x16x16xf32>
    %c3_231 = arith.constant 3 : index
    %c3_232 = arith.constant 3 : index
    %726 = memref.load %arg5[%c3_231, %c3_232] : memref<4x5xf32, #tpu.memory_space<smem>>
    %727 = vector.broadcast %726 : f32 to vector<4x16x16xf32>
    %728 = arith.addf %725, %727 : vector<4x16x16xf32>
    %729 = arith.addf %728, %6 : vector<4x16x16xf32>
    %cst_233 = arith.constant dense<0xFF800000> : vector<4x16xf32>
    %730 = vector.multi_reduction <maximumf>, %729, %cst_233 [2] : vector<4x16x16xf32> to vector<4x16xf32>
    %731 = vector.shape_cast %730 : vector<4x16xf32> to vector<4x16x1xf32>
    %732 = vector.broadcast %731 : vector<4x16x1xf32> to vector<4x16x16xf32>
    %733 = arith.subf %729, %732 : vector<4x16x16xf32>
    %734 = math.exp %733 : vector<4x16x16xf32>
    %cst_234 = arith.constant dense<0.000000e+00> : vector<4x16xf32>
    %735 = vector.multi_reduction <add>, %734, %cst_234 [2] : vector<4x16x16xf32> to vector<4x16xf32>
    %736 = vector.shape_cast %735 : vector<4x16xf32> to vector<4x16x1xf32>
    %737 = tpu.reciprocal %736 {approx = true} : vector<4x16x1xf32> -> vector<4x16x1xf32>
    %738 = vector.broadcast %737 : vector<4x16x1xf32> to vector<4x16x16xf32>
    %739 = arith.mulf %734, %738 : vector<4x16x16xf32>
    %740 = arith.truncf %739 : vector<4x16x16xf32> to vector<4x16x16xbf16>
    %741 = vector.extract_strided_slice %591 {offsets = [0, 0, 24], sizes = [4, 16, 8], strides = [1, 1, 1]} : vector<4x16x40xf32> to vector<4x16x8xf32>
    %742 = arith.truncf %741 : vector<4x16x8xf32> to vector<4x16x8xbf16>
    "tpu.trace_start"() <{level = 10 : i32, message = "bij,bjm->bim"}> : () -> ()
    %cst_235 = arith.constant dense<0.000000e+00> : vector<4x16x8xf32>
    %743 = tpu.matmul %740, %742, %cst_235 {dimension_numbers = #tpu.dot_dimension_numbers<[2], [1], [1], [2], [0, 0, 0, 1, 1, 2], [0], [0]>} : vector<4x16x16xbf16>, vector<4x16x8xbf16>, vector<4x16x8xf32> -> vector<4x16x8xf32>
    "tpu.trace_stop"() : () -> ()
    %c3_236 = arith.constant 3 : index
    %c14_237 = arith.constant 14 : index
    %744 = memref.load %arg4[%c3_236, %c14_237] : memref<4x16xf32, #tpu.memory_space<smem>>
    %745 = vector.extract_strided_slice %0 {offsets = [0, 14, 0, 0], sizes = [4, 1, 16, 16], strides = [1, 1, 1, 1]} : vector<4x16x16x16xf32> to vector<4x1x16x16xf32>
    %746 = vector.shape_cast %745 : vector<4x1x16x16xf32> to vector<4x16x16xf32>
    %747 = vector.broadcast %744 : f32 to vector<4x16x16xf32>
    %748 = arith.mulf %747, %746 : vector<4x16x16xf32>
    %c3_238 = arith.constant 3 : index
    %c15_239 = arith.constant 15 : index
    %749 = memref.load %arg4[%c3_238, %c15_239] : memref<4x16xf32, #tpu.memory_space<smem>>
    %750 = vector.extract_strided_slice %0 {offsets = [0, 15, 0, 0], sizes = [4, 1, 16, 16], strides = [1, 1, 1, 1]} : vector<4x16x16x16xf32> to vector<4x1x16x16xf32>
    %751 = vector.shape_cast %750 : vector<4x1x16x16xf32> to vector<4x16x16xf32>
    %752 = vector.broadcast %749 : f32 to vector<4x16x16xf32>
    %753 = arith.mulf %752, %751 : vector<4x16x16xf32>
    %754 = arith.addf %748, %753 : vector<4x16x16xf32>
    %c3_240 = arith.constant 3 : index
    %c4_241 = arith.constant 4 : index
    %755 = memref.load %arg5[%c3_240, %c4_241] : memref<4x5xf32, #tpu.memory_space<smem>>
    %756 = vector.broadcast %755 : f32 to vector<4x16x16xf32>
    %757 = arith.addf %754, %756 : vector<4x16x16xf32>
    %758 = arith.addf %757, %6 : vector<4x16x16xf32>
    %cst_242 = arith.constant dense<0xFF800000> : vector<4x16xf32>
    %759 = vector.multi_reduction <maximumf>, %758, %cst_242 [2] : vector<4x16x16xf32> to vector<4x16xf32>
    %760 = vector.shape_cast %759 : vector<4x16xf32> to vector<4x16x1xf32>
    %761 = vector.broadcast %760 : vector<4x16x1xf32> to vector<4x16x16xf32>
    %762 = arith.subf %758, %761 : vector<4x16x16xf32>
    %763 = math.exp %762 : vector<4x16x16xf32>
    %cst_243 = arith.constant dense<0.000000e+00> : vector<4x16xf32>
    %764 = vector.multi_reduction <add>, %763, %cst_243 [2] : vector<4x16x16xf32> to vector<4x16xf32>
    %765 = vector.shape_cast %764 : vector<4x16xf32> to vector<4x16x1xf32>
    %766 = tpu.reciprocal %765 {approx = true} : vector<4x16x1xf32> -> vector<4x16x1xf32>
    %767 = vector.broadcast %766 : vector<4x16x1xf32> to vector<4x16x16xf32>
    %768 = arith.mulf %763, %767 : vector<4x16x16xf32>
    %769 = arith.truncf %768 : vector<4x16x16xf32> to vector<4x16x16xbf16>
    %770 = vector.extract_strided_slice %591 {offsets = [0, 0, 32], sizes = [4, 16, 8], strides = [1, 1, 1]} : vector<4x16x40xf32> to vector<4x16x8xf32>
    %771 = arith.truncf %770 : vector<4x16x8xf32> to vector<4x16x8xbf16>
    "tpu.trace_start"() <{level = 10 : i32, message = "bij,bjm->bim"}> : () -> ()
    %cst_244 = arith.constant dense<0.000000e+00> : vector<4x16x8xf32>
    %772 = tpu.matmul %769, %771, %cst_244 {dimension_numbers = #tpu.dot_dimension_numbers<[2], [1], [1], [2], [0, 0, 0, 1, 1, 2], [0], [0]>} : vector<4x16x16xbf16>, vector<4x16x8xbf16>, vector<4x16x8xf32> -> vector<4x16x8xf32>
    "tpu.trace_stop"() : () -> ()
    %773 = tpu.concatenate %644, %685, %714, %743, %772 in 2 : vector<4x16x8xf32>, vector<4x16x8xf32>, vector<4x16x8xf32>, vector<4x16x8xf32>, vector<4x16x8xf32> -> vector<4x16x40xf32>
    %c0_245 = arith.constant 0 : index
    %c0_246 = arith.constant 0 : index
    %774 = vector.load %arg13[%c0_245, %c0_246] : memref<1x40xf32, #tpu.memory_space<vmem>>, vector<1x40xf32>
    %775 = vector.shape_cast %774 : vector<1x40xf32> to vector<1x1x40xf32>
    %776 = vector.broadcast %775 : vector<1x1x40xf32> to vector<4x16x40xf32>
    %777 = arith.addf %773, %776 : vector<4x16x40xf32>
    %c0_247 = arith.constant 0 : index
    %c0_248 = arith.constant 0 : index
    %c0_249 = arith.constant 0 : index
    %778 = vector.load %arg23[%c0_247, %c0_248, %c0_249] : memref<4x16x40xf32, #tpu.memory_space<vmem>>, vector<4x16x40xf32>
    tpu.vector_store %arg23[%c0_247, %c0_248, %c0_249], %777 {strides = array<i32>} : memref<4x16x40xf32, #tpu.memory_space<vmem>>, vector<4x16x40xf32>,
    %cst_250 = arith.constant dense<0.000000e+00> : vector<4x40xf32>
    %779 = vector.multi_reduction <add>, %777, %cst_250 [1] : vector<4x16x40xf32> to vector<4x40xf32>
    %780 = arith.truncf %779 : vector<4x40xf32> to vector<4x40xbf16>
    %c0_251 = arith.constant 0 : index
    %c0_252 = arith.constant 0 : index
    %781 = vector.load %arg14[%c0_251, %c0_252] : memref<40x32xbf16, #tpu.memory_space<vmem>>, vector<40x32xbf16>
    %cst_253 = arith.constant dense<0.000000e+00> : vector<4x32xf32>
    %782 = tpu.matmul %780, %781, %cst_253 {dimension_numbers = #tpu.dot_dimension_numbers<[1], [0], [0], [1], [0, 0, 1, 1], [], []>} : vector<4x40xbf16>, vector<40x32xbf16>, vector<4x32xf32> -> vector<4x32xf32>
    %c0_254 = arith.constant 0 : index
    %c0_255 = arith.constant 0 : index
    %783 = vector.load %arg15[%c0_254, %c0_255] : memref<1x32xf32, #tpu.memory_space<vmem>>, vector<1x32xf32>
    %784 = vector.broadcast %783 : vector<1x32xf32> to vector<4x32xf32>
    %785 = arith.addf %782, %784 : vector<4x32xf32>
    %cst_256 = arith.constant 0.000000e+00 : f32
    %786 = vector.broadcast %cst_256 : f32 to vector<4x32xf32>
    %787 = arith.maximumf %785, %786 : vector<4x32xf32>
    %788 = arith.truncf %787 : vector<4x32xf32> to vector<4x32xbf16>
    %c0_257 = arith.constant 0 : index
    %c0_258 = arith.constant 0 : index
    %789 = vector.load %arg16[%c0_257, %c0_258] : memref<32x16xbf16, #tpu.memory_space<vmem>>, vector<32x16xbf16>
    %cst_259 = arith.constant dense<0.000000e+00> : vector<4x16xf32>
    %790 = tpu.matmul %788, %789, %cst_259 {dimension_numbers = #tpu.dot_dimension_numbers<[1], [0], [0], [1], [0, 0, 1, 1], [], []>} : vector<4x32xbf16>, vector<32x16xbf16>, vector<4x16xf32> -> vector<4x16xf32>
    %c0_260 = arith.constant 0 : index
    %c0_261 = arith.constant 0 : index
    %791 = vector.load %arg17[%c0_260, %c0_261] : memref<1x16xf32, #tpu.memory_space<vmem>>, vector<1x16xf32>
    %792 = vector.broadcast %791 : vector<1x16xf32> to vector<4x16xf32>
    %793 = arith.addf %790, %792 : vector<4x16xf32>
    %794 = vector.shape_cast %793 : vector<4x16xf32> to vector<4x1x16xf32>
    %c0_262 = arith.constant 0 : index
    %c0_263 = arith.constant 0 : index
    %c0_264 = arith.constant 0 : index
    %795 = vector.load %arg24[%c0_262, %c0_263, %c0_264] : memref<4x1x16xf32, #tpu.memory_space<vmem>>, vector<4x1x16xf32>
    tpu.vector_store %arg24[%c0_262, %c0_263, %c0_264], %794 {strides = array<i32>} : memref<4x1x16xf32, #tpu.memory_space<vmem>>, vector<4x1x16xf32>,
    %c0_265 = arith.constant 0 : index
    %c0_266 = arith.constant 0 : index
    %796 = vector.load %arg18[%c0_265, %c0_266] : memref<1x16xf32, #tpu.memory_space<vmem>>, vector<1x16xf32>
    %797 = vector.broadcast %796 : vector<1x16xf32> to vector<4x16xf32>
    %798 = arith.mulf %793, %797 : vector<4x16xf32>
    %c0_267 = arith.constant 0 : index
    %c0_268 = arith.constant 0 : index
    %799 = vector.load %arg19[%c0_267, %c0_268] : memref<1x16xf32, #tpu.memory_space<vmem>>, vector<1x16xf32>
    %800 = vector.broadcast %799 : vector<1x16xf32> to vector<4x16xf32>
    %801 = arith.addf %798, %800 : vector<4x16xf32>
    %cst_269 = arith.constant 0.000000e+00 : f32
    %802 = vector.broadcast %cst_269 : f32 to vector<4x16xf32>
    %803 = arith.maximumf %801, %802 : vector<4x16xf32>
    %804 = arith.truncf %803 : vector<4x16xf32> to vector<4x16xbf16>
    %c0_270 = arith.constant 0 : index
    %c0_271 = arith.constant 0 : index
    %805 = vector.load %arg20[%c0_270, %c0_271] : memref<16x2xbf16, #tpu.memory_space<vmem>>, vector<16x2xbf16>
    %cst_272 = arith.constant dense<0.000000e+00> : vector<4x2xf32>
    %806 = tpu.matmul %804, %805, %cst_272 {dimension_numbers = #tpu.dot_dimension_numbers<[1], [0], [0], [1], [0, 0, 1, 1], [], []>} : vector<4x16xbf16>, vector<16x2xbf16>, vector<4x2xf32> -> vector<4x2xf32>
    %c0_273 = arith.constant 0 : index
    %c0_274 = arith.constant 0 : index
    %807 = vector.load %arg21[%c0_273, %c0_274] : memref<1x2xf32, #tpu.memory_space<vmem>>, vector<1x2xf32>
    %808 = vector.broadcast %807 : vector<1x2xf32> to vector<4x2xf32>
    %809 = arith.addf %806, %808 : vector<4x2xf32>
    %810 = vector.shape_cast %809 : vector<4x2xf32> to vector<4x1x2xf32>
    %c0_275 = arith.constant 0 : index
    %c0_276 = arith.constant 0 : index
    %c0_277 = arith.constant 0 : index
    %811 = vector.load %arg22[%c0_275, %c0_276, %c0_277] : memref<4x1x2xf32, #tpu.memory_space<vmem>>, vector<4x1x2xf32>
    tpu.vector_store %arg22[%c0_275, %c0_276, %c0_277], %810 {strides = array<i32>} : memref<4x1x2xf32, #tpu.memory_space<vmem>>, vector<4x1x2xf32>,
    return
  }
  func.func @transform_0(%arg0: i32) -> (i32, i32, i32, i32) {
    %c0_i32 = arith.constant 0 : i32
    %c0_i32_0 = arith.constant 0 : i32
    %c0_i32_1 = arith.constant 0 : i32
    %c0_i32_2 = arith.constant 0 : i32
    return %arg0, %c0_i32, %c0_i32_0, %c0_i32_1 : i32, i32, i32, i32
  }
  func.func @transform_1(%arg0: i32) -> (i32, i32, i32) {
    %c0_i32 = arith.constant 0 : i32
    %c0_i32_0 = arith.constant 0 : i32
    %c0_i32_1 = arith.constant 0 : i32
    return %arg0, %c0_i32, %c0_i32_0 : i32, i32, i32
  }
  func.func @transform_2(%arg0: i32) -> (i32, i32, i32) {
    %c0_i32 = arith.constant 0 : i32
    %c0_i32_0 = arith.constant 0 : i32
    %c0_i32_1 = arith.constant 0 : i32
    return %arg0, %c0_i32, %c0_i32_0 : i32, i32, i32
  }
  func.func @transform_3(%arg0: i32) -> (i32, i32) {
    %c0_i32 = arith.constant 0 : i32
    %c0_i32_0 = arith.constant 0 : i32
    %c0_i32_1 = arith.constant 0 : i32
    return %c0_i32, %c0_i32_0 : i32, i32
  }
  func.func @transform_4(%arg0: i32) -> (i32, i32) {
    %c0_i32 = arith.constant 0 : i32
    %c0_i32_0 = arith.constant 0 : i32
    %c0_i32_1 = arith.constant 0 : i32
    return %c0_i32, %c0_i32_0 : i32, i32
  }
  func.func @transform_5(%arg0: i32) -> (i32, i32) {
    %c0_i32 = arith.constant 0 : i32
    %c0_i32_0 = arith.constant 0 : i32
    %c0_i32_1 = arith.constant 0 : i32
    return %c0_i32, %c0_i32_0 : i32, i32
  }
  func.func @transform_6(%arg0: i32) -> (i32, i32) {
    %c0_i32 = arith.constant 0 : i32
    %c0_i32_0 = arith.constant 0 : i32
    %c0_i32_1 = arith.constant 0 : i32
    return %c0_i32, %c0_i32_0 : i32, i32
  }
  func.func @transform_7(%arg0: i32) -> (i32, i32) {
    %c0_i32 = arith.constant 0 : i32
    %c0_i32_0 = arith.constant 0 : i32
    %c0_i32_1 = arith.constant 0 : i32
    return %c0_i32, %c0_i32_0 : i32, i32
  }
  func.func @transform_8(%arg0: i32) -> (i32, i32) {
    %c0_i32 = arith.constant 0 : i32
    %c0_i32_0 = arith.constant 0 : i32
    %c0_i32_1 = arith.constant 0 : i32
    return %c0_i32, %c0_i32_0 : i32, i32
  }
  func.func @transform_9(%arg0: i32) -> (i32, i32) {
    %c0_i32 = arith.constant 0 : i32
    %c0_i32_0 = arith.constant 0 : i32
    %c0_i32_1 = arith.constant 0 : i32
    return %c0_i32, %c0_i32_0 : i32, i32
  }
  func.func @transform_10(%arg0: i32) -> (i32, i32) {
    %c0_i32 = arith.constant 0 : i32
    %c0_i32_0 = arith.constant 0 : i32
    %c0_i32_1 = arith.constant 0 : i32
    return %c0_i32, %c0_i32_0 : i32, i32
  }
  func.func @transform_11(%arg0: i32) -> (i32, i32) {
    %c0_i32 = arith.constant 0 : i32
    %c0_i32_0 = arith.constant 0 : i32
    %c0_i32_1 = arith.constant 0 : i32
    return %c0_i32, %c0_i32_0 : i32, i32
  }
  func.func @transform_12(%arg0: i32) -> (i32, i32) {
    %c0_i32 = arith.constant 0 : i32
    %c0_i32_0 = arith.constant 0 : i32
    %c0_i32_1 = arith.constant 0 : i32
    return %c0_i32, %c0_i32_0 : i32, i32
  }
  func.func @transform_13(%arg0: i32) -> (i32, i32) {
    %c0_i32 = arith.constant 0 : i32
    %c0_i32_0 = arith.constant 0 : i32
    %c0_i32_1 = arith.constant 0 : i32
    return %c0_i32, %c0_i32_0 : i32, i32
  }
  func.func @transform_14(%arg0: i32) -> (i32, i32) {
    %c0_i32 = arith.constant 0 : i32
    %c0_i32_0 = arith.constant 0 : i32
    %c0_i32_1 = arith.constant 0 : i32
    return %c0_i32, %c0_i32_0 : i32, i32
  }
  func.func @transform_15(%arg0: i32) -> (i32, i32) {
    %c0_i32 = arith.constant 0 : i32
    %c0_i32_0 = arith.constant 0 : i32
    %c0_i32_1 = arith.constant 0 : i32
    return %c0_i32, %c0_i32_0 : i32, i32
  }
  func.func @transform_16(%arg0: i32) -> (i32, i32) {
    %c0_i32 = arith.constant 0 : i32
    %c0_i32_0 = arith.constant 0 : i32
    %c0_i32_1 = arith.constant 0 : i32
    return %c0_i32, %c0_i32_0 : i32, i32
  }
  func.func @transform_17(%arg0: i32) -> (i32, i32) {
    %c0_i32 = arith.constant 0 : i32
    %c0_i32_0 = arith.constant 0 : i32
    %c0_i32_1 = arith.constant 0 : i32
    return %c0_i32, %c0_i32_0 : i32, i32
  }
  func.func @transform_18(%arg0: i32) -> (i32, i32) {
    %c0_i32 = arith.constant 0 : i32
    %c0_i32_0 = arith.constant 0 : i32
    %c0_i32_1 = arith.constant 0 : i32
    return %c0_i32, %c0_i32_0 : i32, i32
  }
  func.func @transform_19(%arg0: i32) -> (i32, i32) {
    %c0_i32 = arith.constant 0 : i32
    %c0_i32_0 = arith.constant 0 : i32
    %c0_i32_1 = arith.constant 0 : i32
    return %c0_i32, %c0_i32_0 : i32, i32
  }
  func.func @transform_20(%arg0: i32) -> (i32, i32) {
    %c0_i32 = arith.constant 0 : i32
    %c0_i32_0 = arith.constant 0 : i32
    %c0_i32_1 = arith.constant 0 : i32
    return %c0_i32, %c0_i32_0 : i32, i32
  }
  func.func @transform_21(%arg0: i32) -> (i32, i32, i32) {
    %c0_i32 = arith.constant 0 : i32
    %c0_i32_0 = arith.constant 0 : i32
    %c0_i32_1 = arith.constant 0 : i32
    return %arg0, %c0_i32, %c0_i32_0 : i32, i32, i32
  }
  func.func @transform_22(%arg0: i32) -> (i32, i32, i32) {
    %c0_i32 = arith.constant 0 : i32
    %c0_i32_0 = arith.constant 0 : i32
    %c0_i32_1 = arith.constant 0 : i32
    return %arg0, %c0_i32, %c0_i32_0 : i32, i32, i32
  }
  func.func @transform_23(%arg0: i32) -> (i32, i32, i32) {
    %c0_i32 = arith.constant 0 : i32
    %c0_i32_0 = arith.constant 0 : i32
    %c0_i32_1 = arith.constant 0 : i32
    return %arg0, %c0_i32, %c0_i32_0 : i32, i32, i32
  }
}

</mosaic_0001>

<bundles_post_ra>
// kernel: eagcn_forward.1
= control target key start
LH: loop header
LB: loop body
LE: loop exit
PB: predicated region body
PF: predicated region fallthrough
CT: control target
= control target key end

     0   :  { %s17094_s0 = inlined_call_operand.vmem [shape: f32[8,16,16,16], index: 0, kind: input, shape index: {}]   ;;  %s17095_s1 = inlined_call_operand.vmem [shape: f32[8,16,16], index: 1, kind: input, shape index: {}]   ;;  %s17096_s2 = inlined_call_operand.vmem [shape: f32[8,16,8], index: 2, kind: input, shape index: {}]   ;;  %s17097_s3 = inlined_call_operand.vmem [shape: f32[4,16], index: 3, kind: input, shape index: {}]   ;;  %s17098_s4 = inlined_call_operand.vmem [shape: f32[4,5], index: 4, kind: input, shape index: {}]   ;;  %s17099_s5 = inlined_call_operand.vmem [shape: bf16[8,20], index: 5, kind: input, shape index: {}]   ;;  %s17100_s6 = inlined_call_operand.vmem [shape: f32[1,20], index: 6, kind: input, shape index: {}]   ;;  %s17101_s7 = inlined_call_operand.vmem [shape: bf16[20,20], index: 7, kind: input, shape index: {}]   ;;  %s17102_s8 = inlined_call_operand.vmem [shape: f32[1,20], index: 8, kind: input, shape index: {}]   ;;  %s17103_s9 = inlined_call_operand.vmem [shape: bf16[20,40], index: 9, kind: input, shape index: {}]   ;;  %s17104_s10 = inlined_call_operand.vmem [shape: f32[1,40], index: 10, kind: input, shape index: {}]   ;;  %s17105_s11 = inlined_call_operand.vmem [shape: bf16[40,40], index: 11, kind: input, shape index: {}]   ;;  %s17106_s12 = inlined_call_operand.vmem [shape: f32[1,40], index: 12, kind: input, shape index: {}]   ;;  %s17107_s13 = inlined_call_operand.vmem [shape: bf16[40,32], index: 13, kind: input, shape index: {}]   ;;  %s17108_s14 = inlined_call_operand.vmem [shape: f32[1,32], index: 14, kind: input, shape index: {}]   ;;  %s17109_s15 = inlined_call_operand.vmem [shape: bf16[32,16], index: 15, kind: input, shape index: {}]   ;;  %s17110_s16 = inlined_call_operand.vmem [shape: f32[1,16], index: 16, kind: input, shape index: {}]   ;;  %s17111_s17 = inlined_call_operand.vmem [shape: f32[1,16], index: 17, kind: input, shape index: {}]   ;;  %s17112_s18 = inlined_call_operand.vmem [shape: f32[1,16], index: 18, kind: input, shape index: {}]   ;;  %s17113_s19 = inlined_call_operand.vmem [shape: bf16[16,2], index: 19, kind: input, shape index: {}]   ;;  %s17114_s20 = inlined_call_operand.vmem [shape: f32[1,2], index: 20, kind: input, shape index: {}]   ;;  %s17115_s21 = inlined_call_operand.vmem [shape: f32[8,1,2], index: 21, kind: output, shape index: {0}]   ;;  %s17116_s22 = inlined_call_operand.hbm [shape: f32[8,16,40], index: 22, kind: output, shape index: {1}]   ;;  %s17117_s23 = inlined_call_operand.hbm [shape: f32[8,1,16], index: 23, kind: output, shape index: {2}]  }
   0x1   :  { %17284 = sst [smem:[#allocation56_spill]] %s17094_s0 }
   0x2   :  { %17285 = sst [smem:[#allocation57_spill]] %s17095_s1 }
   0x3   :  { %17286 = sst [smem:[#allocation58_spill]] %s17096_s2 }
   0x4   :  { %17287 = sst [smem:[#allocation59_spill]] %s17097_s3 }
   0x5   :  { %17288 = sst [smem:[#allocation60_spill]] %s17098_s4 }
   0x6   :  { %17289 = sst [smem:[#allocation61_spill]] %s17099_s5 }
   0x7   :  { %17290 = sst [smem:[#allocation62_spill]] %s17100_s6 }
   0x8   :  { %17291 = sst [smem:[#allocation63_spill]] %s17101_s7 }
   0x9   :  { %17292 = sst [smem:[#allocation64_spill]] %s17102_s8 }
   0xa   :  { %17293 = sst [smem:[#allocation65_spill]] %s17103_s9 }
   0xb   :  { %17294 = sst [smem:[#allocation66_spill]] %s17104_s10 }
   0xc   :  { %17295 = sst [smem:[#allocation67_spill]] %s17114_s20 }
   0xd   :  { %17296 = sst [smem:[#allocation68_spill]] %s17115_s21 }
   0xe   :  { %17297 = sst [smem:[#allocation69_spill]] %s17116_s22 }
   0xf   :  { %17298 = sst [smem:[#allocation70_spill]] %s17117_s23 }
  0x10   :  { %29 = vsyncpa [#allocation4], 0 }
  0x11   :  { %30 = vsyncpa [#allocation6], 0 }
  0x12   :  { %31 = vsyncpa [#allocation3], 0 }
  0x13   :  { %33 = vsyncpa [#allocation3 + $0x1], 0 }
  0x14   :  { %34 = vsyncpa [#allocation9], 0 }
  0x15   :  { %36 = vsyncpa [#allocation9 + $0x1], 0  ;;  %s11962_s4 = smov 0   ;;  %s11964_s30 = smov 0  }
  0x16   :  { %s11966_s24 = smov 0   ;;  %s11968_s25 = smov 0  }
  0x17 LB: > { %17299 = sst [smem:[#allocation14_spill]] %s11806_s4  ;;  %s11983_s5 = sadd.s32 4294967295, %s11818_s25   ;;  %s11818_s25 = sphi %s11968_s25, %s17600_s25   ;;  %s11814_s24 = sphi %s11966_s24, %s17602_s24   ;;  %s11810_s30 = sphi %s11964_s30, %s17604_s30   ;;  %s11806_s4 = sphi %s11962_s4, %s17603_s4  }
  0x18   : > { %17300 = sst [smem:[#allocation15_spill]] %s11814_s24  ;;  %s9579_s1 = sadd.s32 4294967294, %s11818_s25  }
  0x19   : > { %17301 = sst [smem:[#allocation16_spill]] %s11818_s25  ;;  %s11987_s26 = sadd.s32 1, %s11818_s25  }
  0x1a   : > { %17302 = sst [smem:[#allocation17_spill]] %s11987_s26  ;;  %s531_s2 = sadd.s32 1, %s11814_s24 }
  0x1b   : > { %s528_s6 = ssub.s32 %s11818_s25, %s11987_s26  ;;  %p541_p0 = scmp.ne.s32.totalorder %s11814_s24, %s11810_s30 }
  0x1c   : > { %p529_p1 = scmp.eq.s32.totalorder %s528_s6, 0  ;;  %p542_p2 = scmp.eq.s32.totalorder %s11983_s5, 1 }
  0x1d   : > { %p547_p3 = scmp.ne.s32.totalorder %s11810_s30, %s11806_s4  ;;  %p548_p4 = scmp.eq.s32.totalorder %s9579_s1, 1 }
  0x1e   : > { %s11998_s27 = scalar_select %p529_p1, %s11814_s24, %s531_s2  }
  0x1f   : > { %p12000_p5 = por %p542_p2, %p541_p0  ;;  %p12004_p6 = por %p548_p4, %p547_p3 }
  0x20   : > { %17303 = sst [smem:[#allocation18_spill]] %s11998_s27  ;;  %p9580_p7 = scmp.ge.s32.totalorder %s11818_s25, 1 }
  0x21   : > { %s17304_s7 = scalar_select %p12000_p5, 1, 0 }
  0x22   : > { %s17305_s28 = scalar_select %p12004_p6, 1, 0 }
  0x23   : > { %p581_p8 = scmp.lt.s32.totalorder %s11818_s25, 3  ;;  %p17124_p9 = scmp.eq.s32.totalorder %s11983_s5, 0 }
  0x24   : > { %17306 = sst [smem:[#allocation19_spill]] %s17305_s28  ;;  %s17308_s1 = sld [smem:[#allocation59_spill]] }
  0x25   : > { %p12011_p10 = pnand %p9580_p7, %p581_p8  ;;  %s17309_s24 = sld [smem:[#allocation60_spill]] }
  0x27   : > { %s17307_s29 = scalar_select %p12011_p10, 1, 0 }
  0x28   : > { %p10578_p11 = pneg %p12011_p10 }
  0x2a   : > { %s594_s2 = sshll.u32 %s17308_s1, 4  ;;  %p12025_p12 = pnand %p17124_p9, %p10578_p11  ;;  %s595_s2 = int_to_ptr.vmem [resolvable:$true] %s594_s2 }
  0x2b   : > { %s605_s26 = sshll.u32 %s17309_s24, 4  ;;  %s11686_s4 = scalar_lea.vmem %s595_s2, 64  ;;  %s606_s26 = int_to_ptr.vmem [resolvable:$true] %s605_s26 }
  0x2c   : > { %p11687_p13 = scmp.ne.s32.totalorder %s595_s2, %s11686_s4  ;;  %p11688_p0 = pneg %p12025_p12 }
  0x2d   : > { %p11694_p3 = scmp.lt.s32.totalorder %s595_s2, %s595_s2  ;;  %p11695_p4 = scmp.lt.s32.totalorder %s11686_s4, %s11686_s4 }
  0x2e   : > { %p11689_p1 = pnand %p11688_p0, %p11687_p13 }
  0x2f   : > { %p11696_p7 = por %p11695_p4, %p11694_p3 }
  0x30   : > { %p11690_p2 = pneg %p11689_p1 }
  0x32   : > { %p11697_p8 = pnand %p11696_p7, %p11690_p2 }
  0x34   : > { %11700 = shalt.err (!%p11697_p8)
}
  0x35   : > { %s11820_s24 = smov [#allocation2]   ;;  %s11701_s27 = scalar_lea.vmem %s606_s26, 64 }
  0x36   : > { %10581 = dma.vmem_to_smem (!%p12025_p12), %s595_s2, 64, %s11820_s24, [#allocation4]  }
  0x37   : > { %p11702_p11 = scmp.ne.s32.totalorder %s606_s26, %s11701_s27  ;;  %p11709_p5 = scmp.lt.s32.totalorder %s606_s26, %s606_s26 }
  0x38   : > { %p11710_p10 = scmp.lt.s32.totalorder %s11701_s27, %s11701_s27 }
  0x39   : > { %p11704_p9 = pnand %p11702_p11, %p11688_p0 }
  0x3a   : > { %p11711_p13 = por %p11710_p10, %p11709_p5 }
  0x3b   : > { %p11705_p6 = pneg %p11704_p9 }
  0x3d   : > { %p11712_p1 = pnand %p11711_p13, %p11705_p6 }
  0x3f   : > { %11715 = shalt.err (!%p11712_p1)
}
  0x40   : > { %s11821_s3 = smov [#allocation5]   ;;  %p17311_p2 = scmp.ne.s32.totalorder %s17307_s29, 0 }
  0x41   : > { %10584 = dma.vmem_to_smem (!%p12025_p12), %s606_s26, 64, %s11821_s3, [#allocation6]  }
  0x42   : > { %696 = sbr.rel (%p17311_p2) target bundleno = 4060 (0xfdc), region = 104 }
  0x49   : > { %p17312_p3 = scmp.eq.s32.totalorder %s11983_s5, 0 }
  0x4b   : > { %11789 = dma.done.wait (%p17312_p3), [#allocation4], 64   ;;  %p17313_p4 = pmov %p17312_p3 }
  0x4c   : > { %p17314_p9 = pmov %p17312_p3 }
  0x4d   : > { %11791 = vsyncadd (%p17313_p4), [#allocation4], 4294967232 }
  0x4e   : > { %11793 = dma.done.wait (%p17314_p9), [#allocation6], 64   ;;  %p17315_p5 = pmov %p17312_p3 }
  0x50   : > { %11795 = vsyncadd (%p17315_p5), [#allocation6], 4294967232 }
  0x51   : > { %706 = sfence }
  0x52   : > { %s9589_s4 = sshll.u32 %s11983_s5, 2  ;;  %s9612_s28 = sld [smem:[#allocation2 + $0x6]]  ;;  %vm994_vm0 = vcmask 1043456   ;;  %vm1181_vm2 = vcmask 130048   ;;  %v11822_v18 = vmov -1e+09  }
  0x53   : > { %p788_p6 = scmp.lt.s32.totalorder %s9589_s4, 7  ;;  %s9613_s26 = sld [smem:[#allocation2 + $0x7]]  ;;  %vm981_vm10 = vcmask 64512   ;;  %vm11824_vm11 = vmmov 0   ;;  %vm3012_vm12 = vcmask 1041408   ;;  %vm2926_vm13 = vcmask 31744  }
  0x54   : > { %s17316_s1 = sld [smem:[#allocation61_spill]]  ;;  %s9614_s2 = sld [smem:[#allocation2 + $0x8]]  ;;  %vm2943_vm14 = vcmask 97280   ;;  %vm2999_vm15 = vcmask 162816  }
  0x55   : > { %s9615_s6 = sld [smem:[#allocation2 + $0x9]]  ;;  %s17606_s4 = smov (!%p788_p6, %s9589_s4), 7 }
  0x56   : > { %s9616_s24 = sld [smem:[#allocation5 + $0x1]]  ;;  %s9811_s27 = sshll.u32 %s17606_s4, 8 }
  0x57   : > { %s9812_s3 = sshll.u32 %s17606_s4, 4  ;;  %s17317_s29 = sld [smem:[#allocation56_spill]] }
  0x58   : > { %s17318_s23 = sld [smem:[#allocation57_spill]]  ;;  %v12067_v2 = vstv %s9612_s28  ;;  %s12126_s20 = sld [smem:[#allocation2]] }
  0x59   : > { %v12072_v6 = vstv %s9613_s26  ;;  %s12133_s21 = sld [smem:[#allocation2 + $0x1]]  ;;  %s12139_s25 = sld [smem:[#allocation2 + $0x3]] }
  0x5a   : > { %v980_v0 = vld [vmem:[%s17316_s1] sm:$0xf]  ;;  %v12078_v11 = vstv %s9614_s2  ;;  %s12154_s28 = sld [smem:[#allocation2 + $0x4]]  ;;  %s12156_s26 = sld [smem:[#allocation2 + $0x5]] }
  0x5b   : > { %10562 = vmatprep.subr.msk.bf16.mxu0 %vm994_vm0, %v980_v0  ;;  %v996_v1 = vsel %vm994_vm0, %v980_v0, 0  ;;  %v12080_v12 = vstv %s9615_s6  ;;  %s12170_s2 = sld [smem:[#allocation5]]  ;;  %s12331_s6 = sld [smem:[#allocation2 + $0xa]] }
  0x5c   : > { %10011 = vmatpush3.bf16.msra.mxu0 %v996_v1  ;;  %v12090_v21 = vstv %s9616_s24  ;;  %s12348_s24 = sld [smem:[#allocation5 + $0x2]]  ;;  %s17327_s1 = sld [smem:[#allocation58_spill]] }
  0x5d   : > { %s12058_s0 = scalar_lea.vmem %s17317_s29, %s9811_s27  ;;  %s17168_s27 = smov 4  }
  0x5e   : > { %s12065_s22 = scalar_lea.vmem %s17318_s23, %s9812_s3  ;;  %v829_v3 = vld [vmem:[%s12058_s0 + $0x68] sm:$0xff]  ;;  %v831_v4 = vld [vmem:[%s12058_s0 + $0x78] sm:$0xff]  ;;  %v828_v15 = vld [vmem:[%s12058_s0 + $0x60] sm:$0xff]  ;;  %s12137_s23 = sld [smem:[#allocation2 + $0x2]] }
  0x5f   : > { %v833_v5 = vld [vmem:[%s12058_s0 + $0x88] sm:$0xff]  ;;  %v835_v7 = vld [vmem:[%s12058_s0 + $0x98] sm:$0xff]  ;;  %v1457_v9 = vmul.f32 %v12067_v2, %v829_v3  ;;  %v1467_v10 = vmul.f32 %v12072_v6, %v831_v4  ;;  %v830_v16 = vld [vmem:[%s12058_s0 + $0x70] sm:$0xff]  ;;  %v1456_v24 = vmul.f32 %v12067_v2, %v828_v15  ;;  %s17166_s29 = smov 8   ;;  %s17448_s9 = sld [smem:[#allocation65_spill]] }
  0x60   : > { %v945_v8 = vld [vmem:[%s12065_s22 + $0x8] sm:$0xff]  ;;  %v1485_v13 = vmul.f32 %v12078_v11, %v833_v5  ;;  %v1503_v14 = vmul.f32 %v12080_v12, %v835_v7  ;;  %v832_v17 = vld [vmem:[%s12058_s0 + $0x80] sm:$0xff]  ;;  %v834_v22 = vld [vmem:[%s12058_s0 + $0x90] sm:$0xff]  ;;  %v1466_v26 = vmul.f32 %v12072_v6, %v830_v16  ;;  %s17485_s8 = sld [smem:[#allocation64_spill]]  ;;  %s17560_s10 = sld [smem:[#allocation66_spill]] }
  0x61   : > { %vm953_vm1 = vcmp.gt.f32.partialorder %v945_v8, 0.0  ;;  %v1475_v20 = vadd.f32 %v1467_v10, %v1457_v9  ;;  %v944_v23 = vld [vmem:[%s12065_s22] sm:$0xff]  ;;  %v861_v25 = vld [vmem:[%s12058_s0 + $0x168] sm:$0xff]  ;;  %v1484_v27 = vmul.f32 %v12078_v11, %v832_v17  ;;  %v1502_v28 = vmul.f32 %v12080_v12, %v834_v22  ;;  %v863_v29 = vld [vmem:[%s12058_s0 + $0x178] sm:$0xff]  ;;  %p17590_p12 = scmp.ne.s32.totalorder %s17304_s7, 0 }
  0x62   : > { %v12088_v19 = vsel %vm953_vm1, 0.0, %v11822_v18  ;;  %vm952_vm3 = vcmp.gt.f32.partialorder %v944_v23, 0.0  ;;  %v865_v30 = vld [vmem:[%s12058_s0 + $0x188] sm:$0xff]  ;;  %v867_v31 = vld [vmem:[%s12058_s0 + $0x198] sm:$0xff]  ;;  %v1459_v35 = vmul.f32 %v12067_v2, %v861_v25  ;;  %v1469_v36 = vmul.f32 %v12072_v6, %v863_v29  ;;  %v860_v37 = vld [vmem:[%s12058_s0 + $0x160] sm:$0xff] }
  0x63   : > { %17319 = vst [vmem:[#allocation20_spill] sm:$0xff] %v12088_v19  ;;  %v1493_v32 = vadd.f32 %v1485_v13, %v1475_v20  ;;  %v12103_v33 = vsel %vm952_vm3, 0.0, %v11822_v18  ;;  %v947_v34 = vld [vmem:[%s12065_s22 + $0x18] sm:$0xff]  ;;  %v862_v38 = vld [vmem:[%s12058_s0 + $0x170] sm:$0xff]  ;;  %v1474_v39 = vadd.f32 %v1466_v26, %v1456_v24  ;;  %v1487_v40 = vmul.f32 %v12078_v11, %v865_v30  ;;  %v864_v42 = vld [vmem:[%s12058_s0 + $0x180] sm:$0xff] }
  0x64   : > { %17320 = vst [vmem:[#allocation21_spill] sm:$0xff] %v12103_v33  ;;  %vm955_vm4 = vcmp.gt.f32.partialorder %v947_v34, 0.0  ;;  %v1505_v41 = vmul.f32 %v12080_v12, %v867_v31  ;;  %v866_v43 = vld [vmem:[%s12058_s0 + $0x190] sm:$0xff]  ;;  %v1477_v47 = vadd.f32 %v1469_v36, %v1459_v35  ;;  %v893_v48 = vld [vmem:[%s12058_s0 + $0x268] sm:$0xff]  ;;  %v1458_v51 = vmul.f32 %v12067_v2, %v860_v37  ;;  %v895_v53 = vld [vmem:[%s12058_s0 + $0x278] sm:$0xff] }
  0x65   : > { %v946_v44 = vld [vmem:[%s12065_s22 + $0x10] sm:$0xff]  ;;  %v1511_v45 = vadd.f32 %v1503_v14, %v1493_v32  ;;  %v12116_v46 = vsel %vm955_vm4, 0.0, %v11822_v18  ;;  %v1492_v49 = vadd.f32 %v1484_v27, %v1474_v39  ;;  %v1468_v52 = vmul.f32 %v12072_v6, %v862_v38  ;;  %v949_v54 = vld [vmem:[%s12065_s22 + $0x28] sm:$0xff]  ;;  %v899_v60 = vld [vmem:[%s12058_s0 + $0x298] sm:$0xff] }
  0x66   : > { %17321 = vst [vmem:[#allocation22_spill] sm:$0xff] %v12116_v46  ;;  %vm954_vm5 = vcmp.gt.f32.partialorder %v946_v44, 0.0  ;;  %v1495_v56 = vadd.f32 %v1487_v40, %v1477_v47  ;;  %v1486_v57 = vmul.f32 %v12078_v11, %v864_v42  ;;  %v1504_v58 = vmul.f32 %v12080_v12, %v866_v43  ;;  %v897_v59 = vld [vmem:[%s12058_s0 + $0x288] sm:$0xff]  ;;  %v948_v0 = vld [vmem:[%s12065_s22 + $0x20] sm:$0xff]  ;;  %v894_v14 = vld [vmem:[%s12058_s0 + $0x270] sm:$0xff] }
  0x67   : > { %v12120_v50 = vsel %vm954_vm5, 0.0, %v11822_v18  ;;  %v1521_v55 = vadd.f32 %v12090_v21, %v1511_v45  ;;  %v1510_v61 = vadd.f32 %v1502_v28, %v1492_v49  ;;  %v1476_v62 = vadd.f32 %v1468_v52, %v1458_v51  ;;  %v892_v7 = vld [vmem:[%s12058_s0 + $0x260] sm:$0xff]  ;;  %v898_v22 = vld [vmem:[%s12058_s0 + $0x290] sm:$0xff] }
  0x68   : > { %17322 = vst [vmem:[#allocation23_spill] sm:$0xff] %v12120_v50  ;;  %vm957_vm6 = vcmp.gt.f32.partialorder %v949_v54, 0.0  ;;  %v1461_v63 = vmul.f32 %v12067_v2, %v893_v48  ;;  %v1513_v3 = vadd.f32 %v1505_v41, %v1495_v56  ;;  %v1471_v5 = vmul.f32 %v12072_v6, %v895_v53  ;;  %v896_v15 = vld [vmem:[%s12058_s0 + $0x280] sm:$0xff]  ;;  %v850_v36 = vld [vmem:[%s12058_s0 + $0x110] sm:$0xff] }
  0x69   : > { %v12142_v1 = vadd.f32 %v1521_v55, %v12088_v19  ;;  %v12145_v4 = vsel %vm957_vm6, 0.0, %v11822_v18  ;;  %v1520_v8 = vadd.f32 %v12090_v21, %v1510_v61  ;;  %v1494_v9 = vadd.f32 %v1486_v57, %v1476_v62  ;;  %v848_v27 = vld [vmem:[%s12058_s0 + $0x100] sm:$0xff]  ;;  %v854_v42 = vld [vmem:[%s12058_s0 + $0x130] sm:$0xff] }
  0x6a   : > { %17323 = vst [vmem:[#allocation24_spill] sm:$0xff] %v12145_v4  ;;  %v1489_v10 = vmul.f32 %v12078_v11, %v897_v59  ;;  %v1507_v13 = vmul.f32 %v12080_v12, %v899_v60  ;;  %v1523_v17 = vadd.f32 %v12090_v21, %v1513_v3  ;;  %v1479_v20 = vadd.f32 %v1471_v5, %v1461_v63  ;;  %v852_v37 = vld [vmem:[%s12058_s0 + $0x120] sm:$0xff]  ;;  %v858_v53 = vld [vmem:[%s12058_s0 + $0x150] sm:$0xff] }
  0x6b   : > { %v1539_v16 = vsel %vm1181_vm2, %v12142_v1, -inf  ;;  %vm956_vm7 = vcmp.gt.f32.partialorder %v948_v0, 0.0  ;;  %v12163_v23 = vadd.f32 %v1520_v8, %v12103_v33  ;;  %v1512_v24 = vadd.f32 %v1504_v58, %v1494_v9  ;;  %v856_v45 = vld [vmem:[%s12058_s0 + $0x140] sm:$0xff]  ;;  %v818_v57 = vld [vmem:[%s12058_s0 + $0x10] sm:$0xff] }
  0x6c   : > { %1540 = vmax.xlane.f32.xlu1 %v1539_v16  ;;  %v12166_v25 = vsel %vm956_vm7, 0.0, %v11822_v18  ;;  %v1460_v26 = vmul.f32 %v12067_v2, %v892_v7  ;;  %v12173_v28 = vadd.f32 %v1523_v17, %v12116_v46  ;;  %v1497_v29 = vadd.f32 %v1489_v10, %v1479_v20  ;;  %v816_v56 = vld [vmem:[%s12058_s0] sm:$0xff]  ;;  %v822_v7 = vld [vmem:[%s12058_s0 + $0x30] sm:$0xff]  ;;  %v849_v16 = vld [vmem:[%s12058_s0 + $0x108] sm:$0xff] }
  0x6d   : > { %17324 = vst [vmem:[#allocation25_spill] sm:$0xff] %v12166_v25  ;;  %v1470_v30 = vmul.f32 %v12072_v6, %v894_v14  ;;  %v1488_v31 = vmul.f32 %v12078_v11, %v896_v15  ;;  %v1536_v32 = vsel %vm1181_vm2, %v12163_v23, -inf  ;;  %v1522_v34 = vadd.f32 %v12090_v21, %v1512_v24  ;;  %v820_v62 = vld [vmem:[%s12058_s0 + $0x20] sm:$0xff]  ;;  %v826_v9 = vld [vmem:[%s12058_s0 + $0x50] sm:$0xff]  ;;  %v851_v17 = vld [vmem:[%s12058_s0 + $0x118] sm:$0xff] }
  0x6e   : > { %v1506_v35 = vmul.f32 %v12080_v12, %v898_v22  ;;  %v12184_v38 = vstv %s12126_s20  ;;  %1537 = vmax.xlane.f32.xlu0 %v1536_v32  ;;  %v1545_v39 = vsel %vm1181_vm2, %v12173_v28, -inf  ;;  %v1515_v40 = vadd.f32 %v1507_v13, %v1497_v29  ;;  %v824_v8 = vld [vmem:[%s12058_s0 + $0x40] sm:$0xff]  ;;  %v855_v29 = vld [vmem:[%s12058_s0 + $0x138] sm:$0xff]  ;;  %s12420_s20 = scalar_lea.vmem %s17327_s1, %s9812_s3  ;;  %s12450_s3 = sld [smem:[#allocation2 + $0xd]] }
  0x6f   : > { %v1478_v41 = vadd.f32 %v1470_v30, %v1460_v26  ;;  %v1067_v43 = vmul.f32 %v12184_v38, %v848_v27  ;;  %v12191_v44 = vadd.f32 %v1522_v34, %v12120_v50  ;;  %v12195_v47 = vstv %s12133_s21  ;;  %v853_v27 = vld [vmem:[%s12058_s0 + $0x128] sm:$0xff]  ;;  %s12431_s21 = sld [smem:[#allocation2 + $0xc]]  ;;  %s11831_s1 = smov 12  }
  0x70   : > { %1546 = vmax.xlane.f32.xlu1 %v1545_v39  ;;  %v12198_v48 = vstv %s12137_s23  ;;  %v12201_v49 = vstv %s12139_s25  ;;  %v1525_v51 = vadd.f32 %v12090_v21, %v1515_v40  ;;  %v1077_v54 = vmul.f32 %v12195_v47, %v850_v36  ;;  %v857_v30 = vld [vmem:[%s12058_s0 + $0x148] sm:$0xff]  ;;  %v859_v36 = vld [vmem:[%s12058_s0 + $0x158] sm:$0xff]  ;;  %s12460_s23 = sld [smem:[#allocation5 + $0x3]]  ;;  %s12540_s25 = sld [smem:[#allocation2 + $0xe]] }
  0x71   : > { %v1496_v52 = vadd.f32 %v1488_v31, %v1478_v41  ;;  %v1095_v55 = vmul.f32 %v12198_v48, %v852_v37  ;;  %v1542_v58 = vsel %vm1181_vm2, %v12191_v44, -inf  ;;  %v1113_v59 = vmul.f32 %v12201_v49, %v854_v42  ;;  %v817_v42 = vld [vmem:[%s12058_s0 + $0x8] sm:$0xff] }
  0x72   : > { %v12213_v60 = vstv %s12154_s28  ;;  %v12216_v61 = vstv %s12156_s26  ;;  %1543 = vmax.xlane.f32.xlu0 %v1542_v58  ;;  %v12220_v63 = vadd.f32 %v1525_v51, %v12145_v4  ;;  %v1085_v3 = vadd.f32 %v1077_v54, %v1067_v43  ;;  %v819_v43 = vld [vmem:[%s12058_s0 + $0x18] sm:$0xff]  ;;  %s12542_s28 = sld [smem:[#allocation2 + $0xf]]  ;;  %s12563_s26 = sld [smem:[#allocation5 + $0x4]] }
  0x73   : > { %v1514_v0 = vadd.f32 %v1506_v35, %v1496_v52  ;;  %v1131_v5 = vmul.f32 %v12213_v60, %v856_v45  ;;  %v1149_v10 = vmul.f32 %v12216_v61, %v858_v53  ;;  %v12228_v13 = vstv %s12170_s2  ;;  %v821_v45 = vld [vmem:[%s12058_s0 + $0x28] sm:$0xff]  ;;  %s11825_s2 = smov 124  }
  0x74   : > { %v1065_v14 = vmul.f32 %v12184_v38, %v816_v56  ;;  %v1075_v15 = vmul.f32 %v12195_v47, %v818_v57  ;;  %v1551_v20 = vsel %vm1181_vm2, %v12220_v63, -inf  ;;  %v1103_v24 = vadd.f32 %v1095_v55, %v1085_v3  ;;  %v823_v55 = vld [vmem:[%s12058_s0 + $0x38] sm:$0xff]  ;;  %v825_v56 = vld [vmem:[%s12058_s0 + $0x48] sm:$0xff] }
  0x75   : > { %v1524_v22 = vadd.f32 %v12090_v21, %v1514_v0  ;;  %v1093_v26 = vmul.f32 %v12198_v48, %v820_v62  ;;  %1552 = vmax.xlane.f32.xlu1 %v1551_v20  ;;  %v1111_v32 = vmul.f32 %v12201_v49, %v822_v7  ;;  %v1129_v34 = vmul.f32 %v12213_v60, %v824_v8  ;;  %v827_v0 = vld [vmem:[%s12058_s0 + $0x58] sm:$0xff]  ;;  %v881_v3 = vld [vmem:[%s12058_s0 + $0x208] sm:$0xff] }
  0x76   : > { %v1083_v31 = vadd.f32 %v1075_v15, %v1065_v14  ;;  %v1147_v35 = vmul.f32 %v12216_v61, %v826_v9  ;;  %v1121_v39 = vadd.f32 %v1113_v59, %v1103_v24  ;;  %v1068_v40 = vmul.f32 %v12184_v38, %v849_v16  ;;  %v883_v15 = vld [vmem:[%s12058_s0 + $0x218] sm:$0xff]  ;;  %v885_v16 = vld [vmem:[%s12058_s0 + $0x228] sm:$0xff] }
  0x77   : > { %v12246_v37 = vadd.f32 %v1524_v22, %v12166_v25  ;;  %v1078_v41 = vmul.f32 %v12195_v47, %v851_v17  ;;  %v1096_v52 = vmul.f32 %v12198_v48, %v853_v27  ;;  %v1114_v53 = vmul.f32 %v12201_v49, %v855_v29  ;;  %v887_v24 = vld [vmem:[%s12058_s0 + $0x238] sm:$0xff] }
  0x78   : > { %v1101_v51 = vadd.f32 %v1093_v26, %v1083_v31  ;;  %v1132_v54 = vmul.f32 %v12213_v60, %v857_v30  ;;  %v1139_v58 = vadd.f32 %v1131_v5, %v1121_v39  ;;  %v1150_v62 = vmul.f32 %v12216_v61, %v859_v36  ;;  %v889_v26 = vld [vmem:[%s12058_s0 + $0x248] sm:$0xff]  ;;  %v891_v31 = vld [vmem:[%s12058_s0 + $0x258] sm:$0xff] }
  0x79   : > { %v1548_v57 = vsel %vm1181_vm2, %v12246_v37, -inf  ;;  %v1086_v59 = vadd.f32 %v1078_v41, %v1068_v40  ;;  %v1066_v8 = vmul.f32 %v12184_v38, %v817_v42  ;;  %v1076_v9 = vmul.f32 %v12195_v47, %v819_v43  ;;  %v880_v41 = vld [vmem:[%s12058_s0 + $0x200] sm:$0xff]  ;;  %v882_v42 = vld [vmem:[%s12058_s0 + $0x210] sm:$0xff] }
  0x7a   : > { %1549 = vmax.xlane.f32.xlu0 %v1548_v57  ;;  %v1119_v7 = vadd.f32 %v1111_v32, %v1101_v51  ;;  %v1094_v14 = vmul.f32 %v12198_v48, %v821_v45  ;;  %v1157_v5 = vadd.f32 %v1149_v10, %v1139_v58  ;;  %v1112_v20 = vmul.f32 %v12201_v49, %v823_v55  ;;  %v886_v58 = vld [vmem:[%s12058_s0 + $0x230] sm:$0xff] }
  0x7b   : > { %v1104_v17 = vadd.f32 %v1096_v52, %v1086_v59  ;;  %v1130_v22 = vmul.f32 %v12213_v60, %v825_v56  ;;  %v1084_v29 = vadd.f32 %v1076_v9, %v1066_v8  ;;  %v1148_v30 = vmul.f32 %v12216_v61, %v827_v0  ;;  %v884_v52 = vld [vmem:[%s12058_s0 + $0x220] sm:$0xff] }
  0x7c   : > { %v1137_v27 = vadd.f32 %v1129_v34, %v1119_v7  ;;  %v1070_v32 = vmul.f32 %v12184_v38, %v881_v3  ;;  %v1167_v36 = vadd.f32 %v12228_v13, %v1157_v5  ;;  %v1080_v39 = vmul.f32 %v12195_v47, %v883_v15  ;;  %v890_v3 = vld [vmem:[%s12058_s0 + $0x250] sm:$0xff] }
  0x7d   : > { %v1122_v10 = vadd.f32 %v1114_v53, %v1104_v17  ;;  %v1098_v40 = vmul.f32 %v12198_v48, %v885_v16  ;;  %v1102_v34 = vadd.f32 %v1094_v14, %v1084_v29  ;;  %v1116_v45 = vmul.f32 %v12201_v49, %v887_v24  ;;  %v951_v16 = vld [vmem:[%s12065_s22 + $0x38] sm:$0xff] }
  0x7e   : > { %v1155_v43 = vadd.f32 %v1147_v35, %v1137_v27  ;;  %v1134_v51 = vmul.f32 %v12213_v60, %v889_v26  ;;  %v12284_v55 = vadd.f32 %v1167_v36, %v12120_v50  ;;  %v1088_v56 = vadd.f32 %v1080_v39, %v1070_v32  ;;  %v888_v35 = vld [vmem:[%s12058_s0 + $0x240] sm:$0xff]  ;;  %v913_v26 = vld [vmem:[%s12058_s0 + $0x308] sm:$0xff]  ;;  %v915_v32 = vld [vmem:[%s12058_s0 + $0x318] sm:$0xff] }
  0x7f   : > { %v1140_v53 = vadd.f32 %v1132_v54, %v1122_v10  ;;  %v1152_v57 = vmul.f32 %v12216_v61, %v891_v31  ;;  %v1120_v0 = vadd.f32 %v1112_v20, %v1102_v34  ;;  %v1069_v7 = vmul.f32 %v12184_v38, %v880_v41  ;;  %v917_v36 = vld [vmem:[%s12058_s0 + $0x328] sm:$0xff]  ;;  %v923_v34 = vld [vmem:[%s12058_s0 + $0x358] sm:$0xff] }
  0x80   : > { %v1165_v59 = vadd.f32 %v12228_v13, %v1155_v43  ;;  %v1079_v8 = vmul.f32 %v12195_v47, %v882_v42  ;;  %v1188_v9 = vsel %vm1181_vm2, %v12284_v55, -inf  ;;  %v1106_v14 = vadd.f32 %v1098_v40, %v1088_v56  ;;  %v919_v40 = vld [vmem:[%s12058_s0 + $0x338] sm:$0xff]  ;;  %v921_v41 = vld [vmem:[%s12058_s0 + $0x348] sm:$0xff] }
  0x81   : > { %v1158_v54 = vadd.f32 %v1150_v62, %v1140_v53  ;;  %v1097_v15 = vmul.f32 %v12198_v48, %v884_v52  ;;  %1189 = vmax.xlane.f32.xlu1 %v1188_v9  ;;  %v1138_v17 = vadd.f32 %v1130_v22, %v1120_v0  ;;  %v1115_v24 = vmul.f32 %v12201_v49, %v886_v58  ;;  %v914_v0 = vld [vmem:[%s12058_s0 + $0x310] sm:$0xff]  ;;  %v916_v9 = vld [vmem:[%s12058_s0 + $0x320] sm:$0xff] }
  0x82   : > { %v12298_v5 = vadd.f32 %v1165_v59, %v12103_v33  ;;  %v1087_v20 = vadd.f32 %v1079_v8, %v1069_v7  ;;  %v1124_v29 = vadd.f32 %v1116_v45, %v1106_v14  ;;  %v1133_v62 = vmul.f32 %v12213_v60, %v888_v35  ;;  %v912_v59 = vld [vmem:[%s12058_s0 + $0x300] sm:$0xff] }
  0x83   : > { %v1168_v27 = vadd.f32 %v12228_v13, %v1158_v54  ;;  %v1151_v31 = vmul.f32 %v12216_v61, %v890_v3  ;;  %v1156_v39 = vadd.f32 %v1148_v30, %v1138_v17  ;;  %vm959_vm8 = vcmp.gt.f32.partialorder %v951_v16, 0.0  ;;  %v918_v54 = vld [vmem:[%s12058_s0 + $0x330] sm:$0xff] }
  0x84   : > { %v1182_v10 = vsel %vm1181_vm2, %v12298_v5, -inf  ;;  %v1105_v22 = vadd.f32 %v1097_v15, %v1087_v20  ;;  %v1142_v43 = vadd.f32 %v1134_v51, %v1124_v29  ;;  %v12316_v45 = vsel %vm959_vm8, 0.0, %v11822_v18  ;;  %v950_v51 = vld [vmem:[%s12065_s22 + $0x30] sm:$0xff]  ;;  %s12340_s22 = sld [smem:[#allocation2 + $0xb]] }
  0x85   : > { %1183 = vmax.xlane.f32.xlu0 %v1182_v10  ;;  %v12312_v42 = vadd.f32 %v1168_v27, %v12116_v46  ;;  %17325 = vst [vmem:[#allocation26_spill] sm:$0xff] %v12316_v45  ;;  %v1072_v52 = vmul.f32 %v12184_v38, %v913_v26  ;;  %v1166_v30 = vadd.f32 %v12228_v13, %v1156_v39  ;;  %v922_v20 = vld [vmem:[%s12058_s0 + $0x350] sm:$0xff]  ;;  %vm958_vm9 = vcmp.gt.f32.partialorder %v950_v51, 0.0 }
  0x86   : > { %v1123_v53 = vadd.f32 %v1115_v24, %v1105_v22  ;;  %v1082_v56 = vmul.f32 %v12195_v47, %v915_v32  ;;  %v1100_v58 = vmul.f32 %v12198_v48, %v917_v36  ;;  %v1160_v3 = vadd.f32 %v1152_v57, %v1142_v43  ;;  %v920_v57 = vld [vmem:[%s12058_s0 + $0x340] sm:$0xff]  ;;  %v925_v24 = vld [vmem:[%s12058_s0 + $0x368] sm:$0xff]  ;;  %v927_v32 = vld [vmem:[%s12058_s0 + $0x378] sm:$0xff] }
  0x87   : > { %v1191_v35 = vsel %vm1181_vm2, %v12312_v42, -inf  ;;  %v1118_v7 = vmul.f32 %v12201_v49, %v919_v40  ;;  %v1136_v8 = vmul.f32 %v12213_v60, %v921_v41  ;;  %v12334_v14 = vadd.f32 %v1166_v30, %v12088_v19  ;;  %v931_v36 = vld [vmem:[%s12058_s0 + $0x398] sm:$0xff]  ;;  %v924_v41 = vld [vmem:[%s12058_s0 + $0x360] sm:$0xff]  ;;  %v926_v43 = vld [vmem:[%s12058_s0 + $0x370] sm:$0xff] }
  0x88   : > { %1192 = vmax.xlane.f32.xlu1 %v1191_v35  ;;  %v1141_v15 = vadd.f32 %v1133_v62, %v1123_v53  ;;  %v1090_v16 = vadd.f32 %v1082_v56, %v1072_v52  ;;  %v1154_v17 = vmul.f32 %v12216_v61, %v923_v34  ;;  %v1170_v26 = vadd.f32 %v12228_v13, %v1160_v3  ;;  %v929_v62 = vld [vmem:[%s12058_s0 + $0x388] sm:$0xff]  ;;  %v928_v30 = vld [vmem:[%s12058_s0 + $0x380] sm:$0xff] }
  0x89   : > { %v1071_v27 = vmul.f32 %v12184_v38, %v912_v59  ;;  %v1081_v29 = vmul.f32 %v12195_v47, %v914_v0  ;;  %v1185_v10 = vsel %vm1181_vm2, %v12334_v14, -inf  ;;  %v12353_v40 = vsel %vm958_vm9, 0.0, %v11822_v18 }
  0x8a   : > { %v1159_v39 = vadd.f32 %v1151_v31, %v1141_v15  ;;  %v1108_v22 = vadd.f32 %v1100_v58, %v1090_v16  ;;  %17326 = vst [vmem:[#allocation27_spill] sm:$0xff] %v12353_v40  ;;  %1186 = vmax.xlane.f32.xlu0 %v1185_v10  ;;  %v12358_v38 = vadd.f32 %v1170_v26, %v12145_v4  ;;  %v837_v15 = vld [vmem:[%s12058_s0 + $0xa8] sm:$0xff]  ;;  %v12393_v10 = vstv %s12340_s22  ;;  %s17172_s22 = smov 116  }
  0x8b   : > { %v1089_v47 = vadd.f32 %v1081_v29, %v1071_v27  ;;  %v1099_v34 = vmul.f32 %v12198_v48, %v916_v9  ;;  %v1117_v52 = vmul.f32 %v12201_v49, %v918_v54  ;;  %v1135_v56 = vmul.f32 %v12213_v60, %v920_v57  ;;  %v930_v48 = vld [vmem:[%s12058_s0 + $0x390] sm:$0xff] }
  0x8c   : > { %v1169_v53 = vadd.f32 %v12228_v13, %v1159_v39  ;;  %v1126_v31 = vadd.f32 %v1118_v7, %v1108_v22  ;;  %v1153_v18 = vmul.f32 %v12216_v61, %v922_v20  ;;  %v1197_v58 = vsel %vm1181_vm2, %v12358_v38, -inf }
  0x8d   : > { %v1107_v59 = vadd.f32 %v1099_v34, %v1089_v47  ;;  %v1463_v0 = vmul.f32 %v12067_v2, %v925_v24  ;;  %v1473_v51 = vmul.f32 %v12072_v6, %v927_v32  ;;  %1198 = vmax.xlane.f32.xlu1 %v1197_v58  ;;  %v1491_v60 = vmul.f32 %v12078_v11, %v929_v62  ;;  %v839_v24 = vld [vmem:[%s12058_s0 + $0xb8] sm:$0xff]  ;;  %v838_v32 = vld [vmem:[%s12058_s0 + $0xb0] sm:$0xff]  ;;  %v869_v62 = vld [vmem:[%s12058_s0 + $0x1a8] sm:$0xff] }
  0x8e   : > { %v12372_v49 = vadd.f32 %v1169_v53, %v12166_v25  ;;  %v1144_v35 = vadd.f32 %v1136_v8, %v1126_v31  ;;  %v1509_v61 = vmul.f32 %v12080_v12, %v931_v36  ;;  %v1462_v9 = vmul.f32 %v12067_v2, %v924_v41  ;;  %v868_v47 = vld [vmem:[%s12058_s0 + $0x1a0] sm:$0xff] }
  0x8f   : > { %v1125_v3 = vadd.f32 %v1117_v52, %v1107_v59  ;;  %v1481_v7 = vadd.f32 %v1473_v51, %v1463_v0  ;;  %v1472_v54 = vmul.f32 %v12072_v6, %v926_v43  ;;  %v1490_v57 = vmul.f32 %v12078_v11, %v928_v30  ;;  %v836_v6 = vld [vmem:[%s12058_s0 + $0xa0] sm:$0xff]  ;;  %v871_v43 = vld [vmem:[%s12058_s0 + $0x1b8] sm:$0xff]  ;;  %v870_v59 = vld [vmem:[%s12058_s0 + $0x1b0] sm:$0xff] }
  0x90   : > { %v1194_v16 = vsel %vm1181_vm2, %v12372_v49, -inf  ;;  %v1162_v8 = vadd.f32 %v1154_v17, %v1144_v35  ;;  %v1508_v20 = vmul.f32 %v12080_v12, %v930_v48  ;;  %v12385_v29 = vstv %s12331_s6  ;;  %v901_v0 = vld [vmem:[%s12058_s0 + $0x2a8] sm:$0xff]  ;;  %s11826_s6 = smov 120  }
  0x91   : > { %1195 = vmax.xlane.f32.xlu0 %v1194_v16  ;;  %v1143_v26 = vadd.f32 %v1135_v56, %v1125_v3  ;;  %v1499_v27 = vadd.f32 %v1491_v60, %v1481_v7  ;;  %v1480_v2 = vadd.f32 %v1472_v54, %v1462_v9  ;;  %v1823_v17 = vmul.f32 %v12385_v29, %v837_v15  ;;  %v903_v9 = vld [vmem:[%s12058_s0 + $0x2b8] sm:$0xff] }
  0x92   : > { %v1172_v36 = vadd.f32 %v12228_v13, %v1162_v8  ;;  %v12396_v11 = vstv %s12348_s24  ;;  %v1833_v41 = vmul.f32 %v12393_v10, %v839_v24  ;;  %v1822_v52 = vmul.f32 %v12385_v29, %v836_v6  ;;  %v969_v6 = vld [vmem:[%s12420_s20 + $0x8] sm:$0xff]  ;;  %s17170_s24 = smov 112  }
  0x93   : > { %v1161_v12 = vadd.f32 %v1153_v18, %v1143_v26  ;;  %v1517_v39 = vadd.f32 %v1509_v61, %v1499_v27  ;;  %v1498_v22 = vadd.f32 %v1490_v57, %v1480_v2  ;;  %v1832_v30 = vmul.f32 %v12393_v10, %v838_v32  ;;  %v900_v57 = vld [vmem:[%s12058_s0 + $0x2a0] sm:$0xff] }
  0x94   : > { %v12402_v34 = vadd.f32 %v1172_v36, %v12316_v45  ;;  %v1825_v53 = vmul.f32 %v12385_v29, %v869_v62  ;;  %v1841_v58 = vadd.f32 %v1833_v41, %v1823_v17  ;;  %v1835_v35 = vmul.f32 %v12393_v10, %v871_v43  ;;  %v968_v2 = vld [vmem:[%s12420_s20] sm:$0xff] }
  0x95   : > { %v1171_v31 = vadd.f32 %v12228_v13, %v1161_v12  ;;  %v1527_v56 = vadd.f32 %v12090_v21, %v1517_v39  ;;  %v1516_v18 = vadd.f32 %v1508_v20, %v1498_v22  ;;  %v1840_v48 = vadd.f32 %v1832_v30, %v1822_v52  ;;  %v902_v20 = vld [vmem:[%s12058_s0 + $0x2b0] sm:$0xff]  ;;  %v971_v39 = vld [vmem:[%s12420_s20 + $0x18] sm:$0xff]  ;;  %v933_v22 = vld [vmem:[%s12058_s0 + $0x3a8] sm:$0xff] }
  0x96   : > { %v1203_v51 = vsel %vm1181_vm2, %v12402_v34, -inf  ;;  %v1824_v60 = vmul.f32 %v12385_v29, %v868_v47  ;;  %v1851_v7 = vadd.f32 %v12396_v11, %v1841_v58  ;;  %v1843_v15 = vadd.f32 %v1835_v35, %v1825_v53  ;;  %v970_v12 = vld [vmem:[%s12420_s20 + $0x10] sm:$0xff]  ;;  %v935_v52 = vld [vmem:[%s12058_s0 + $0x3b8] sm:$0xff]  ;;  %v841_v35 = vld [vmem:[%s12058_s0 + $0xc8] sm:$0xff] }
  0x97   : > { %1204 = vmax.xlane.f32.xlu1 %v1203_v51  ;;  %v12423_v13 = vadd.f32 %v1171_v31, %v12353_v40  ;;  %v12426_v61 = vadd.f32 %v1527_v56, %v12316_v45  ;;  %v1526_v3 = vadd.f32 %v12090_v21, %v1516_v18  ;;  %v1850_v54 = vadd.f32 %v12396_v11, %v1840_v48  ;;  %v932_v18 = vld [vmem:[%s12058_s0 + $0x3a0] sm:$0xff]  ;;  %v934_v58 = vld [vmem:[%s12058_s0 + $0x3b0] sm:$0xff] }
  0x98   : > { %v1834_v16 = vmul.f32 %v12393_v10, %v870_v59  ;;  %v1827_v8 = vmul.f32 %v12385_v29, %v901_v0  ;;  %v12446_v27 = vadd.f32 %v1851_v7, %v12088_v19  ;;  %v1853_v62 = vadd.f32 %v12396_v11, %v1843_v15 }
  0x99   : > { %17328 = vst [vmem:[#allocation28_spill] sm:$0xff] %v12423_v13  ;;  %v1200_v21 = vsel %vm1181_vm2, %v12423_v13, -inf  ;;  %v1557_v24 = vsel %vm1181_vm2, %v12426_v61, -inf  ;;  %v12443_v26 = vadd.f32 %v1526_v3, %v12353_v40  ;;  %v12453_v32 = vadd.f32 %v1850_v54, %v12103_v33  ;;  %v942_v13 = vld [vmem:[%s12058_s0 + $0x3f0] sm:$0xff] }
  0x9a   : > { %1201 = vmax.xlane.f32.xlu0 %v1200_v21  ;;  %v1842_v36 = vadd.f32 %v1834_v16, %v1824_v60  ;;  %v1837_v17 = vmul.f32 %v12393_v10, %v903_v9  ;;  %v1826_v43 = vmul.f32 %v12385_v29, %v900_v57  ;;  %v1836_v47 = vmul.f32 %v12393_v10, %v902_v20  ;;  %v840_v20 = vld [vmem:[%s12058_s0 + $0xc0] sm:$0xff] }
  0x9b   : > { %1558 = vmax.xlane.f32.xlu1 %v1557_v24  ;;  %v1554_v41 = vsel %vm1181_vm2, %v12443_v26, -inf  ;;  %v1869_v30 = vsel %vm1181_vm2, %v12446_v27, -inf  ;;  %v12470_v53 = vadd.f32 %v1853_v62, %v12116_v46  ;;  %v976_v0 = vpack.c.bf16 %v969_v6, %v968_v2  ;;  %v972_v6 = vld [vmem:[%s12420_s20 + $0x20] sm:$0xff]  ;;  %v973_v62 = vld [vmem:[%s12420_s20 + $0x28] sm:$0xff] }
  0x9c   : > { %v1852_v31 = vadd.f32 %v12396_v11, %v1842_v36  ;;  %v1845_v56 = vadd.f32 %v1837_v17, %v1827_v8  ;;  %v1844_v59 = vadd.f32 %v1836_v47, %v1826_v43  ;;  %v977_v51 = vpack.c.bf16 %v971_v39, %v970_v12  ;;  %v843_v8 = vld [vmem:[%s12058_s0 + $0xd8] sm:$0xff]  ;;  %v873_v43 = vld [vmem:[%s12058_s0 + $0x1c8] sm:$0xff] }
  0x9d   : > { %v1829_v48 = vmul.f32 %v12385_v29, %v933_v22  ;;  %v1866_v60 = vsel %vm1181_vm2, %v12453_v32, -inf  ;;  %v1839_v9 = vmul.f32 %v12393_v10, %v935_v52  ;;  %10012 = vmatprep.mubr.msk.bf16.mxu0 %vm981_vm10, %v976_v0  ;;  %v1828_v15 = vmul.f32 %v12385_v29, %v932_v18  ;;  %v974_v22 = vld [vmem:[%s12420_s20 + $0x30] sm:$0xff]  ;;  %v872_v18 = vld [vmem:[%s12058_s0 + $0x1c0] sm:$0xff] }
  0x9e   : > { %1555 = vmax.xlane.f32.xlu0 %v1554_v41  ;;  %v12480_v3 = vadd.f32 %v1852_v31, %v12120_v50  ;;  %v1855_v7 = vadd.f32 %v12396_v11, %v1845_v56  ;;  %v1854_v54 = vadd.f32 %v12396_v11, %v1844_v59  ;;  %v1838_v16 = vmul.f32 %v12393_v10, %v934_v58  ;;  %v842_v10 = vld [vmem:[%s12058_s0 + $0xd0] sm:$0xff]  ;;  %v975_v41 = vld [vmem:[%s12420_s20 + $0x38] sm:$0xff]  ;;  %s9649_s20 = sld [smem:[#allocation2 + $0x80]] }
  0x9f   : > { %1870 = vmax.xlane.f32.xlu1 %v1869_v30  ;;  %v12490_v57 = vstv %s12431_s21  ;;  %v1875_v21 = vsel %vm1181_vm2, %v12470_v53, -inf  ;;  %10013 = vmatmul.mubr.msk.bf16.vlgmr.msra.gmra.mrb[0].mxu0 %vm981_vm10, %v977_v51  ;;  %v1847_v29 = vadd.f32 %v1839_v9, %v1829_v48  ;;  %v12509_v39 = vstv %s12450_s3  ;;  %v875_v56 = vld [vmem:[%s12058_s0 + $0x1d8] sm:$0xff]  ;;  %v874_v48 = vld [vmem:[%s12058_s0 + $0x1d0] sm:$0xff]  ;;  %s9650_s21 = sld [smem:[#allocation2 + $0x81]]  ;;  %s13341_s3 = sld [smem:[#allocation2 + $0x88]] }
  0xa0   : > { %v12496_v24 = vadd.f32 %v1855_v7, %v12145_v4  ;;  %v2149_v2 = vmul.f32 %v12490_v57, %v841_v35  ;;  %v1872_v36 = vsel %vm1181_vm2, %v12480_v3, -inf  ;;  %v12506_v17 = vadd.f32 %v1854_v54, %v12166_v25  ;;  %v905_v35 = vld [vmem:[%s12058_s0 + $0x2c8] sm:$0xff] }
  0xa1   : > { %v1846_v12 = vadd.f32 %v1838_v16, %v1828_v15  ;;  %v1857_v47 = vadd.f32 %v12396_v11, %v1847_v29  ;;  %v2159_v52 = vmul.f32 %v12509_v39, %v843_v8  ;;  %v12517_v30 = vstv %s12460_s23  ;;  %v907_v15 = vld [vmem:[%s12058_s0 + $0x2d8] sm:$0xff]  ;;  %v904_v16 = vld [vmem:[%s12058_s0 + $0x2c0] sm:$0xff]  ;;  %v906_v29 = vld [vmem:[%s12058_s0 + $0x2d0] sm:$0xff]  ;;  %s13351_s23 = sld [smem:[#allocation2 + $0x89]] }
  0xa2   : > { %1867 = vmax.xlane.f32.xlu0 %v1866_v60  ;;  %v2148_v31 = vmul.f32 %v12490_v57, %v840_v20  ;;  %v1881_v58 = vsel %vm1181_vm2, %v12496_v24, -inf  ;;  %v2158_v0 = vmul.f32 %v12509_v39, %v842_v10  ;;  %v978_v51 = vpack.c.bf16 %v973_v62, %v972_v6 }
  0xa3   : > { %1876 = vmax.xlane.f32.xlu1 %v1875_v21  ;;  %v1856_v59 = vadd.f32 %v12396_v11, %v1846_v12  ;;  %v12529_v60 = vadd.f32 %v1857_v47, %v12316_v45  ;;  %v2167_v7 = vadd.f32 %v2159_v52, %v2149_v2  ;;  %v979_v9 = vpack.c.bf16 %v975_v41, %v974_v22  ;;  %v937_v12 = vld [vmem:[%s12058_s0 + $0x3c8] sm:$0xff]  ;;  %v939_v47 = vld [vmem:[%s12058_s0 + $0x3d8] sm:$0xff] }
  0xa4   : > { %v2151_v54 = vmul.f32 %v12490_v57, %v873_v43  ;;  %v1878_v8 = vsel %vm1181_vm2, %v12506_v17, -inf  ;;  %v2166_v11 = vadd.f32 %v2158_v0, %v2148_v31  ;;  %10016 = vmatprep.mubr.msk.bf16.mxu0 %vm981_vm10, %v978_v51  ;;  %v2161_v20 = vmul.f32 %v12509_v39, %v875_v56 }
  0xa5   : > { %v2150_v21 = vmul.f32 %v12490_v57, %v872_v18  ;;  %v12545_v2 = vadd.f32 %v1856_v59, %v12353_v40  ;;  %v2177_v10 = vadd.f32 %v12517_v30, %v2167_v7  ;;  %v2160_v6 = vmul.f32 %v12509_v39, %v874_v48  ;;  %v938_v48 = vld [vmem:[%s12058_s0 + $0x3d0] sm:$0xff] }
  0xa6   : > { %1873 = vmax.xlane.f32.xlu0 %v1872_v36  ;;  %v2153_v62 = vmul.f32 %v12490_v57, %v905_v35  ;;  %v1887_v22 = vsel %vm1181_vm2, %v12529_v60, -inf  ;;  %v2176_v41 = vadd.f32 %v12517_v30, %v2166_v11  ;;  %v2169_v43 = vadd.f32 %v2161_v20, %v2151_v54 }
  0xa7   : > { %1882 = vmax.xlane.f32.xlu1 %v1881_v58  ;;  %v2163_v36 = vmul.f32 %v12509_v39, %v907_v15  ;;  %v12557_v52 = vadd.f32 %v2177_v10, %v12088_v19  ;;  %10017 = vmatmul.mubr.msk.bf16.gmra.mrb[4].mxu0 %vm981_vm10, %v979_v9  ;;  %v2168_v31 = vadd.f32 %v2160_v6, %v2150_v21  ;;  %v936_v58 = vld [vmem:[%s12058_s0 + $0x3c0] sm:$0xff]  ;;  %v1884_v35 = vsel %vm1181_vm2, %v12545_v2, -inf  ;;  %v845_v6 = vld [vmem:[%s12058_s0 + $0xe8] sm:$0xff] }
  0xa8   : > { %v2152_v56 = vmul.f32 %v12490_v57, %v904_v16  ;;  %v2162_v18 = vmul.f32 %v12509_v39, %v906_v29  ;;  %v2179_v59 = vadd.f32 %v12517_v30, %v2169_v43  ;;  %v2155_v51 = vmul.f32 %v12490_v57, %v937_v12 }
  0xa9   : > { %v2171_v0 = vadd.f32 %v2163_v36, %v2153_v62  ;;  %v12571_v7 = vadd.f32 %v2176_v41, %v12103_v33  ;;  %v2165_v54 = vmul.f32 %v12509_v39, %v939_v47  ;;  %v2195_v15 = vsel %vm1181_vm2, %v12557_v52, -inf  ;;  %v847_v62 = vld [vmem:[%s12058_s0 + $0xf8] sm:$0xff]  ;;  %v844_v41 = vld [vmem:[%s12058_s0 + $0xe0] sm:$0xff]  ;;  %v846_v47 = vld [vmem:[%s12058_s0 + $0xf0] sm:$0xff] }
  0xaa   : > { %1879 = vmax.xlane.f32.xlu0 %v1878_v8  ;;  %v2170_v9 = vadd.f32 %v2162_v18, %v2152_v56  ;;  %v12577_v16 = vadd.f32 %v2179_v59, %v12116_v46  ;;  %v2178_v8 = vadd.f32 %v12517_v30, %v2168_v31  ;;  %v2154_v11 = vmul.f32 %v12490_v57, %v936_v58  ;;  %v877_v31 = vld [vmem:[%s12058_s0 + $0x1e8] sm:$0xff] }
  0xab   : > { %1888 = vmax.xlane.f32.xlu1 %v1887_v22  ;;  %v2181_v20 = vadd.f32 %v12517_v30, %v2171_v0  ;;  %v2173_v29 = vadd.f32 %v2165_v54, %v2155_v51  ;;  %v2164_v10 = vmul.f32 %v12509_v39, %v938_v48  ;;  %v12587_v12 = vstv %s12540_s25  ;;  %v879_v39 = vld [vmem:[%s12058_s0 + $0x1f8] sm:$0xff]  ;;  %v876_v0 = vld [vmem:[%s12058_s0 + $0x1e0] sm:$0xff]  ;;  %v878_v51 = vld [vmem:[%s12058_s0 + $0x1f0] sm:$0xff]  ;;  %s17369_s25 = sld [smem:[#allocation63_spill]] }
  0xac   : > { %v2180_v21 = vadd.f32 %v12517_v30, %v2170_v9  ;;  %v12590_v22 = vstv %s12542_s28  ;;  %v2192_v57 = vsel %vm1181_vm2, %v12571_v7, -inf  ;;  %v2201_v56 = vsel %vm1181_vm2, %v12577_v16, -inf }
  0xad   : > { %v2183_v43 = vadd.f32 %v12517_v30, %v2173_v29  ;;  %v2172_v36 = vadd.f32 %v2164_v10, %v2154_v11  ;;  %v12602_v18 = vadd.f32 %v2178_v8, %v12120_v50  ;;  %v2475_v58 = vmul.f32 %v12587_v12, %v845_v6  ;;  %v909_v10 = vld [vmem:[%s12058_s0 + $0x2e8] sm:$0xff]  ;;  %v911_v6 = vld [vmem:[%s12058_s0 + $0x2f8] sm:$0xff] }
  0xae   : > { %1885 = vmax.xlane.f32.xlu0 %v1884_v35  ;;  %v2485_v59 = vmul.f32 %v12590_v22, %v847_v62  ;;  %v12609_v48 = vadd.f32 %v2181_v20, %v12145_v4  ;;  %v12612_v35 = vadd.f32 %v2180_v21, %v12166_v25  ;;  %v12615_v9 = vstv %s12563_s26  ;;  %s9651_s26 = sld [smem:[#allocation2 + $0x82]] }
  0xaf   : > { %2196 = vmax.xlane.f32.xlu1 %v2195_v15  ;;  %v2474_v54 = vmul.f32 %v12587_v12, %v844_v41  ;;  %v2484_v8 = vmul.f32 %v12590_v22, %v846_v47  ;;  %v2477_v11 = vmul.f32 %v12587_v12, %v877_v31  ;;  %v2487_v29 = vmul.f32 %v12590_v22, %v879_v39 }
  0xb0   : > { %17329 = vst [vmem:[#allocation29_spill] sm:$0xff] %v12609_v48  ;;  %17330 = vst [vmem:[#allocation30_spill] sm:$0xff] %v12612_v35  ;;  %v2493_v15 = vadd.f32 %v2485_v59, %v2475_v58  ;;  %v12624_v20 = vadd.f32 %v2183_v43, %v12316_v45  ;;  %v2182_v21 = vadd.f32 %v12517_v30, %v2172_v36  ;;  %v2198_v47 = vsel %vm1181_vm2, %v12602_v18, -inf  ;;  %v908_v30 = vld [vmem:[%s12058_s0 + $0x2e0] sm:$0xff]  ;;  %v910_v36 = vld [vmem:[%s12058_s0 + $0x2f0] sm:$0xff] }
  0xb1   : > { %v2476_v62 = vmul.f32 %v12587_v12, %v876_v0  ;;  %v2486_v41 = vmul.f32 %v12590_v22, %v878_v51  ;;  %v2492_v39 = vadd.f32 %v2484_v8, %v2474_v54  ;;  %v2495_v58 = vadd.f32 %v2487_v29, %v2477_v11  ;;  %v941_v0 = vld [vmem:[%s12058_s0 + $0x3e8] sm:$0xff]  ;;  %v943_v51 = vld [vmem:[%s12058_s0 + $0x3f8] sm:$0xff]  ;;  %s17370_s28 = smov %s17369_s25 }
  0xb2   : > { %2193 = vmax.xlane.f32.xlu0 %v2192_v57  ;;  %17331 = vst [vmem:[#allocation31_spill] sm:$0xff] %v12624_v20  ;;  %v2503_v31 = vadd.f32 %v12615_v9, %v2493_v15  ;;  %v2207_v57 = vsel %vm1181_vm2, %v12609_v48, -inf  ;;  %v2479_v43 = vmul.f32 %v12587_v12, %v909_v10  ;;  %v2489_v59 = vmul.f32 %v12590_v22, %v911_v6 }
  0xb3   : > { %2202 = vmax.xlane.f32.xlu1 %v2201_v56  ;;  %v2204_v56 = vsel %vm1181_vm2, %v12612_v35, -inf  ;;  %v2213_v54 = vsel %vm1181_vm2, %v12624_v20, -inf  ;;  %v12645_v15 = vadd.f32 %v2182_v21, %v12353_v40  ;;  %v2494_v8 = vadd.f32 %v2486_v41, %v2476_v62  ;;  %v940_v21 = vld [vmem:[%s12058_s0 + $0x3e0] sm:$0xff] }
  0xb4   : > { %v12648_v11 = vadd.f32 %v2503_v31, %v12088_v19  ;;  %v2502_v29 = vadd.f32 %v12615_v9, %v2492_v39  ;;  %v2478_v10 = vmul.f32 %v12587_v12, %v908_v30  ;;  %v2488_v6 = vmul.f32 %v12590_v22, %v910_v36 }
  0xb5   : > { %v2497_v35 = vadd.f32 %v2489_v59, %v2479_v43  ;;  %v2481_v48 = vmul.f32 %v12587_v12, %v941_v0  ;;  %v2491_v20 = vmul.f32 %v12590_v22, %v943_v51  ;;  %v2210_v62 = vsel %vm1181_vm2, %v12645_v15, -inf }
  0xb6   : > { %2199 = vmax.xlane.f32.xlu0 %v2198_v47  ;;  %v2505_v47 = vadd.f32 %v12615_v9, %v2495_v58  ;;  %v2504_v41 = vadd.f32 %v12615_v9, %v2494_v8  ;;  %v12662_v31 = vadd.f32 %v2502_v29, %v12103_v33  ;;  %v2496_v39 = vadd.f32 %v2488_v6, %v2478_v10 }
  0xb7   : > { %2208 = vmax.xlane.f32.xlu1 %v2207_v57  ;;  %v2480_v57 = vmul.f32 %v12587_v12, %v940_v21  ;;  %v2490_v58 = vmul.f32 %v12590_v22, %v942_v13  ;;  %v2521_v43 = vsel %vm1181_vm2, %v12648_v11, -inf  ;;  %v2507_v30 = vadd.f32 %v12615_v9, %v2497_v35 }
  0xb8   : > { %v12669_v59 = vadd.f32 %v2505_v47, %v12116_v46  ;;  %v2499_v36 = vadd.f32 %v2491_v20, %v2481_v48  ;;  %v2518_v0 = vsel %vm1181_vm2, %v12662_v31, -inf  ;;  %v12675_v51 = vadd.f32 %v2504_v41, %v12120_v50 }
  0xb9   : > { %v2506_v12 = vadd.f32 %v12615_v9, %v2496_v39  ;;  %v2498_v13 = vadd.f32 %v2490_v58, %v2480_v57  ;;  %v17134_v21 = vmov 0.0   ;;  %vm6972_vm1 = vcmask 195584  }
  0xba   : > { %2205 = vmax.xlane.f32.xlu0 %v2204_v56  ;;  %v2527_v22 = vsel %vm1181_vm2, %v12669_v59, -inf  ;;  %v12681_v56 = vadd.f32 %v2507_v30, %v12145_v4  ;;  %v2509_v35 = vadd.f32 %v12615_v9, %v2499_v36  ;;  %v2524_v48 = vsel %vm1181_vm2, %v12675_v51, -inf  ;;  %10020 = vmatprep.subr.bf16.mxu1 %v17134_v21 }
  0xbb   : > { %2214 = vmax.xlane.f32.xlu1 %v2213_v54  ;;  %v12687_v20 = vadd.f32 %v2506_v12, %v12166_v25  ;;  %v2508_v54 = vadd.f32 %v12615_v9, %v2498_v13  ;;  %10032 = vmatprep.subr.bf16.mxu0 %v17134_v21  ;;  %vm6981_vm3 = vcmask 261120   ;;  %vm7037_vm4 = vcmask 326656  }
  0xbc   : > { %v2533_v8 = vsel %vm1181_vm2, %v12681_v56, -inf  ;;  %v12693_v29 = vadd.f32 %v2509_v35, %v12316_v45  ;;  %vm9097_vm5 = vcmask 1042434   ;;  %vm9099_vm6 = vcmask 1043459  }
  0xbd   : > { %v2530_v10 = vsel %vm1181_vm2, %v12687_v20, -inf  ;;  %v12698_v6 = vadd.f32 %v2508_v54, %v12353_v40  ;;  %vm9260_vm7 = vcmask 122880  }
  0xbe   : > { %2211 = vmax.xlane.f32.xlu0 %v2210_v62  ;;  %17332 = vst [vmem:[#allocation32_spill] sm:$0xff] %v12693_v29  ;;  %v2539_v47 = vsel %vm1181_vm2, %v12693_v29, -inf }
  0xbf   : > { %2522 = vmax.xlane.f32.xlu1 %v2521_v43  ;;  %17333 = vst [vmem:[#allocation33_spill] sm:$0xff] %v12698_v6  ;;  %v2536_v9 = vsel %vm1181_vm2, %v12698_v6, -inf }
  0xc2   : > { %2519 = vmax.xlane.f32.xlu0 %v2518_v0 }
  0xc3   : > { %2528 = vmax.xlane.f32.xlu1 %v2527_v22 }
  0xc6   : > { %2525 = vmax.xlane.f32.xlu0 %v2524_v48 }
  0xc7   : > { %2534 = vmax.xlane.f32.xlu1 %v2533_v8 }
  0xca   : > { %2531 = vmax.xlane.f32.xlu0 %v2530_v10 }
  0xcb   : > { %2540 = vmax.xlane.f32.xlu1 %v2539_v47 }
  0xce   : > { %2537 = vmax.xlane.f32.xlu0 %v2536_v9 }
  0xf9   : > { %v12706_v62 = vpop.xlane.xlu1 %1540 }
  0xfb   : > { %v12708_v41 = vpop.xlane.xlu0 %1537 }
  0xfd   : > { %v12710_v39 = vpop.xlane.xlu1 %1546 }
  0xff   : > { %v12712_v57 = vpop.xlane.xlu0 %1543 }
 0x102   : > { %v12714_v58 = vpop.xlane.xlu1 %1552 }
 0x107   : > { %v12716_v43 = vpop.xlane.xlu0 %1549 }
 0x10e   : > { %v12718_v30 = vpop.xlane.xlu1 %1189 }
 0x112   : > { %v12720_v36 = vpop.xlane.xlu0 %1183 }
 0x115   : > { %v12722_v0 = vpop.xlane.xlu1 %1192 }
 0x117   : > { %v12724_v12 = vpop.xlane.xlu0 %1186 }
 0x11a   : > { %v12726_v13 = vpop.xlane.xlu1 %1198 }
 0x11e   : > { %v12728_v22 = vpop.xlane.xlu0 %1195 }
 0x124   : > { %v12730_v35 = vpop.xlane.xlu1 %1204 }
 0x127   : > { %v12732_v48 = vpop.xlane.xlu0 %1201 }
 0x128   : > { %v12734_v54 = vpop.xlane.xlu1 %1558 }
 0x12b   : > { %v12736_v8 = vpop.xlane.xlu0 %1555 }
 0x12c   : > { %v1871_v10 = vpop.xlane.xlu1 %1870 }
 0x12d   : > { %v1891_v47 = vsub.f32 %v12446_v27, %v1871_v10 }
 0x12f   : > { %v1900_v9 = vmul.f32 1.442695, %v1891_v47  ;;  %v1868_v21 = vpop.xlane.xlu0 %1867 }
 0x130   : > { %v1890_v45 = vsub.f32 %v12453_v32, %v1868_v21  ;;  %v1877_v40 = vpop.xlane.xlu1 %1876 }
 0x131   : > { %10662 = vpow2.f32 %v1900_v9  ;;  %v1893_v4 = vsub.f32 %v12470_v53, %v1877_v40 }
 0x132   : > { %v1898_v25 = vmul.f32 1.442695, %v1890_v45 }
 0x133   : > { %v1904_v46 = vmul.f32 1.442695, %v1893_v4  ;;  %v1874_v19 = vpop.xlane.xlu0 %1873 }
 0x134   : > { %10664 = vpow2.f32 %v1898_v25  ;;  %v1892_v50 = vsub.f32 %v12480_v3, %v1874_v19  ;;  %v1883_v33 = vpop.xlane.xlu1 %1882 }
 0x135   : > { %10666 = vpow2.f32 %v1904_v46  ;;  %v1895_v29 = vsub.f32 %v12496_v24, %v1883_v33 }
 0x136   : > { %v1902_v6 = vmul.f32 1.442695, %v1892_v50 }
 0x137   : > { %v1908_v27 = vmul.f32 1.442695, %v1895_v29  ;;  %v1880_v10 = vpop.xlane.xlu0 %1879 }
 0x138   : > { %10668 = vpow2.f32 %v1902_v6  ;;  %v1894_v32 = vsub.f32 %v12506_v17, %v1880_v10  ;;  %v1889_v21 = vpop.xlane.xlu1 %1888 }
 0x139   : > { %10670 = vpow2.f32 %v1908_v27  ;;  %v1897_v40 = vsub.f32 %v12529_v60, %v1889_v21 }
 0x13a   : > { %v1906_v45 = vmul.f32 1.442695, %v1894_v32  ;;  %v1560_v32 = vsub.f32 %v12163_v23, %v12708_v41 }
 0x13b   : > { %v12745_v4 = vpop.eup %10662  ;;  %v1912_v25 = vmul.f32 1.442695, %v1897_v40  ;;  %v1886_v53 = vpop.xlane.xlu0 %1885 }
 0x13c   : > { %10672 = vpow2.f32 %v1906_v45  ;;  %v1896_v19 = vsub.f32 %v12545_v2, %v1886_v53  ;;  %v2197_v46 = vpop.xlane.xlu1 %2196  ;;  %v1917_v33 = vsel %vm1181_vm2, %v12745_v4, 0.0  ;;  %v1563_v53 = vsub.f32 %v12173_v28, %v12710_v39 }
 0x13d   : > { %10674 = vpow2.f32 %v1912_v25  ;;  %v2217_v50 = vsub.f32 %v12557_v52, %v2197_v46  ;;  %1918 = vadd.xlane.f32.xlu1 %v1917_v33  ;;  %v1561_v52 = vsub.f32 %v12142_v1, %v12706_v62  ;;  %v1568_v41 = vmul.f32 1.442695, %v1560_v32 }
 0x13e   : > { %v12751_v3 = vpop.eup %10664  ;;  %v1910_v24 = vmul.f32 1.442695, %v1896_v19  ;;  %v1562_v19 = vsub.f32 %v12191_v44, %v12712_v57  ;;  %v1574_v28 = vmul.f32 1.442695, %v1563_v53  ;;  %v1565_v39 = vsub.f32 %v12220_v63, %v12714_v58 }
 0x13f   : > { %v12753_v17 = vpop.eup %10666  ;;  %v2226_v60 = vmul.f32 1.442695, %v2217_v50  ;;  %v2194_v29 = vpop.xlane.xlu0 %2193  ;;  %v1914_v6 = vsel %vm1181_vm2, %v12751_v3, 0.0  ;;  %v1570_v62 = vmul.f32 1.442695, %v1561_v52  ;;  %v1564_v57 = vsub.f32 %v12246_v37, %v12716_v43 }
 0x140   : > { %10676 = vpow2.f32 %v1910_v24  ;;  %v2216_v2 = vsub.f32 %v12571_v7, %v2194_v29  ;;  %1915 = vadd.xlane.f32.xlu0 %v1914_v6  ;;  %v2203_v47 = vpop.xlane.xlu1 %2202  ;;  %v1923_v9 = vsel %vm1181_vm2, %v12753_v17, 0.0  ;;  %v1572_v44 = vmul.f32 1.442695, %v1562_v19 }
 0x141   : > { %10678 = vpow2.f32 %v2226_v60  ;;  %v2219_v27 = vsub.f32 %v12577_v16, %v2203_v47  ;;  %1924 = vadd.xlane.f32.xlu1 %v1923_v9  ;;  %v1578_v6 = vmul.f32 1.442695, %v1565_v39  ;;  %v1576_v47 = vmul.f32 1.442695, %v1564_v57  ;;  %v17339_v57 = vld [vmem:[#allocation29_spill] sm:$0xff] }
 0x142   : > { %v12763_v10 = vpop.eup %10668  ;;  %v2224_v21 = vmul.f32 1.442695, %v2216_v2  ;;  %v1567_v2 = vsub.f32 %v12426_v61, %v12734_v54  ;;  %v1566_v37 = vsub.f32 %v12443_v26, %v12736_v8  ;;  %v1206_v61 = vsub.f32 %v12298_v5, %v12720_v36 }
 0x143   : > { %v12767_v40 = vpop.eup %10670  ;;  %v2230_v7 = vmul.f32 1.442695, %v2219_v27  ;;  %v2200_v45 = vpop.xlane.xlu0 %2199  ;;  %v1920_v25 = vsel %vm1181_vm2, %v12763_v10, 0.0  ;;  %v1207_v26 = vsub.f32 %v12334_v14, %v12724_v12  ;;  %v1208_v5 = vsub.f32 %v12284_v55, %v12718_v30 }
 0x144   : > { %10680 = vpow2.f32 %v2224_v21  ;;  %v2218_v1 = vsub.f32 %v12602_v18, %v2200_v45  ;;  %1921 = vadd.xlane.f32.xlu0 %v1920_v25  ;;  %v1929_v16 = vsel %vm1181_vm2, %v12767_v40, 0.0  ;;  %v1582_v54 = vmul.f32 1.442695, %v1567_v2 }
 0x145   : > { %10682 = vpow2.f32 %v2230_v7  ;;  %1930 = vadd.xlane.f32.xlu1 %v1929_v16  ;;  %v1580_v8 = vmul.f32 1.442695, %v1566_v37  ;;  %v1214_v36 = vmul.f32 1.442695, %v1206_v61  ;;  %v1209_v45 = vsub.f32 %v12312_v42, %v12722_v0 }
 0x146   : > { %v12776_v23 = vpop.eup %10672  ;;  %v2228_v46 = vmul.f32 1.442695, %v2218_v1  ;;  %v1216_v25 = vmul.f32 1.442695, %v1207_v26  ;;  %v1218_v55 = vmul.f32 1.442695, %v1208_v5  ;;  %v1211_v30 = vsub.f32 %v12358_v38, %v12726_v13 }
 0x147   : > { %v12780_v33 = vpop.eup %10674  ;;  %v1926_v18 = vsel %vm1181_vm2, %v12776_v23, 0.0  ;;  %v1220_v42 = vmul.f32 1.442695, %v1209_v45  ;;  %v1210_v0 = vsub.f32 %v12372_v49, %v12728_v22  ;;  %v1213_v13 = vsub.f32 %v12402_v34, %v12730_v35  ;;  %v17338_v22 = vld [vmem:[#allocation28_spill] sm:$0xff]  ;;  %v17340_v34 = vld [vmem:[#allocation30_spill] sm:$0xff] }
 0x148   : > { %10684 = vpow2.f32 %v2228_v46  ;;  %1927 = vadd.xlane.f32.xlu0 %v1926_v18  ;;  %v1935_v50 = vsel %vm1181_vm2, %v12780_v33, 0.0  ;;  %v2209_v46 = vpop.xlane.xlu1 %2208  ;;  %v1224_v38 = vmul.f32 1.442695, %v1211_v30  ;;  %v2206_v18 = vpop.xlane.xlu0 %2205 }
 0x149   : > { %10686 = vpow2.f32 %v1570_v62  ;;  %1936 = vadd.xlane.f32.xlu1 %v1935_v50  ;;  %v1222_v49 = vmul.f32 1.442695, %v1210_v0  ;;  %v1212_v50 = vsub.f32 %v17338_v22, %v12732_v48  ;;  %v2220_v35 = vsub.f32 %v17340_v34, %v2206_v18 }
 0x14a   : > { %v12788_v24 = vpop.eup %10676  ;;  %10688 = vpow2.f32 %v1568_v41  ;;  %v1228_v2 = vmul.f32 1.442695, %v1213_v13 }
 0x14b   : > { %v12792_v60 = vpop.eup %10678  ;;  %v1932_v29 = vsel %vm1181_vm2, %v12788_v24, 0.0  ;;  %10690 = vpow2.f32 %v1574_v28  ;;  %v1226_v48 = vmul.f32 1.442695, %v1212_v50 }
 0x14c   : > { %17334 = vst [vmem:[#allocation34_spill] sm:$0xff] %v12792_v60  ;;  %1933 = vadd.xlane.f32.xlu0 %v1932_v29  ;;  %v2243_v63 = vsel %vm1181_vm2, %v12792_v60, 0.0  ;;  %10692 = vpow2.f32 %v1572_v44  ;;  %v2221_v29 = vsub.f32 %v17339_v57, %v2209_v46 }
 0x14d   : > { %10694 = vpow2.f32 %v1578_v6 }
 0x14e   : > { %v12800_v58 = vpop.eup %10680  ;;  %10696 = vpow2.f32 %v1576_v47 }
 0x14f   : > { %17335 = vst [vmem:[#allocation35_spill] sm:$0xff] %v12800_v58  ;;  %v12804_v43 = vpop.eup %10682  ;;  %v2240_v9 = vsel %vm1181_vm2, %v12800_v58, 0.0  ;;  %10698 = vpow2.f32 %v1582_v54  ;;  %v2232_v54 = vmul.f32 1.442695, %v2220_v35 }
 0x150   : > { %17336 = vst [vmem:[#allocation36_spill] sm:$0xff] %v12804_v43  ;;  %2244 = vadd.xlane.f32.xlu0 %v2243_v63  ;;  %2241 = vadd.xlane.f32.xlu1 %v2240_v9  ;;  %v2249_v52 = vsel %vm1181_vm2, %v12804_v43, 0.0  ;;  %10700 = vpow2.f32 %v1580_v8  ;;  %v2234_v9 = vmul.f32 1.442695, %v2221_v29 }
 0x151   : > { %10702 = vpow2.f32 %v1214_v36 }
 0x152   : > { %v12812_v27 = vpop.eup %10684  ;;  %10704 = vpow2.f32 %v1216_v25 }
 0x153   : > { %17337 = vst [vmem:[#allocation37_spill] sm:$0xff] %v12812_v27  ;;  %v12816_v32 = vpop.eup %10686  ;;  %v2246_v21 = vsel %vm1181_vm2, %v12812_v27, 0.0  ;;  %10706 = vpow2.f32 %v1218_v55 }
 0x154   : > { %v12820_v7 = vpop.eup %10688  ;;  %2250 = vadd.xlane.f32.xlu1 %v2249_v52  ;;  %2247 = vadd.xlane.f32.xlu0 %v2246_v21  ;;  %v1587_v12 = vsel %vm1181_vm2, %v12816_v32, 0.0  ;;  %10708 = vpow2.f32 %v1220_v42 }
 0x155   : > { %v12826_v14 = vpop.eup %10690  ;;  %v1584_v1 = vsel %vm1181_vm2, %v12820_v7, 0.0  ;;  %10710 = vpow2.f32 %v1224_v38 }
 0x156   : > { %v12832_v16 = vpop.eup %10692  ;;  %v1593_v53 = vsel %vm1181_vm2, %v12826_v14, 0.0  ;;  %10712 = vpow2.f32 %v1222_v49 }
 0x157   : > { %v12838_v62 = vpop.eup %10694  ;;  %v1590_v41 = vsel %vm1181_vm2, %v12832_v16, 0.0  ;;  %10714 = vpow2.f32 %v1228_v2 }
 0x158   : > { %1588 = vadd.xlane.f32.xlu1 %v1587_v12  ;;  %1585 = vadd.xlane.f32.xlu0 %v1584_v1  ;;  %v12844_v19 = vpop.eup %10696  ;;  %v1599_v39 = vsel %vm1181_vm2, %v12838_v62, 0.0  ;;  %10716 = vpow2.f32 %v1226_v48 }
 0x159   : > { %v12850_v28 = vpop.eup %10698  ;;  %v1596_v44 = vsel %vm1181_vm2, %v12844_v19, 0.0  ;;  %10718 = vpow2.f32 %v2234_v9  ;;  %v17344_v9 = vld [vmem:[#allocation31_spill] sm:$0xff] }
 0x15a   : > { %v12857_v6 = vpop.eup %10700  ;;  %v1605_v47 = vsel %vm1181_vm2, %v12850_v28, 0.0  ;;  %10720 = vpow2.f32 %v2232_v54 }
 0x15b   : > { %v12860_v63 = vpop.eup %10702  ;;  %v1602_v37 = vsel %vm1181_vm2, %v12857_v6, 0.0 }
 0x15c   : > { %1594 = vadd.xlane.f32.xlu1 %v1593_v53  ;;  %1591 = vadd.xlane.f32.xlu0 %v1590_v41  ;;  %v12866_v61 = vpop.eup %10704  ;;  %v1230_v8 = vsel %vm1181_vm2, %v12860_v63, 0.0 }
 0x15d   : > { %v12868_v52 = vpop.eup %10706  ;;  %v1233_v26 = vsel %vm1181_vm2, %v12866_v61, 0.0 }
 0x15e   : > { %v12874_v21 = vpop.eup %10708  ;;  %v1236_v45 = vsel %vm1181_vm2, %v12868_v52, 0.0 }
 0x15f   : > { %v12876_v5 = vpop.eup %10710  ;;  %v1239_v36 = vsel %vm1181_vm2, %v12874_v21, 0.0 }
 0x160   : > { %1600 = vadd.xlane.f32.xlu1 %v1599_v39  ;;  %1597 = vadd.xlane.f32.xlu0 %v1596_v44  ;;  %v12882_v25 = vpop.eup %10712  ;;  %v1245_v1 = vsel %vm1181_vm2, %v12876_v5, 0.0  ;;  %v17343_v44 = vmov 0.0  }
 0x161   : > { %v12884_v12 = vpop.eup %10714  ;;  %v1242_v55 = vsel %vm1181_vm2, %v12882_v25, 0.0  ;;  %10022 = vmatprep.mubr.msk.bf16.mxu1 %vm11824_vm11, %v17343_v44  ;;  %10034 = vmatprep.mubr.msk.bf16.mxu0 %vm11824_vm11, %v17343_v44 }
 0x162   : > { %v12890_v30 = vpop.eup %10716  ;;  %v1251_v53 = vsel %vm1181_vm2, %v12884_v12, 0.0 }
 0x163   : > { %v12892_v42 = vpop.eup %10718  ;;  %v1248_v41 = vsel %vm1181_vm2, %v12890_v30, 0.0 }
 0x164   : > { %1606 = vadd.xlane.f32.xlu1 %v1605_v47  ;;  %1603 = vadd.xlane.f32.xlu0 %v1602_v37  ;;  %17341 = vst [vmem:[#allocation28_spill] sm:$0xff] %v12892_v42  ;;  %v12894_v0 = vpop.eup %10720  ;;  %v2255_v13 = vsel %vm1181_vm2, %v12892_v42, 0.0  ;;  %v2215_v47 = vpop.xlane.xlu1 %2214 }
 0x165   : > { %17342 = vst [vmem:[#allocation29_spill] sm:$0xff] %v12894_v0  ;;  %v2252_v18 = vsel %vm1181_vm2, %v12894_v0, 0.0  ;;  %v2212_v37 = vpop.xlane.xlu0 %2211  ;;  %v2223_v54 = vsub.f32 %v17344_v9, %v2215_v47 }
 0x168   : > { %1234 = vadd.xlane.f32.xlu1 %v1233_v26  ;;  %1231 = vadd.xlane.f32.xlu0 %v1230_v8  ;;  %v2222_v26 = vsub.f32 %v12645_v15, %v2212_v37  ;;  %v2238_v8 = vmul.f32 1.442695, %v2223_v54 }
 0x16a   : > { %10722 = vpow2.f32 %v2238_v8 }
 0x16c   : > { %1240 = vadd.xlane.f32.xlu1 %v1239_v36  ;;  %1237 = vadd.xlane.f32.xlu0 %v1236_v45  ;;  %v2236_v36 = vmul.f32 1.442695, %v2222_v26 }
 0x16e   : > { %10724 = vpow2.f32 %v2236_v36 }
 0x170   : > { %1246 = vadd.xlane.f32.xlu1 %v1245_v1  ;;  %1243 = vadd.xlane.f32.xlu0 %v1242_v55 }
 0x172   : > { %v10014_v46 = vpop.f32.mrb[0].mxu0 }
 0x173   : > { %v1032_v38 = vpop.f32.mrb[1].mxu0 }
 0x174   : > { %1252 = vadd.xlane.f32.xlu1 %v1251_v53  ;;  %1249 = vadd.xlane.f32.xlu0 %v1248_v41  ;;  %v10015_v49 = vpop.f32.mrb[2].mxu0  ;;  %v12930_v45 = vpop.eup %10722 }
 0x175   : > { %v12904_v22 = vpack.c.bf16 %v10015_v49, %v10014_v46  ;;  %v1035_v50 = vpop.f32.mrb[3].mxu0  ;;  %17345 = vst [vmem:[#allocation30_spill] sm:$0xff] %v12930_v45  ;;  %v2261_v55 = vsel %vm1181_vm2, %v12930_v45, 0.0  ;;  %v2523_v41 = vpop.xlane.xlu1 %2522 }
 0x176   : > { %v12906_v39 = vpack.c.bf16 %v1035_v50, %v1032_v38  ;;  %v2520_v46 = vpop.xlane.xlu0 %2519 }
 0x177   : > { %v2542_v47 = vsub.f32 %v12662_v31, %v2520_v46 }
 0x178   : > { %2256 = vadd.xlane.f32.xlu0 %v2255_v13  ;;  %2253 = vadd.xlane.f32.xlu1 %v2252_v18  ;;  %v12932_v1 = vpop.eup %10724 }
 0x179   : > { %10021 = vmatpush3.bf16.msra.mxu1 %v12906_v39  ;;  %17346 = vst [vmem:[#allocation31_spill] sm:$0xff] %v12932_v1  ;;  %v2258_v53 = vsel %vm1181_vm2, %v12932_v1, 0.0  ;;  %v2529_v38 = vpop.xlane.xlu1 %2528  ;;  %v2550_v8 = vmul.f32 1.442695, %v2542_v47 }
 0x17a   : > { %10026 = vmatprep.subr.bf16.mxu1 %v17343_v44  ;;  %v10018_v57 = vpop.f32.mrb[4].mxu0  ;;  %v2526_v15 = vpop.xlane.xlu0 %2525  ;;  %v2545_v26 = vsub.f32 %v12669_v59, %v2529_v38 }
 0x17b   : > { %v1048_v29 = vpop.f32.mrb[5].mxu0  ;;  %v2544_v36 = vsub.f32 %v12675_v51, %v2526_v15 }
 0x17c   : > { %v10019_v34 = vpop.f32.mrb[6].mxu0 }
 0x17d   : > { %v12910_v35 = vpack.c.bf16 %v10019_v34, %v10018_v57  ;;  %v1051_v2 = vpop.f32.mrb[7].mxu0  ;;  %v12938_v13 = vpop.xlane.xlu1 %2534 }
 0x17e   : > { %v12912_v48 = vpack.c.bf16 %v1051_v2, %v1048_v29  ;;  %v12940_v18 = vpop.xlane.xlu0 %2531  ;;  %v2543_v2 = vsub.f32 %v12648_v11, %v2523_v41  ;;  %v2554_v11 = vmul.f32 1.442695, %v2544_v36 }
 0x180   : > { %10033 = vmatpush3.bf16.msra.mxu0 %v12912_v48  ;;  %v2552_v54 = vmul.f32 1.442695, %v2543_v2 }
 0x181   : > { %10044 = vmatprep.subr.bf16.mxu0 %v17343_v44  ;;  %v12944_v49 = vpop.xlane.xlu1 %2540 }
 0x182   : > { %v12948_v50 = vpop.xlane.xlu0 %2537  ;;  %10726 = vpow2.f32 %v2552_v54 }
 0x183   : > { %10728 = vpow2.f32 %v2550_v8 }
 0x189   : > { %1677 = vrot.lane.b32.xlu1 %v12904_v22, %s11825_s2 }
 0x18c   : > { %v12974_v59 = vpop.eup %10726 }
 0x18d   : > { %1773 = vrot.lane.b32.xlu1 %v12910_v35, %s11825_s2  ;;  %17347 = vst [vmem:[#allocation38_spill] sm:$0xff] %v12974_v59  ;;  %v12980_v15 = vpop.eup %10728 }
 0x18e   : > { %1629 = vrot.lane.b32.xlu0 %v12906_v39, %s11825_s2  ;;  %17350 = vst [vmem:[#allocation41_spill] sm:$0xff] %v12980_v15  ;;  %v2566_v8 = vsel %vm1181_vm2, %v12980_v15, 0.0 }
 0x192   : > { %1725 = vrot.lane.b32.xlu0 %v12912_v48, %s11825_s2 }
 0x1b1   : > { %2262 = vadd.xlane.f32.xlu1 %v2261_v55  ;;  %2259 = vadd.xlane.f32.xlu0 %v2258_v53  ;;  %v2556_v53 = vmul.f32 1.442695, %v2545_v26  ;;  %v2569_v26 = vsel %vm1181_vm2, %v12974_v59, 0.0 }
 0x1b3   : > { %10730 = vpow2.f32 %v2556_v53 }
 0x1b4   : > { %10732 = vpow2.f32 %v2554_v11 }
 0x1bd   : > { %v12982_v2 = vpop.eup %10730 }
 0x1be   : > { %17351 = vst [vmem:[#allocation42_spill] sm:$0xff] %v12982_v2  ;;  %v12988_v36 = vpop.eup %10732  ;;  %v2575_v45 = vsel %vm1181_vm2, %v12982_v2, 0.0 }
 0x1bf   : > { %17352 = vst [vmem:[#allocation43_spill] sm:$0xff] %v12988_v36  ;;  %v2572_v42 = vsel %vm1181_vm2, %v12988_v36, 0.0 }
 0x1c2   : > { %2005 = vrot.lane.b32.xlu1 %v12904_v22, %s11826_s6 }
 0x1c7   : > { %1958 = vrot.lane.b32.xlu0 %v12906_v39, %s11826_s6 }
 0x1ca   : > { %v12950_v57 = vpop.xlane.xlu1 %1918 }
 0x1cd   : > { %v12952_v29 = vpop.xlane.xlu0 %1915 }
 0x1ce   : > { %v12954_v34 = vpop.xlane.xlu1 %1924 }
 0x1d1   : > { %v12958_v37 = vpop.xlane.xlu0 %1921 }
 0x1d2   : > { %v12960_v9 = vpop.xlane.xlu1 %1930 }
 0x1d5   : > { %v12964_v55 = vpop.xlane.xlu0 %1927 }
 0x1d6   : > { %v12966_v1 = vpop.xlane.xlu1 %1936 }
 0x1d9   : > { %v12968_v41 = vpop.xlane.xlu0 %1933 }
 0x1dd   : > { %v12970_v31 = vpop.xlane.xlu1 %2241  ;;  %v12972_v46 = vpop.xlane.xlu0 %2244 }
 0x1e1   : > { %v12976_v38 = vpop.xlane.xlu1 %2250  ;;  %v12978_v51 = vpop.xlane.xlu0 %2247 }
 0x1e2   : > { %17348 = vst [vmem:[#allocation39_spill] sm:$0xff] %v12976_v38  ;;  %17349 = vst [vmem:[#allocation40_spill] sm:$0xff] %v12978_v51 }
 0x1e5   : > { %v1589_v47 = vpop.xlane.xlu1 %1588  ;;  %v1586_v54 = vpop.xlane.xlu0 %1585 }
 0x1e6   : > { %2570 = vadd.xlane.f32.xlu0 %v2569_v26  ;;  %2567 = vadd.xlane.f32.xlu1 %v2566_v8 }
 0x1e9   : > { %v1595_v53 = vpop.xlane.xlu1 %1594  ;;  %v1592_v11 = vpop.xlane.xlu0 %1591 }
 0x1ea   : > { %2576 = vadd.xlane.f32.xlu1 %v2575_v45  ;;  %2573 = vadd.xlane.f32.xlu0 %v2572_v42 }
 0x1ed   : > { %v1601_v0 = vpop.xlane.xlu1 %1600  ;;  %v1598_v27 = vpop.xlane.xlu0 %1597 }
 0x1f1   : > { %v12994_v59 = vpop.xlane.xlu1 %1606  ;;  %v12996_v43 = vpop.xlane.xlu0 %1603 }
 0x1f5   : > { %v1235_v15 = vpop.xlane.xlu1 %1234  ;;  %v1232_v60 = vpop.xlane.xlu0 %1231 }
 0x1f6   : > { %10734 = vrcp.f32 %v1235_v15 }
 0x1f7   : > { %10736 = vrcp.f32 %v1232_v60 }
 0x1f9   : > { %v1241_v26 = vpop.xlane.xlu1 %1240  ;;  %v1238_v8 = vpop.xlane.xlu0 %1237 }
 0x1fa   : > { %10738 = vrcp.f32 %v1241_v26 }
 0x1fb   : > { %10740 = vrcp.f32 %v1238_v8  ;;  %2099 = vrot.lane.b32.xlu1 %v12910_v35, %s11826_s6 }
 0x1fd   : > { %v1247_v36 = vpop.xlane.xlu1 %1246  ;;  %v1244_v45 = vpop.xlane.xlu0 %1243 }
 0x1fe   : > { %10742 = vrcp.f32 %v1247_v36 }
 0x1ff   : > { %10744 = vrcp.f32 %v1244_v45 }
 0x200   : > { %v10735_v42 = vpop.eup %10734  ;;  %10746 = vrcp.f32 %v1589_v47  ;;  %2052 = vrot.lane.b32.xlu0 %v12912_v48, %s11826_s6 }
 0x201   : > { %v10737_v2 = vpop.eup %10736  ;;  %10748 = vrcp.f32 %v1586_v54  ;;  %v1253_v15 = vpop.xlane.xlu1 %1252  ;;  %v1263_v58 = vmul.f32 %v10735_v42, %v12866_v61  ;;  %v2547_v54 = vsub.f32 %v12681_v56, %v12938_v13 }
 0x202   : > { %v1250_v60 = vpop.xlane.xlu0 %1249  ;;  %10750 = vrcp.f32 %v1253_v15  ;;  %v1262_v26 = vmul.f32 %v10737_v2, %v12860_v63 }
 0x203   : > { %10752 = vrcp.f32 %v1250_v60  ;;  %v17353_v60 = vld [vmem:[#allocation33_spill] sm:$0xff] }
 0x204   : > { %v10739_v8 = vpop.eup %10738  ;;  %v1270_v51 = vpack.c.bf16 %v1263_v58, %v1262_v26  ;;  %10754 = vrcp.f32 %v1595_v53  ;;  %v2560_v53 = vmul.f32 1.442695, %v2547_v54  ;;  %v2548_v26 = vsub.f32 %v17353_v60, %v12948_v50 }
 0x205   : > { %v10741_v38 = vpop.eup %10740  ;;  %v1265_v61 = vmul.f32 %v10739_v8, %v12874_v21  ;;  %10756 = vrcp.f32 %v1592_v11  ;;  %v13030_v50 = vpop.xlane.xlu1 %2253 }
 0x206   : > { %10023 = vmatmul.mubr.msk.bf16.vlgmr.msra.gmra.mrb[0].mxu1 %vm1181_vm2, %v1270_v51  ;;  %v1264_v63 = vmul.f32 %v10741_v38, %v12868_v52  ;;  %v13012_v2 = vpop.xlane.xlu0 %2256  ;;  %v2546_v51 = vsub.f32 %v12687_v20, %v12940_v18  ;;  %10758 = vrcp.f32 %v1601_v0  ;;  %v17354_v20 = vld [vmem:[#allocation32_spill] sm:$0xff] }
 0x207   : > { %10027 = vmatpush3.bf16.msra.mxu1 %v12904_v22  ;;  %10028 = vmatprep.mubr.msk.bf16.mxu1 %vm11824_vm11, %v17343_v44  ;;  %10760 = vrcp.f32 %v1598_v27  ;;  %v2549_v18 = vsub.f32 %v17354_v20, %v12944_v49 }
 0x208   : > { %v10743_v47 = vpop.eup %10742  ;;  %10038 = vmatprep.subr.bf16.mxu1 %v17343_v44  ;;  %v1271_v38 = vpack.c.bf16 %v1265_v61, %v1264_v63  ;;  %v2558_v15 = vmul.f32 1.442695, %v2546_v51  ;;  %10762 = vpow2.f32 %v2560_v53 }
 0x209   : > { %v10745_v58 = vpop.eup %10744  ;;  %v1267_v36 = vmul.f32 %v10743_v47, %v12876_v5  ;;  %v1678_v61 = vpop.permute.xlu1 %1677 }
 0x20a   : > { %v10747_v45 = vpop.eup %10746  ;;  %v1266_v56 = vmul.f32 %v10745_v58, %v12882_v25  ;;  %v1630_v11 = vpop.permute.xlu0 %1629  ;;  %10764 = vpow2.f32 %v2558_v15 }
 0x20b   : > { %v10749_v13 = vpop.eup %10748  ;;  %v1617_v5 = vmul.f32 %v10747_v45, %v12816_v32  ;;  %v2562_v32 = vmul.f32 1.442695, %v2548_v26  ;;  %10766 = vrcp.f32 %v12994_v59 }
 0x20c   : > { %v10751_v21 = vpop.eup %10750  ;;  %v1272_v52 = vpack.c.bf16 %v1267_v36, %v1266_v56  ;;  %v1616_v27 = vmul.f32 %v10749_v13, %v12820_v7  ;;  %v2564_v7 = vmul.f32 1.442695, %v2549_v18  ;;  %10768 = vrcp.f32 %v12996_v43 }
 0x20d   : > { %v10753_v42 = vpop.eup %10752  ;;  %v1269_v25 = vmul.f32 %v10751_v21, %v12884_v12  ;;  %10770 = vpow2.f32 %v2562_v32  ;;  %v1774_v13 = vpop.permute.xlu1 %1773 }
 0x20e   : > { %10029 = vmatmul.mubr.msk.bf16.vlgmr.msra.gmra.mrb[4].mxu1 %vm1181_vm2, %v1271_v38  ;;  %10035 = vmatmul.mubr.msk.bf16.vlgmr.msra.gmra.mrb[8].mxu0 %vm1181_vm2, %v1272_v52  ;;  %v1268_v0 = vmul.f32 %v10753_v42, %v12890_v30  ;;  %v10755_v49 = vpop.eup %10754  ;;  %v1624_v47 = vpack.c.bf16 %v1617_v5, %v1616_v27  ;;  %10772 = vpow2.f32 %v2564_v7  ;;  %v1726_v63 = vpop.permute.xlu0 %1725 }
 0x20f   : > { %10039 = vmatpush3.bf16.msra.mxu1 %v12910_v35  ;;  %10045 = vmatpush3.bf16.msra.mxu0 %v1630_v11  ;;  %v10757_v12 = vpop.eup %10756  ;;  %v1619_v58 = vmul.f32 %v10755_v49, %v12826_v14  ;;  %10774 = vrcp.f32 %v12950_v57 }
 0x210   : > { %10040 = vmatprep.mubr.msk.bf16.mxu1 %vm11824_vm11, %v17343_v44  ;;  %10046 = vmatprep.mubr.msk.bf16.mxu0 %vm11824_vm11, %v17343_v44  ;;  %v10759_v30 = vpop.eup %10758  ;;  %v1273_v8 = vpack.c.bf16 %v1269_v25, %v1268_v0  ;;  %v1618_v59 = vmul.f32 %v10757_v12, %v12832_v16  ;;  %10776 = vrcp.f32 %v12952_v29 }
 0x211   : > { %10050 = vmatprep.subr.bf16.mxu1 %v17343_v44  ;;  %10056 = vmatprep.subr.bf16.mxu0 %v17343_v44  ;;  %v10761_v54 = vpop.eup %10760  ;;  %v1621_v43 = vmul.f32 %v10759_v30, %v12838_v62  ;;  %10778 = vrcp.f32 %v12954_v34 }
 0x212   : > { %v1620_v51 = vmul.f32 %v10761_v54, %v12844_v19  ;;  %v13052_v36 = vpop.eup %10762  ;;  %v1625_v16 = vpack.c.bf16 %v1619_v58, %v1618_v59  ;;  %10780 = vrcp.f32 %v12958_v37  ;;  %v17357_v58 = vld [vmem:[#allocation35_spill] sm:$0xff]  ;;  %v17358_v59 = vld [vmem:[#allocation34_spill] sm:$0xff] }
 0x213   : > { %v2581_v19 = vsel %vm1181_vm2, %v13052_v36, 0.0  ;;  %10782 = vrcp.f32 %v12960_v9 }
 0x214   : > { %v13054_v14 = vpop.eup %10764  ;;  %v1626_v56 = vpack.c.bf16 %v1621_v43, %v1620_v51  ;;  %10784 = vrcp.f32 %v12964_v55  ;;  %v17359_v51 = vld [vmem:[#allocation36_spill] sm:$0xff] }
 0x215   : > { %v10767_v45 = vpop.eup %10766  ;;  %v2578_v53 = vsel %vm1181_vm2, %v13054_v14, 0.0  ;;  %10786 = vrcp.f32 %v12966_v1 }
 0x216   : > { %10041 = vmatmul.mubr.msk.bf16.vlgmr.msra.gmra.mrb[8].mxu1 %vm1181_vm2, %v1273_v8  ;;  %10047 = vmatmul.mubr.msk.bf16.vlgmr.msra.gmra.mrb[12].mxu0 %vm1181_vm2, %v1624_v47  ;;  %v10769_v62 = vpop.eup %10768  ;;  %v1623_v38 = vmul.f32 %v10767_v45, %v12850_v28  ;;  %10788 = vrcp.f32 %v12968_v41 }
 0x217   : > { %10051 = vmatpush3.bf16.msra.mxu1 %v1678_v61  ;;  %10057 = vmatpush3.bf16.msra.mxu0 %v1726_v63  ;;  %v13060_v21 = vpop.eup %10770  ;;  %v1622_v42 = vmul.f32 %v10769_v62, %v12857_v6  ;;  %10790 = vrcp.f32 %v12970_v31 }
 0x218   : > { %10052 = vmatprep.mubr.msk.bf16.mxu1 %vm11824_vm11, %v17343_v44  ;;  %10058 = vmatprep.mubr.msk.bf16.mxu0 %vm11824_vm11, %v17343_v44  ;;  %v13064_v52 = vpop.eup %10772  ;;  %v2584_v15 = vsel %vm1181_vm2, %v13060_v21, 0.0  ;;  %10792 = vrcp.f32 %v12972_v46 }
 0x219   : > { %10062 = vmatprep.subr.bf16.mxu1 %v17343_v44  ;;  %10068 = vmatprep.subr.bf16.mxu0 %v17343_v44  ;;  %v2587_v60 = vsel %vm1181_vm2, %v13064_v52, 0.0  ;;  %v1627_v28 = vpack.c.bf16 %v1623_v38, %v1622_v42  ;;  %v10775_v6 = vpop.eup %10774 }
 0x21a   : > { %v10777_v26 = vpop.eup %10776  ;;  %v1947_v37 = vmul.f32 %v10775_v6, %v12745_v4  ;;  %v17362_v6 = vld [vmem:[#allocation28_spill] sm:$0xff] }
 0x21b   : > { %v10779_v20 = vpop.eup %10778  ;;  %v1946_v18 = vmul.f32 %v10777_v26, %v12751_v3 }
 0x21c   : > { %v10781_v57 = vpop.eup %10780  ;;  %v1949_v11 = vmul.f32 %v10779_v20, %v12753_v17  ;;  %v17363_v20 = vld [vmem:[#allocation30_spill] sm:$0xff] }
 0x21d   : > { %v1948_v5 = vmul.f32 %v10781_v57, %v12763_v10  ;;  %v10783_v4 = vpop.eup %10782 }
 0x21e   : > { %10053 = vmatmul.mubr.msk.bf16.vlgmr.msra.gmra.mrb[12].mxu1 %vm1181_vm2, %v1625_v16  ;;  %10059 = vmatmul.mubr.msk.bf16.vlgmr.msra.gmra.mrb[16].mxu0 %vm1181_vm2, %v1626_v56  ;;  %v10785_v10 = vpop.eup %10784  ;;  %v1951_v49 = vmul.f32 %v10783_v4, %v12767_v40  ;;  %v17355_v40 = vld [vmem:[#allocation39_spill] sm:$0xff]  ;;  %v17360_v16 = vld [vmem:[#allocation37_spill] sm:$0xff] }
 0x21f   : > { %10063 = vmatpush3.bf16.msra.mxu1 %v1774_v13  ;;  %2582 = vadd.xlane.f32.xlu0 %v2581_v19  ;;  %v1955_v0 = vpack.c.bf16 %v1949_v11, %v1948_v5  ;;  %v1950_v7 = vmul.f32 %v10785_v10, %v12776_v23  ;;  %10794 = vrcp.f32 %v17355_v40  ;;  %v17356_v23 = vld [vmem:[#allocation40_spill] sm:$0xff]  ;;  %v17366_v10 = vld [vmem:[#allocation38_spill] sm:$0xff] }
 0x220   : > { %2579 = vadd.xlane.f32.xlu1 %v2578_v53  ;;  %10064 = vmatprep.mubr.msk.bf16.mxu1 %vm11824_vm11, %v17343_v44  ;;  %10796 = vrcp.f32 %v17356_v23 }
 0x221   : > { %10074 = vmatprep.subr.bf16.mxu1 %v17343_v44  ;;  %10070 = vmatprep.mubr.msk.bf16.mxu0 %vm11824_vm11, %v17343_v44  ;;  %v1956_v41 = vpack.c.bf16 %v1951_v49, %v1950_v7  ;;  %10798 = vrcp.f32 %v13030_v50 }
 0x222   : > { %10800 = vrcp.f32 %v13012_v2 }
 0x223   : > { %2585 = vadd.xlane.f32.xlu0 %v2584_v15 }
 0x224   : > { %2588 = vadd.xlane.f32.xlu1 %v2587_v60  ;;  %v17361_v60 = vld [vmem:[#allocation29_spill] sm:$0xff] }
 0x226   : > { %10065 = vmatmul.mubr.msk.bf16.vlgmr.msra.gmra.mrb[16].mxu1 %vm1181_vm2, %v1627_v28 }
 0x227   : > { %10076 = vmatprep.mubr.msk.bf16.mxu1 %vm11824_vm11, %v17343_v44 }
 0x235   : > { %2331 = vrot.lane.b32.xlu1 %v12904_v22, %s17172_s22 }
 0x239   : > { %2378 = vrot.lane.b32.xlu1 %v12912_v48, %s17172_s22  ;;  %2284 = vrot.lane.b32.xlu0 %v12906_v39, %s17172_s22 }
 0x23d   : > { %2425 = vrot.lane.b32.xlu1 %v12910_v35, %s17172_s22  ;;  %2610 = vrot.lane.b32.xlu0 %v12906_v39, %s17170_s24  ;;  %v1954_v39 = vpack.c.bf16 %v1947_v37, %v1946_v18  ;;  %s13238_s22 = sld [smem:[#allocation2 + $0x84]] }
 0x23e   : > { %v2263_v29 = vpop.xlane.xlu1 %2262  ;;  %v2260_v34 = vpop.xlane.xlu0 %2259 }
 0x23f   : > { %10802 = vrcp.f32 %v2263_v29  ;;  %v17364_v29 = vld [vmem:[#allocation31_spill] sm:$0xff] }
 0x240   : > { %10804 = vrcp.f32 %v2260_v34 }
 0x241   : > { %2657 = vrot.lane.b32.xlu1 %v12904_v22, %s17170_s24  ;;  %2704 = vrot.lane.b32.xlu0 %v12912_v48, %s17170_s24  ;;  %v10787_v22 = vpop.eup %10786 }
 0x242   : > { %v2006_v27 = vpop.permute.xlu1 %2005  ;;  %v1959_v25 = vpop.permute.xlu0 %1958  ;;  %v1953_v9 = vmul.f32 %v10787_v22, %v12780_v33 }
 0x243   : > { %10069 = vmatpush3.bf16.msra.mxu0 %v1959_v25  ;;  %10075 = vmatpush3.bf16.msra.mxu1 %v2006_v27 }
 0x244   : > { %10080 = vmatprep.subr.bf16.mxu0 %v17343_v44  ;;  %10086 = vmatprep.subr.bf16.mxu1 %v17343_v44 }
 0x245   : > { %2751 = vrot.lane.b32.xlu1 %v12910_v35, %s17170_s24  ;;  %v10789_v35 = vpop.eup %10788  ;;  %s13250_s24 = sld [smem:[#allocation2 + $0x85]] }
 0x246   : > { %10071 = vmatmul.mubr.msk.bf16.vlgmr.msra.gmra.mrb[20].mxu0 %vm1181_vm2, %v1954_v39  ;;  %10077 = vmatmul.mubr.msk.bf16.vlgmr.msra.gmra.mrb[20].mxu1 %vm1181_vm2, %v1955_v0  ;;  %v1952_v55 = vmul.f32 %v10789_v35, %v12788_v24  ;;  %v10791_v24 = vpop.eup %10790  ;;  %v17367_v35 = vld [vmem:[#allocation42_spill] sm:$0xff] }
 0x247   : > { %10082 = vmatprep.mubr.msk.bf16.mxu0 %vm11824_vm11, %v17343_v44  ;;  %10088 = vmatprep.mubr.msk.bf16.mxu1 %vm11824_vm11, %v17343_v44  ;;  %v10793_v47 = vpop.eup %10792  ;;  %v2272_v46 = vmul.f32 %v10791_v24, %v17357_v58 }
 0x248   : > { %v1957_v30 = vpack.c.bf16 %v1953_v9, %v1952_v55  ;;  %v10795_v54 = vpop.eup %10794  ;;  %v2273_v43 = vmul.f32 %v10793_v47, %v17358_v59 }
 0x249   : > { %v10797_v61 = vpop.eup %10796  ;;  %v2275_v45 = vmul.f32 %v10795_v54, %v17359_v51 }
 0x24a   : > { %v2274_v50 = vmul.f32 %v10797_v61, %v17360_v16  ;;  %v10799_v56 = vpop.eup %10798  ;;  %v2280_v19 = vpack.c.bf16 %v2273_v43, %v2272_v46 }
 0x24b   : > { %v10801_v13 = vpop.eup %10800  ;;  %v2276_v28 = vmul.f32 %v10799_v56, %v17361_v60 }
 0x24c   : > { %v10803_v53 = vpop.eup %10802  ;;  %v2281_v38 = vpack.c.bf16 %v2275_v45, %v2274_v50  ;;  %v2277_v26 = vmul.f32 %v10801_v13, %v17362_v6 }
 0x24d   : > { %v10805_v42 = vpop.eup %10804  ;;  %v2279_v57 = vmul.f32 %v10803_v53, %v17363_v20 }
 0x24e   : > { %v2278_v34 = vmul.f32 %v10805_v42, %v17364_v29  ;;  %v2282_v5 = vpack.c.bf16 %v2277_v26, %v2276_v28 }
 0x250   : > { %v2283_v25 = vpack.c.bf16 %v2279_v57, %v2278_v34 }
 0x273   : > { %v2568_v3 = vpop.xlane.xlu1 %2567  ;;  %v2571_v17 = vpop.xlane.xlu0 %2570 }
 0x274   : > { %10806 = vrcp.f32 %v2568_v3  ;;  %v17365_v3 = vld [vmem:[#allocation41_spill] sm:$0xff] }
 0x275   : > { %10808 = vrcp.f32 %v2571_v17 }
 0x277   : > { %v2577_v48 = vpop.xlane.xlu1 %2576  ;;  %v2574_v32 = vpop.xlane.xlu0 %2573 }
 0x278   : > { %10810 = vrcp.f32 %v2577_v48 }
 0x279   : > { %10812 = vrcp.f32 %v2574_v32  ;;  %v17368_v32 = vld [vmem:[#allocation43_spill] sm:$0xff] }
 0x27b   : > { %v2100_v12 = vpop.permute.xlu1 %2099  ;;  %v2053_v1 = vpop.permute.xlu0 %2052 }
 0x27c   : > { %10081 = vmatpush3.bf16.msra.mxu0 %v2053_v1  ;;  %10087 = vmatpush3.bf16.msra.mxu1 %v2100_v12 }
 0x27d   : > { %10092 = vmatprep.subr.bf16.mxu0 %v17343_v44  ;;  %10098 = vmatprep.subr.bf16.mxu1 %v17343_v44 }
 0x27e   : > { %v10807_v37 = vpop.eup %10806 }
 0x27f   : > { %10083 = vmatmul.mubr.msk.bf16.vlgmr.msra.gmra.mrb[24].mxu0 %vm1181_vm2, %v1956_v41  ;;  %10089 = vmatmul.mubr.msk.bf16.vlgmr.msra.gmra.mrb[24].mxu1 %vm1181_vm2, %v1957_v30  ;;  %v10809_v11 = vpop.eup %10808  ;;  %v2598_v17 = vmul.f32 %v10807_v37, %v17365_v3 }
 0x280   : > { %10094 = vmatprep.mubr.msk.bf16.mxu0 %vm11824_vm11, %v17343_v44  ;;  %10100 = vmatprep.mubr.msk.bf16.mxu1 %vm11824_vm11, %v17343_v44  ;;  %v2599_v22 = vmul.f32 %v10809_v11, %v17366_v10 }
 0x282   : > { %v10811_v27 = vpop.eup %10810  ;;  %v2606_v55 = vpack.c.bf16 %v2599_v22, %v2598_v17 }
 0x283   : > { %v10813_v39 = vpop.eup %10812  ;;  %v2601_v48 = vmul.f32 %v10811_v27, %v17367_v35 }
 0x284   : > { %v2600_v49 = vmul.f32 %v10813_v39, %v17368_v32 }
 0x286   : > { %v2607_v1 = vpack.c.bf16 %v2601_v48, %v2600_v49 }
 0x2ac   : > { %v2583_v33 = vpop.xlane.xlu0 %2582 }
 0x2ad   : > { %v2580_v8 = vpop.xlane.xlu1 %2579  ;;  %10814 = vrcp.f32 %v2583_v33 }
 0x2ae   : > { %10816 = vrcp.f32 %v2580_v8 }
 0x2b0   : > { %v2586_v63 = vpop.xlane.xlu0 %2585 }
 0x2b1   : > { %v2589_v31 = vpop.xlane.xlu1 %2588  ;;  %10818 = vrcp.f32 %v2586_v63 }
 0x2b2   : > { %10820 = vrcp.f32 %v2589_v31 }
 0x2b4   : > { %v2285_v2 = vpop.permute.xlu0 %2284 }
 0x2b5   : > { %v2332_v62 = vpop.permute.xlu1 %2331  ;;  %10093 = vmatpush3.bf16.msra.mxu0 %v2285_v2 }
 0x2b6   : > { %10099 = vmatpush3.bf16.msra.mxu1 %v2332_v62  ;;  %10104 = vmatprep.subr.bf16.mxu0 %v17343_v44 }
 0x2b7   : > { %10110 = vmatprep.subr.bf16.mxu1 %v17343_v44  ;;  %v10815_v7 = vpop.eup %10814 }
 0x2b8   : > { %10095 = vmatmul.mubr.msk.bf16.vlgmr.msra.gmra.mrb[28].mxu0 %vm1181_vm2, %v2280_v19  ;;  %v2611_v0 = vpop.permute.xlu0 %2610  ;;  %v10817_v9 = vpop.eup %10816  ;;  %v2603_v33 = vmul.f32 %v10815_v7, %v13052_v36 }
 0x2b9   : > { %v2379_v15 = vpop.permute.xlu1 %2378  ;;  %10101 = vmatmul.mubr.msk.bf16.vlgmr.msra.gmra.mrb[28].mxu1 %vm1181_vm2, %v2281_v38  ;;  %10106 = vmatprep.mubr.msk.bf16.mxu0 %vm11824_vm11, %v17343_v44  ;;  %v2602_v23 = vmul.f32 %v10817_v9, %v13054_v14 }
 0x2ba   : > { %10105 = vmatpush3.bf16.msra.mxu0 %v2379_v15  ;;  %10112 = vmatprep.mubr.msk.bf16.mxu1 %vm11824_vm11, %v17343_v44 }
 0x2bb   : > { %10116 = vmatprep.subr.bf16.mxu0 %v17343_v44  ;;  %v10819_v12 = vpop.eup %10818  ;;  %v2608_v47 = vpack.c.bf16 %v2603_v33, %v2602_v23 }
 0x2bc   : > { %v10821_v41 = vpop.eup %10820  ;;  %v2705_v30 = vpop.permute.xlu0 %2704  ;;  %v2604_v8 = vmul.f32 %v10819_v12, %v13060_v21 }
 0x2bd   : > { %v2426_v18 = vpop.permute.xlu1 %2425  ;;  %v2605_v24 = vmul.f32 %v10821_v41, %v13064_v52 }
 0x2be   : > { %10111 = vmatpush3.bf16.msra.mxu1 %v2426_v18 }
 0x2bf   : > { %10122 = vmatprep.subr.bf16.mxu1 %v17343_v44  ;;  %v2609_v54 = vpack.c.bf16 %v2605_v24, %v2604_v8 }
 0x2c0   : > { %10107 = vmatmul.mubr.msk.bf16.vlgmr.msra.gmra.mrb[32].mxu0 %vm1181_vm2, %v2282_v5 }
 0x2c1   : > { %v2658_v4 = vpop.permute.xlu1 %2657  ;;  %10113 = vmatmul.mubr.msk.bf16.vlgmr.msra.gmra.mrb[32].mxu1 %vm1181_vm2, %v2283_v25  ;;  %10117 = vmatpush3.bf16.msra.mxu0 %v2611_v0 }
 0x2c2   : > { %10123 = vmatpush3.bf16.msra.mxu1 %v2658_v4  ;;  %10118 = vmatprep.mubr.msk.bf16.mxu0 %vm11824_vm11, %v17343_v44 }
 0x2c3   : > { %10124 = vmatprep.mubr.msk.bf16.mxu1 %vm11824_vm11, %v17343_v44  ;;  %10128 = vmatprep.subr.bf16.mxu0 %v17343_v44 }
 0x2c4   : > { %10134 = vmatprep.subr.bf16.mxu1 %v17343_v44 }
 0x2c5   : > { %v2752_v40 = vpop.permute.xlu1 %2751 }
 0x2c8   : > { %10119 = vmatmul.mubr.msk.bf16.vlgmr.msra.gmra.mrb[36].mxu0 %vm1181_vm2, %v2606_v55 }
 0x2c9   : > { %10125 = vmatmul.mubr.msk.bf16.vlgmr.msra.gmra.mrb[36].mxu1 %vm1181_vm2, %v2607_v1  ;;  %10129 = vmatpush3.bf16.msra.mxu0 %v2705_v30 }
 0x2ca   : > { %10135 = vmatpush3.bf16.msra.mxu1 %v2752_v40  ;;  %10130 = vmatprep.mubr.msk.bf16.mxu0 %vm11824_vm11, %v17343_v44 }
 0x2cb   : > { %10136 = vmatprep.mubr.msk.bf16.mxu1 %vm11824_vm11, %v17343_v44  ;;  %10152 = vmatprep.subr.bf16.mxu1 %v17343_v44 }
 0x2d0   : > { %10131 = vmatmul.mubr.msk.bf16.vlgmr.msra.gmra.mrb[40].mxu0 %vm1181_vm2, %v2608_v47 }
 0x2d1   : > { %10137 = vmatmul.mubr.msk.bf16.vlgmr.msra.gmra.mrb[40].mxu1 %vm1181_vm2, %v2609_v54 }
 0x2d2   : > { %10154 = vmatprep.mubr.msk.bf16.mxu1 %vm11824_vm11, %v17343_v44 }
 0x2d9   : > { %v13179_v36 = vpop.f32.mrb[0].mxu1 }
 0x2da   : > { %v10024_v14 = vpop.f32.mrb[1].mxu1 }
 0x2db   : > { %v13181_v52 = vpop.f32.mrb[2].mxu1 }
 0x2dc   : > { %v10025_v21 = vpop.f32.mrb[3].mxu1 }
 0x2dd   : > { %v10649_v21 = vld [vmem:[%s17369_s25] sm:$0xff]   ;;  %s13401_s25 = sld [smem:[#allocation5 + $0x81]] }
 0x2de   : > { %10140 = vmatprep.subr.bf16.mxu0 %v10649_v21 }
 0x2df   : > { %10141 = vmatpush3.bf16.msra.mxu0 %v10649_v21  ;;  %v13280_v21 = vstv %s13250_s24  ;;  %s13518_s24 = sld [smem:[#allocation5 + $0x82]] }
 0x2e1   : > { %v13183_v61 = vpop.f32.mrb[4].mxu1  ;;  %v13185_v63 = vpop.f32.mrb[8].mxu0 }
 0x2e2   : > { %v10030_v31 = vpop.f32.mrb[5].mxu1  ;;  %v10036_v58 = vpop.f32.mrb[9].mxu0 }
 0x2e3   : > { %v13187_v46 = vpop.f32.mrb[6].mxu1  ;;  %v13189_v59 = vpop.f32.mrb[10].mxu0 }
 0x2e4   : > { %v10031_v43 = vpop.f32.mrb[7].mxu1  ;;  %v10037_v51 = vpop.f32.mrb[11].mxu0 }
 0x2e5   : > { %v10650_v51 = vld [vmem:[%s17370_s28 + $0x8] ss:$0 sps:$4 sm:$0x33]  }
 0x2e6   : > { %10563 = vmatprep.subr.msk.bf16.mxu0 %vm3012_vm12, %v10650_v51 }
 0x2e9   : > { %v13191_v45 = vpop.f32.mrb[8].mxu1  ;;  %v1669_v16 = vpop.f32.mrb[12].mxu0 }
 0x2ea   : > { %v10042_v50 = vpop.f32.mrb[9].mxu1  ;;  %2806 = vrot.lane.b32.xlu0 %v1669_v16, %s17168_s27  ;;  %v10048_v2 = vpop.f32.mrb[13].mxu0 }
 0x2eb   : > { %v13194_v56 = vpop.f32.mrb[10].mxu1  ;;  %v1672_v62 = vpop.f32.mrb[14].mxu0  ;;  %v13226_v2 = vstv %s9649_s20  ;;  %s13324_s20 = sld [smem:[#allocation2 + $0x86]] }
 0x2ec   : > { %v10043_v13 = vpop.f32.mrb[11].mxu1  ;;  %2808 = vrot.lane.b32.xlu1 %v1672_v62, %s17168_s27  ;;  %v10049_v19 = vpop.f32.mrb[15].mxu0  ;;  %v13228_v62 = vstv %s9650_s21  ;;  %s13326_s21 = sld [smem:[#allocation2 + $0x87]] }
 0x2f1   : > { %v1717_v53 = vpop.f32.mrb[12].mxu1  ;;  %v1765_v38 = vpop.f32.mrb[16].mxu0 }
 0x2f2   : > { %v10054_v42 = vpop.f32.mrb[13].mxu1  ;;  %2814 = vrot.lane.b32.xlu0 %v1765_v38, %s17168_s27  ;;  %v10060_v15 = vpop.f32.mrb[17].mxu0 }
 0x2f3   : > { %v1720_v60 = vpop.f32.mrb[14].mxu1  ;;  %v1768_v28 = vpop.f32.mrb[18].mxu0  ;;  %v11302_v42 = vld [vmem:[%s12058_s0] sm:$0xff] }
 0x2f4   : > { %v10055_v6 = vpop.f32.mrb[15].mxu1  ;;  %2816 = vrot.lane.b32.xlu1 %v1768_v28, %s17168_s27  ;;  %v10061_v26 = vpop.f32.mrb[19].mxu0  ;;  %v3083_v15 = vmul.f32 %v11302_v42, %v13226_v2 }
 0x2f5   : > { %v13241_v6 = vstv %s9651_s26  ;;  %s13474_s26 = sld [smem:[#allocation2 + $0x8a]] }
 0x2f6   : > { %2810 = vrot.lane.b32.xlu0 %v1717_v53, %s17168_s27  ;;  %v3014_v53 = vsel %vm3012_vm12, %v10650_v51, 0 }
 0x2f7   : > { %10143 = vmatpush3.bf16.msra.mxu0 %v3014_v53 }
 0x2f8   : > { %2812 = vrot.lane.b32.xlu1 %v1720_v60, %s17168_s27  ;;  %v11303_v60 = vld [vmem:[%s12058_s0 + $0x10] sm:$0xff]  ;;  %10164 = vmatprep.subr.bf16.mxu0 %v17343_v44 }
 0x2f9   : > { %v1813_v20 = vpop.f32.mrb[16].mxu1  ;;  %v3093_v28 = vmul.f32 %v11303_v60, %v13228_v62 }
 0x2fa   : > { %v10066_v57 = vpop.f32.mrb[17].mxu1 }
 0x2fb   : > { %v1816_v29 = vpop.f32.mrb[18].mxu1 }
 0x2fc   : > { %v10067_v34 = vpop.f32.mrb[19].mxu1 }
 0x2fd   : > { %v11304_v34 = vld [vmem:[%s12058_s0 + $0x20] sm:$0xff] }
 0x319   : > { %v1998_v37 = vpop.f32.mrb[20].mxu0  ;;  %v2045_v18 = vpop.f32.mrb[20].mxu1 }
 0x31a   : > { %v10078_v11 = vpop.f32.mrb[21].mxu1  ;;  %2838 = vrot.lane.b32.xlu0 %v1998_v37, %s17166_s29  ;;  %v10072_v5 = vpop.f32.mrb[21].mxu0  ;;  %v3111_v37 = vmul.f32 %v11304_v34, %v13241_v6 }
 0x31b   : > { %v2001_v27 = vpop.f32.mrb[22].mxu0  ;;  %v2048_v25 = vpop.f32.mrb[22].mxu1 }
 0x31c   : > { %v10079_v39 = vpop.f32.mrb[23].mxu1  ;;  %2840 = vrot.lane.b32.xlu1 %v2001_v27, %s17166_s29  ;;  %v10073_v0 = vpop.f32.mrb[23].mxu0  ;;  %v11305_v27 = vld [vmem:[%s12058_s0 + $0x100] sm:$0xff] }
 0x31d   : > { %v11306_v39 = vld [vmem:[%s12058_s0 + $0x110] sm:$0xff] }
 0x31e   : > { %2818 = vrot.lane.b32.xlu0 %v1813_v20, %s17168_s27  ;;  %v3095_v0 = vmul.f32 %v11306_v39, %v13228_v62 }
 0x320   : > { %2820 = vrot.lane.b32.xlu1 %v1816_v29, %s17168_s27  ;;  %s17283_s27 = smov 16   ;;  %v3101_v29 = vadd.f32 %v3093_v28, %v3083_v15  ;;  %v11319_v15 = vld [vmem:[%s12058_s0 + $0x210] sm:$0xff] }
 0x321   : > { %v3097_v60 = vmul.f32 %v11319_v15, %v13228_v62 }
 0x352   : > { %v2092_v4 = vpop.f32.mrb[24].mxu0  ;;  %v2139_v3 = vpop.f32.mrb[24].mxu1 }
 0x353   : > { %v10090_v17 = vpop.f32.mrb[25].mxu1  ;;  %2846 = vrot.lane.b32.xlu0 %v2092_v4, %s17166_s29  ;;  %v10084_v10 = vpop.f32.mrb[25].mxu0  ;;  %v11307_v4 = vld [vmem:[%s12058_s0 + $0x8] sm:$0xff] }
 0x354   : > { %v2095_v22 = vpop.f32.mrb[26].mxu0  ;;  %v2142_v35 = vpop.f32.mrb[26].mxu1  ;;  %v11308_v17 = vld [vmem:[%s12058_s0 + $0x18] sm:$0xff] }
 0x355   : > { %v10091_v48 = vpop.f32.mrb[27].mxu1  ;;  %2848 = vrot.lane.b32.xlu1 %v2095_v22, %s17166_s29  ;;  %v10085_v32 = vpop.f32.mrb[27].mxu0  ;;  %v3094_v10 = vmul.f32 %v11308_v17, %v13228_v62  ;;  %v11325_v17 = vld [vmem:[%s12058_s0 + $0x208] sm:$0xff] }
 0x356   : > { %v3119_v32 = vadd.f32 %v3111_v37, %v3101_v29  ;;  %v11321_v29 = vld [vmem:[%s12058_s0 + $0x140] sm:$0xff] }
 0x357   : > { %2842 = vrot.lane.b32.xlu0 %v2045_v18, %s17166_s29 }
 0x359   : > { %2844 = vrot.lane.b32.xlu1 %v2048_v25, %s17166_s29  ;;  %v3085_v25 = vmul.f32 %v11305_v27, %v13226_v2 }
 0x38b   : > { %v2324_v49 = vpop.f32.mrb[28].mxu0 }
 0x38c   : > { %v2371_v7 = vpop.f32.mrb[28].mxu1  ;;  %2870 = vrot.lane.b32.xlu0 %v2324_v49, %s11831_s1  ;;  %v10096_v9 = vpop.f32.mrb[29].mxu0  ;;  %v11309_v49 = vld [vmem:[%s12058_s0 + $0x30] sm:$0xff] }
 0x38d   : > { %v10102_v55 = vpop.f32.mrb[29].mxu1  ;;  %v2327_v12 = vpop.f32.mrb[30].mxu0  ;;  %v13265_v9 = vstv %s13238_s22  ;;  %s13476_s22 = sld [smem:[#allocation2 + $0x8b]] }
 0x38e   : > { %v2374_v1 = vpop.f32.mrb[30].mxu1  ;;  %2872 = vrot.lane.b32.xlu1 %v2327_v12, %s11831_s1  ;;  %v10097_v30 = vpop.f32.mrb[31].mxu0  ;;  %v3103_v55 = vadd.f32 %v3095_v0, %v3085_v25  ;;  %v11310_v12 = vld [vmem:[%s12058_s0 + $0x120] sm:$0xff]  ;;  %v3149_v34 = vmul.f32 %v11321_v29, %v13265_v9  ;;  %v11323_v25 = vld [vmem:[%s12058_s0 + $0x138] sm:$0xff] }
 0x38f   : > { %v10103_v41 = vpop.f32.mrb[31].mxu1  ;;  %v11311_v30 = vld [vmem:[%s12058_s0 + $0x28] sm:$0xff] }
 0x390   : > { %2850 = vrot.lane.b32.xlu0 %v2139_v3, %s17166_s29  ;;  %v3084_v3 = vmul.f32 %v11307_v4, %v13226_v2  ;;  %v11324_v4 = vld [vmem:[%s12058_s0 + $0x220] sm:$0xff] }
 0x392   : > { %2852 = vrot.lane.b32.xlu1 %v2142_v35, %s17166_s29  ;;  %s13220_s29 = sld [smem:[#allocation2 + $0x83]]  ;;  %v3102_v41 = vadd.f32 %v3094_v10, %v3084_v3  ;;  %v3115_v3 = vmul.f32 %v11324_v4, %v13241_v6  ;;  %v3088_v10 = vmul.f32 %v11325_v17, %v13226_v2 }
 0x393   : > { %v2418_v40 = vpop.f32.mrb[32].mxu0 }
 0x394   : > { %v2465_v23 = vpop.f32.mrb[32].mxu1  ;;  %2878 = vrot.lane.b32.xlu0 %v2418_v40, %s11831_s1  ;;  %v10108_v33 = vpop.f32.mrb[33].mxu0  ;;  %v3112_v40 = vmul.f32 %v11311_v30, %v13241_v6  ;;  %v11330_v30 = vld [vmem:[%s12058_s0 + $0x318] sm:$0xff] }
 0x395   : > { %v10114_v24 = vpop.f32.mrb[33].mxu1  ;;  %v2421_v8 = vpop.f32.mrb[34].mxu0 }
 0x396   : > { %v2468_v47 = vpop.f32.mrb[34].mxu1  ;;  %v10109_v54 = vpop.f32.mrb[35].mxu0  ;;  %2880 = vrot.lane.b32.xlu1 %v2421_v8, %s11831_s1  ;;  %v11313_v24 = vld [vmem:[%s12058_s0 + $0x118] sm:$0xff]  ;;  %v3120_v51 = vadd.f32 %v3112_v40, %v3102_v41  ;;  %v3100_v40 = vmul.f32 %v11330_v30, %v13228_v62  ;;  %v11344_v30 = vld [vmem:[%s12058_s0 + $0x248] sm:$0xff] }
 0x397   : > { %v10115_v14 = vpop.f32.mrb[35].mxu1  ;;  %v3096_v8 = vmul.f32 %v11313_v24, %v13228_v62  ;;  %v11314_v54 = vld [vmem:[%s12058_s0 + $0x40] sm:$0xff] }
 0x398   : > { %2874 = vrot.lane.b32.xlu0 %v2371_v7, %s11831_s1  ;;  %v13248_v18 = vstv %s13220_s29  ;;  %v3147_v14 = vmul.f32 %v11314_v54, %v13265_v9  ;;  %s13282_s29 = sld [smem:[#allocation5 + $0x80]] }
 0x399   : > { %v3129_v7 = vmul.f32 %v11309_v49, %v13248_v18  ;;  %v3132_v39 = vmul.f32 %v11323_v25, %v13248_v18  ;;  %v11328_v49 = vld [vmem:[%s12058_s0 + $0x310] sm:$0xff] }
 0x39a   : > { %2876 = vrot.lane.b32.xlu1 %v2374_v1, %s11831_s1  ;;  %v3113_v1 = vmul.f32 %v11310_v12, %v13241_v6 }
 0x39b   : > { %v2650_v31 = vpop.f32.mrb[36].mxu0 }
 0x39c   : > { %v2697_v58 = vpop.f32.mrb[36].mxu1  ;;  %2902 = vrot.lane.b32.xlu0 %v2650_v31, %s17283_s27  ;;  %v10120_v43 = vpop.f32.mrb[37].mxu0  ;;  %v3121_v31 = vadd.f32 %v3113_v1, %v3103_v55  ;;  %v11329_v1 = vld [vmem:[%s12058_s0 + $0x308] sm:$0xff] }
 0x39d   : > { %v10126_v16 = vpop.f32.mrb[37].mxu1  ;;  %v2653_v50 = vpop.f32.mrb[38].mxu0  ;;  %v3090_v41 = vmul.f32 %v11329_v1, %v13226_v2  ;;  %v11343_v1 = vld [vmem:[%s12058_s0 + $0x250] sm:$0xff] }
 0x39e   : > { %v2700_v13 = vpop.f32.mrb[38].mxu1  ;;  %v10121_v19 = vpop.f32.mrb[39].mxu0  ;;  %2904 = vrot.lane.b32.xlu1 %v2653_v50, %s17283_s27  ;;  %v11316_v16 = vld [vmem:[%s12058_s0 + $0x38] sm:$0xff]  ;;  %v13314_v12 = vstv %s13282_s29  ;;  %s13569_s29 = sld [smem:[#allocation2 + $0x8c]] }
 0x39f   : > { %v10127_v38 = vpop.f32.mrb[39].mxu1  ;;  %v3130_v50 = vmul.f32 %v11316_v16, %v13248_v18  ;;  %v11317_v19 = vld [vmem:[%s12058_s0 + $0x128] sm:$0xff] }
 0x3a0   : > { %2882 = vrot.lane.b32.xlu0 %v2465_v23, %s11831_s1  ;;  %v11312_v23 = vld [vmem:[%s12058_s0 + $0x108] sm:$0xff]  ;;  %v3114_v53 = vmul.f32 %v11317_v19, %v13241_v6  ;;  %v11318_v38 = vld [vmem:[%s12058_s0 + $0x200] sm:$0xff] }
 0x3a1   : > { %v3086_v33 = vmul.f32 %v11312_v23, %v13226_v2  ;;  %v3087_v42 = vmul.f32 %v11318_v38, %v13226_v2  ;;  %v3138_v37 = vadd.f32 %v3130_v50, %v3120_v51  ;;  %v11335_v16 = vld [vmem:[%s12058_s0 + $0x228] sm:$0xff]  ;;  %v11336_v19 = vld [vmem:[%s12058_s0 + $0x320] sm:$0xff]  ;;  %v3108_v38 = vadd.f32 %v3100_v40, %v3090_v41 }
 0x3a2   : > { %2884 = vrot.lane.b32.xlu1 %v2468_v47, %s11831_s1  ;;  %v3137_v47 = vadd.f32 %v3129_v7, %v3119_v32  ;;  %v3099_v7 = vmul.f32 %v11328_v49, %v13228_v62  ;;  %v3116_v50 = vmul.f32 %v11335_v16, %v13241_v6  ;;  %v3152_v40 = vmul.f32 %v11344_v30, %v13265_v9  ;;  %v11349_v16 = vld [vmem:[%s12058_s0 + $0x68] sm:$0xff] }
 0x3a3   : > { %v2744_v26 = vpop.f32.mrb[40].mxu0  ;;  %v3105_v0 = vadd.f32 %v3097_v60, %v3087_v42  ;;  %v11337_v42 = vld [vmem:[%s12058_s0 + $0x328] sm:$0xff] }
 0x3a4   : > { %v2791_v20 = vpop.f32.mrb[40].mxu1  ;;  %2906 = vrot.lane.b32.xlu0 %v2697_v58, %s17283_s27  ;;  %v10132_v57 = vpop.f32.mrb[41].mxu0  ;;  %v11315_v58 = vld [vmem:[%s12058_s0 + $0x130] sm:$0xff]  ;;  %v3155_v28 = vadd.f32 %v3147_v14, %v3137_v47  ;;  %v11332_v47 = vld [vmem:[%s12058_s0 + $0x148] sm:$0xff]  ;;  %v11333_v14 = vld [vmem:[%s12058_s0 + $0x58] sm:$0xff]  ;;  %v3118_v15 = vmul.f32 %v11337_v42, %v13241_v6 }
 0x3a5   : > { %v10138_v11 = vpop.f32.mrb[41].mxu1  ;;  %v2747_v5 = vpop.f32.mrb[42].mxu0  ;;  %v3131_v43 = vmul.f32 %v11315_v58, %v13248_v18  ;;  %v3150_v54 = vmul.f32 %v11332_v47, %v13265_v9  ;;  %v11334_v58 = vld [vmem:[%s12058_s0 + $0x230] sm:$0xff]  ;;  %v11346_v47 = vld [vmem:[%s12058_s0 + $0x348] sm:$0xff] }
 0x3a6   : > { %v2794_v22 = vpop.f32.mrb[42].mxu1  ;;  %v10133_v35 = vpop.f32.mrb[43].mxu0  ;;  %2908 = vrot.lane.b32.xlu1 %v2700_v13, %s17283_s27  ;;  %v3104_v13 = vadd.f32 %v3096_v8, %v3086_v33  ;;  %v11322_v11 = vld [vmem:[%s12058_s0 + $0x48] sm:$0xff]  ;;  %v11331_v33 = vld [vmem:[%s12058_s0 + $0x150] sm:$0xff]  ;;  %v3126_v4 = vadd.f32 %v3118_v15, %v3108_v38  ;;  %v11351_v15 = vld [vmem:[%s12058_s0 + $0x258] sm:$0xff] }
 0x3a7   : > { %v10139_v48 = vpop.f32.mrb[43].mxu1  ;;  %v3139_v57 = vadd.f32 %v3131_v43, %v3121_v31  ;;  %v3167_v24 = vmul.f32 %v11331_v33, %v13280_v21  ;;  %v3123_v31 = vadd.f32 %v3115_v3, %v3105_v0  ;;  %v3133_v43 = vmul.f32 %v11334_v58, %v13248_v18  ;;  %v11342_v3 = vld [vmem:[%s12058_s0 + $0x338] sm:$0xff]  ;;  %v11345_v33 = vld [vmem:[%s12058_s0 + $0x340] sm:$0xff] }
 0x3a8   : > { %2910 = vrot.lane.b32.xlu0 %v2744_v26, %s17283_s27  ;;  %v11320_v26 = vld [vmem:[%s12058_s0 + $0x50] sm:$0xff]  ;;  %v3122_v27 = vadd.f32 %v3114_v53, %v3104_v13  ;;  %v11327_v48 = vld [vmem:[%s12058_s0 + $0x300] sm:$0xff]  ;;  %v3117_v53 = vmul.f32 %v11336_v19, %v13241_v6  ;;  %v3136_v17 = vmul.f32 %v11342_v3, %v13248_v18  ;;  %v17373_v19 = vld [vmem:[#allocation20_spill] sm:$0xff] }
 0x3a9   : > { %v3089_v32 = vmul.f32 %v11327_v48, %v13226_v2  ;;  %v3157_v23 = vadd.f32 %v3149_v34, %v3139_v57  ;;  %v3166_v2 = vmul.f32 %v11333_v14, %v13280_v21  ;;  %v3141_v34 = vadd.f32 %v3133_v43, %v3123_v31  ;;  %v11347_v14 = vld [vmem:[%s12058_s0 + $0x60] sm:$0xff] }
 0x3aa   : > { %2912 = vrot.lane.b32.xlu1 %v2747_v5, %s17283_s27  ;;  %v3148_v5 = vmul.f32 %v11322_v11, %v13265_v9  ;;  %v13358_v48 = vstv %s13324_s20  ;;  %v17372_v58 = vld [vmem:[#allocation23_spill] sm:$0xff]  ;;  %s13571_s20 = sld [smem:[#allocation2 + $0x8d]] }
 0x3ab   : > { %v3107_v13 = vadd.f32 %v3099_v7, %v3089_v32  ;;  %v13361_v32 = vstv %s13326_s21  ;;  %s13623_s21 = sld [smem:[#allocation5 + $0x83]] }
 0x3ac   : > { %2914 = vrot.lane.b32.xlu0 %v2791_v20, %s17283_s27  ;;  %v3165_v20 = vmul.f32 %v11320_v26, %v13280_v21  ;;  %v3156_v8 = vadd.f32 %v3148_v5, %v3138_v37  ;;  %v11338_v26 = vld [vmem:[%s12058_s0 + $0x158] sm:$0xff]  ;;  %v11339_v37 = vld [vmem:[%s12058_s0 + $0x240] sm:$0xff] }
 0x3ad   : > { %v3151_v11 = vmul.f32 %v11339_v37, %v13265_v9  ;;  %v3125_v25 = vadd.f32 %v3117_v53, %v3107_v13  ;;  %v11350_v13 = vld [vmem:[%s12058_s0 + $0x78] sm:$0xff] }
 0x3ae   : > { %2916 = vrot.lane.b32.xlu1 %v2794_v22, %s17283_s27  ;;  %v11326_v22 = vld [vmem:[%s12058_s0 + $0x218] sm:$0xff]  ;;  %v3173_v55 = vadd.f32 %v3165_v20, %v3155_v28  ;;  %v3175_v28 = vadd.f32 %v3167_v24, %v3157_v23  ;;  %v3168_v20 = vmul.f32 %v11338_v26, %v13280_v21  ;;  %v3174_v57 = vadd.f32 %v3166_v2, %v3156_v8 }
 0x3af   : > { %v3098_v35 = vmul.f32 %v11326_v22, %v13228_v62  ;;  %v3140_v62 = vadd.f32 %v3132_v39, %v3122_v27  ;;  %v11340_v27 = vld [vmem:[%s12058_s0 + $0x238] sm:$0xff]  ;;  %v11341_v39 = vld [vmem:[%s12058_s0 + $0x330] sm:$0xff]  ;;  %v3153_v24 = vmul.f32 %v11345_v33, %v13265_v9  ;;  %v3144_v8 = vadd.f32 %v3136_v17, %v3126_v4  ;;  %v11356_v4 = vld [vmem:[%s12058_s0 + $0x160] sm:$0xff] }
 0x3b0   : > { %v3183_v60 = vadd.f32 %v13314_v12, %v3173_v55  ;;  %v3134_v6 = vmul.f32 %v11340_v27, %v13248_v18  ;;  %v3135_v0 = vmul.f32 %v11341_v39, %v13248_v18  ;;  %v3184_v49 = vadd.f32 %v13314_v12, %v3174_v57  ;;  %v11355_v39 = vld [vmem:[%s12058_s0 + $0x88] sm:$0xff] }
 0x3b1   : > { %v3106_v51 = vadd.f32 %v3098_v35, %v3088_v10  ;;  %v3158_v29 = vadd.f32 %v3150_v54, %v3140_v62  ;;  %v17371_v10 = vld [vmem:[#allocation21_spill] sm:$0xff]  ;;  %v3185_v35 = vadd.f32 %v13314_v12, %v3175_v28  ;;  %v3159_v55 = vadd.f32 %v3151_v11, %v3141_v34 }
 0x3b2   : > { %v13354_v22 = vadd.f32 %v3183_v60, %v17371_v10  ;;  %v3169_v18 = vmul.f32 %v11343_v1, %v13280_v21  ;;  %v3143_v23 = vadd.f32 %v3135_v0, %v3125_v25  ;;  %v3154_v54 = vmul.f32 %v11346_v47, %v13265_v9  ;;  %v11348_v62 = vld [vmem:[%s12058_s0 + $0x70] sm:$0xff] }
 0x3b3   : > { %v3124_v5 = vadd.f32 %v3116_v50, %v3106_v51  ;;  %v3176_v7 = vadd.f32 %v3168_v20, %v3158_v29  ;;  %v3473_v2 = vmul.f32 %v11347_v14, %v13358_v48  ;;  %v3483_v31 = vmul.f32 %v11348_v62, %v13361_v32  ;;  %v11352_v20 = vld [vmem:[%s12058_s0 + $0x350] sm:$0xff]  ;;  %v11353_v29 = vld [vmem:[%s12058_s0 + $0x358] sm:$0xff] }
 0x3b4   : > { %v13377_v43 = vadd.f32 %v3185_v35, %v17372_v58  ;;  %v13380_v51 = vstv %s13341_s3  ;;  %v3474_v50 = vmul.f32 %v11349_v16, %v13358_v48  ;;  %v3484_v9 = vmul.f32 %v11350_v13, %v13361_v32  ;;  %v17374_v35 = vld [vmem:[#allocation22_spill] sm:$0xff]  ;;  %s13660_s3 = sld [smem:[#allocation2 + $0x8e]] }
 0x3b5   : > { %v3142_v41 = vadd.f32 %v3134_v6, %v3124_v5  ;;  %v13387_v53 = vadd.f32 %v3184_v49, %v17373_v19  ;;  %v3186_v38 = vadd.f32 %v13314_v12, %v3176_v7  ;;  %v3177_v42 = vadd.f32 %v3169_v18, %v3159_v55  ;;  %v11354_v5 = vld [vmem:[%s12058_s0 + $0x80] sm:$0xff]  ;;  %v11358_v55 = vld [vmem:[%s12058_s0 + $0x168] sm:$0xff]  ;;  %v11359_v18 = vld [vmem:[%s12058_s0 + $0x178] sm:$0xff] }
 0x3b6   : > { %v3170_v60 = vmul.f32 %v11351_v15, %v13280_v21  ;;  %v3161_v26 = vadd.f32 %v3153_v24, %v3143_v23  ;;  %v3171_v57 = vmul.f32 %v11352_v20, %v13280_v21  ;;  %v3172_v34 = vmul.f32 %v11353_v29, %v13280_v21  ;;  %v11357_v21 = vld [vmem:[%s12058_s0 + $0x170] sm:$0xff]  ;;  %v11361_v62 = vld [vmem:[%s12058_s0 + $0x98] sm:$0xff] }
 0x3b7   : > { %v3160_v28 = vadd.f32 %v3152_v40, %v3142_v41  ;;  %v3162_v37 = vadd.f32 %v3154_v54, %v3144_v8  ;;  %v3491_v11 = vadd.f32 %v3483_v31, %v3473_v2  ;;  %v3501_v27 = vmul.f32 %v11354_v5, %v13380_v51  ;;  %v11360_v54 = vld [vmem:[%s12058_s0 + $0x90] sm:$0xff] }
 0x3b8   : > { %v13399_v6 = vstv %s13351_s23  ;;  %v3492_v25 = vadd.f32 %v3484_v9, %v3474_v50  ;;  %v3502_v0 = vmul.f32 %v11355_v39, %v13380_v51  ;;  %v3475_v3 = vmul.f32 %v11356_v4, %v13358_v48  ;;  %v11362_v50 = vld [vmem:[%s12058_s0 + $0x180] sm:$0xff]  ;;  %s13662_s23 = sld [smem:[#allocation2 + $0x8f]] }
 0x3b9   : > { %v3485_v17 = vmul.f32 %v11357_v21, %v13361_v32  ;;  %v13410_v49 = vadd.f32 %v3186_v38, %v17374_v35  ;;  %v3187_v7 = vadd.f32 %v13314_v12, %v3177_v42  ;;  %v3476_v1 = vmul.f32 %v11358_v55, %v13358_v48  ;;  %v17376_v38 = vld [vmem:[#allocation25_spill] sm:$0xff] }
 0x3ba   : > { %v3486_v41 = vmul.f32 %v11359_v18, %v13361_v32  ;;  %v3199_v30 = vsel %vm1181_vm2, %v13354_v22, -inf  ;;  %v3205_v40 = vsel %vm1181_vm2, %v13377_v43, -inf  ;;  %v13423_v23 = vsel %vm1181_vm2, %v13387_v53, -inf }
 0x3bb   : > { %17375 = vst [vmem:[#allocation33_spill] sm:$0xff] %v13410_v49  ;;  %v3178_v33 = vadd.f32 %v3170_v60, %v3160_v28  ;;  %v3179_v24 = vadd.f32 %v3171_v57, %v3161_v26  ;;  %v3180_v8 = vadd.f32 %v3172_v34, %v3162_v37  ;;  %v3509_v47 = vadd.f32 %v3501_v27, %v3491_v11  ;;  %v11363_v60 = vld [vmem:[%s12058_s0 + $0x188] sm:$0xff]  ;;  %v11364_v26 = vld [vmem:[%s12058_s0 + $0x260] sm:$0xff]  ;;  %v11365_v57 = vld [vmem:[%s12058_s0 + $0x270] sm:$0xff] }
 0x3bc   : > { %v3519_v14 = vmul.f32 %v11360_v54, %v13399_v6  ;;  %v3510_v2 = vadd.f32 %v3502_v0, %v3492_v25  ;;  %v3520_v31 = vmul.f32 %v11361_v62, %v13399_v6  ;;  %v3493_v16 = vadd.f32 %v3485_v17, %v3475_v3  ;;  %v11366_v34 = vld [vmem:[%s12058_s0 + $0x268] sm:$0xff]  ;;  %v11367_v11 = vld [vmem:[%s12058_s0 + $0x278] sm:$0xff]  ;;  %v11368_v17 = vld [vmem:[%s12058_s0 + $0x190] sm:$0xff] }
 0x3bd   : > { %v3503_v13 = vmul.f32 %v11362_v50, %v13380_v51  ;;  %v3208_v9 = vsel %vm1181_vm2, %v13410_v49, -inf  ;;  %v13434_v42 = vadd.f32 %v3187_v7, %v17376_v38  ;;  %v3494_v15 = vadd.f32 %v3486_v41, %v3476_v1  ;;  %v11369_v1 = vld [vmem:[%s12058_s0 + $0x198] sm:$0xff]  ;;  %v11370_v41 = vld [vmem:[%s12058_s0 + $0x360] sm:$0xff]  ;;  %v17378_v62 = vld [vmem:[#allocation24_spill] sm:$0xff] }
 0x3be   : > { %v3504_v28 = vmul.f32 %v11363_v60, %v13380_v51  ;;  %v3477_v20 = vmul.f32 %v11364_v26, %v13358_v48  ;;  %v3487_v29 = vmul.f32 %v11365_v57, %v13361_v32  ;;  %v3478_v37 = vmul.f32 %v11366_v34, %v13358_v48  ;;  %v11427_v49 = vld [vmem:[%s12058_s0 + $0x3f0] sm:$0xff] }
 0x3bf   : > { %17377 = vst [vmem:[#allocation32_spill] sm:$0xff] %v13434_v42  ;;  %v3488_v5 = vmul.f32 %v11367_v11, %v13361_v32  ;;  %v3188_v27 = vadd.f32 %v13314_v12, %v3178_v33  ;;  %v3189_v25 = vadd.f32 %v13314_v12, %v3179_v24  ;;  %v3527_v39 = vadd.f32 %v3519_v14, %v3509_v47  ;;  %v11371_v33 = vld [vmem:[%s12058_s0 + $0x370] sm:$0xff]  ;;  %v11373_v14 = vld [vmem:[%s12058_s0 + $0x288] sm:$0xff] }
 0x3c0   : > { %v13449_v0 = vstv %s13401_s25  ;;  %v3190_v4 = vadd.f32 %v13314_v12, %v3180_v8  ;;  %v3528_v3 = vadd.f32 %v3520_v31, %v3510_v2  ;;  %v3511_v21 = vadd.f32 %v3503_v13, %v3493_v16  ;;  %v11372_v8 = vld [vmem:[%s12058_s0 + $0x280] sm:$0xff]  ;;  %v11374_v13 = vld [vmem:[%s12058_s0 + $0x368] sm:$0xff]  ;;  %s13718_s25 = sld [smem:[#allocation5 + $0x84]] }
 0x3c1   : > { %v3521_v7 = vmul.f32 %v11368_v17, %v13399_v6  ;;  %v3512_v55 = vadd.f32 %v3504_v28, %v3494_v15  ;;  %v3522_v18 = vmul.f32 %v11369_v1, %v13399_v6  ;;  %v3489_v24 = vmul.f32 %v11371_v33, %v13361_v32  ;;  %v17380_v16 = vld [vmem:[#allocation27_spill] sm:$0xff]  ;;  %v17382_v28 = vld [vmem:[#allocation26_spill] sm:$0xff] }
 0x3c2   : > { %v3495_v12 = vadd.f32 %v3487_v29, %v3477_v20  ;;  %v3505_v47 = vmul.f32 %v11372_v8, %v13380_v51  ;;  %v3496_v54 = vadd.f32 %v3488_v5, %v3478_v37  ;;  %v3506_v2 = vmul.f32 %v11373_v14, %v13380_v51  ;;  %v11376_v37 = vld [vmem:[%s12058_s0 + $0x290] sm:$0xff] }
 0x3c3   : > { %v13465_v31 = vadd.f32 %v3188_v27, %v17378_v62  ;;  %v13468_v50 = vadd.f32 %v3189_v25, %v17380_v16  ;;  %v3480_v15 = vmul.f32 %v11374_v13, %v13358_v48  ;;  %v13479_v26 = vadd.f32 %v3190_v4, %v17382_v28  ;;  %v11378_v4 = vld [vmem:[%s12058_s0 + $0x298] sm:$0xff] }
 0x3c4   : > { %v3537_v20 = vadd.f32 %v13449_v0, %v3527_v39  ;;  %v3538_v57 = vadd.f32 %v13449_v0, %v3528_v3  ;;  %v3529_v29 = vadd.f32 %v3521_v7, %v3511_v21  ;;  %v3530_v34 = vadd.f32 %v3522_v18, %v3512_v55  ;;  %v11379_v7 = vld [vmem:[%s12058_s0 + $0x388] sm:$0xff] }
 0x3c5   : > { %17379 = vst [vmem:[#allocation39_spill] sm:$0xff] %v13465_v31  ;;  %17381 = vst [vmem:[#allocation40_spill] sm:$0xff] %v13468_v50  ;;  %v3513_v27 = vadd.f32 %v3505_v47, %v3495_v12  ;;  %v3514_v25 = vadd.f32 %v3506_v2, %v3496_v54  ;;  %v3524_v39 = vmul.f32 %v11378_v4, %v13399_v6  ;;  %v3211_v3 = vsel %vm1181_vm2, %v13434_v42, -inf  ;;  %v11381_v54 = vld [vmem:[%s12058_s0 + $0x398] sm:$0xff] }
 0x3c6   : > { %17383 = vst [vmem:[#allocation35_spill] sm:$0xff] %v13479_v26  ;;  %v3214_v21 = vsel %vm1181_vm2, %v13465_v31, -inf  ;;  %v3508_v55 = vmul.f32 %v11379_v7, %v13380_v51  ;;  %v3539_v1 = vadd.f32 %v13449_v0, %v3529_v29  ;;  %v3540_v18 = vadd.f32 %v13449_v0, %v3530_v34  ;;  %v11382_v29 = vld [vmem:[%s12058_s0 + $0xa0] sm:$0xff]  ;;  %v11385_v4 = vld [vmem:[%s12058_s0 + $0xb8] sm:$0xff]  ;;  %v11425_v31 = vld [vmem:[%s12058_s0 + $0x2f0] sm:$0xff] }
 0x3c7   : > { %v3532_v8 = vadd.f32 %v3524_v39, %v3514_v25  ;;  %v3526_v14 = vmul.f32 %v11381_v54, %v13399_v6  ;;  %v13513_v2 = vstv %s13474_s26  ;;  %v13516_v13 = vstv %s13476_s22  ;;  %s9697_s22 = sld [smem:[#allocation2 + $0x100]]  ;;  %s14510_s26 = sld [smem:[#allocation2 + $0x107]] }
 0x3c8   : > { %v3839_v34 = vmul.f32 %v11382_v29, %v13513_v2  ;;  %v3850_v39 = vmul.f32 %v11385_v4, %v13516_v13  ;;  %v11390_v29 = vld [vmem:[%s12058_s0 + $0x2a0] sm:$0xff]  ;;  %v11393_v4 = vld [vmem:[%s12058_s0 + $0x2b8] sm:$0xff] }
 0x3cb   : > { %3200 = vmax.xlane.f32.xlu0 %v3199_v30  ;;  %v3479_v30 = vmul.f32 %v11370_v41, %v13358_v48  ;;  %v3523_v48 = vmul.f32 %v11376_v37, %v13399_v6  ;;  %v11383_v37 = vld [vmem:[%s12058_s0 + $0xb0] sm:$0xff] }
 0x3cd   : > { %v3497_v11 = vadd.f32 %v3489_v24, %v3479_v30  ;;  %v11380_v30 = vld [vmem:[%s12058_s0 + $0x390] sm:$0xff]  ;;  %v13508_v24 = vadd.f32 %v3538_v57, %v17373_v19  ;;  %v3531_v12 = vadd.f32 %v3523_v48, %v3513_v27  ;;  %v3849_v48 = vmul.f32 %v11383_v37, %v13516_v13  ;;  %v11384_v27 = vld [vmem:[%s12058_s0 + $0xa8] sm:$0xff] }
 0x3ce   : > { %v3525_v33 = vmul.f32 %v11380_v30, %v13399_v6  ;;  %v3840_v25 = vmul.f32 %v11384_v27, %v13513_v2  ;;  %v13551_v30 = vpop.permute.xlu1 %2808  ;;  %v11391_v37 = vld [vmem:[%s12058_s0 + $0x2b0] sm:$0xff]  ;;  %v11392_v27 = vld [vmem:[%s12058_s0 + $0x2a8] sm:$0xff] }
 0x3cf   : > { %3206 = vmax.xlane.f32.xlu0 %v3205_v40  ;;  %v11375_v40 = vld [vmem:[%s12058_s0 + $0x378] sm:$0xff]  ;;  %17385 = vst [vmem:[#allocation36_spill] sm:$0xff] %v13508_v24  ;;  %v3556_v6 = vsel %vm1181_vm2, %v13508_v24, -inf  ;;  %v3541_v57 = vadd.f32 %v13449_v0, %v3531_v12 }
 0x3d0   : > { %v3490_v60 = vmul.f32 %v11375_v40, %v13361_v32  ;;  %v11377_v32 = vld [vmem:[%s12058_s0 + $0x380] sm:$0xff]  ;;  %v13523_v40 = vadd.f32 %v3539_v1, %v17372_v58  ;;  %v11389_v1 = vld [vmem:[%s12058_s0 + $0x1b8] sm:$0xff] }
 0x3d1   : > { %v3507_v5 = vmul.f32 %v11377_v32, %v13380_v51  ;;  %v3220_v51 = vsel %vm1181_vm2, %v13479_v26, -inf  ;;  %v3542_v32 = vadd.f32 %v13449_v0, %v3532_v8  ;;  %v13558_v12 = vadd.f32 %v3541_v57, %v17376_v38  ;;  %v11415_v26 = vld [vmem:[%s12058_s0 + $0xf0] sm:$0xff] }
 0x3d2   : > { %3203 = vmax.xlane.f32.xlu1 %v13423_v23  ;;  %v3498_v17 = vadd.f32 %v3490_v60, %v3480_v15  ;;  %v3217_v23 = vsel %vm1181_vm2, %v13468_v50, -inf  ;;  %17386 = vst [vmem:[#allocation37_spill] sm:$0xff] %v13523_v40  ;;  %v13526_v60 = vadd.f32 %v3540_v18, %v17374_v35  ;;  %v3852_v18 = vmul.f32 %v11389_v1, %v13516_v13  ;;  %v11414_v50 = vld [vmem:[%s12058_s0 + $0xe0] sm:$0xff] }
 0x3d3   : > { %3209 = vmax.xlane.f32.xlu0 %v3208_v9  ;;  %v13499_v9 = vadd.f32 %v3537_v20, %v17371_v10  ;;  %v3515_v41 = vadd.f32 %v3507_v5, %v3497_v11  ;;  %v13535_v11 = vpop.permute.xlu0 %2806  ;;  %17388 = vst [vmem:[#allocation28_spill] sm:$0xff] %v13558_v12  ;;  %v3857_v8 = vadd.f32 %v3849_v48, %v3839_v34 }
 0x3d4   : > { %v3516_v47 = vadd.f32 %v3508_v55, %v3498_v17  ;;  %17387 = vst [vmem:[#allocation29_spill] sm:$0xff] %v13526_v60  ;;  %v11387_v17 = vld [vmem:[%s12058_s0 + $0x1b0] sm:$0xff]  ;;  %v11388_v55 = vld [vmem:[%s12058_s0 + $0x1a8] sm:$0xff]  ;;  %v13563_v54 = vadd.f32 %v3542_v32, %v17378_v62  ;;  %v3843_v34 = vmul.f32 %v11390_v29, %v13513_v2  ;;  %v3853_v48 = vmul.f32 %v11391_v37, %v13516_v13  ;;  %v11397_v37 = vld [vmem:[%s12058_s0 + $0x3b8] sm:$0xff] }
 0x3d5   : > { %17384 = vst [vmem:[#allocation34_spill] sm:$0xff] %v13499_v9  ;;  %v3553_v15 = vsel %vm1181_vm2, %v13499_v9, -inf  ;;  %v3533_v20 = vadd.f32 %v3525_v33, %v3515_v41  ;;  %v3851_v7 = vmul.f32 %v11387_v17, %v13516_v13  ;;  %v3559_v33 = vsel %vm1181_vm2, %v13523_v40, -inf  ;;  %v11396_v29 = vld [vmem:[%s12058_s0 + $0x3a8] sm:$0xff]  ;;  %v11413_v9 = vld [vmem:[%s12058_s0 + $0x3d8] sm:$0xff] }
 0x3d6   : > { %3215 = vmax.xlane.f32.xlu1 %v3214_v21  ;;  %v3534_v5 = vadd.f32 %v3526_v14, %v3516_v47  ;;  %17389 = vst [vmem:[#allocation30_spill] sm:$0xff] %v13563_v54  ;;  %v3861_v1 = vadd.f32 %v3853_v48, %v3843_v34 }
 0x3d7   : > { %3212 = vmax.xlane.f32.xlu0 %v3211_v3  ;;  %v11386_v3 = vld [vmem:[%s12058_s0 + $0x1a0] sm:$0xff]  ;;  %v3543_v41 = vadd.f32 %v13449_v0, %v3533_v20  ;;  %v13560_v47 = vpop.permute.xlu0 %2814  ;;  %v3858_v20 = vadd.f32 %v3850_v39, %v3840_v25  ;;  %v3844_v25 = vmul.f32 %v11392_v27, %v13513_v2  ;;  %v3854_v39 = vmul.f32 %v11393_v4, %v13516_v13 }
 0x3d8   : > { %v3841_v21 = vmul.f32 %v11386_v3, %v13513_v2  ;;  %v3544_v14 = vadd.f32 %v13449_v0, %v3534_v5  ;;  %v13580_v0 = vpop.permute.xlu1 %2816  ;;  %v3565_v3 = vsel %vm1181_vm2, %v13558_v12, -inf  ;;  %v11410_v12 = vld [vmem:[%s12058_s0 + $0x3c0] sm:$0xff] }
 0x3d9   : > { %v13578_v32 = vadd.f32 %v3543_v41, %v17380_v16  ;;  %v11394_v41 = vld [vmem:[%s12058_s0 + $0x3a0] sm:$0xff]  ;;  %v3862_v34 = vadd.f32 %v3854_v39, %v3844_v25 }
 0x3da   : > { %3221 = vmax.xlane.f32.xlu1 %v3220_v51  ;;  %v3562_v51 = vsel %vm1181_vm2, %v13526_v60, -inf  ;;  %v13592_v17 = vadd.f32 %v3544_v14, %v17382_v28  ;;  %v3846_v14 = vmul.f32 %v11396_v29, %v13513_v2  ;;  %v11399_v29 = vld [vmem:[%s12058_s0 + $0xd0] sm:$0xff] }
 0x3db   : > { %3218 = vmax.xlane.f32.xlu0 %v3217_v23  ;;  %v3842_v23 = vmul.f32 %v11388_v55, %v13513_v2  ;;  %17390 = vst [vmem:[#allocation31_spill] sm:$0xff] %v13578_v32 }
 0x3dc   : > { %17391 = vst [vmem:[#allocation41_spill] sm:$0xff] %v13592_v17  ;;  %v3574_v48 = vsel %vm1181_vm2, %v13592_v17, -inf  ;;  %v13625_v4 = vpop.permute.xlu1 %2812  ;;  %v11409_v17 = vld [vmem:[%s12058_s0 + $0x2d8] sm:$0xff] }
 0x3dd   : > { %v3860_v57 = vadd.f32 %v3852_v18, %v3842_v23  ;;  %v13597_v18 = vpop.permute.xlu0 %2810 }
 0x3de   : > { %3557 = vmax.xlane.f32.xlu1 %v3556_v6  ;;  %v3859_v6 = vadd.f32 %v3851_v7, %v3841_v21  ;;  %v3568_v21 = vsel %vm1181_vm2, %v13563_v54, -inf  ;;  %v11411_v54 = vld [vmem:[%s12058_s0 + $0x3d0] sm:$0xff] }
 0x3df   : > { %3554 = vmax.xlane.f32.xlu0 %v3553_v15  ;;  %v13567_v15 = vstv %s13518_s24  ;;  %s17407_s24 = sld [smem:[#allocation62_spill]] }
 0x3e0   : > { %v3867_v5 = vadd.f32 %v13567_v15, %v3857_v8  ;;  %v3868_v7 = vadd.f32 %v13567_v15, %v3858_v20  ;;  %v3869_v55 = vadd.f32 %v13567_v15, %v3859_v6  ;;  %v3870_v23 = vadd.f32 %v13567_v15, %v3860_v57 }
 0x3e1   : > { %v3856_v20 = vmul.f32 %v11397_v37, %v13516_v13  ;;  %v3571_v6 = vsel %vm1181_vm2, %v13578_v32, -inf  ;;  %v13628_v25 = vpop.permute.xlu0 %2838  ;;  %v11404_v32 = vld [vmem:[%s12058_s0 + $0x1c8] sm:$0xff] }
 0x3e2   : > { %3563 = vmax.xlane.f32.xlu1 %v3562_v51  ;;  %v11395_v51 = vld [vmem:[%s12058_s0 + $0x3b0] sm:$0xff]  ;;  %v13610_v57 = vadd.f32 %v3867_v5, %v17371_v10  ;;  %v13615_v27 = vadd.f32 %v3868_v7, %v17373_v19  ;;  %v3871_v5 = vadd.f32 %v13567_v15, %v3861_v1  ;;  %v13631_v39 = vadd.f32 %v3869_v55, %v17372_v58 }
 0x3e3   : > { %3560 = vmax.xlane.f32.xlu0 %v3559_v33  ;;  %v3845_v33 = vmul.f32 %v11394_v41, %v13513_v2  ;;  %v3855_v8 = vmul.f32 %v11395_v51, %v13516_v13  ;;  %v13618_v2 = vstv %s13569_s29  ;;  %v13621_v13 = vstv %s13571_s20  ;;  %v11398_v51 = vld [vmem:[%s12058_s0 + $0xc0] sm:$0xff]  ;;  %s17441_s29 = smov 112   ;;  %s17446_s20 = smov 4  }
 0x3e4   : > { %17392 = vst [vmem:[#allocation38_spill] sm:$0xff] %v13610_v57  ;;  %17393 = vst [vmem:[#allocation42_spill] sm:$0xff] %v13615_v27  ;;  %v3864_v7 = vadd.f32 %v3856_v20, %v3846_v14  ;;  %v3872_v41 = vadd.f32 %v13567_v15, %v3862_v34  ;;  %v4165_v1 = vmul.f32 %v11398_v51, %v13618_v2  ;;  %v3883_v55 = vsel %vm1181_vm2, %v13610_v57, -inf  ;;  %v11401_v14 = vld [vmem:[%s12058_s0 + $0xd8] sm:$0xff] }
 0x3e5   : > { %17394 = vst [vmem:[#allocation43_spill] sm:$0xff] %v13631_v39  ;;  %v4175_v37 = vmul.f32 %v11399_v29, %v13621_v13  ;;  %v4176_v20 = vmul.f32 %v11401_v14, %v13621_v13  ;;  %v13652_v34 = vadd.f32 %v3871_v5, %v17376_v38  ;;  %v11402_v29 = vld [vmem:[%s12058_s0 + $0x1c0] sm:$0xff]  ;;  %v3889_v5 = vsel %vm1181_vm2, %v13631_v39, -inf  ;;  %v13671_v14 = vpop.permute.xlu0 %2818 }
 0x3e6   : > { %3569 = vmax.xlane.f32.xlu1 %v3568_v21  ;;  %v3863_v21 = vadd.f32 %v3855_v8, %v3845_v33  ;;  %v11400_v33 = vld [vmem:[%s12058_s0 + $0xc8] sm:$0xff]  ;;  %v3874_v51 = vadd.f32 %v13567_v15, %v3864_v7  ;;  %v4167_v57 = vmul.f32 %v11402_v29, %v13618_v2  ;;  %v4181_v40 = vmul.f32 %v11411_v54, %v13621_v13 }
 0x3e7   : > { %3566 = vmax.xlane.f32.xlu0 %v3565_v3  ;;  %v13634_v3 = vadd.f32 %v3870_v23, %v17374_v35  ;;  %v3886_v23 = vsel %vm1181_vm2, %v13615_v27, -inf  ;;  %v4166_v8 = vmul.f32 %v11400_v33, %v13618_v2  ;;  %17396 = vst [vmem:[#allocation45_spill] sm:$0xff] %v13652_v34  ;;  %v11403_v27 = vld [vmem:[%s12058_s0 + $0x1d0] sm:$0xff]  ;;  %v4183_v7 = vadd.f32 %v4175_v37, %v4165_v1 }
 0x3e8   : > { %v4177_v33 = vmul.f32 %v11403_v27, %v13621_v13  ;;  %v13674_v27 = vstv %s13623_s21  ;;  %v13686_v1 = vadd.f32 %v3874_v51, %v17382_v28  ;;  %v11407_v51 = vld [vmem:[%s12058_s0 + $0x2d0] sm:$0xff]  ;;  %v4182_v24 = vmul.f32 %v11413_v9, %v13621_v13  ;;  %s17447_s21 = smov 8  }
 0x3e9   : > { %17395 = vst [vmem:[#allocation44_spill] sm:$0xff] %v13634_v3  ;;  %v4184_v29 = vadd.f32 %v4176_v20, %v4166_v8  ;;  %v4193_v20 = vadd.f32 %v13674_v27, %v4183_v7  ;;  %v4180_v7 = vmul.f32 %v11409_v17, %v13621_v13 }
 0x3ea   : > { %3575 = vmax.xlane.f32.xlu1 %v3574_v48  ;;  %v3873_v48 = vadd.f32 %v13567_v15, %v3863_v21  ;;  %v3892_v15 = vsel %vm1181_vm2, %v13634_v3, -inf  ;;  %v13669_v21 = vadd.f32 %v3872_v41, %v17378_v62  ;;  %v3895_v3 = vsel %vm1181_vm2, %v13652_v34, -inf  ;;  %17399 = vst [vmem:[#allocation48_spill] sm:$0xff] %v13686_v1 }
 0x3eb   : > { %3572 = vmax.xlane.f32.xlu0 %v3571_v6  ;;  %v13649_v6 = vpop.permute.xlu1 %2840  ;;  %v4185_v37 = vadd.f32 %v4177_v33, %v4167_v57  ;;  %v4179_v34 = vmul.f32 %v11407_v51, %v13621_v13  ;;  %v13697_v57 = vpop.permute.xlu0 %2846  ;;  %v4194_v33 = vadd.f32 %v13674_v27, %v4184_v29  ;;  %v11412_v51 = vld [vmem:[%s12058_s0 + $0x3c8] sm:$0xff]  ;;  %v13713_v29 = vstv %s13660_s3  ;;  %s14427_s3 = sld [smem:[#allocation2 + $0x104]] }
 0x3ec   : > { %17397 = vst [vmem:[#allocation46_spill] sm:$0xff] %v13669_v21  ;;  %v13683_v41 = vadd.f32 %v3873_v48, %v17380_v16  ;;  %v4172_v60 = vmul.f32 %v11412_v51, %v13618_v2  ;;  %v3904_v54 = vsel %vm1181_vm2, %v13686_v1, -inf }
 0x3ed   : > { %v4195_v9 = vadd.f32 %v13674_v27, %v4185_v37 }
 0x3ee   : > { %3887 = vmax.xlane.f32.xlu1 %v3886_v23  ;;  %v11405_v23 = vld [vmem:[%s12058_s0 + $0x1d8] sm:$0xff]  ;;  %17398 = vst [vmem:[#allocation47_spill] sm:$0xff] %v13683_v41  ;;  %v4190_v51 = vadd.f32 %v4182_v24, %v4172_v60 }
 0x3ef   : > { %3884 = vmax.xlane.f32.xlu0 %v3883_v55  ;;  %v4168_v55 = vmul.f32 %v11404_v32, %v13618_v2  ;;  %v4178_v39 = vmul.f32 %v11405_v23, %v13621_v13  ;;  %v13688_v8 = vpop.permute.xlu1 %2820  ;;  %v3898_v32 = vsel %vm1181_vm2, %v13669_v21, -inf  ;;  %v11406_v23 = vld [vmem:[%s12058_s0 + $0x2c0] sm:$0xff]  ;;  %v13728_v13 = vadd.f32 %v4193_v20, %v17371_v10  ;;  %v13738_v42 = vpop.permute.xlu0 %2842  ;;  %v11417_v20 = vld [vmem:[%s12058_s0 + $0xf8] sm:$0xff] }
 0x3f0   : > { %v4169_v48 = vmul.f32 %v11406_v23, %v13618_v2  ;;  %v4171_v23 = vmul.f32 %v11410_v12, %v13618_v2  ;;  %v3901_v12 = vsel %vm1181_vm2, %v13683_v41, -inf  ;;  %v4491_v41 = vmul.f32 %v11414_v50, %v13713_v29 }
 0x3f1   : > { %17400 = vst [vmem:[#allocation49_spill] sm:$0xff] %v13728_v13  ;;  %v13745_v24 = vadd.f32 %v4195_v9, %v17372_v58 }
 0x3f2   : > { %3893 = vmax.xlane.f32.xlu1 %v3892_v15  ;;  %v11408_v15 = vld [vmem:[%s12058_s0 + $0x2c8] sm:$0xff] }
 0x3f3   : > { %3890 = vmax.xlane.f32.xlu0 %v3889_v5  ;;  %v4186_v5 = vadd.f32 %v4178_v39, %v4168_v55  ;;  %v4170_v21 = vmul.f32 %v11408_v15, %v13618_v2  ;;  %v13716_v39 = vstv %s13662_s23  ;;  %v13720_v17 = vpop.permute.xlu1 %2848  ;;  %v4187_v2 = vadd.f32 %v4179_v34, %v4169_v48  ;;  %v11416_v34 = vld [vmem:[%s12058_s0 + $0xe8] sm:$0xff]  ;;  %17402 = vst [vmem:[#allocation51_spill] sm:$0xff] %v13745_v24  ;;  %s14443_s23 = sld [smem:[#allocation2 + $0x105]] }
 0x3f4   : > { %v13731_v55 = vadd.f32 %v4194_v33, %v17373_v19  ;;  %v4189_v15 = vadd.f32 %v4181_v40, %v4171_v23  ;;  %v4501_v1 = vmul.f32 %v11415_v26, %v13716_v39  ;;  %v4492_v37 = vmul.f32 %v11416_v34, %v13713_v29 }
 0x3f5   : > { %v4502_v48 = vmul.f32 %v11417_v20, %v13716_v39  ;;  %v4197_v50 = vadd.f32 %v13674_v27, %v4187_v2  ;;  %v4209_v26 = vsel %vm1181_vm2, %v13728_v13, -inf  ;;  %v11418_v2 = vld [vmem:[%s12058_s0 + $0x1e0] sm:$0xff] }
 0x3f6   : > { %3899 = vmax.xlane.f32.xlu1 %v3898_v32  ;;  %17401 = vst [vmem:[#allocation50_spill] sm:$0xff] %v13731_v55  ;;  %v4188_v32 = vadd.f32 %v4180_v7, %v4170_v21  ;;  %v4212_v40 = vsel %vm1181_vm2, %v13731_v55, -inf  ;;  %v4200_v7 = vadd.f32 %v13674_v27, %v4190_v51  ;;  %v4509_v23 = vadd.f32 %v4501_v1, %v4491_v41  ;;  %v11424_v55 = vld [vmem:[%s12058_s0 + $0x2e0] sm:$0xff] }
 0x3f7   : > { %3896 = vmax.xlane.f32.xlu0 %v3895_v3  ;;  %v4196_v3 = vadd.f32 %v13674_v27, %v4186_v5  ;;  %v13756_v33 = vpop.permute.xlu1 %2844  ;;  %v4199_v5 = vadd.f32 %v13674_v27, %v4189_v15  ;;  %v4510_v9 = vadd.f32 %v4502_v48, %v4492_v37  ;;  %v4493_v34 = vmul.f32 %v11418_v2, %v13713_v29 }
 0x3f8   : > { %v4198_v21 = vadd.f32 %v13674_v27, %v4188_v32  ;;  %v11420_v32 = vld [vmem:[%s12058_s0 + $0x1e8] sm:$0xff]  ;;  %v11421_v27 = vld [vmem:[%s12058_s0 + $0x1f8] sm:$0xff]  ;;  %v4215_v1 = vsel %vm1181_vm2, %v13745_v24, -inf  ;;  %v13778_v37 = vadd.f32 %v4197_v50, %v17376_v38  ;;  %v13789_v2 = vadd.f32 %v4200_v7, %v17382_v28 }
 0x3f9   : > { %v13753_v60 = vadd.f32 %v4196_v3, %v17374_v35  ;;  %v11419_v3 = vld [vmem:[%s12058_s0 + $0x1f0] sm:$0xff]  ;;  %v4494_v15 = vmul.f32 %v11420_v32, %v13713_v29  ;;  %v4504_v41 = vmul.f32 %v11421_v27, %v13716_v39  ;;  %v11422_v24 = vld [vmem:[%s12058_s0 + $0x2e8] sm:$0xff]  ;;  %v4495_v7 = vmul.f32 %v11424_v55, %v13713_v29 }
 0x3fa   : > { %3905 = vmax.xlane.f32.xlu1 %v3904_v54  ;;  %v13763_v54 = vstv %s13718_s25  ;;  %v4503_v20 = vmul.f32 %v11419_v3, %v13716_v39  ;;  %17404 = vst [vmem:[#allocation53_spill] sm:$0xff] %v13778_v37  ;;  %v13781_v48 = vadd.f32 %v4198_v21, %v17378_v62  ;;  %v4496_v21 = vmul.f32 %v11422_v24, %v13713_v29  ;;  %s14504_s25 = sld [smem:[#allocation2 + $0x106]] }
 0x3fb   : > { %3902 = vmax.xlane.f32.xlu0 %v3901_v12  ;;  %17403 = vst [vmem:[#allocation52_spill] sm:$0xff] %v13753_v60  ;;  %v4218_v51 = vsel %vm1181_vm2, %v13753_v60, -inf  ;;  %v4519_v3 = vadd.f32 %v13763_v54, %v4509_v23  ;;  %v4520_v50 = vadd.f32 %v13763_v54, %v4510_v9  ;;  %v11423_v60 = vld [vmem:[%s12058_s0 + $0x2f8] sm:$0xff]  ;;  %v4505_v23 = vmul.f32 %v11425_v31, %v13716_v39 }
 0x3fc   : > { %17405 = vst [vmem:[#allocation54_spill] sm:$0xff] %v13781_v48  ;;  %v4511_v27 = vadd.f32 %v4503_v20, %v4493_v34  ;;  %v4506_v13 = vmul.f32 %v11423_v60, %v13716_v39  ;;  %v4221_v9 = vsel %vm1181_vm2, %v13778_v37, -inf  ;;  %v4224_v34 = vsel %vm1181_vm2, %v13781_v48, -inf  ;;  %v11426_v48 = vld [vmem:[%s12058_s0 + $0x3e0] sm:$0xff] }
 0x3fd   : > { %v13814_v31 = vadd.f32 %v4519_v3, %v17371_v10  ;;  %v13817_v20 = vadd.f32 %v4520_v50, %v17373_v19  ;;  %v4513_v37 = vadd.f32 %v4505_v23, %v4495_v7  ;;  %v4507_v3 = vmul.f32 %v11427_v49, %v13716_v39  ;;  %v11428_v10 = vld [vmem:[%s12058_s0 + $0x3e8] sm:$0xff]  ;;  %v11429_v19 = vld [vmem:[%s12058_s0 + $0x3f8] sm:$0xff] }
 0x3fe   : > { %v13760_v12 = vpop.permute.xlu0 %2870  ;;  %4213 = vmax.xlane.f32.xlu1 %v4212_v40  ;;  %v13786_v40 = vadd.f32 %v4199_v5, %v17380_v16  ;;  %v4512_v5 = vadd.f32 %v4504_v41, %v4494_v15  ;;  %v4521_v15 = vadd.f32 %v13763_v54, %v4511_v27  ;;  %v4230_v41 = vsel %vm1181_vm2, %v13789_v2, -inf }
 0x3ff   : > { %4210 = vmax.xlane.f32.xlu0 %v4209_v26  ;;  %v4498_v50 = vmul.f32 %v11428_v10, %v13713_v29  ;;  %v4508_v27 = vmul.f32 %v11429_v19, %v13716_v39  ;;  %v4538_v49 = vsel %vm1181_vm2, %v13817_v20, -inf  ;;  %v2928_v23 = vsel %vm2926_vm13, %v13181_v52, %v13551_v30 }
 0x400   : > { %v13783_v26 = vpop.permute.xlu1 %2872  ;;  %17406 = vst [vmem:[#allocation55_spill] sm:$0xff] %v13786_v40  ;;  %v4227_v55 = vsel %vm1181_vm2, %v13786_v40, -inf  ;;  %v4497_v40 = vmul.f32 %v11426_v48, %v13713_v29  ;;  %v4535_v48 = vsel %vm1181_vm2, %v13814_v31, -inf  ;;  %v13841_v10 = vadd.f32 %v4521_v15, %v17372_v58 }
 0x401   : > { %v4516_v39 = vadd.f32 %v4508_v27, %v4498_v50 }
 0x402   : > { %v13792_v32 = vpop.permute.xlu0 %2850  ;;  %4219 = vmax.xlane.f32.xlu1 %v4218_v51  ;;  %v4514_v51 = vadd.f32 %v4506_v13, %v4496_v21 }
 0x403   : > { %4216 = vmax.xlane.f32.xlu0 %v4215_v1  ;;  %v4522_v1 = vadd.f32 %v13763_v54, %v4512_v5  ;;  %v2927_v5 = vsel %vm2926_vm13, %v13179_v36, %v13535_v11  ;;  %v4523_v36 = vadd.f32 %v13763_v54, %v4513_v37  ;;  %v4515_v11 = vadd.f32 %v4507_v3, %v4497_v40 }
 0x404   : > { %v13807_v24 = vpop.permute.xlu1 %2852  ;;  %v4524_v19 = vadd.f32 %v13763_v54, %v4514_v51  ;;  %v2935_v21 = vsel %vm981_vm10, %v2927_v5, %v13628_v25  ;;  %v2936_v37 = vsel %vm981_vm10, %v2928_v23, %v13649_v6  ;;  %v4541_v25 = vsel %vm1181_vm2, %v13841_v10, -inf }
 0x405   : > { %v13845_v29 = vadd.f32 %v4522_v1, %v17374_v35  ;;  %v4526_v6 = vadd.f32 %v13763_v54, %v4516_v39  ;;  %v2945_v1 = vsel %vm2943_vm14, %v2936_v37, %v13783_v26  ;;  %v2929_v5 = vsel %vm2926_vm13, %v13183_v61, %v13597_v18 }
 0x406   : > { %v13809_v60 = vpop.permute.xlu0 %2878  ;;  %4225 = vmax.xlane.f32.xlu1 %v4224_v34  ;;  %v2944_v34 = vsel %vm2943_vm14, %v2935_v21, %v13760_v12  ;;  %v13866_v52 = vadd.f32 %v4524_v19, %v17378_v62  ;;  %v13871_v12 = vadd.f32 %v4523_v36, %v17376_v38  ;;  %v2937_v36 = vsel %vm981_vm10, %v2929_v5, %v13738_v42 }
 0x407   : > { %4222 = vmax.xlane.f32.xlu0 %v4221_v9  ;;  %v4544_v30 = vsel %vm1181_vm2, %v13845_v29, -inf  ;;  %v13891_v19 = vadd.f32 %v4526_v6, %v17382_v28  ;;  %v2930_v23 = vsel %vm2926_vm13, %v13187_v46, %v13625_v4  ;;  %v2931_v42 = vsel %vm2926_vm13, %v13185_v63, %v13560_v47 }
 0x408   : > { %v13831_v9 = vpop.permute.xlu1 %2880  ;;  %v4547_v26 = vsel %vm1181_vm2, %v13871_v12, -inf  ;;  %v2938_v37 = vsel %vm981_vm10, %v2930_v23, %v13756_v33  ;;  %v2939_v46 = vsel %vm981_vm10, %v2931_v42, %v13697_v57  ;;  %v2932_v63 = vsel %vm2926_vm13, %v13189_v59, %v13580_v0 }
 0x409   : > { %v2948_v47 = vsel %vm2943_vm14, %v2939_v46, %v13809_v60  ;;  %v2933_v57 = vsel %vm2926_vm13, %v13191_v45, %v13671_v14 }
 0x40a   : > { %v2875_v13 = vpop.permute.xlu0 %2874  ;;  %4231 = vmax.xlane.f32.xlu1 %v4230_v41  ;;  %v4525_v41 = vadd.f32 %v13763_v54, %v4515_v11  ;;  %v4550_v54 = vsel %vm1181_vm2, %v13866_v52, -inf  ;;  %v2941_v59 = vsel %vm981_vm10, %v2933_v57, %v13792_v32  ;;  %v17410_v57 = vld [vmem:[#allocation32_spill] sm:$0xff] }
 0x40b   : > { %4228 = vmax.xlane.f32.xlu0 %v4227_v55  ;;  %v13858_v55 = vld [vmem:[%s17407_s24] ss:$0 sm:$0xff]  ;;  %v2946_v39 = vsel %vm2943_vm14, %v2937_v36, %v2875_v13  ;;  %s9698_s24 = sld [smem:[#allocation2 + $0x101]] }
 0x40c   : > { %v2877_v7 = vpop.permute.xlu1 %2876 }
 0x40d   : > { %v2947_v4 = vsel %vm2943_vm14, %v2938_v37, %v2877_v7 }
 0x40e   : > { %v2903_v15 = vpop.permute.xlu0 %2902  ;;  %4539 = vmax.xlane.f32.xlu1 %v4538_v49  ;;  %v13888_v49 = vadd.f32 %v4525_v41, %v17380_v16 }
 0x40f   : > { %v2952_v40 = vsel %vm1181_vm2, %v2944_v34, %v2903_v15  ;;  %4536 = vmax.xlane.f32.xlu0 %v4535_v48 }
 0x410   : > { %v2967_v51 = vadd.f32 %v13858_v55, %v2952_v40  ;;  %v2905_v3 = vpop.permute.xlu1 %2904  ;;  %v4553_v13 = vsel %vm1181_vm2, %v13888_v49, -inf  ;;  %v4556_v40 = vsel %vm1181_vm2, %v13891_v19, -inf }
 0x411   : > { %v2953_v50 = vsel %vm1181_vm2, %v2945_v1, %v2905_v3  ;;  %v2940_v1 = vsel %vm981_vm10, %v2932_v63, %v13720_v17  ;;  %v2934_v17 = vsel %vm2926_vm13, %v13194_v56, %v13688_v8 }
 0x412   : > { %v2883_v27 = vpop.permute.xlu0 %2882  ;;  %v2968_v48 = vadd.f32 %v13858_v55, %v2953_v50  ;;  %4545 = vmax.xlane.f32.xlu1 %v4544_v30  ;;  %v2975_v61 = vmax.f32 %v2967_v51, 0.0  ;;  %v2949_v0 = vsel %vm2943_vm14, %v2940_v1, %v13831_v9  ;;  %v2942_v9 = vsel %vm981_vm10, %v2934_v17, %v13807_v24 }
 0x413   : > { %4542 = vmax.xlane.f32.xlu0 %v4541_v25  ;;  %v2950_v14 = vsel %vm2943_vm14, %v2941_v59, %v2883_v27 }
 0x414   : > { %v2976_v18 = vmax.f32 %v2968_v48, 0.0  ;;  %v2885_v11 = vpop.permute.xlu1 %2884 }
 0x416   : > { %v2907_v21 = vpop.permute.xlu0 %2906  ;;  %v2983_v34 = vpack.c.bf16 %v2976_v18, %v2975_v61  ;;  %4551 = vmax.xlane.f32.xlu1 %v4550_v54 }
 0x417   : > { %v2954_v15 = vsel %vm1181_vm2, %v2946_v39, %v2907_v21  ;;  %4548 = vmax.xlane.f32.xlu0 %v4547_v26  ;;  %v2951_v26 = vsel %vm2943_vm14, %v2942_v9, %v2885_v11 }
 0x418   : > { %v2969_v25 = vadd.f32 %v13858_v55, %v2954_v15  ;;  %v2909_v30 = vpop.permute.xlu1 %2908  ;;  %10144 = vmatprep.mubr.msk.bf16.mxu0 %vm2999_vm15, %v2983_v34 }
 0x419   : > { %v2955_v33 = vsel %vm1181_vm2, %v2947_v4, %v2909_v30  ;;  %v17408_v4 = vld [vmem:[#allocation33_spill] sm:$0xff] }
 0x41a   : > { %v2911_v41 = vpop.permute.xlu0 %2910  ;;  %v2970_v7 = vadd.f32 %v13858_v55, %v2955_v33  ;;  %4557 = vmax.xlane.f32.xlu1 %v4556_v40  ;;  %v2977_v60 = vmax.f32 %v2969_v25, 0.0 }
 0x41b   : > { %v2956_v6 = vsel %vm1181_vm2, %v2948_v47, %v2911_v41  ;;  %4554 = vmax.xlane.f32.xlu0 %v4553_v13  ;;  %v17409_v41 = vld [vmem:[#allocation39_spill] sm:$0xff] }
 0x41c   : > { %v2978_v51 = vmax.f32 %v2970_v7, 0.0  ;;  %v2971_v3 = vadd.f32 %v13858_v55, %v2956_v6  ;;  %v2913_v45 = vpop.permute.xlu1 %2912 }
 0x41d   : > { %v2957_v50 = vsel %vm1181_vm2, %v2949_v0, %v2913_v45 }
 0x41e   : > { %v2915_v5 = vpop.permute.xlu0 %2914  ;;  %v2984_v48 = vpack.c.bf16 %v2978_v51, %v2977_v60  ;;  %v2972_v32 = vadd.f32 %v13858_v55, %v2957_v50  ;;  %v2979_v36 = vmax.f32 %v2971_v3, 0.0  ;;  %v17411_v60 = vld [vmem:[#allocation35_spill] sm:$0xff]  ;;  %v17412_v3 = vld [vmem:[#allocation40_spill] sm:$0xff] }
 0x41f   : > { %v2958_v54 = vsel %vm1181_vm2, %v2950_v14, %v2915_v5 }
 0x420   : > { %v2980_v61 = vmax.f32 %v2972_v32, 0.0  ;;  %v2973_v27 = vadd.f32 %v13858_v55, %v2958_v54  ;;  %v2917_v18 = vpop.permute.xlu1 %2916  ;;  %10145 = vmatmul.mubr.msk.bf16.vlgmr.msra.gmra.mrb[44].mxu0 %vm2999_vm15, %v2984_v48  ;;  %v17413_v54 = vld [vmem:[#allocation36_spill] sm:$0xff] }
 0x421   : > { %v2959_v39 = vsel %vm1181_vm2, %v2951_v26, %v2917_v18  ;;  %v17414_v26 = vld [vmem:[#allocation34_spill] sm:$0xff] }
 0x422   : > { %v2985_v56 = vpack.c.bf16 %v2980_v61, %v2979_v36  ;;  %v2974_v8 = vadd.f32 %v13858_v55, %v2959_v39  ;;  %v2981_v21 = vmax.f32 %v2973_v27, 0.0 }
 0x424   : > { %v2982_v23 = vmax.f32 %v2974_v8, 0.0  ;;  %10148 = vmatprep.mubr.msk.bf16.mxu0 %vm2999_vm15, %v2985_v56 }
 0x426   : > { %v2986_v34 = vpack.c.bf16 %v2982_v23, %v2981_v21  ;;  %v17415_v23 = vld [vmem:[#allocation29_spill] sm:$0xff] }
 0x428   : > { %10149 = vmatmul.mubr.msk.bf16.gmra.mrb[48].mxu0 %vm2999_vm15, %v2986_v34 }
 0x429   : > { %10166 = vmatprep.mubr.msk.bf16.mxu0 %vm11824_vm11, %v17343_v44 }
 0x458   : > { %v3201_v24 = vpop.xlane.xlu0 %3200 }
 0x459   : > { %v3223_v11 = vsub.f32 %v13354_v22, %v3201_v24  ;;  %v17416_v24 = vld [vmem:[#allocation37_spill] sm:$0xff] }
 0x45b   : > { %v3231_v15 = vmul.f32 1.442695, %v3223_v11 }
 0x45c   : > { %v3207_v42 = vpop.xlane.xlu0 %3206 }
 0x45d   : > { %10822 = vpow2.f32 %v3231_v15  ;;  %v3225_v37 = vsub.f32 %v13377_v43, %v3207_v42 }
 0x45f   : > { %v3235_v13 = vmul.f32 1.442695, %v3225_v37  ;;  %v3204_v55 = vpop.xlane.xlu1 %3203 }
 0x460   : > { %v3210_v40 = vpop.xlane.xlu0 %3209  ;;  %v3224_v46 = vsub.f32 %v13387_v53, %v3204_v55 }
 0x461   : > { %10824 = vpow2.f32 %v3235_v13  ;;  %v3226_v25 = vsub.f32 %v17408_v4, %v3210_v40  ;;  %v17417_v4 = vld [vmem:[#allocation30_spill] sm:$0xff] }
 0x462   : > { %v3233_v30 = vmul.f32 1.442695, %v3224_v46 }
 0x463   : > { %v3237_v63 = vmul.f32 1.442695, %v3226_v25  ;;  %v3216_v47 = vpop.xlane.xlu1 %3215 }
 0x464   : > { %v3213_v33 = vpop.xlane.xlu0 %3212  ;;  %10826 = vpow2.f32 %v3233_v30  ;;  %v3228_v22 = vsub.f32 %v17409_v41, %v3216_v47  ;;  %v17418_v30 = vld [vmem:[#allocation28_spill] sm:$0xff] }
 0x465   : > { %v3227_v7 = vsub.f32 %v17410_v57, %v3213_v33  ;;  %10828 = vpow2.f32 %v3237_v63 }
 0x466   : > { %v3241_v43 = vmul.f32 1.442695, %v3228_v22 }
 0x467   : > { %v13956_v6 = vpop.eup %10822  ;;  %v3239_v1 = vmul.f32 1.442695, %v3227_v7  ;;  %v3222_v59 = vpop.xlane.xlu1 %3221 }
 0x468   : > { %v3219_v0 = vpop.xlane.xlu0 %3218  ;;  %v3247_v53 = vsel %vm1181_vm2, %v13956_v6, 0.0  ;;  %10830 = vpow2.f32 %v3241_v43  ;;  %v3230_v51 = vsub.f32 %v17411_v60, %v3222_v59  ;;  %v17419_v59 = vld [vmem:[#allocation41_spill] sm:$0xff] }
 0x469   : > { %v3229_v45 = vsub.f32 %v17412_v3, %v3219_v0  ;;  %3248 = vadd.xlane.f32.xlu0 %v3247_v53  ;;  %10832 = vpow2.f32 %v3239_v1  ;;  %v17420_v53 = vld [vmem:[#allocation31_spill] sm:$0xff] }
 0x46a   : > { %v3245_v50 = vmul.f32 1.442695, %v3230_v51 }
 0x46b   : > { %v13962_v14 = vpop.eup %10824  ;;  %v3243_v5 = vmul.f32 1.442695, %v3229_v45  ;;  %v3558_v17 = vpop.xlane.xlu1 %3557 }
 0x46c   : > { %v3555_v48 = vpop.xlane.xlu0 %3554  ;;  %v3253_v32 = vsel %vm1181_vm2, %v13962_v14, 0.0  ;;  %10834 = vpow2.f32 %v3245_v50  ;;  %v3578_v9 = vsub.f32 %v17413_v54, %v3558_v17  ;;  %v17421_v54 = vld [vmem:[#allocation42_spill] sm:$0xff] }
 0x46d   : > { %v3577_v36 = vsub.f32 %v17414_v26, %v3555_v48  ;;  %3254 = vadd.xlane.f32.xlu0 %v3253_v32  ;;  %10836 = vpow2.f32 %v3243_v5  ;;  %v17422_v26 = vld [vmem:[#allocation38_spill] sm:$0xff] }
 0x46e   : > { %v13968_v61 = vpop.eup %10826  ;;  %v3587_v27 = vmul.f32 1.442695, %v3578_v9 }
 0x46f   : > { %v3585_v18 = vmul.f32 1.442695, %v3577_v36  ;;  %v13970_v39 = vpop.eup %10828  ;;  %v3250_v56 = vsel %vm1181_vm2, %v13968_v61, 0.0  ;;  %v3564_v8 = vpop.xlane.xlu1 %3563 }
 0x470   : > { %v3561_v21 = vpop.xlane.xlu0 %3560  ;;  %10838 = vpow2.f32 %v3587_v27  ;;  %3251 = vadd.xlane.f32.xlu1 %v3250_v56  ;;  %v3580_v34 = vsub.f32 %v17415_v23, %v3564_v8  ;;  %v3256_v15 = vsel %vm1181_vm2, %v13970_v39, 0.0 }
 0x471   : > { %v3579_v11 = vsub.f32 %v17416_v24, %v3561_v21  ;;  %10840 = vpow2.f32 %v3585_v18 }
 0x472   : > { %v13978_v42 = vpop.eup %10830  ;;  %v3591_v37 = vmul.f32 1.442695, %v3580_v34 }
 0x473   : > { %v3589_v13 = vmul.f32 1.442695, %v3579_v11  ;;  %v13980_v55 = vpop.eup %10832  ;;  %v3570_v40 = vpop.xlane.xlu1 %3569  ;;  %v3262_v33 = vsel %vm1181_vm2, %v13978_v42, 0.0  ;;  %v17423_v11 = vld [vmem:[#allocation44_spill] sm:$0xff] }
 0x474   : > { %v3567_v46 = vpop.xlane.xlu0 %3566  ;;  %10842 = vpow2.f32 %v3591_v37  ;;  %v3582_v25 = vsub.f32 %v17417_v4, %v3570_v40  ;;  %3257 = vadd.xlane.f32.xlu1 %v3256_v15  ;;  %v3259_v47 = vsel %vm1181_vm2, %v13980_v55, 0.0  ;;  %v17424_v37 = vld [vmem:[#allocation43_spill] sm:$0xff] }
 0x475   : > { %v3581_v63 = vsub.f32 %v17418_v30, %v3567_v46  ;;  %10844 = vpow2.f32 %v3589_v13  ;;  %3260 = vadd.xlane.f32.xlu0 %v3259_v47 }
 0x476   : > { %v13988_v41 = vpop.eup %10834  ;;  %v3595_v22 = vmul.f32 1.442695, %v3582_v25 }
 0x477   : > { %v3593_v57 = vmul.f32 1.442695, %v3581_v63  ;;  %v13990_v7 = vpop.eup %10836  ;;  %v3576_v43 = vpop.xlane.xlu1 %3575  ;;  %v3268_v3 = vsel %vm1181_vm2, %v13988_v41, 0.0 }
 0x478   : > { %v3573_v1 = vpop.xlane.xlu0 %3572  ;;  %10846 = vpow2.f32 %v3595_v22  ;;  %v3584_v0 = vsub.f32 %v17419_v59, %v3576_v43  ;;  %3263 = vadd.xlane.f32.xlu1 %v3262_v33  ;;  %v3265_v51 = vsel %vm1181_vm2, %v13990_v7, 0.0  ;;  %v17425_v22 = vld [vmem:[#allocation46_spill] sm:$0xff]  ;;  %v17426_v43 = vld [vmem:[#allocation45_spill] sm:$0xff] }
 0x479   : > { %v3583_v60 = vsub.f32 %v17420_v53, %v3573_v1  ;;  %10848 = vpow2.f32 %v3593_v57  ;;  %3266 = vadd.xlane.f32.xlu0 %v3265_v51 }
 0x47a   : > { %v13998_v45 = vpop.eup %10838  ;;  %v3599_v50 = vmul.f32 1.442695, %v3584_v0 }
 0x47b   : > { %v3597_v5 = vmul.f32 1.442695, %v3583_v60  ;;  %v14000_v17 = vpop.eup %10840  ;;  %v3888_v48 = vpop.xlane.xlu1 %3887  ;;  %v3604_v18 = vsel %vm1181_vm2, %v13998_v45, 0.0 }
 0x47c   : > { %v3885_v32 = vpop.xlane.xlu0 %3884  ;;  %10850 = vpow2.f32 %v3599_v50  ;;  %v3908_v9 = vsub.f32 %v17421_v54, %v3888_v48  ;;  %3269 = vadd.xlane.f32.xlu1 %v3268_v3  ;;  %v3601_v27 = vsel %vm1181_vm2, %v14000_v17, 0.0  ;;  %v17427_v48 = vld [vmem:[#allocation48_spill] sm:$0xff]  ;;  %v17428_v54 = vld [vmem:[#allocation47_spill] sm:$0xff] }
 0x47d   : > { %v3907_v36 = vsub.f32 %v17422_v26, %v3885_v32  ;;  %10852 = vpow2.f32 %v3597_v5  ;;  %3602 = vadd.xlane.f32.xlu0 %v3601_v27 }
 0x47e   : > { %v14008_v56 = vpop.eup %10842  ;;  %v3917_v8 = vmul.f32 1.442695, %v3908_v9 }
 0x47f   : > { %v3915_v21 = vmul.f32 1.442695, %v3907_v36  ;;  %v14010_v23 = vpop.eup %10844  ;;  %v3894_v34 = vpop.xlane.xlu1 %3893  ;;  %v3610_v46 = vsel %vm1181_vm2, %v14008_v56, 0.0 }
 0x480   : > { %v3891_v24 = vpop.xlane.xlu0 %3890  ;;  %10854 = vpow2.f32 %v3917_v8  ;;  %v3910_v15 = vsub.f32 %v17423_v11, %v3894_v34  ;;  %3605 = vadd.xlane.f32.xlu1 %v3604_v18  ;;  %v3607_v40 = vsel %vm1181_vm2, %v14010_v23, 0.0  ;;  %v17429_v11 = vld [vmem:[#allocation50_spill] sm:$0xff] }
 0x481   : > { %v3909_v13 = vsub.f32 %v17424_v37, %v3891_v24  ;;  %10856 = vpow2.f32 %v3915_v21  ;;  %3608 = vadd.xlane.f32.xlu0 %v3607_v40  ;;  %v17430_v37 = vld [vmem:[#allocation49_spill] sm:$0xff] }
 0x482   : > { %v14018_v4 = vpop.eup %10846  ;;  %v3921_v25 = vmul.f32 1.442695, %v3910_v15 }
 0x483   : > { %v3919_v30 = vmul.f32 1.442695, %v3909_v13  ;;  %v14020_v63 = vpop.eup %10848  ;;  %v3900_v47 = vpop.xlane.xlu1 %3899  ;;  %v3616_v0 = vsel %vm1181_vm2, %v14018_v4, 0.0 }
 0x484   : > { %v3897_v33 = vpop.xlane.xlu0 %3896  ;;  %10858 = vpow2.f32 %v3921_v25  ;;  %v3912_v57 = vsub.f32 %v17425_v22, %v3900_v47  ;;  %3611 = vadd.xlane.f32.xlu1 %v3610_v46  ;;  %v3613_v59 = vsel %vm1181_vm2, %v14020_v63, 0.0 }
 0x485   : > { %v3911_v1 = vsub.f32 %v17426_v43, %v3897_v33  ;;  %10860 = vpow2.f32 %v3919_v30  ;;  %3614 = vadd.xlane.f32.xlu0 %v3613_v59  ;;  %v17431_v43 = vld [vmem:[#allocation52_spill] sm:$0xff]  ;;  %v17432_v59 = vld [vmem:[#allocation51_spill] sm:$0xff] }
 0x486   : > { %v14028_v53 = vpop.eup %10850  ;;  %v3925_v60 = vmul.f32 1.442695, %v3912_v57 }
 0x487   : > { %v3923_v51 = vmul.f32 1.442695, %v3911_v1  ;;  %v14030_v3 = vpop.eup %10852  ;;  %v3906_v50 = vpop.xlane.xlu1 %3905  ;;  %v3622_v36 = vsel %vm1181_vm2, %v14028_v53, 0.0 }
 0x488   : > { %v3903_v5 = vpop.xlane.xlu0 %3902  ;;  %10862 = vpow2.f32 %v3925_v60  ;;  %v3914_v32 = vsub.f32 %v17427_v48, %v3906_v50  ;;  %3617 = vadd.xlane.f32.xlu1 %v3616_v0  ;;  %v3619_v26 = vsel %vm1181_vm2, %v14030_v3, 0.0 }
 0x489   : > { %v3913_v9 = vsub.f32 %v17428_v54, %v3903_v5  ;;  %10864 = vpow2.f32 %v3923_v51  ;;  %3620 = vadd.xlane.f32.xlu0 %v3619_v26  ;;  %v17433_v26 = vld [vmem:[#allocation54_spill] sm:$0xff] }
 0x48a   : > { %v14038_v27 = vpop.eup %10854  ;;  %v3929_v18 = vmul.f32 1.442695, %v3914_v32 }
 0x48b   : > { %v3927_v8 = vmul.f32 1.442695, %v3913_v9  ;;  %v14040_v21 = vpop.eup %10856  ;;  %v4214_v34 = vpop.xlane.xlu1 %4213  ;;  %v3934_v46 = vsel %vm1181_vm2, %v14038_v27, 0.0 }
 0x48c   : > { %v4211_v24 = vpop.xlane.xlu0 %4210  ;;  %10866 = vpow2.f32 %v3929_v18  ;;  %v4234_v15 = vsub.f32 %v17429_v11, %v4214_v34  ;;  %3623 = vadd.xlane.f32.xlu1 %v3622_v36  ;;  %v3931_v40 = vsel %vm1181_vm2, %v14040_v21, 0.0  ;;  %v17434_v18 = vld [vmem:[#allocation53_spill] sm:$0xff] }
 0x48d   : > { %v4233_v13 = vsub.f32 %v17430_v37, %v4211_v24  ;;  %10868 = vpow2.f32 %v3927_v8  ;;  %3932 = vadd.xlane.f32.xlu0 %v3931_v40 }
 0x48e   : > { %v14048_v25 = vpop.eup %10858  ;;  %v4243_v30 = vmul.f32 1.442695, %v4234_v15 }
 0x48f   : > { %v4241_v47 = vmul.f32 1.442695, %v4233_v13  ;;  %v14050_v33 = vpop.eup %10860  ;;  %v4220_v22 = vpop.xlane.xlu1 %4219  ;;  %v3940_v51 = vsel %vm1181_vm2, %v14048_v25, 0.0 }
 0x490   : > { %v4217_v57 = vpop.xlane.xlu0 %4216  ;;  %10870 = vpow2.f32 %v4243_v30  ;;  %v4236_v1 = vsub.f32 %v17431_v43, %v4220_v22  ;;  %3935 = vadd.xlane.f32.xlu1 %v3934_v46  ;;  %v3937_v60 = vsel %vm1181_vm2, %v14050_v33, 0.0 }
 0x491   : > { %v4235_v0 = vsub.f32 %v17432_v59, %v4217_v57  ;;  %10872 = vpow2.f32 %v4241_v47  ;;  %3938 = vadd.xlane.f32.xlu0 %v3937_v60  ;;  %v17435_v47 = vld [vmem:[#allocation55_spill] sm:$0xff] }
 0x492   : > { %v14058_v50 = vpop.eup %10862  ;;  %v4247_v5 = vmul.f32 1.442695, %v4236_v1 }
 0x493   : > { %v4245_v48 = vmul.f32 1.442695, %v4235_v0  ;;  %v14060_v32 = vpop.eup %10864  ;;  %v4226_v54 = vpop.xlane.xlu1 %4225  ;;  %v3946_v24 = vsel %vm1181_vm2, %v14058_v50, 0.0 }
 0x494   : > { %v4223_v9 = vpop.xlane.xlu0 %4222  ;;  %10874 = vpow2.f32 %v4247_v5  ;;  %v4238_v36 = vsub.f32 %v17433_v26, %v4226_v54  ;;  %3941 = vadd.xlane.f32.xlu1 %v3940_v51  ;;  %v3943_v34 = vsel %vm1181_vm2, %v14060_v32, 0.0 }
 0x495   : > { %v4237_v8 = vsub.f32 %v17434_v18, %v4223_v9  ;;  %10876 = vpow2.f32 %v4245_v48  ;;  %3944 = vadd.xlane.f32.xlu0 %v3943_v34 }
 0x496   : > { %v14068_v11 = vpop.eup %10866  ;;  %v4251_v15 = vmul.f32 1.442695, %v4238_v36 }
 0x497   : > { %v4249_v37 = vmul.f32 1.442695, %v4237_v8  ;;  %v14070_v13 = vpop.eup %10868  ;;  %v4232_v40 = vpop.xlane.xlu1 %4231  ;;  %v3952_v43 = vsel %vm1181_vm2, %v14068_v11, 0.0 }
 0x498   : > { %v4229_v46 = vpop.xlane.xlu0 %4228  ;;  %10878 = vpow2.f32 %v4251_v15  ;;  %v4240_v30 = vsub.f32 %v13789_v2, %v4232_v40  ;;  %3947 = vadd.xlane.f32.xlu1 %v3946_v24  ;;  %v3949_v57 = vsel %vm1181_vm2, %v14070_v13, 0.0 }
 0x499   : > { %v4239_v22 = vsub.f32 %v17435_v47, %v4229_v46  ;;  %10880 = vpow2.f32 %v4249_v37  ;;  %3950 = vadd.xlane.f32.xlu0 %v3949_v57 }
 0x49a   : > { %v14078_v1 = vpop.eup %10870  ;;  %v4255_v59 = vmul.f32 1.442695, %v4240_v30 }
 0x49b   : > { %v4253_v0 = vmul.f32 1.442695, %v4239_v22  ;;  %v14080_v60 = vpop.eup %10872  ;;  %v4540_v51 = vpop.xlane.xlu1 %4539  ;;  %v4260_v2 = vsel %vm1181_vm2, %v14078_v1, 0.0 }
 0x49c   : > { %v4537_v5 = vpop.xlane.xlu0 %4536  ;;  %10882 = vpow2.f32 %v4255_v59  ;;  %v4560_v48 = vsub.f32 %v13817_v20, %v4540_v51  ;;  %3953 = vadd.xlane.f32.xlu1 %v3952_v43  ;;  %v4257_v9 = vsel %vm1181_vm2, %v14080_v60, 0.0 }
 0x49d   : > { %v4559_v54 = vsub.f32 %v13814_v31, %v4537_v5  ;;  %10884 = vpow2.f32 %v4253_v0  ;;  %4261 = vadd.xlane.f32.xlu0 %v4260_v2 }
 0x49e   : > { %v14088_v26 = vpop.eup %10874  ;;  %v4569_v36 = vmul.f32 1.442695, %v4560_v48 }
 0x49f   : > { %v4567_v18 = vmul.f32 1.442695, %v4559_v54  ;;  %v14090_v8 = vpop.eup %10876  ;;  %v4546_v34 = vpop.xlane.xlu1 %4545  ;;  %v4266_v37 = vsel %vm1181_vm2, %v14088_v26, 0.0 }
 0x4a0   : > { %v4543_v24 = vpop.xlane.xlu0 %4542  ;;  %10886 = vpow2.f32 %v4569_v36  ;;  %v4562_v15 = vsub.f32 %v13845_v29, %v4546_v34  ;;  %4258 = vadd.xlane.f32.xlu1 %v4257_v9  ;;  %v4263_v31 = vsel %vm1181_vm2, %v14090_v8, 0.0 }
 0x4a1   : > { %v4561_v20 = vsub.f32 %v13841_v10, %v4543_v24  ;;  %10888 = vpow2.f32 %v4567_v18  ;;  %4264 = vadd.xlane.f32.xlu0 %v4263_v31 }
 0x4a2   : > { %v14098_v40 = vpop.eup %10878  ;;  %v4573_v46 = vmul.f32 1.442695, %v4562_v15 }
 0x4a3   : > { %v4571_v30 = vmul.f32 1.442695, %v4561_v20  ;;  %v14100_v47 = vpop.eup %10880  ;;  %v4552_v22 = vpop.xlane.xlu1 %4551  ;;  %v4272_v29 = vsel %vm1181_vm2, %v14098_v40, 0.0 }
 0x4a4   : > { %v4549_v57 = vpop.xlane.xlu0 %4548  ;;  %10890 = vpow2.f32 %v4573_v46  ;;  %v4564_v10 = vsub.f32 %v13866_v52, %v4552_v22  ;;  %4267 = vadd.xlane.f32.xlu1 %v4266_v37  ;;  %v4269_v59 = vsel %vm1181_vm2, %v14100_v47, 0.0 }
 0x4a5   : > { %v4563_v43 = vsub.f32 %v13871_v12, %v4549_v57  ;;  %10892 = vpow2.f32 %v4571_v30  ;;  %4273 = vadd.xlane.f32.xlu0 %v4272_v29 }
 0x4a6   : > { %v14108_v0 = vpop.eup %10882  ;;  %v4577_v51 = vmul.f32 1.442695, %v4564_v10 }
 0x4a7   : > { %v4575_v5 = vmul.f32 1.442695, %v4563_v43  ;;  %v14110_v2 = vpop.eup %10884  ;;  %v4278_v52 = vsel %vm1181_vm2, %v14108_v0, 0.0 }
 0x4a8   : > { %10894 = vpow2.f32 %v4577_v51  ;;  %4270 = vadd.xlane.f32.xlu1 %v4269_v59  ;;  %v4275_v48 = vsel %vm1181_vm2, %v14110_v2, 0.0  ;;  %v4555_v30 = vpop.xlane.xlu0 %4554  ;;  %v4558_v51 = vpop.xlane.xlu1 %4557 }
 0x4a9   : > { %10896 = vpow2.f32 %v4575_v5  ;;  %4276 = vadd.xlane.f32.xlu0 %v4275_v48 }
 0x4aa   : > { %v14116_v12 = vpop.eup %10886 }
 0x4ab   : > { %v14118_v54 = vpop.eup %10888  ;;  %v4586_v9 = vsel %vm1181_vm2, %v14116_v12, 0.0 }
 0x4ac   : > { %4279 = vadd.xlane.f32.xlu1 %v4278_v52  ;;  %v4583_v36 = vsel %vm1181_vm2, %v14118_v54, 0.0 }
 0x4ad   : > { %4587 = vadd.xlane.f32.xlu0 %v4586_v9 }
 0x4ae   : > { %v14124_v18 = vpop.eup %10890 }
 0x4af   : > { %v14126_v34 = vpop.eup %10892  ;;  %v4592_v15 = vsel %vm1181_vm2, %v14124_v18, 0.0 }
 0x4b0   : > { %4584 = vadd.xlane.f32.xlu1 %v4583_v36  ;;  %v4589_v24 = vsel %vm1181_vm2, %v14126_v34, 0.0 }
 0x4b1   : > { %4590 = vadd.xlane.f32.xlu0 %v4589_v24 }
 0x4b2   : > { %v14132_v20 = vpop.eup %10894 }
 0x4b3   : > { %17436 = vst [vmem:[#allocation33_spill] sm:$0xff] %v14132_v20  ;;  %v14134_v31 = vpop.eup %10896  ;;  %v4598_v37 = vsel %vm1181_vm2, %v14132_v20, 0.0 }
 0x4b4   : > { %17437 = vst [vmem:[#allocation39_spill] sm:$0xff] %v14134_v31  ;;  %4593 = vadd.xlane.f32.xlu1 %v4592_v15  ;;  %v4595_v46 = vsel %vm1181_vm2, %v14134_v31, 0.0 }
 0x4b5   : > { %4599 = vadd.xlane.f32.xlu0 %v4598_v37 }
 0x4b8   : > { %4596 = vadd.xlane.f32.xlu1 %v4595_v46 }
 0x4f3   : > { %v10146_v22 = vpop.f32.mrb[44].mxu0 }
 0x4f4   : > { %v3050_v29 = vpop.f32.mrb[45].mxu0 }
 0x4f5   : > { %v10147_v57 = vpop.f32.mrb[46].mxu0 }
 0x4f6   : > { %v14140_v10 = vpack.c.bf16 %v10147_v57, %v10146_v22  ;;  %v3053_v43 = vpop.f32.mrb[47].mxu0  ;;  %v3249_v5 = vpop.xlane.xlu0 %3248 }
 0x4f7   : > { %v14142_v59 = vpack.c.bf16 %v3053_v43, %v3050_v29  ;;  %10898 = vrcp.f32 %v3249_v5 }
 0x4f8   : > { %3694 = vrot.lane.b32.xlu1 %v14140_v10, %s11825_s2 }
 0x4f9   : > { %10153 = vmatpush3.bf16.msra.mxu1 %v14142_v59  ;;  %3646 = vrot.lane.b32.xlu0 %v14142_v59, %s11825_s2 }
 0x4fa   : > { %10158 = vmatprep.subr.bf16.mxu1 %v17343_v44  ;;  %v3255_v24 = vpop.xlane.xlu0 %3254 }
 0x4fb   : > { %v10150_v48 = vpop.f32.mrb[48].mxu0 }
 0x4fc   : > { %v3066_v52 = vpop.f32.mrb[49].mxu0  ;;  %4022 = vrot.lane.b32.xlu1 %v14140_v10, %s11826_s6 }
 0x4fd   : > { %v3252_v9 = vpop.xlane.xlu1 %3251  ;;  %v10151_v36 = vpop.f32.mrb[50].mxu0  ;;  %3975 = vrot.lane.b32.xlu0 %v14142_v59, %s11826_s6 }
 0x4fe   : > { %10900 = vrcp.f32 %v3252_v9  ;;  %v14154_v15 = vpack.c.bf16 %v10151_v36, %v10150_v48  ;;  %v3069_v37 = vpop.f32.mrb[51].mxu0 }
 0x4ff   : > { %v14156_v46 = vpack.c.bf16 %v3069_v37, %v3066_v52 }
 0x500   : > { %3790 = vrot.lane.b32.xlu1 %v14154_v15, %s11825_s2 }
 0x501   : > { %10165 = vmatpush3.bf16.msra.mxu0 %v14156_v46  ;;  %v3258_v22 = vpop.xlane.xlu1 %3257  ;;  %3742 = vrot.lane.b32.xlu0 %v14156_v46, %s11825_s2  ;;  %v10899_v43 = vpop.eup %10898  ;;  %s17440_s2 = smov 116  }
 0x502   : > { %10902 = vrcp.f32 %v3258_v22  ;;  %v3261_v29 = vpop.xlane.xlu0 %3260  ;;  %10176 = vmatprep.subr.bf16.mxu0 %v17343_v44  ;;  %v3279_v48 = vmul.f32 %v10899_v43, %v13956_v6  ;;  %v4565_v22 = vsub.f32 %v13888_v49, %v4555_v30  ;;  %v4566_v43 = vsub.f32 %v13891_v19, %v4558_v51 }
 0x503   : > { %10904 = vrcp.f32 %v3255_v24 }
 0x504   : > { %10906 = vrcp.f32 %v3261_v29  ;;  %4116 = vrot.lane.b32.xlu1 %v14154_v15, %s11826_s6  ;;  %v4581_v16 = vmul.f32 1.442695, %v4566_v43 }
 0x505   : > { %v3264_v57 = vpop.xlane.xlu1 %3263  ;;  %4069 = vrot.lane.b32.xlu0 %v14156_v46, %s11826_s6 }
 0x506   : > { %10908 = vrcp.f32 %v3264_v57  ;;  %v3267_v9 = vpop.xlane.xlu0 %3266  ;;  %v4579_v57 = vmul.f32 1.442695, %v4565_v22 }
 0x508   : > { %v10901_v5 = vpop.eup %10900 }
 0x509   : > { %v3280_v52 = vmul.f32 %v10901_v5, %v13968_v61  ;;  %v3270_v36 = vpop.xlane.xlu1 %3269 }
 0x50a   : > { %10910 = vrcp.f32 %v3270_v36 }
 0x50b   : > { %v3287_v37 = vpack.c.bf16 %v3280_v52, %v3279_v48  ;;  %10912 = vrcp.f32 %v3267_v9  ;;  %v3603_v9 = vpop.xlane.xlu0 %3602 }
 0x50c   : > { %v10903_v24 = vpop.eup %10902  ;;  %10914 = vpow2.f32 %v4579_v57 }
 0x50d   : > { %v10905_v29 = vpop.eup %10904  ;;  %10155 = vmatmul.mubr.msk.bf16.vlgmr.msra.gmra.mrb[44].mxu1 %vm1181_vm2, %v3287_v37  ;;  %v3282_v6 = vmul.f32 %v10903_v24, %v13970_v39  ;;  %v3606_v48 = vpop.xlane.xlu1 %3605  ;;  %10916 = vpow2.f32 %v4581_v16 }
 0x50e   : > { %v10907_v28 = vpop.eup %10906  ;;  %10159 = vmatpush3.bf16.msra.mxu1 %v14140_v10  ;;  %10160 = vmatprep.mubr.msk.bf16.mxu1 %vm11824_vm11, %v17343_v44  ;;  %v3281_v49 = vmul.f32 %v10905_v29, %v13962_v14 }
 0x50f   : > { %10170 = vmatprep.subr.bf16.mxu1 %v17343_v44  ;;  %v3283_v30 = vmul.f32 %v10907_v28, %v13980_v55 }
 0x510   : > { %v10909_v61 = vpop.eup %10908  ;;  %v3288_v36 = vpack.c.bf16 %v3282_v6, %v3281_v49 }
 0x511   : > { %v3284_v5 = vmul.f32 %v10909_v61, %v13978_v42  ;;  %v3612_v19 = vpop.xlane.xlu1 %3611  ;;  %v3609_v42 = vpop.xlane.xlu0 %3608 }
 0x512   : > { %10918 = vrcp.f32 %v3612_v19 }
 0x513   : > { %v3289_v52 = vpack.c.bf16 %v3284_v5, %v3283_v30  ;;  %10920 = vrcp.f32 %v3606_v48 }
 0x514   : > { %v10911_v37 = vpop.eup %10910  ;;  %10922 = vrcp.f32 %v3609_v42 }
 0x515   : > { %10161 = vmatmul.mubr.msk.bf16.vlgmr.msra.gmra.mrb[48].mxu1 %vm1181_vm2, %v3288_v36  ;;  %10167 = vmatmul.mubr.msk.bf16.vlgmr.msra.gmra.mrb[52].mxu0 %vm1181_vm2, %v3289_v52  ;;  %v10913_v39 = vpop.eup %10912  ;;  %v3286_v28 = vmul.f32 %v10911_v37, %v13988_v41  ;;  %v3618_v24 = vpop.xlane.xlu1 %3617  ;;  %10924 = vrcp.f32 %v3603_v9 }
 0x516   : > { %10171 = vmatpush3.bf16.msra.mxu1 %v14154_v15  ;;  %10172 = vmatprep.mubr.msk.bf16.mxu1 %vm11824_vm11, %v17343_v44  ;;  %v3285_v14 = vmul.f32 %v10913_v39, %v13990_v7  ;;  %v14192_v51 = vpop.eup %10914  ;;  %v3615_v41 = vpop.xlane.xlu0 %3614 }
 0x517   : > { %10182 = vmatprep.subr.bf16.mxu1 %v17343_v44  ;;  %10178 = vmatprep.mubr.msk.bf16.mxu0 %vm11824_vm11, %v17343_v44  ;;  %17438 = vst [vmem:[#allocation32_spill] sm:$0xff] %v14192_v51  ;;  %v4601_v22 = vsel %vm1181_vm2, %v14192_v51, 0.0  ;;  %v14198_v29 = vpop.eup %10916 }
 0x518   : > { %v3290_v55 = vpack.c.bf16 %v3286_v28, %v3285_v14  ;;  %17439 = vst [vmem:[#allocation35_spill] sm:$0xff] %v14198_v29  ;;  %v4604_v7 = vsel %vm1181_vm2, %v14198_v29, 0.0 }
 0x519   : > { %v3624_v16 = vpop.xlane.xlu1 %3623 }
 0x51a   : > { %v3621_v6 = vpop.xlane.xlu0 %3620  ;;  %10926 = vrcp.f32 %v3624_v16 }
 0x51b   : > { %10928 = vrcp.f32 %v3618_v24 }
 0x51c   : > { %10930 = vrcp.f32 %v3621_v6 }
 0x51d   : > { %10173 = vmatmul.mubr.msk.bf16.vlgmr.msra.gmra.mrb[52].mxu1 %vm1181_vm2, %v3290_v55  ;;  %v3936_v61 = vpop.xlane.xlu1 %3935  ;;  %10932 = vrcp.f32 %v3615_v41 }
 0x51e   : > { %10184 = vmatprep.mubr.msk.bf16.mxu1 %vm11824_vm11, %v17343_v44  ;;  %v3933_v57 = vpop.xlane.xlu0 %3932 }
 0x521   : > { %v3942_v43 = vpop.xlane.xlu1 %3941 }
 0x522   : > { %v3939_v49 = vpop.xlane.xlu0 %3938  ;;  %10934 = vrcp.f32 %v3942_v43 }
 0x523   : > { %10936 = vrcp.f32 %v3936_v61 }
 0x524   : > { %4602 = vadd.xlane.f32.xlu0 %v4601_v22  ;;  %10938 = vrcp.f32 %v3939_v49 }
 0x525   : > { %v14202_v30 = vpop.xlane.xlu1 %3947  ;;  %10940 = vrcp.f32 %v3933_v57 }
 0x526   : > { %v14204_v5 = vpop.xlane.xlu0 %3944 }
 0x528   : > { %4605 = vadd.xlane.f32.xlu1 %v4604_v7 }
 0x529   : > { %v14210_v52 = vpop.xlane.xlu1 %3953 }
 0x52a   : > { %v14212_v36 = vpop.xlane.xlu0 %3950  ;;  %10942 = vrcp.f32 %v14210_v52 }
 0x52b   : > { %10944 = vrcp.f32 %v14202_v30 }
 0x52c   : > { %10946 = vrcp.f32 %v14212_v36 }
 0x52d   : > { %v14220_v37 = vpop.xlane.xlu1 %4258  ;;  %10948 = vrcp.f32 %v14204_v5 }
 0x52e   : > { %v14224_v39 = vpop.xlane.xlu0 %4261 }
 0x531   : > { %v14228_v28 = vpop.xlane.xlu1 %4267 }
 0x532   : > { %v14230_v14 = vpop.xlane.xlu0 %4264 }
 0x536   : > { %v14236_v55 = vpop.xlane.xlu0 %4273 }
 0x539   : > { %4348 = vrot.lane.b32.xlu1 %v14140_v10, %s17440_s2 }
 0x53a   : > { %4301 = vrot.lane.b32.xlu0 %v14142_v59, %s17440_s2  ;;  %v14240_v7 = vpop.xlane.xlu0 %4276 }
 0x53d   : > { %4395 = vrot.lane.b32.xlu1 %v14156_v46, %s17440_s2 }
 0x53e   : > { %4627 = vrot.lane.b32.xlu0 %v14142_v59, %s17441_s29  ;;  %v14234_v59 = vpop.xlane.xlu1 %4270  ;;  %v14244_v62 = vpop.xlane.xlu0 %4587 }
 0x541   : > { %4442 = vrot.lane.b32.xlu1 %v14154_v15, %s17440_s2  ;;  %s9699_s2 = sld [smem:[#allocation2 + $0x102]] }
 0x542   : > { %4721 = vrot.lane.b32.xlu0 %v14156_v46, %s17441_s29  ;;  %v14238_v22 = vpop.xlane.xlu1 %4279  ;;  %v14248_v38 = vpop.xlane.xlu0 %4590 }
 0x545   : > { %4674 = vrot.lane.b32.xlu1 %v14140_v10, %s17441_s29 }
 0x546   : > { %v14242_v46 = vpop.xlane.xlu1 %4584  ;;  %v14252_v29 = vpop.xlane.xlu0 %4599 }
 0x549   : > { %4768 = vrot.lane.b32.xlu1 %v14154_v15, %s17441_s29  ;;  %v10919_v15 = vpop.eup %10918  ;;  %10950 = vrcp.f32 %v14220_v37 }
 0x54a   : > { %v14246_v10 = vpop.xlane.xlu1 %4593  ;;  %v10921_v35 = vpop.eup %10920  ;;  %v3636_v48 = vmul.f32 %v10919_v15, %v14008_v56  ;;  %10952 = vrcp.f32 %v14224_v39 }
 0x54b   : > { %v10923_v51 = vpop.eup %10922  ;;  %v3634_v9 = vmul.f32 %v10921_v35, %v13998_v45  ;;  %10954 = vrcp.f32 %v14228_v28 }
 0x54c   : > { %v10925_v19 = vpop.eup %10924  ;;  %v3635_v42 = vmul.f32 %v10923_v51, %v14010_v23  ;;  %10956 = vrcp.f32 %v14230_v14 }
 0x54d   : > { %v3633_v16 = vmul.f32 %v10925_v19, %v14000_v17  ;;  %v10927_v6 = vpop.eup %10926  ;;  %10958 = vrcp.f32 %v14234_v59 }
 0x54e   : > { %v14250_v58 = vpop.xlane.xlu1 %4596  ;;  %v3642_v41 = vpack.c.bf16 %v3636_v48, %v3635_v42  ;;  %v10929_v56 = vpop.eup %10928  ;;  %10960 = vrcp.f32 %v14236_v55 }
 0x54f   : > { %v3641_v31 = vpack.c.bf16 %v3634_v9, %v3633_v16  ;;  %v10931_v45 = vpop.eup %10930  ;;  %v3638_v51 = vmul.f32 %v10929_v56, %v14018_v4  ;;  %10962 = vrcp.f32 %v14238_v22 }
 0x550   : > { %v10933_v23 = vpop.eup %10932  ;;  %v3639_v61 = vmul.f32 %v10931_v45, %v14030_v3  ;;  %10964 = vrcp.f32 %v14240_v7 }
 0x551   : > { %v3637_v43 = vmul.f32 %v10933_v23, %v14020_v63 }
 0x553   : > { %v3643_v15 = vpack.c.bf16 %v3638_v51, %v3637_v43 }
 0x56a   : > { %v3695_v20 = vpop.permute.xlu1 %3694 }
 0x56b   : > { %10183 = vmatpush3.bf16.msra.mxu1 %v3695_v20  ;;  %v3647_v24 = vpop.permute.xlu0 %3646  ;;  %v3640_v20 = vmul.f32 %v10927_v6, %v14028_v53  ;;  %v10935_v53 = vpop.eup %10934  ;;  %10966 = vrcp.f32 %v14242_v46 }
 0x56c   : > { %10177 = vmatpush3.bf16.msra.mxu0 %v3647_v24  ;;  %10194 = vmatprep.subr.bf16.mxu1 %v17343_v44  ;;  %v10937_v4 = vpop.eup %10936  ;;  %v3966_v30 = vmul.f32 %v10935_v53, %v14048_v25  ;;  %10968 = vrcp.f32 %v14244_v62 }
 0x56d   : > { %10188 = vmatprep.subr.bf16.mxu0 %v17343_v44  ;;  %v3644_v49 = vpack.c.bf16 %v3640_v20, %v3639_v61  ;;  %v10939_v63 = vpop.eup %10938  ;;  %v3964_v52 = vmul.f32 %v10937_v4, %v14038_v27  ;;  %10970 = vrcp.f32 %v14246_v10  ;;  %v17442_v4 = vld [vmem:[#allocation39_spill] sm:$0xff] }
 0x56e   : > { %v4023_v35 = vpop.permute.xlu1 %4022  ;;  %10185 = vmatmul.mubr.msk.bf16.vlgmr.msra.gmra.mrb[56].mxu1 %vm1181_vm2, %v3642_v41  ;;  %v10941_v3 = vpop.eup %10940  ;;  %v3965_v5 = vmul.f32 %v10939_v63, %v14050_v33  ;;  %10972 = vrcp.f32 %v14248_v38 }
 0x56f   : > { %10179 = vmatmul.mubr.msk.bf16.vlgmr.msra.gmra.mrb[56].mxu0 %vm1181_vm2, %v3641_v31  ;;  %v3976_v17 = vpop.permute.xlu0 %3975  ;;  %10196 = vmatprep.mubr.msk.bf16.mxu1 %vm11824_vm11, %v17343_v44  ;;  %v3963_v36 = vmul.f32 %v10941_v3, %v14040_v21  ;;  %v10943_v48 = vpop.eup %10942  ;;  %10974 = vrcp.f32 %v14250_v58 }
 0x570   : > { %10190 = vmatprep.mubr.msk.bf16.mxu0 %vm11824_vm11, %v17343_v44  ;;  %v3972_v19 = vpack.c.bf16 %v3966_v30, %v3965_v5  ;;  %v10945_v9 = vpop.eup %10944  ;;  %v3970_v41 = vmul.f32 %v10943_v48, %v14068_v11  ;;  %10976 = vrcp.f32 %v14252_v29 }
 0x571   : > { %v3971_v25 = vpack.c.bf16 %v3964_v52, %v3963_v36  ;;  %v10947_v16 = vpop.eup %10946  ;;  %v3968_v21 = vmul.f32 %v10945_v9, %v14058_v50  ;;  %v17443_v52 = vld [vmem:[#allocation33_spill] sm:$0xff] }
 0x572   : > { %v3791_v57 = vpop.permute.xlu1 %3790  ;;  %v10949_v24 = vpop.eup %10948  ;;  %v3969_v33 = vmul.f32 %v10947_v16, %v14070_v13 }
 0x573   : > { %10195 = vmatpush3.bf16.msra.mxu1 %v3791_v57  ;;  %v3743_v31 = vpop.permute.xlu0 %3742  ;;  %v3967_v6 = vmul.f32 %v10949_v24, %v14060_v32  ;;  %v10951_v50 = vpop.eup %10950 }
 0x574   : > { %10189 = vmatpush3.bf16.msra.mxu0 %v3743_v31  ;;  %10206 = vmatprep.subr.bf16.mxu1 %v17343_v44  ;;  %v3974_v56 = vpack.c.bf16 %v3970_v41, %v3969_v33  ;;  %v10953_v11 = vpop.eup %10952  ;;  %v4289_v13 = vmul.f32 %v10951_v50, %v14080_v60 }
 0x575   : > { %10200 = vmatprep.subr.bf16.mxu0 %v17343_v44  ;;  %v10955_v45 = vpop.eup %10954  ;;  %v4290_v37 = vmul.f32 %v10953_v11, %v14078_v1 }
 0x576   : > { %10197 = vmatmul.mubr.msk.bf16.vlgmr.msra.gmra.mrb[60].mxu1 %vm1181_vm2, %v3644_v49  ;;  %v4117_v42 = vpop.permute.xlu1 %4116  ;;  %v4292_v14 = vmul.f32 %v10955_v45, %v14088_v26 }
 0x577   : > { %10191 = vmatmul.mubr.msk.bf16.vlgmr.msra.gmra.mrb[60].mxu0 %vm1181_vm2, %v3643_v15  ;;  %10207 = vmatpush3.bf16.msra.mxu1 %v4023_v35  ;;  %v4070_v27 = vpop.permute.xlu0 %4069  ;;  %v3973_v35 = vpack.c.bf16 %v3968_v21, %v3967_v6  ;;  %v4297_v59 = vpack.c.bf16 %v4290_v37, %v4289_v13 }
 0x578   : > { %10201 = vmatpush3.bf16.msra.mxu0 %v3976_v17  ;;  %10208 = vmatprep.mubr.msk.bf16.mxu1 %vm11824_vm11, %v17343_v44  ;;  %v10957_v17 = vpop.eup %10956 }
 0x579   : > { %10218 = vmatprep.subr.bf16.mxu1 %v17343_v44  ;;  %10202 = vmatprep.mubr.msk.bf16.mxu0 %vm11824_vm11, %v17343_v44  ;;  %v10959_v55 = vpop.eup %10958  ;;  %v4291_v60 = vmul.f32 %v10957_v17, %v14090_v8 }
 0x57a   : > { %10212 = vmatprep.subr.bf16.mxu0 %v17343_v44  ;;  %v10961_v1 = vpop.eup %10960  ;;  %v4293_v26 = vmul.f32 %v10959_v55, %v14100_v47 }
 0x57b   : > { %v4298_v7 = vpack.c.bf16 %v4292_v14, %v4291_v60  ;;  %v10963_v46 = vpop.eup %10962  ;;  %v4294_v62 = vmul.f32 %v10961_v1, %v14098_v40 }
 0x57c   : > { %v10965_v23 = vpop.eup %10964  ;;  %v4296_v47 = vmul.f32 %v10963_v46, %v14108_v0 }
 0x57d   : > { %v4299_v10 = vpack.c.bf16 %v4294_v62, %v4293_v26  ;;  %v10967_v20 = vpop.eup %10966  ;;  %v4295_v38 = vmul.f32 %v10965_v23, %v14110_v2 }
 0x57e   : > { %10209 = vmatmul.mubr.msk.bf16.vlgmr.msra.gmra.mrb[64].mxu1 %vm1181_vm2, %v3972_v19  ;;  %v10969_v61 = vpop.eup %10968  ;;  %v4615_v58 = vmul.f32 %v10967_v20, %v14118_v54 }
 0x57f   : > { %10219 = vmatpush3.bf16.msra.mxu1 %v4117_v42  ;;  %10203 = vmatmul.mubr.msk.bf16.vlgmr.msra.gmra.mrb[64].mxu0 %vm1181_vm2, %v3971_v25  ;;  %v4300_v57 = vpack.c.bf16 %v4296_v47, %v4295_v38  ;;  %v10971_v0 = vpop.eup %10970  ;;  %v4616_v2 = vmul.f32 %v10969_v61, %v14116_v12  ;;  %v17445_v25 = vld [vmem:[#allocation32_spill] sm:$0xff] }
 0x580   : > { %10213 = vmatpush3.bf16.msra.mxu0 %v4070_v27  ;;  %10220 = vmatprep.mubr.msk.bf16.mxu1 %vm11824_vm11, %v17343_v44  ;;  %v10973_v43 = vpop.eup %10972  ;;  %v4618_v54 = vmul.f32 %v10971_v0, %v14124_v18 }
 0x581   : > { %10214 = vmatprep.mubr.msk.bf16.mxu0 %vm11824_vm11, %v17343_v44  ;;  %10224 = vmatprep.subr.bf16.mxu0 %v17343_v44  ;;  %v4623_v31 = vpack.c.bf16 %v4616_v2, %v4615_v58  ;;  %v10975_v49 = vpop.eup %10974  ;;  %v4617_v53 = vmul.f32 %v10973_v43, %v14126_v34  ;;  %v17444_v34 = vld [vmem:[#allocation35_spill] sm:$0xff] }
 0x582   : > { %10230 = vmatprep.subr.bf16.mxu1 %v17343_v44  ;;  %v10977_v12 = vpop.eup %10976  ;;  %v4619_v63 = vmul.f32 %v10975_v49, %v17442_v4 }
 0x583   : > { %v4624_v3 = vpack.c.bf16 %v4618_v54, %v4617_v53  ;;  %v4620_v18 = vmul.f32 %v10977_v12, %v17443_v52 }
 0x585   : > { %v4625_v48 = vpack.c.bf16 %v4620_v18, %v4619_v63 }
 0x586   : > { %10221 = vmatmul.mubr.msk.bf16.vlgmr.msra.gmra.mrb[68].mxu1 %vm1181_vm2, %v3974_v56 }
 0x587   : > { %10215 = vmatmul.mubr.msk.bf16.vlgmr.msra.gmra.mrb[68].mxu0 %vm1181_vm2, %v3973_v35  ;;  %10232 = vmatprep.mubr.msk.bf16.mxu1 %vm11824_vm11, %v17343_v44 }
 0x588   : > { %10226 = vmatprep.mubr.msk.bf16.mxu0 %vm11824_vm11, %v17343_v44 }
 0x5b1   : > { %v4603_v32 = vpop.xlane.xlu0 %4602 }
 0x5b5   : > { %v4606_v39 = vpop.xlane.xlu1 %4605  ;;  %v4302_v28 = vpop.permute.xlu0 %4301 }
 0x5b6   : > { %10225 = vmatpush3.bf16.msra.mxu0 %v4302_v28  ;;  %10978 = vrcp.f32 %v4606_v39 }
 0x5b7   : > { %10236 = vmatprep.subr.bf16.mxu0 %v17343_v44  ;;  %10980 = vrcp.f32 %v4603_v32 }
 0x5b9   : > { %v4349_v22 = vpop.permute.xlu1 %4348  ;;  %10227 = vmatmul.mubr.msk.bf16.vlgmr.msra.gmra.mrb[72].mxu0 %vm1181_vm2, %v4297_v59  ;;  %v4628_v40 = vpop.permute.xlu0 %4627 }
 0x5ba   : > { %10231 = vmatpush3.bf16.msra.mxu1 %v4349_v22  ;;  %10238 = vmatprep.mubr.msk.bf16.mxu0 %vm11824_vm11, %v17343_v44 }
 0x5bb   : > { %10242 = vmatprep.subr.bf16.mxu1 %v17343_v44 }
 0x5bd   : > { %v4396_v8 = vpop.permute.xlu1 %4395  ;;  %10233 = vmatmul.mubr.msk.bf16.vlgmr.msra.gmra.mrb[72].mxu1 %vm1181_vm2, %v4298_v7  ;;  %v4722_v15 = vpop.permute.xlu0 %4721 }
 0x5be   : > { %10237 = vmatpush3.bf16.msra.mxu0 %v4396_v8  ;;  %10244 = vmatprep.mubr.msk.bf16.mxu1 %vm11824_vm11, %v17343_v44 }
 0x5bf   : > { %10248 = vmatprep.subr.bf16.mxu0 %v17343_v44 }
 0x5c0   : > { %v10979_v30 = vpop.eup %10978 }
 0x5c1   : > { %v4443_v51 = vpop.permute.xlu1 %4442  ;;  %10239 = vmatmul.mubr.msk.bf16.vlgmr.msra.gmra.mrb[76].mxu0 %vm1181_vm2, %v4299_v10  ;;  %v10981_v36 = vpop.eup %10980  ;;  %v4622_v19 = vmul.f32 %v10979_v30, %v17444_v34 }
 0x5c2   : > { %10243 = vmatpush3.bf16.msra.mxu1 %v4443_v51  ;;  %10249 = vmatpush3.bf16.msra.mxu0 %v4628_v40  ;;  %v4621_v9 = vmul.f32 %v10981_v36, %v17445_v25 }
 0x5c3   : > { %10254 = vmatprep.subr.bf16.mxu1 %v17343_v44  ;;  %10250 = vmatprep.mubr.msk.bf16.mxu0 %vm11824_vm11, %v17343_v44 }
 0x5c4   : > { %10260 = vmatprep.subr.bf16.mxu0 %v17343_v44  ;;  %v4626_v42 = vpack.c.bf16 %v4622_v19, %v4621_v9 }
 0x5c5   : > { %v4675_v29 = vpop.permute.xlu1 %4674  ;;  %10245 = vmatmul.mubr.msk.bf16.vlgmr.msra.gmra.mrb[76].mxu1 %vm1181_vm2, %v4300_v57 }
 0x5c6   : > { %10255 = vmatpush3.bf16.msra.mxu1 %v4675_v29  ;;  %10256 = vmatprep.mubr.msk.bf16.mxu1 %vm11824_vm11, %v17343_v44 }
 0x5c7   : > { %10266 = vmatprep.subr.bf16.mxu1 %v17343_v44 }
 0x5c9   : > { %10251 = vmatmul.mubr.msk.bf16.vlgmr.msra.gmra.mrb[80].mxu0 %vm1181_vm2, %v4623_v31  ;;  %v4769_v5 = vpop.permute.xlu1 %4768 }
 0x5ca   : > { %10261 = vmatpush3.bf16.msra.mxu0 %v4722_v15  ;;  %10262 = vmatprep.mubr.msk.bf16.mxu0 %vm11824_vm11, %v17343_v44 }
 0x5cd   : > { %10257 = vmatmul.mubr.msk.bf16.vlgmr.msra.gmra.mrb[80].mxu1 %vm1181_vm2, %v4624_v3 }
 0x5ce   : > { %10267 = vmatpush3.bf16.msra.mxu1 %v4769_v5  ;;  %10268 = vmatprep.mubr.msk.bf16.mxu1 %vm11824_vm11, %v17343_v44 }
 0x5cf   : > { %10284 = vmatprep.subr.bf16.mxu1 %v17343_v44 }
 0x5d1   : > { %10263 = vmatmul.mubr.msk.bf16.vlgmr.msra.gmra.mrb[84].mxu0 %vm1181_vm2, %v4625_v48 }
 0x5d5   : > { %10269 = vmatmul.mubr.msk.bf16.vlgmr.msra.gmra.mrb[84].mxu1 %vm1181_vm2, %v4626_v42  ;;  %v10651_v42 = vld [vmem:[%s17448_s9] sm:$0xff]  }
 0x5d6   : > { %10286 = vmatprep.mubr.msk.bf16.mxu1 %vm11824_vm11, %v17343_v44  ;;  %10272 = vmatprep.subr.bf16.mxu0 %v10651_v42 }
 0x5d7   : > { %10273 = vmatpush3.bf16.msra.mxu0 %v10651_v42  ;;  %v11442_v42 = vld [vmem:[%s12058_s0 + $0x130] sm:$0xff] }
 0x5e0   : > { %v14365_v16 = vpop.f32.mrb[44].mxu1 }
 0x5e1   : > { %v10156_v27 = vpop.f32.mrb[45].mxu1 }
 0x5e2   : > { %v14367_v24 = vpop.f32.mrb[46].mxu1 }
 0x5e3   : > { %v10157_v41 = vpop.f32.mrb[47].mxu1 }
 0x5e8   : > { %v14369_v21 = vpop.f32.mrb[48].mxu1  ;;  %v14371_v33 = vpop.f32.mrb[52].mxu0 }
 0x5e9   : > { %v10162_v6 = vpop.f32.mrb[49].mxu1  ;;  %v10168_v56 = vpop.f32.mrb[53].mxu0 }
 0x5ea   : > { %v14373_v35 = vpop.f32.mrb[50].mxu1  ;;  %v14375_v50 = vpop.f32.mrb[54].mxu0 }
 0x5eb   : > { %v10163_v32 = vpop.f32.mrb[51].mxu1  ;;  %v10169_v11 = vpop.f32.mrb[55].mxu0 }
 0x5ec   : > { %v10652_v32 = vld [vmem:[%s17448_s9 + $0x8] ss:$0 sps:$4 sm:$0x33]  }
 0x5ed   : > { %10564 = vmatprep.subr.msk.bf16.mxu0 %vm3012_vm12, %v10652_v32 }
 0x5f0   : > { %v14377_v13 = vpop.f32.mrb[52].mxu1 }
 0x5f1   : > { %v10174_v45 = vpop.f32.mrb[53].mxu1 }
 0x5f2   : > { %v14379_v37 = vpop.f32.mrb[54].mxu1 }
 0x5f3   : > { %v10175_v39 = vpop.f32.mrb[55].mxu1 }
 0x5f4   : > { %v5027_v39 = vsel %vm3012_vm12, %v10652_v32, 0 }
 0x5f5   : > { %10275 = vmatpush3.bf16.msra.mxu0 %v5027_v39  ;;  %v11445_v39 = vld [vmem:[%s12058_s0 + $0x200] sm:$0xff] }
 0x5f6   : > { %10296 = vmatprep.subr.bf16.mxu0 %v17343_v44 }
 0x641   : > { %v3734_v28 = vpop.f32.mrb[56].mxu1 }
 0x642   : > { %4827 = vrot.lane.b32.xlu0 %v3734_v28, %s17446_s20  ;;  %v3686_v17 = vpop.f32.mrb[56].mxu0  ;;  %v10186_v14 = vpop.f32.mrb[57].mxu1 }
 0x643   : > { %v10180_v59 = vpop.f32.mrb[57].mxu0  ;;  %v3737_v55 = vpop.f32.mrb[58].mxu1 }
 0x644   : > { %4829 = vrot.lane.b32.xlu1 %v3737_v55, %s17446_s20  ;;  %v3689_v60 = vpop.f32.mrb[58].mxu0  ;;  %v10187_v22 = vpop.f32.mrb[59].mxu1 }
 0x645   : > { %v10181_v1 = vpop.f32.mrb[59].mxu0 }
 0x646   : > { %4823 = vrot.lane.b32.xlu0 %v3686_v17, %s17446_s20  ;;  %v14415_v1 = vstv %s9697_s22  ;;  %s14518_s22 = sld [smem:[#allocation2 + $0x108]] }
 0x648   : > { %4825 = vrot.lane.b32.xlu1 %v3689_v60, %s17446_s20 }
 0x649   : > { %v3830_v26 = vpop.f32.mrb[60].mxu1 }
 0x64a   : > { %v10198_v7 = vpop.f32.mrb[61].mxu1  ;;  %4835 = vrot.lane.b32.xlu0 %v3830_v26, %s17446_s20  ;;  %v3782_v46 = vpop.f32.mrb[60].mxu0  ;;  %v14417_v26 = vstv %s9698_s24  ;;  %s14534_s24 = sld [smem:[#allocation2 + $0x109]] }
 0x64b   : > { %v10192_v62 = vpop.f32.mrb[61].mxu0  ;;  %v3833_v8 = vpop.f32.mrb[62].mxu1 }
 0x64c   : > { %v10199_v23 = vpop.f32.mrb[63].mxu1  ;;  %4837 = vrot.lane.b32.xlu1 %v3833_v8, %s17446_s20  ;;  %v3785_v47 = vpop.f32.mrb[62].mxu0  ;;  %v11430_v8 = vld [vmem:[%s12058_s0] sm:$0xff] }
 0x64d   : > { %v10193_v10 = vpop.f32.mrb[63].mxu0  ;;  %v5096_v23 = vmul.f32 %v11430_v8, %v14415_v1  ;;  %v14478_v8 = vstv %s14443_s23  ;;  %s14701_s23 = sld [smem:[#allocation5 + $0x102]] }
 0x64e   : > { %4831 = vrot.lane.b32.xlu0 %v3782_v46, %s17446_s20 }
 0x650   : > { %4833 = vrot.lane.b32.xlu1 %v3785_v47, %s17446_s20  ;;  %s9700_s20 = sld [smem:[#allocation2 + $0x103]]  ;;  %v11431_v47 = vld [vmem:[%s12058_s0 + $0x10] sm:$0xff] }
 0x651   : > { %v4062_v20 = vpop.f32.mrb[64].mxu1  ;;  %v5106_v10 = vmul.f32 %v11431_v47, %v14417_v26  ;;  %v11450_v47 = vld [vmem:[%s12058_s0 + $0x140] sm:$0xff] }
 0x652   : > { %v10210_v38 = vpop.f32.mrb[65].mxu1  ;;  %4859 = vrot.lane.b32.xlu0 %v4062_v20, %s17447_s21  ;;  %v4015_v40 = vpop.f32.mrb[64].mxu0 }
 0x653   : > { %v10204_v51 = vpop.f32.mrb[65].mxu0  ;;  %v4065_v61 = vpop.f32.mrb[66].mxu1  ;;  %v14425_v38 = vstv %s9699_s2  ;;  %s14584_s2 = sld [smem:[#allocation5 + $0x101]] }
 0x654   : > { %v10211_v58 = vpop.f32.mrb[67].mxu1  ;;  %4861 = vrot.lane.b32.xlu1 %v4065_v61, %s17447_s21  ;;  %v4018_v57 = vpop.f32.mrb[66].mxu0  ;;  %v11433_v61 = vld [vmem:[%s12058_s0 + $0x110] sm:$0xff] }
 0x655   : > { %v10205_v0 = vpop.f32.mrb[67].mxu0  ;;  %v5108_v58 = vmul.f32 %v11433_v61, %v14417_v26 }
 0x656   : > { %4855 = vrot.lane.b32.xlu0 %v4015_v40, %s17447_s21  ;;  %v11432_v40 = vld [vmem:[%s12058_s0 + $0x100] sm:$0xff]  ;;  %v11434_v0 = vld [vmem:[%s12058_s0 + $0x8] sm:$0xff] }
 0x657   : > { %v5098_v51 = vmul.f32 %v11432_v40, %v14415_v1  ;;  %v11451_v40 = vld [vmem:[%s12058_s0 + $0x48] sm:$0xff] }
 0x658   : > { %4857 = vrot.lane.b32.xlu1 %v4018_v57, %s17447_s21 }
 0x659   : > { %v4156_v2 = vpop.f32.mrb[68].mxu1 }
 0x65a   : > { %v10222_v29 = vpop.f32.mrb[69].mxu1  ;;  %4867 = vrot.lane.b32.xlu0 %v4156_v2, %s17447_s21  ;;  %v4109_v43 = vpop.f32.mrb[68].mxu0  ;;  %v5097_v2 = vmul.f32 %v11434_v0, %v14415_v1 }
 0x65b   : > { %v10216_v54 = vpop.f32.mrb[69].mxu0  ;;  %v4159_v31 = vpop.f32.mrb[70].mxu1  ;;  %v11435_v29 = vld [vmem:[%s12058_s0 + $0x18] sm:$0xff] }
 0x65c   : > { %v10223_v49 = vpop.f32.mrb[71].mxu1  ;;  %4869 = vrot.lane.b32.xlu1 %v4159_v31, %s17447_s21  ;;  %v4112_v53 = vpop.f32.mrb[70].mxu0  ;;  %v5114_v54 = vadd.f32 %v5106_v10, %v5096_v23  ;;  %v11436_v31 = vld [vmem:[%s12058_s0 + $0x20] sm:$0xff] }
 0x65d   : > { %v10217_v15 = vpop.f32.mrb[71].mxu0  ;;  %v5124_v49 = vmul.f32 %v11436_v31, %v14425_v38 }
 0x65e   : > { %4863 = vrot.lane.b32.xlu0 %v4109_v43, %s17447_s21  ;;  %v5107_v43 = vmul.f32 %v11435_v29, %v14417_v26  ;;  %v5116_v15 = vadd.f32 %v5108_v58, %v5098_v51  ;;  %v11452_v58 = vld [vmem:[%s12058_s0 + $0x138] sm:$0xff] }
 0x660   : > { %4865 = vrot.lane.b32.xlu1 %v4112_v53, %s17447_s21  ;;  %v14441_v53 = vstv %s9700_s20  ;;  %s14640_s20 = sld [smem:[#allocation2 + $0x10a]] }
 0x68c   : > { %v4341_v12 = vpop.f32.mrb[72].mxu0 }
 0x68d   : > { %v10228_v4 = vpop.f32.mrb[73].mxu0 }
 0x68e   : > { %v4344_v63 = vpop.f32.mrb[74].mxu0 }
 0x68f   : > { %v10229_v3 = vpop.f32.mrb[75].mxu0 }
 0x690   : > { %v4388_v30 = vpop.f32.mrb[72].mxu1  ;;  %v11438_v3 = vld [vmem:[%s12058_s0 + $0x28] sm:$0xff] }
 0x691   : > { %v10234_v52 = vpop.f32.mrb[73].mxu1  ;;  %4891 = vrot.lane.b32.xlu0 %v4388_v30, %s11831_s1  ;;  %v5125_v30 = vmul.f32 %v11438_v3, %v14425_v38  ;;  %v11457_v3 = vld [vmem:[%s12058_s0 + $0x310] sm:$0xff] }
 0x692   : > { %v4391_v18 = vpop.f32.mrb[74].mxu1  ;;  %v11439_v52 = vld [vmem:[%s12058_s0 + $0x108] sm:$0xff] }
 0x693   : > { %v10235_v5 = vpop.f32.mrb[75].mxu1  ;;  %4893 = vrot.lane.b32.xlu1 %v4391_v18, %s11831_s1  ;;  %v5099_v18 = vmul.f32 %v11439_v52, %v14415_v1 }
 0x694   : > { %v4435_v36 = vpop.f32.mrb[76].mxu0  ;;  %v11440_v5 = vld [vmem:[%s12058_s0 + $0x118] sm:$0xff] }
 0x695   : > { %4887 = vrot.lane.b32.xlu0 %v4341_v12, %s11831_s1  ;;  %v10240_v34 = vpop.f32.mrb[77].mxu0  ;;  %v11437_v12 = vld [vmem:[%s12058_s0 + $0x120] sm:$0xff] }
 0x696   : > { %v4438_v19 = vpop.f32.mrb[78].mxu0  ;;  %v5126_v4 = vmul.f32 %v11437_v12, %v14425_v38  ;;  %v5132_v34 = vadd.f32 %v5124_v49, %v5114_v54  ;;  %v11454_v54 = vld [vmem:[%s12058_s0 + $0x228] sm:$0xff] }
 0x697   : > { %4889 = vrot.lane.b32.xlu1 %v4344_v63, %s11831_s1  ;;  %v10241_v48 = vpop.f32.mrb[79].mxu0  ;;  %v5115_v63 = vadd.f32 %v5107_v43, %v5097_v2  ;;  %v11453_v2 = vld [vmem:[%s12058_s0 + $0x220] sm:$0xff]  ;;  %v5129_v31 = vmul.f32 %v11454_v54, %v14425_v38 }
 0x698   : > { %v4482_v25 = vpop.f32.mrb[76].mxu1  ;;  %v5128_v29 = vmul.f32 %v11453_v2, %v14425_v38  ;;  %v11470_v2 = vld [vmem:[%s12058_s0 + $0x330] sm:$0xff] }
 0x699   : > { %v10246_v9 = vpop.f32.mrb[77].mxu1  ;;  %4895 = vrot.lane.b32.xlu0 %v4435_v36, %s11831_s1  ;;  %v5109_v36 = vmul.f32 %v11440_v5, %v14417_v26 }
 0x69a   : > { %v4485_v27 = vpop.f32.mrb[78].mxu1  ;;  %v5134_v9 = vadd.f32 %v5126_v4, %v5116_v15  ;;  %v11455_v15 = vld [vmem:[%s12058_s0 + $0x50] sm:$0xff]  ;;  %v11456_v4 = vld [vmem:[%s12058_s0 + $0x300] sm:$0xff] }
 0x69b   : > { %v10247_v41 = vpop.f32.mrb[79].mxu1  ;;  %4897 = vrot.lane.b32.xlu1 %v4438_v19, %s11831_s1  ;;  %v11441_v19 = vld [vmem:[%s12058_s0 + $0x30] sm:$0xff]  ;;  %v5117_v32 = vadd.f32 %v5109_v36, %v5099_v18  ;;  %v5178_v12 = vmul.f32 %v11455_v15, %v14478_v8  ;;  %v11459_v36 = vld [vmem:[%s12058_s0 + $0x308] sm:$0xff]  ;;  %v14540_v15 = vstv %s14504_s25  ;;  %s14751_s25 = sld [smem:[#allocation2 + $0x10d]] }
 0x69c   : > { %v4667_v6 = vpop.f32.mrb[80].mxu0  ;;  %v5142_v48 = vmul.f32 %v11441_v19, %v14441_v53  ;;  %v5133_v41 = vadd.f32 %v5125_v30, %v5115_v63  ;;  %v5102_v63 = vmul.f32 %v11456_v4, %v14415_v1  ;;  %v5112_v30 = vmul.f32 %v11457_v3, %v14417_v26  ;;  %v11458_v18 = vld [vmem:[%s12058_s0 + $0x150] sm:$0xff]  ;;  %v11460_v19 = vld [vmem:[%s12058_s0 + $0x318] sm:$0xff] }
 0x69d   : > { %v10252_v56 = vpop.f32.mrb[81].mxu0  ;;  %v5180_v5 = vmul.f32 %v11458_v18, %v14478_v8 }
 0x69e   : > { %v4670_v11 = vpop.f32.mrb[82].mxu0 }
 0x69f   : > { %v10253_v45 = vpop.f32.mrb[83].mxu0 }
 0x6a0   : > { %v4714_v28 = vpop.f32.mrb[80].mxu1 }
 0x6a1   : > { %v10258_v17 = vpop.f32.mrb[81].mxu1  ;;  %4923 = vrot.lane.b32.xlu0 %v4714_v28, %s17283_s27  ;;  %v5100_v28 = vmul.f32 %v11445_v39, %v14415_v1 }
 0x6a2   : > { %v4717_v14 = vpop.f32.mrb[82].mxu1  ;;  %v11446_v17 = vld [vmem:[%s12058_s0 + $0x210] sm:$0xff] }
 0x6a3   : > { %v10259_v59 = vpop.f32.mrb[83].mxu1  ;;  %4925 = vrot.lane.b32.xlu1 %v4717_v14, %s17283_s27  ;;  %v5110_v14 = vmul.f32 %v11446_v17, %v14417_v26  ;;  %v5120_v17 = vadd.f32 %v5112_v30, %v5102_v63  ;;  %v11472_v63 = vld [vmem:[%s12058_s0 + $0x250] sm:$0xff]  ;;  %v14546_v30 = vstv %s14510_s26  ;;  %s14803_s26 = sld [smem:[#allocation5 + $0x103]] }
 0x6a4   : > { %v4761_v55 = vpop.f32.mrb[84].mxu0  ;;  %v11447_v59 = vld [vmem:[%s12058_s0 + $0x208] sm:$0xff]  ;;  %v5182_v3 = vmul.f32 %v11472_v63, %v14478_v8 }
 0x6a5   : > { %4919 = vrot.lane.b32.xlu0 %v4667_v6, %s17283_s27  ;;  %v10264_v60 = vpop.f32.mrb[85].mxu0  ;;  %v11443_v6 = vld [vmem:[%s12058_s0 + $0x38] sm:$0xff]  ;;  %v5118_v0 = vadd.f32 %v5110_v14, %v5100_v28  ;;  %v11465_v14 = vld [vmem:[%s12058_s0 + $0x320] sm:$0xff] }
 0x6a6   : > { %v4764_v22 = vpop.f32.mrb[86].mxu0  ;;  %v5143_v56 = vmul.f32 %v11443_v6, %v14441_v53  ;;  %v11448_v60 = vld [vmem:[%s12058_s0 + $0x218] sm:$0xff]  ;;  %v11462_v6 = vld [vmem:[%s12058_s0 + $0x148] sm:$0xff] }
 0x6a7   : > { %4921 = vrot.lane.b32.xlu1 %v4670_v11, %s17283_s27  ;;  %v10265_v7 = vpop.f32.mrb[87].mxu0  ;;  %v11444_v11 = vld [vmem:[%s12058_s0 + $0x128] sm:$0xff] }
 0x6a8   : > { %v4808_v46 = vpop.f32.mrb[84].mxu1  ;;  %v5127_v45 = vmul.f32 %v11444_v11, %v14425_v38  ;;  %v5150_v7 = vadd.f32 %v5142_v48, %v5132_v34  ;;  %v5103_v34 = vmul.f32 %v11459_v36, %v14415_v1  ;;  %v5113_v48 = vmul.f32 %v11460_v19, %v14417_v26  ;;  %v11474_v36 = vld [vmem:[%s12058_s0 + $0x340] sm:$0xff] }
 0x6a9   : > { %v10270_v62 = vpop.f32.mrb[85].mxu1  ;;  %4899 = vrot.lane.b32.xlu0 %v4482_v25, %s11831_s1  ;;  %v14458_v25 = vstv %s14427_s3  ;;  %s14642_s3 = sld [smem:[#allocation2 + $0x10b]] }
 0x6aa   : > { %v4811_v20 = vpop.f32.mrb[86].mxu1  ;;  %v5162_v10 = vmul.f32 %v11450_v47, %v14458_v25  ;;  %v5161_v51 = vmul.f32 %v11451_v40, %v14458_v25  ;;  %v5135_v61 = vadd.f32 %v5127_v45, %v5117_v32  ;;  %v5136_v32 = vadd.f32 %v5128_v29, %v5118_v0  ;;  %v11464_v45 = vld [vmem:[%s12058_s0 + $0x238] sm:$0xff]  ;;  %v11468_v40 = vld [vmem:[%s12058_s0 + $0x240] sm:$0xff] }
 0x6ab   : > { %v10271_v57 = vpop.f32.mrb[87].mxu1  ;;  %4901 = vrot.lane.b32.xlu1 %v4485_v27, %s11831_s1  ;;  %v5144_v27 = vmul.f32 %v11442_v42, %v14441_v53  ;;  %s14480_s1 = sld [smem:[#allocation5 + $0x100]]  ;;  %v11461_v42 = vld [vmem:[%s12058_s0 + $0x58] sm:$0xff]  ;;  %v5147_v39 = vmul.f32 %v11464_v45, %v14441_v53  ;;  %v5148_v29 = vmul.f32 %v11470_v2, %v14441_v53  ;;  %v11484_v2 = vld [vmem:[%s12058_s0 + $0x160] sm:$0xff] }
 0x6ac   : > { %v5145_v57 = vmul.f32 %v11452_v58, %v14441_v53  ;;  %v11467_v47 = vld [vmem:[%s12058_s0 + $0x158] sm:$0xff]  ;;  %v11469_v58 = vld [vmem:[%s12058_s0 + $0x248] sm:$0xff] }
 0x6ad   : > { %4927 = vrot.lane.b32.xlu0 %v4761_v55, %s17283_s27  ;;  %v5101_v55 = vmul.f32 %v11447_v59, %v14415_v1  ;;  %v5152_v23 = vadd.f32 %v5144_v27, %v5134_v9  ;;  %v5179_v27 = vmul.f32 %v11461_v42, %v14478_v8  ;;  %v11463_v1 = vld [vmem:[%s12058_s0 + $0x230] sm:$0xff]  ;;  %v5130_v59 = vmul.f32 %v11465_v14, %v14425_v38  ;;  %v11476_v42 = vld [vmem:[%s12058_s0 + $0x60] sm:$0xff]  ;;  %v17451_v14 = vld [vmem:[#allocation20_spill] sm:$0xff] }
 0x6ae   : > { %v5146_v11 = vmul.f32 %v11463_v1, %v14441_v53  ;;  %v11478_v1 = vld [vmem:[%s12058_s0 + $0x68] sm:$0xff] }
 0x6af   : > { %4929 = vrot.lane.b32.xlu1 %v4764_v22, %s17283_s27  ;;  %v5111_v22 = vmul.f32 %v11448_v60, %v14417_v26  ;;  %v5170_v52 = vadd.f32 %v5162_v10, %v5152_v23  ;;  %v5181_v10 = vmul.f32 %v11467_v47, %v14478_v8 }
 0x6b1   : > { %4931 = vrot.lane.b32.xlu0 %v4808_v46, %s17283_s27  ;;  %v11449_v46 = vld [vmem:[%s12058_s0 + $0x40] sm:$0xff]  ;;  %v5119_v43 = vadd.f32 %v5111_v22, %v5101_v55  ;;  %v14521_v55 = vstv %s14480_s1  ;;  %v5188_v60 = vadd.f32 %v5180_v5, %v5170_v52  ;;  %v5121_v22 = vadd.f32 %v5113_v48, %v5103_v34  ;;  %v11473_v5 = vld [vmem:[%s12058_s0 + $0x258] sm:$0xff]  ;;  %s14749_s1 = sld [smem:[#allocation2 + $0x10c]] }
 0x6b2   : > { %v5160_v62 = vmul.f32 %v11449_v46, %v14458_v25  ;;  %v5166_v34 = vmul.f32 %v11474_v36, %v14458_v25  ;;  %v11475_v48 = vld [vmem:[%s12058_s0 + $0x348] sm:$0xff] }
 0x6b3   : > { %4933 = vrot.lane.b32.xlu1 %v4811_v20, %s17283_s27  ;;  %v5151_v20 = vadd.f32 %v5143_v56, %v5133_v41  ;;  %v5153_v41 = vadd.f32 %v5145_v57, %v5135_v61  ;;  %v5163_v56 = vmul.f32 %v11462_v6, %v14458_v25  ;;  %v5137_v26 = vadd.f32 %v5129_v31, %v5119_v43  ;;  %v11471_v31 = vld [vmem:[%s12058_s0 + $0x338] sm:$0xff] }
 0x6b4   : > { %v5168_v49 = vadd.f32 %v5160_v62, %v5150_v7  ;;  %v11466_v7 = vld [vmem:[%s12058_s0 + $0x328] sm:$0xff]  ;;  %v5165_v57 = vmul.f32 %v11469_v58, %v14458_v25  ;;  %v5198_v43 = vadd.f32 %v14521_v55, %v5188_v60 }
 0x6b5   : > { %v5169_v9 = vadd.f32 %v5161_v51, %v5151_v20  ;;  %v5131_v46 = vmul.f32 %v11466_v7, %v14425_v38  ;;  %v5171_v23 = vadd.f32 %v5163_v56, %v5153_v41  ;;  %v5154_v20 = vadd.f32 %v5146_v11, %v5136_v32  ;;  %v11477_v56 = vld [vmem:[%s12058_s0 + $0x70] sm:$0xff] }
 0x6b6   : > { %v5186_v28 = vadd.f32 %v5178_v12, %v5168_v49  ;;  %v5164_v51 = vmul.f32 %v11468_v40, %v14458_v25  ;;  %v5155_v61 = vadd.f32 %v5147_v39, %v5137_v26  ;;  %v5138_v38 = vadd.f32 %v5130_v59, %v5120_v17  ;;  %v11479_v26 = vld [vmem:[%s12058_s0 + $0x78] sm:$0xff]  ;;  %v11480_v7 = vld [vmem:[%s12058_s0 + $0x350] sm:$0xff] }
 0x6b7   : > { %v5187_v62 = vadd.f32 %v5179_v27, %v5169_v9  ;;  %v5139_v54 = vadd.f32 %v5131_v46, %v5121_v22  ;;  %v5149_v49 = vmul.f32 %v11471_v31, %v14441_v53  ;;  %v5189_v4 = vadd.f32 %v5181_v10, %v5171_v23 }
 0x6b8   : > { %v5196_v0 = vadd.f32 %v14521_v55, %v5186_v28  ;;  %v5172_v52 = vadd.f32 %v5164_v51, %v5154_v20  ;;  %v5173_v18 = vadd.f32 %v5165_v57, %v5155_v61  ;;  %v5183_v53 = vmul.f32 %v11473_v5, %v14478_v8  ;;  %v17450_v28 = vld [vmem:[#allocation23_spill] sm:$0xff] }
 0x6b9   : > { %v5197_v12 = vadd.f32 %v14521_v55, %v5187_v62  ;;  %v5156_v19 = vadd.f32 %v5148_v29, %v5138_v38  ;;  %v5167_v9 = vmul.f32 %v11475_v48, %v14458_v25  ;;  %v5486_v27 = vmul.f32 %v11476_v42, %v14540_v15  ;;  %v17449_v25 = vld [vmem:[#allocation21_spill] sm:$0xff]  ;;  %v11481_v62 = vld [vmem:[%s12058_s0 + $0x358] sm:$0xff]  ;;  %v11482_v20 = vld [vmem:[%s12058_s0 + $0x80] sm:$0xff] }
 0x6ba   : > { %v14557_v41 = vstv %s14518_s22  ;;  %v5157_v6 = vadd.f32 %v5149_v49, %v5139_v54  ;;  %v5496_v32 = vmul.f32 %v11477_v56, %v14546_v30  ;;  %v5487_v11 = vmul.f32 %v11478_v1, %v14540_v15  ;;  %v11485_v29 = vld [vmem:[%s12058_s0 + $0x170] sm:$0xff]  ;;  %v11486_v54 = vld [vmem:[%s12058_s0 + $0x168] sm:$0xff]  ;;  %v11487_v49 = vld [vmem:[%s12058_s0 + $0x178] sm:$0xff]  ;;  %s14854_s22 = sld [smem:[#allocation2 + $0x10e]] }
 0x6bb   : > { %v5497_v45 = vmul.f32 %v11479_v26, %v14546_v30  ;;  %v14566_v39 = vadd.f32 %v5196_v0, %v17449_v25  ;;  %v14569_v17 = vadd.f32 %v5198_v43, %v17450_v28  ;;  %v14572_v59 = vadd.f32 %v5197_v12, %v17451_v14  ;;  %v11483_v0 = vld [vmem:[%s12058_s0 + $0x88] sm:$0xff]  ;;  %v11489_v42 = vld [vmem:[%s12058_s0 + $0x98] sm:$0xff] }
 0x6bc   : > { %v5199_v60 = vadd.f32 %v14521_v55, %v5189_v4  ;;  %v5190_v22 = vadd.f32 %v5182_v3, %v5172_v52  ;;  %v5184_v46 = vmul.f32 %v11480_v7, %v14478_v8  ;;  %v5185_v23 = vmul.f32 %v11481_v62, %v14478_v8  ;;  %v17453_v3 = vld [vmem:[#allocation22_spill] sm:$0xff]  ;;  %v11491_v26 = vld [vmem:[%s12058_s0 + $0x188] sm:$0xff] }
 0x6bd   : > { %17452 = vst [vmem:[#allocation40_spill] sm:$0xff] %v14572_v59  ;;  %v5191_v47 = vadd.f32 %v5183_v53, %v5173_v18  ;;  %v5174_v10 = vadd.f32 %v5166_v34, %v5156_v19  ;;  %v5514_v40 = vmul.f32 %v11482_v20, %v14557_v41  ;;  %v14582_v51 = vstv %s14534_s24  ;;  %v11488_v34 = vld [vmem:[%s12058_s0 + $0x90] sm:$0xff]  ;;  %s14856_s24 = sld [smem:[#allocation2 + $0x10f]] }
 0x6be   : > { %v5175_v61 = vadd.f32 %v5167_v9, %v5157_v6  ;;  %v5504_v58 = vadd.f32 %v5496_v32, %v5486_v27  ;;  %v5505_v57 = vadd.f32 %v5497_v45, %v5487_v11  ;;  %v5515_v38 = vmul.f32 %v11483_v0, %v14557_v41  ;;  %v11490_v6 = vld [vmem:[%s12058_s0 + $0x180] sm:$0xff] }
 0x6bf   : > { %v5488_v8 = vmul.f32 %v11484_v2, %v14540_v15  ;;  %v5498_v43 = vmul.f32 %v11485_v29, %v14546_v30  ;;  %v5489_v31 = vmul.f32 %v11486_v54, %v14540_v15  ;;  %v5499_v12 = vmul.f32 %v11487_v49, %v14546_v30  ;;  %v11496_v29 = vld [vmem:[%s12058_s0 + $0x190] sm:$0xff] }
 0x6c0   : > { %v5212_v4 = vsel %vm1181_vm2, %v14566_v39, -inf  ;;  %v5218_v63 = vsel %vm1181_vm2, %v14569_v17, -inf  ;;  %v14601_v52 = vadd.f32 %v5199_v60, %v17453_v3  ;;  %v5200_v18 = vadd.f32 %v14521_v55, %v5190_v22  ;;  %v17455_v22 = vld [vmem:[#allocation25_spill] sm:$0xff] }
 0x6c1   : > { %v5215_v5 = vsel %vm1181_vm2, %v14572_v59, -inf  ;;  %v5201_v53 = vadd.f32 %v14521_v55, %v5191_v47  ;;  %v5192_v36 = vadd.f32 %v5184_v46, %v5174_v10  ;;  %v5532_v19 = vmul.f32 %v11488_v34, %v14582_v51  ;;  %v11492_v46 = vld [vmem:[%s12058_s0 + $0x268] sm:$0xff] }
 0x6c2   : > { %17454 = vst [vmem:[#allocation36_spill] sm:$0xff] %v14601_v52  ;;  %v5193_v48 = vadd.f32 %v5185_v23, %v5175_v61  ;;  %v5522_v9 = vadd.f32 %v5514_v40, %v5504_v58  ;;  %v5533_v27 = vmul.f32 %v11489_v42, %v14582_v51  ;;  %v5516_v56 = vmul.f32 %v11490_v6, %v14557_v41  ;;  %v11493_v23 = vld [vmem:[%s12058_s0 + $0x278] sm:$0xff]  ;;  %v17457_v10 = vld [vmem:[#allocation24_spill] sm:$0xff]  ;;  %v11494_v61 = vld [vmem:[%s12058_s0 + $0x260] sm:$0xff] }
 0x6c3   : > { %v5523_v32 = vadd.f32 %v5515_v38, %v5505_v57  ;;  %v5506_v1 = vadd.f32 %v5498_v43, %v5488_v8  ;;  %v5507_v11 = vadd.f32 %v5499_v12, %v5489_v31  ;;  %v5517_v45 = vmul.f32 %v11491_v26, %v14557_v41  ;;  %v11495_v57 = vld [vmem:[%s12058_s0 + $0x270] sm:$0xff]  ;;  %v11497_v12 = vld [vmem:[%s12058_s0 + $0x198] sm:$0xff] }
 0x6c4   : > { %v5221_v60 = vsel %vm1181_vm2, %v14601_v52, -inf  ;;  %v14618_v7 = vadd.f32 %v5200_v18, %v17455_v22  ;;  %v5491_v62 = vmul.f32 %v11492_v46, %v14540_v15  ;;  %v5501_v47 = vmul.f32 %v11493_v23, %v14546_v30  ;;  %v11498_v18 = vld [vmem:[%s12058_s0 + $0x288] sm:$0xff]  ;;  %v14666_v23 = vpop.permute.xlu1 %4829 }
 0x6c5   : > { %v14625_v20 = vadd.f32 %v5201_v53, %v17457_v10  ;;  %v14628_v40 = vstv %s14584_s2  ;;  %v5490_v58 = vmul.f32 %v11494_v61, %v14540_v15  ;;  %v5500_v0 = vmul.f32 %v11495_v57, %v14546_v30  ;;  %s14907_s2 = sld [smem:[#allocation5 + $0x104]] }
 0x6c6   : > { %17456 = vst [vmem:[#allocation34_spill] sm:$0xff] %v14618_v7  ;;  %v5202_v38 = vadd.f32 %v14521_v55, %v5192_v36  ;;  %v5203_v2 = vadd.f32 %v14521_v55, %v5193_v48  ;;  %v5540_v8 = vadd.f32 %v5532_v19, %v5522_v9  ;;  %v5534_v43 = vmul.f32 %v11496_v29, %v14582_v51  ;;  %v11499_v36 = vld [vmem:[%s12058_s0 + $0x368] sm:$0xff]  ;;  %v11500_v19 = vld [vmem:[%s12058_s0 + $0x378] sm:$0xff]  ;;  %v14650_v9 = vpop.permute.xlu0 %4827 }
 0x6c7   : > { %17458 = vst [vmem:[#allocation29_spill] sm:$0xff] %v14625_v20  ;;  %v5541_v54 = vadd.f32 %v5533_v27, %v5523_v32  ;;  %v5524_v31 = vadd.f32 %v5516_v56, %v5506_v1  ;;  %v5525_v49 = vadd.f32 %v5517_v45, %v5507_v11  ;;  %v5509_v55 = vadd.f32 %v5501_v47, %v5491_v62  ;;  %v11501_v27 = vld [vmem:[%s12058_s0 + $0x280] sm:$0xff]  ;;  %v11503_v32 = vld [vmem:[%s12058_s0 + $0x370] sm:$0xff] }
 0x6c8   : > { %v5519_v53 = vmul.f32 %v11498_v18, %v14557_v41  ;;  %v5493_v34 = vmul.f32 %v11499_v36, %v14540_v15  ;;  %v5503_v48 = vmul.f32 %v11500_v19, %v14546_v30  ;;  %v5508_v42 = vadd.f32 %v5500_v0, %v5490_v58  ;;  %v11502_v56 = vld [vmem:[%s12058_s0 + $0x360] sm:$0xff]  ;;  %v11504_v0 = vld [vmem:[%s12058_s0 + $0x298] sm:$0xff]  ;;  %v11506_v18 = vld [vmem:[%s12058_s0 + $0x290] sm:$0xff] }
 0x6c9   : > { %v5518_v6 = vmul.f32 %v11501_v27, %v14557_v41  ;;  %v5502_v1 = vmul.f32 %v11503_v32, %v14546_v30  ;;  %v5224_v11 = vsel %vm1181_vm2, %v14618_v7, -inf  ;;  %v5227_v26 = vsel %vm1181_vm2, %v14625_v20, -inf  ;;  %v17459_v45 = vld [vmem:[#allocation27_spill] sm:$0xff]  ;;  %v11551_v20 = vld [vmem:[%s12058_s0 + $0x2f8] sm:$0xff] }
 0x6ca   : > { %v14663_v46 = vadd.f32 %v5202_v38, %v17459_v45  ;;  %v5550_v62 = vadd.f32 %v14628_v40, %v5540_v8  ;;  %v5551_v30 = vadd.f32 %v14628_v40, %v5541_v54  ;;  %v5542_v61 = vadd.f32 %v5534_v43, %v5524_v31  ;;  %v11505_v8 = vld [vmem:[%s12058_s0 + $0x388] sm:$0xff]  ;;  %v11507_v54 = vld [vmem:[%s12058_s0 + $0x380] sm:$0xff] }
 0x6cb   : > { %v5527_v57 = vadd.f32 %v5519_v53, %v5509_v55  ;;  %v5537_v38 = vmul.f32 %v11504_v0, %v14582_v51  ;;  %v5511_v29 = vadd.f32 %v5503_v48, %v5493_v34  ;;  %v5520_v43 = vmul.f32 %v11507_v54, %v14557_v41 }
 0x6cc   : > { %17460 = vst [vmem:[#allocation37_spill] sm:$0xff] %v14663_v46  ;;  %v14683_v31 = vadd.f32 %v5550_v62, %v17449_v25  ;;  %v14690_v55 = vadd.f32 %v5551_v30, %v17451_v14  ;;  %v14693_v53 = vstv %s14640_s20  ;;  %v11511_v30 = vld [vmem:[%s12058_s0 + $0xb0] sm:$0xff]  ;;  %s9749_s20 = sld [smem:[#allocation2 + $0x183]] }
 0x6cd   : > { %v5545_v19 = vadd.f32 %v5537_v38, %v5527_v57  ;;  %v11512_v57 = vld [vmem:[%s12058_s0 + $0xa8] sm:$0xff]  ;;  %v11513_v38 = vld [vmem:[%s12058_s0 + $0xb8] sm:$0xff] }
 0x6ce   : > { %17463 = vst [vmem:[#allocation28_spill] sm:$0xff] %v14683_v31  ;;  %17464 = vst [vmem:[#allocation41_spill] sm:$0xff] %v14690_v55  ;;  %v5853_v0 = vmul.f32 %v11512_v57, %v14693_v53 }
 0x6d0   : > { %5213 = vmax.xlane.f32.xlu0 %v5212_v4  ;;  %v5535_v4 = vmul.f32 %v11497_v12, %v14582_v51  ;;  %v5521_v12 = vmul.f32 %v11505_v8, %v14557_v41  ;;  %v14696_v41 = vstv %s14642_s3  ;;  %v5555_v8 = vadd.f32 %v14628_v40, %v5545_v19  ;;  %s15622_s3 = sld [smem:[#allocation2 + $0x184]] }
 0x6d2   : > { %v5543_v58 = vadd.f32 %v5535_v4, %v5525_v49  ;;  %v14685_v49 = vpop.permute.xlu0 %4823  ;;  %v5529_v48 = vadd.f32 %v5521_v12, %v5511_v29  ;;  %v5863_v29 = vmul.f32 %v11513_v38, %v14696_v41 }
 0x6d4   : > { %5219 = vmax.xlane.f32.xlu0 %v5218_v63  ;;  %v5492_v63 = vmul.f32 %v11502_v56, %v14540_v15  ;;  %v17461_v15 = vld [vmem:[#allocation26_spill] sm:$0xff]  ;;  %v5553_v34 = vadd.f32 %v14628_v40, %v5543_v58  ;;  %v5552_v56 = vadd.f32 %v14628_v40, %v5542_v61  ;;  %v5862_v58 = vmul.f32 %v11511_v30, %v14696_v41 }
 0x6d5   : > { %v14669_v47 = vadd.f32 %v5203_v2, %v17461_v15  ;;  %v5536_v2 = vmul.f32 %v11506_v18, %v14582_v51  ;;  %v5569_v61 = vsel %vm1181_vm2, %v14690_v55, -inf  ;;  %v5566_v18 = vsel %vm1181_vm2, %v14683_v31, -inf }
 0x6d6   : > { %v5510_v36 = vadd.f32 %v5502_v1, %v5492_v63  ;;  %v11509_v1 = vld [vmem:[%s12058_s0 + $0x390] sm:$0xff]  ;;  %v5871_v19 = vadd.f32 %v5863_v29, %v5853_v0  ;;  %v14905_v55 = vstv %s14856_s24  ;;  %s11836_s24 = smov 32  }
 0x6d7   : > { %5216 = vmax.xlane.f32.xlu1 %v5215_v5  ;;  %17462 = vst [vmem:[#allocation30_spill] sm:$0xff] %v14669_v47  ;;  %v5526_v5 = vadd.f32 %v5518_v6, %v5508_v42  ;;  %v5233_v4 = vsel %vm1181_vm2, %v14669_v47, -inf  ;;  %v11508_v42 = vld [vmem:[%s12058_s0 + $0x398] sm:$0xff]  ;;  %v14703_v6 = vpop.permute.xlu1 %4825  ;;  %v11549_v47 = vld [vmem:[%s12058_s0 + $0x1f0] sm:$0xff]  ;;  %v6519_v52 = vmul.f32 %v11551_v20, %v14905_v55 }
 0x6d8   : > { %5222 = vmax.xlane.f32.xlu0 %v5221_v60  ;;  %v5230_v60 = vsel %vm1181_vm2, %v14663_v46, -inf  ;;  %v5539_v27 = vmul.f32 %v11508_v42, %v14582_v51  ;;  %v5528_v32 = vadd.f32 %v5520_v43, %v5510_v36 }
 0x6d9   : > { %v5544_v63 = vadd.f32 %v5536_v2, %v5526_v5  ;;  %v14722_v5 = vpop.permute.xlu0 %4835  ;;  %v14727_v2 = vadd.f32 %v5552_v56, %v17450_v28  ;;  %v11517_v56 = vld [vmem:[%s12058_s0 + $0x1b8] sm:$0xff] }
 0x6da   : > { %v5547_v12 = vadd.f32 %v5539_v27, %v5529_v48  ;;  %v11515_v48 = vld [vmem:[%s12058_s0 + $0x1b0] sm:$0xff]  ;;  %v11516_v27 = vld [vmem:[%s12058_s0 + $0x1a8] sm:$0xff] }
 0x6db   : > { %5228 = vmax.xlane.f32.xlu1 %v5227_v26  ;;  %v11510_v26 = vld [vmem:[%s12058_s0 + $0xa0] sm:$0xff]  ;;  %17466 = vst [vmem:[#allocation42_spill] sm:$0xff] %v14727_v2  ;;  %v5554_v36 = vadd.f32 %v14628_v40, %v5544_v63  ;;  %v5864_v42 = vmul.f32 %v11515_v48, %v14696_v41  ;;  %v5572_v30 = vsel %vm1181_vm2, %v14727_v2, -inf }
 0x6dc   : > { %5225 = vmax.xlane.f32.xlu0 %v5224_v11  ;;  %v5538_v11 = vmul.f32 %v11509_v1, %v14582_v51  ;;  %v5852_v62 = vmul.f32 %v11510_v26, %v14693_v53  ;;  %v14719_v51 = vadd.f32 %v5553_v34, %v17453_v3  ;;  %v14732_v34 = vpop.permute.xlu1 %4837  ;;  %v5855_v1 = vmul.f32 %v11516_v27, %v14693_v53  ;;  %v11520_v48 = vld [vmem:[%s12058_s0 + $0x2a0] sm:$0xff]  ;;  %v11521_v27 = vld [vmem:[%s12058_s0 + $0x2b0] sm:$0xff] }
 0x6dd   : > { %v5865_v26 = vmul.f32 %v11517_v56, %v14696_v41  ;;  %v14759_v0 = vpop.permute.xlu0 %4831  ;;  %v11522_v56 = vld [vmem:[%s12058_s0 + $0x3a8] sm:$0xff] }
 0x6de   : > { %17465 = vst [vmem:[#allocation31_spill] sm:$0xff] %v14719_v51  ;;  %v5546_v54 = vadd.f32 %v5538_v11, %v5528_v32  ;;  %v5870_v43 = vadd.f32 %v5862_v58, %v5852_v62  ;;  %v5575_v63 = vsel %vm1181_vm2, %v14719_v51, -inf  ;;  %v14743_v32 = vadd.f32 %v5555_v8, %v17457_v10  ;;  %v11534_v51 = vld [vmem:[%s12058_s0 + $0x2c0] sm:$0xff] }
 0x6df   : > { %5234 = vmax.xlane.f32.xlu1 %v5233_v4  ;;  %v5557_v11 = vadd.f32 %v14628_v40, %v5547_v12  ;;  %v14747_v62 = vstv %s14701_s23  ;;  %v14756_v58 = vadd.f32 %v5554_v36, %v17455_v22  ;;  %v5873_v8 = vadd.f32 %v5865_v26, %v5855_v1  ;;  %s11833_s23 = smov 104  }
 0x6e0   : > { %5231 = vmax.xlane.f32.xlu0 %v5230_v60  ;;  %v11514_v60 = vld [vmem:[%s12058_s0 + $0x1a0] sm:$0xff]  ;;  %17467 = vst [vmem:[#allocation38_spill] sm:$0xff] %v14743_v32  ;;  %v5556_v57 = vadd.f32 %v14628_v40, %v5546_v54  ;;  %v5880_v38 = vadd.f32 %v14747_v62, %v5870_v43  ;;  %v5881_v29 = vadd.f32 %v14747_v62, %v5871_v19  ;;  %v5581_v12 = vsel %vm1181_vm2, %v14743_v32, -inf  ;;  %v11518_v40 = vld [vmem:[%s12058_s0 + $0x2a8] sm:$0xff]  ;;  %v11519_v54 = vld [vmem:[%s12058_s0 + $0x2b8] sm:$0xff] }
 0x6e1   : > { %v5854_v4 = vmul.f32 %v11514_v60, %v14693_v53  ;;  %17468 = vst [vmem:[#allocation44_spill] sm:$0xff] %v14756_v58  ;;  %v5857_v36 = vmul.f32 %v11518_v40, %v14693_v53  ;;  %v5867_v43 = vmul.f32 %v11519_v54, %v14696_v41  ;;  %v14772_v60 = vpop.permute.xlu1 %4833  ;;  %v5866_v1 = vmul.f32 %v11521_v27, %v14696_v41  ;;  %v11526_v32 = vld [vmem:[%s12058_s0 + $0xc8] sm:$0xff] }
 0x6e2   : > { %v14777_v19 = vadd.f32 %v5556_v57, %v17459_v45  ;;  %v5859_v26 = vmul.f32 %v11522_v56, %v14693_v53  ;;  %v14791_v57 = vadd.f32 %v5881_v29, %v17451_v14  ;;  %v5883_v54 = vadd.f32 %v14747_v62, %v5873_v8  ;;  %v11524_v8 = vld [vmem:[%s12058_s0 + $0x3a0] sm:$0xff] }
 0x6e3   : > { %5570 = vmax.xlane.f32.xlu1 %v5569_v61  ;;  %v5872_v61 = vadd.f32 %v5864_v42, %v5854_v4  ;;  %v5578_v4 = vsel %vm1181_vm2, %v14756_v58, -inf  ;;  %v5856_v42 = vmul.f32 %v11520_v48, %v14693_v53  ;;  %v5875_v27 = vadd.f32 %v5867_v43, %v5857_v36 }
 0x6e4   : > { %5567 = vmax.xlane.f32.xlu0 %v5566_v18  ;;  %v14766_v18 = vadd.f32 %v5557_v11, %v17461_v15  ;;  %17470 = vst [vmem:[#allocation46_spill] sm:$0xff] %v14777_v19  ;;  %17472 = vst [vmem:[#allocation48_spill] sm:$0xff] %v14791_v57  ;;  %v14798_v56 = vstv %s14749_s1  ;;  %v5584_v29 = vsel %vm1181_vm2, %v14777_v19, -inf  ;;  %v14816_v58 = vadd.f32 %v5883_v54, %v17453_v3  ;;  %v11527_v19 = vld [vmem:[%s12058_s0 + $0xd8] sm:$0xff]  ;;  %v11528_v54 = vld [vmem:[%s12058_s0 + $0xc0] sm:$0xff]  ;;  %s11834_s1 = smov 96  }
 0x6e5   : > { %v5882_v40 = vadd.f32 %v14747_v62, %v5872_v61  ;;  %v5874_v61 = vadd.f32 %v5866_v1, %v5856_v42  ;;  %v14813_v43 = vpop.permute.xlu1 %4861  ;;  %v6179_v2 = vmul.f32 %v11526_v32, %v14798_v56  ;;  %v6182_v31 = vmul.f32 %v11534_v51, %v14798_v56 }
 0x6e6   : > { %17469 = vst [vmem:[#allocation43_spill] sm:$0xff] %v14766_v18  ;;  %v5587_v48 = vsel %vm1181_vm2, %v14766_v18, -inf  ;;  %17473 = vst [vmem:[#allocation47_spill] sm:$0xff] %v14816_v58 }
 0x6e7   : > { %5576 = vmax.xlane.f32.xlu1 %v5575_v63  ;;  %v11523_v63 = vld [vmem:[%s12058_s0 + $0x3b8] sm:$0xff]  ;;  %v14827_v1 = vadd.f32 %v5882_v40, %v17450_v28  ;;  %v5905_v40 = vsel %vm1181_vm2, %v14816_v58, -inf }
 0x6e8   : > { %5573 = vmax.xlane.f32.xlu0 %v5572_v30  ;;  %v5869_v11 = vmul.f32 %v11523_v63, %v14696_v41  ;;  %v14788_v30 = vadd.f32 %v5880_v38, %v17449_v25  ;;  %v14805_v38 = vpop.permute.xlu0 %4859  ;;  %v11525_v63 = vld [vmem:[%s12058_s0 + $0x3b0] sm:$0xff] }
 0x6e9   : > { %v5868_v18 = vmul.f32 %v11525_v63, %v14696_v41  ;;  %v5899_v41 = vsel %vm1181_vm2, %v14791_v57, -inf  ;;  %17474 = vst [vmem:[#allocation50_spill] sm:$0xff] %v14827_v1  ;;  %v11533_v57 = vld [vmem:[%s12058_s0 + $0x1d8] sm:$0xff] }
 0x6ea   : > { %17471 = vst [vmem:[#allocation45_spill] sm:$0xff] %v14788_v30  ;;  %v5877_v36 = vadd.f32 %v5869_v11, %v5859_v26  ;;  %v5885_v26 = vadd.f32 %v14747_v62, %v5875_v27  ;;  %v5884_v11 = vadd.f32 %v14747_v62, %v5874_v61  ;;  %v11530_v61 = vld [vmem:[%s12058_s0 + $0x1c0] sm:$0xff] }
 0x6eb   : > { %5582 = vmax.xlane.f32.xlu1 %v5581_v12  ;;  %v14801_v12 = vstv %s14751_s25  ;;  %s11835_s25 = smov 24  }
 0x6ec   : > { %5579 = vmax.xlane.f32.xlu0 %v5578_v4  ;;  %v5858_v4 = vmul.f32 %v11524_v8, %v14693_v53  ;;  %v6189_v42 = vmul.f32 %v11527_v19, %v14801_v12  ;;  %v5896_v53 = vsel %vm1181_vm2, %v14788_v30, -inf  ;;  %v6178_v19 = vmul.f32 %v11528_v54, %v14798_v56  ;;  %v14836_v63 = vpop.permute.xlu0 %4855 }
 0x6ed   : > { %v5887_v8 = vadd.f32 %v14747_v62, %v5877_v36  ;;  %v14845_v54 = vadd.f32 %v5885_v26, %v17457_v10  ;;  %v11532_v36 = vld [vmem:[%s12058_s0 + $0x1c8] sm:$0xff]  ;;  %v14863_v26 = vadd.f32 %v5884_v11, %v17455_v22 }
 0x6ee   : > { %v5876_v32 = vadd.f32 %v5868_v18, %v5858_v4  ;;  %v6197_v27 = vadd.f32 %v6189_v42, %v6179_v2  ;;  %v6180_v18 = vmul.f32 %v11530_v61, %v14798_v56  ;;  %v11531_v4 = vld [vmem:[%s12058_s0 + $0x1d0] sm:$0xff]  ;;  %v6191_v2 = vmul.f32 %v11533_v57, %v14801_v12  ;;  %v14858_v42 = vpop.permute.xlu1 %4857 }
 0x6ef   : > { %5588 = vmax.xlane.f32.xlu1 %v5587_v48  ;;  %v11529_v48 = vld [vmem:[%s12058_s0 + $0xd0] sm:$0xff]  ;;  %v6190_v30 = vmul.f32 %v11531_v4, %v14801_v12  ;;  %17475 = vst [vmem:[#allocation49_spill] sm:$0xff] %v14845_v54  ;;  %17476 = vst [vmem:[#allocation52_spill] sm:$0xff] %v14863_v26  ;;  %v5908_v51 = vsel %vm1181_vm2, %v14863_v26, -inf }
 0x6f0   : > { %5585 = vmax.xlane.f32.xlu0 %v5584_v29  ;;  %v6188_v29 = vmul.f32 %v11529_v48, %v14801_v12  ;;  %v14848_v48 = vstv %s14803_s26  ;;  %v5886_v61 = vadd.f32 %v14747_v62, %v5876_v32  ;;  %v5911_v62 = vsel %vm1181_vm2, %v14845_v54, -inf  ;;  %s9746_s26 = sld [smem:[#allocation2 + $0x180]] }
 0x6f1   : > { %v6207_v57 = vadd.f32 %v14848_v48, %v6197_v27  ;;  %v6198_v58 = vadd.f32 %v6190_v30, %v6180_v18  ;;  %v14880_v30 = vpop.permute.xlu0 %4867  ;;  %v11538_v18 = vld [vmem:[%s12058_s0 + $0x3c8] sm:$0xff] }
 0x6f2   : > { %v6196_v4 = vadd.f32 %v6188_v29, %v6178_v19  ;;  %v11536_v19 = vld [vmem:[%s12058_s0 + $0x2c8] sm:$0xff]  ;;  %v14885_v27 = vadd.f32 %v5886_v61, %v17459_v45 }
 0x6f3   : > { %5900 = vmax.xlane.f32.xlu1 %v5899_v41  ;;  %v6181_v41 = vmul.f32 %v11532_v36, %v14798_v56  ;;  %v14867_v36 = vadd.f32 %v5887_v8, %v17461_v15  ;;  %v6183_v29 = vmul.f32 %v11536_v19, %v14798_v56  ;;  %v11537_v8 = vld [vmem:[%s12058_s0 + $0x2d8] sm:$0xff]  ;;  %v14892_v19 = vpop.permute.xlu1 %4869  ;;  %v14897_v61 = vadd.f32 %v6207_v57, %v17451_v14 }
 0x6f4   : > { %5897 = vmax.xlane.f32.xlu0 %v5896_v53  ;;  %v5902_v53 = vsel %vm1181_vm2, %v14827_v1, -inf  ;;  %v11535_v1 = vld [vmem:[%s12058_s0 + $0x2d0] sm:$0xff]  ;;  %17478 = vst [vmem:[#allocation54_spill] sm:$0xff] %v14885_v27  ;;  %v6208_v26 = vadd.f32 %v14848_v48, %v6198_v58  ;;  %v11540_v58 = vld [vmem:[%s12058_s0 + $0x3c0] sm:$0xff] }
 0x6f5   : > { %17477 = vst [vmem:[#allocation51_spill] sm:$0xff] %v14867_v36  ;;  %v6192_v11 = vmul.f32 %v11535_v1, %v14801_v12  ;;  %v6199_v32 = vadd.f32 %v6191_v2, %v6181_v41  ;;  %v6206_v1 = vadd.f32 %v14848_v48, %v6196_v4  ;;  %v6185_v41 = vmul.f32 %v11538_v18, %v14798_v56  ;;  %v11539_v2 = vld [vmem:[%s12058_s0 + $0x3d8] sm:$0xff] }
 0x6f6   : > { %17479 = vst [vmem:[#allocation53_spill] sm:$0xff] %v14897_v61 }
 0x6f7   : > { %5906 = vmax.xlane.f32.xlu1 %v5905_v40  ;;  %v6193_v40 = vmul.f32 %v11537_v8, %v14801_v12  ;;  %v5917_v8 = vsel %vm1181_vm2, %v14867_v36, -inf  ;;  %v6200_v4 = vadd.f32 %v6192_v11, %v6182_v31  ;;  %v6209_v18 = vadd.f32 %v14848_v48, %v6199_v32  ;;  %v11541_v11 = vld [vmem:[%s12058_s0 + $0x3d0] sm:$0xff]  ;;  %v11542_v36 = vld [vmem:[%s12058_s0 + $0xe8] sm:$0xff] }
 0x6f8   : > { %5903 = vmax.xlane.f32.xlu0 %v5902_v53  ;;  %v6195_v53 = vmul.f32 %v11539_v2, %v14801_v12  ;;  %v14902_v2 = vstv %s14854_s22  ;;  %v14912_v57 = vadd.f32 %v6206_v1, %v17449_v25  ;;  %v6184_v31 = vmul.f32 %v11540_v58, %v14798_v56  ;;  %v11543_v1 = vld [vmem:[%s12058_s0 + $0xf8] sm:$0xff]  ;;  %v11544_v58 = vld [vmem:[%s12058_s0 + $0xe0] sm:$0xff]  ;;  %s9747_s22 = sld [smem:[#allocation2 + $0x181]] }
 0x6f9   : > { %v6201_v54 = vadd.f32 %v6193_v40, %v6183_v29  ;;  %v6194_v32 = vmul.f32 %v11541_v11, %v14801_v12  ;;  %v14918_v40 = vpop.permute.xlu0 %4863  ;;  %v6515_v46 = vmul.f32 %v11543_v1, %v14905_v55  ;;  %v6225_v56 = vsel %vm1181_vm2, %v14897_v61, -inf  ;;  %v11545_v11 = vld [vmem:[%s12058_s0 + $0xf0] sm:$0xff] }
 0x6fa   : > { %17480 = vst [vmem:[#allocation55_spill] sm:$0xff] %v14912_v57  ;;  %v6203_v29 = vadd.f32 %v6195_v53, %v6185_v41  ;;  %v14930_v12 = vadd.f32 %v6209_v18, %v17453_v3  ;;  %v6210_v41 = vadd.f32 %v14848_v48, %v6200_v4  ;;  %v14934_v53 = vpop.permute.xlu1 %4865  ;;  %v6514_v1 = vmul.f32 %v11545_v11, %v14905_v55 }
 0x6fb   : > { %5912 = vmax.xlane.f32.xlu1 %v5911_v62  ;;  %v5914_v62 = vsel %vm1181_vm2, %v14885_v27, -inf  ;;  %v6505_v27 = vmul.f32 %v11542_v36, %v14902_v2  ;;  %v6222_v36 = vsel %vm1181_vm2, %v14912_v57, -inf  ;;  %v11546_v57 = vld [vmem:[%s12058_s0 + $0x1e8] sm:$0xff] }
 0x6fc   : > { %5909 = vmax.xlane.f32.xlu0 %v5908_v51  ;;  %v14921_v51 = vadd.f32 %v6208_v26, %v17450_v28  ;;  %17482 = vst [vmem:[#allocation33_spill] sm:$0xff] %v14930_v12  ;;  %v6211_v26 = vadd.f32 %v14848_v48, %v6201_v54  ;;  %v6213_v18 = vadd.f32 %v14848_v48, %v6203_v29  ;;  %v6231_v29 = vsel %vm1181_vm2, %v14930_v12, -inf }
 0x6fd   : > { %v6523_v4 = vadd.f32 %v6515_v46, %v6505_v27  ;;  %v14954_v11 = vadd.f32 %v6210_v41, %v17455_v22  ;;  %v6516_v12 = vmul.f32 %v11549_v47, %v14905_v55 }
 0x6fe   : > { %17481 = vst [vmem:[#allocation39_spill] sm:$0xff] %v14921_v51  ;;  %v6228_v54 = vsel %vm1181_vm2, %v14921_v51, -inf  ;;  %v14960_v51 = vstv %s14907_s2  ;;  %v14970_v41 = vadd.f32 %v6213_v18, %v17461_v15  ;;  %s9748_s2 = sld [smem:[#allocation2 + $0x182]] }
 0x6ff   : > { %5918 = vmax.xlane.f32.xlu1 %v5917_v8  ;;  %v6202_v8 = vadd.f32 %v6194_v32, %v6184_v31  ;;  %v6507_v31 = vmul.f32 %v11546_v57, %v14902_v2  ;;  %v11547_v32 = vld [vmem:[%s12058_s0 + $0x1f8] sm:$0xff]  ;;  %17483 = vst [vmem:[#allocation35_spill] sm:$0xff] %v14954_v11  ;;  %v6234_v20 = vsel %vm1181_vm2, %v14954_v11, -inf }
 0x700   : > { %5915 = vmax.xlane.f32.xlu0 %v5914_v62  ;;  %v6504_v62 = vmul.f32 %v11544_v58, %v14902_v2  ;;  %v6517_v58 = vmul.f32 %v11547_v32, %v14905_v55  ;;  %v11548_v32 = vld [vmem:[%s12058_s0 + $0x1e0] sm:$0xff] }
 0x701   : > { %v6212_v27 = vadd.f32 %v14848_v48, %v6202_v8  ;;  %v6533_v48 = vadd.f32 %v14960_v51, %v6523_v4 }
 0x702   : > { %v6522_v57 = vadd.f32 %v6514_v1, %v6504_v62  ;;  %v6525_v8 = vadd.f32 %v6517_v58, %v6507_v31  ;;  %v11552_v62 = vld [vmem:[%s12058_s0 + $0x2e0] sm:$0xff] }
 0x703   : > { %v14943_v61 = vpop.permute.xlu0 %4891  ;;  %6226 = vmax.xlane.f32.xlu1 %v6225_v56  ;;  %v14957_v56 = vadd.f32 %v6211_v26, %v17457_v10  ;;  %v11550_v26 = vld [vmem:[%s12058_s0 + $0x2e8] sm:$0xff]  ;;  %v6508_v1 = vmul.f32 %v11552_v62, %v14902_v2  ;;  %v14986_v4 = vadd.f32 %v6212_v27, %v17459_v45  ;;  %v14994_v62 = vadd.f32 %v6533_v48, %v17451_v14  ;;  %v11554_v27 = vld [vmem:[%s12058_s0 + $0x3e0] sm:$0xff] }
 0x704   : > { %6223 = vmax.xlane.f32.xlu0 %v6222_v36  ;;  %v6506_v36 = vmul.f32 %v11548_v32, %v14902_v2  ;;  %v6509_v7 = vmul.f32 %v11550_v26, %v14902_v2  ;;  %v11553_v32 = vld [vmem:[%s12058_s0 + $0x2f0] sm:$0xff]  ;;  %v6532_v31 = vadd.f32 %v14960_v51, %v6522_v57 }
 0x705   : > { %17484 = vst [vmem:[#allocation32_spill] sm:$0xff] %v14957_v56  ;;  %v14962_v46 = vpop.permute.xlu1 %4893  ;;  %v6518_v59 = vmul.f32 %v11553_v32, %v14905_v55  ;;  %v6237_v47 = vsel %vm1181_vm2, %v14957_v56, -inf  ;;  %v6535_v32 = vadd.f32 %v14960_v51, %v6525_v8  ;;  %v6510_v56 = vmul.f32 %v11554_v27, %v14902_v2  ;;  %v11555_v57 = vld [vmem:[%s12058_s0 + $0x3f0] sm:$0xff] }
 0x706   : > { %v6524_v58 = vadd.f32 %v6516_v12, %v6506_v36  ;;  %v6520_v12 = vmul.f32 %v11555_v57, %v14905_v55  ;;  %v11557_v36 = vld [vmem:[%s12058_s0 + $0x3f8] sm:$0xff]  ;;  %v6240_v48 = vsel %vm1181_vm2, %v14986_v4, -inf  ;;  %v15008_v14 = vadd.f32 %v6532_v31, %v17449_v25 }
 0x707   : > { %6232 = vmax.xlane.f32.xlu1 %v6231_v29  ;;  %v4888_v18 = vpop.permute.xlu0 %4887  ;;  %v6527_v29 = vadd.f32 %v6519_v52, %v6509_v7  ;;  %v6526_v11 = vadd.f32 %v6518_v59, %v6508_v1  ;;  %v11556_v52 = vld [vmem:[%s12058_s0 + $0x3e8] sm:$0xff]  ;;  %v4945_v31 = vsel %vm2926_vm13, %v14369_v21, %v14650_v9  ;;  %v4946_v21 = vsel %vm2926_vm13, %v14373_v35, %v14666_v23 }
 0x708   : > { %6229 = vmax.xlane.f32.xlu0 %v6228_v54  ;;  %v6243_v54 = vsel %vm1181_vm2, %v14970_v41, -inf  ;;  %v6511_v7 = vmul.f32 %v11556_v52, %v14902_v2  ;;  %v6534_v59 = vadd.f32 %v14960_v51, %v6524_v58  ;;  %v6528_v27 = vadd.f32 %v6520_v12, %v6510_v56  ;;  %v15035_v56 = vld [vmem:[%s17485_s8] ss:$0 sm:$0xff] }
 0x709   : > { %v14989_v26 = vpop.permute.xlu1 %4889  ;;  %v6537_v8 = vadd.f32 %v14960_v51, %v6527_v29  ;;  %v6536_v2 = vadd.f32 %v14960_v51, %v6526_v11  ;;  %v6548_v29 = vsel %vm1181_vm2, %v15008_v14, -inf  ;;  %v4953_v11 = vsel %vm981_vm10, %v4945_v31, %v14805_v38 }
 0x70a   : > { %v4961_v9 = vsel %vm2943_vm14, %v4953_v11, %v14943_v61  ;;  %v4943_v23 = vsel %vm2926_vm13, %v14365_v16, %v14685_v49  ;;  %v4944_v16 = vsel %vm2926_vm13, %v14367_v24, %v14703_v6 }
 0x70b   : > { %6238 = vmax.xlane.f32.xlu1 %v6237_v47  ;;  %v6521_v47 = vmul.f32 %v11557_v36, %v14905_v55  ;;  %v15012_v1 = vpop.permute.xlu0 %4895  ;;  %v6551_v55 = vsel %vm1181_vm2, %v14994_v62, -inf  ;;  %v15048_v52 = vadd.f32 %v6536_v2, %v17455_v22 }
 0x70c   : > { %6235 = vmax.xlane.f32.xlu0 %v6234_v20  ;;  %v15015_v20 = vadd.f32 %v6535_v32, %v17453_v3  ;;  %v15038_v32 = vadd.f32 %v6537_v8, %v17457_v10  ;;  %v4951_v8 = vsel %vm981_vm10, %v4943_v23, %v14836_v63  ;;  %v4952_v63 = vsel %vm981_vm10, %v4944_v16, %v14858_v42 }
 0x70d   : > { %v6529_v57 = vadd.f32 %v6521_v47, %v6511_v7  ;;  %v15023_v58 = vpop.permute.xlu1 %4897  ;;  %v4954_v7 = vsel %vm981_vm10, %v4946_v21, %v14813_v43  ;;  %v6538_v47 = vadd.f32 %v14960_v51, %v6528_v27  ;;  %v4959_v49 = vsel %vm2943_vm14, %v4951_v8, %v4888_v18 }
 0x70e   : > { %v6557_v38 = vsel %vm1181_vm2, %v15015_v20, -inf  ;;  %v4962_v61 = vsel %vm2943_vm14, %v4954_v7, %v14962_v46  ;;  %v6560_v27 = vsel %vm1181_vm2, %v15048_v52, -inf  ;;  %v4960_v6 = vsel %vm2943_vm14, %v4952_v63, %v14989_v26 }
 0x70f   : > { %6244 = vmax.xlane.f32.xlu1 %v6243_v54  ;;  %v15028_v54 = vadd.f32 %v6534_v59, %v17450_v28  ;;  %v6539_v35 = vadd.f32 %v14960_v51, %v6529_v57  ;;  %v6563_v51 = vsel %vm1181_vm2, %v15038_v32, -inf  ;;  %v15079_v31 = vadd.f32 %v6538_v47, %v17459_v45 }
 0x710   : > { %6241 = vmax.xlane.f32.xlu0 %v6240_v48  ;;  %v4947_v26 = vsel %vm2926_vm13, %v14371_v33, %v14759_v0 }
 0x711   : > { %v6554_v43 = vsel %vm1181_vm2, %v15028_v54, -inf  ;;  %v15082_v24 = vadd.f32 %v6539_v35, %v17461_v15  ;;  %v6566_v23 = vsel %vm1181_vm2, %v15079_v31, -inf }
 0x713   : > { %v4924_v12 = vpop.permute.xlu0 %4923  ;;  %6552 = vmax.xlane.f32.xlu1 %v6551_v55  ;;  %v6569_v7 = vsel %vm1181_vm2, %v15082_v24, -inf }
 0x714   : > { %v4969_v36 = vsel %vm1181_vm2, %v4961_v9, %v4924_v12  ;;  %6549 = vmax.xlane.f32.xlu0 %v6548_v29 }
 0x715   : > { %v4984_v48 = vadd.f32 %v15035_v56, %v4969_v36  ;;  %v4926_v59 = vpop.permute.xlu1 %4925 }
 0x716   : > { %v4970_v2 = vsel %vm1181_vm2, %v4962_v61, %v4926_v59  ;;  %v4955_v61 = vsel %vm981_vm10, %v4947_v26, %v14918_v40  ;;  %v4949_v40 = vsel %vm2926_vm13, %v14377_v13, %v14722_v5 }
 0x717   : > { %v4985_v46 = vadd.f32 %v15035_v56, %v4970_v2  ;;  %v4920_v55 = vpop.permute.xlu0 %4919  ;;  %6558 = vmax.xlane.f32.xlu1 %v6557_v38  ;;  %v4992_v18 = vmax.f32 %v4984_v48, 0.0  ;;  %v4948_v48 = vsel %vm2926_vm13, %v14375_v50, %v14772_v60  ;;  %v4963_v59 = vsel %vm2943_vm14, %v4955_v61, %v15012_v1 }
 0x718   : > { %v4967_v57 = vsel %vm1181_vm2, %v4959_v49, %v4920_v55  ;;  %6555 = vmax.xlane.f32.xlu0 %v6554_v43  ;;  %v4956_v33 = vsel %vm981_vm10, %v4948_v48, %v14934_v53  ;;  %v4957_v1 = vsel %vm981_vm10, %v4949_v40, %v14880_v30  ;;  %v17488_v48 = vld [vmem:[#allocation29_spill] sm:$0xff] }
 0x719   : > { %v4993_v29 = vmax.f32 %v4985_v46, 0.0  ;;  %v4982_v11 = vadd.f32 %v15035_v56, %v4967_v57  ;;  %v4922_v21 = vpop.permute.xlu1 %4921  ;;  %v4964_v2 = vsel %vm2943_vm14, %v4956_v33, %v15023_v58 }
 0x71a   : > { %v4968_v9 = vsel %vm1181_vm2, %v4960_v6, %v4922_v21 }
 0x71b   : > { %v4999_v42 = vpack.c.bf16 %v4993_v29, %v4992_v18  ;;  %v4983_v12 = vadd.f32 %v15035_v56, %v4968_v9  ;;  %v4900_v38 = vpop.permute.xlu0 %4899  ;;  %6564 = vmax.xlane.f32.xlu1 %v6563_v51  ;;  %v4990_v36 = vmax.f32 %v4982_v11, 0.0  ;;  %v4950_v51 = vsel %vm2926_vm13, %v14379_v37, %v14732_v34 }
 0x71c   : > { %6561 = vmax.xlane.f32.xlu0 %v6560_v27  ;;  %v4965_v13 = vsel %vm2943_vm14, %v4957_v1, %v4900_v38  ;;  %v4958_v16 = vsel %vm981_vm10, %v4950_v51, %v14892_v19  ;;  %v17486_v38 = vld [vmem:[#allocation40_spill] sm:$0xff] }
 0x71d   : > { %v4991_v47 = vmax.f32 %v4983_v12, 0.0  ;;  %v4902_v35 = vpop.permute.xlu1 %4901 }
 0x71e   : > { %v4966_v30 = vsel %vm2943_vm14, %v4958_v16, %v4902_v35 }
 0x71f   : > { %v4998_v43 = vpack.c.bf16 %v4991_v47, %v4990_v36  ;;  %v4928_v8 = vpop.permute.xlu0 %4927  ;;  %6570 = vmax.xlane.f32.xlu1 %v6569_v7  ;;  %v17487_v36 = vld [vmem:[#allocation36_spill] sm:$0xff] }
 0x720   : > { %v4971_v0 = vsel %vm1181_vm2, %v4963_v59, %v4928_v8  ;;  %6567 = vmax.xlane.f32.xlu0 %v6566_v23 }
 0x721   : > { %v4986_v50 = vadd.f32 %v15035_v56, %v4971_v0  ;;  %v4930_v60 = vpop.permute.xlu1 %4929  ;;  %10276 = vmatprep.mubr.msk.bf16.mxu0 %vm2999_vm15, %v4998_v43  ;;  %v17489_v43 = vld [vmem:[#allocation34_spill] sm:$0xff] }
 0x722   : > { %v4972_v53 = vsel %vm1181_vm2, %v4964_v2, %v4930_v60  ;;  %10277 = vmatmul.mubr.msk.bf16.vlgmr.msra.gmra.mrb[88].mxu0 %vm2999_vm15, %v4999_v42  ;;  %v17490_v2 = vld [vmem:[#allocation30_spill] sm:$0xff] }
 0x723   : > { %v4987_v5 = vadd.f32 %v15035_v56, %v4972_v53  ;;  %v4932_v58 = vpop.permute.xlu0 %4931  ;;  %v4994_v46 = vmax.f32 %v4986_v50, 0.0  ;;  %v17491_v53 = vld [vmem:[#allocation37_spill] sm:$0xff] }
 0x724   : > { %v4973_v49 = vsel %vm1181_vm2, %v4965_v13, %v4932_v58 }
 0x725   : > { %v4995_v55 = vmax.f32 %v4987_v5, 0.0  ;;  %v4988_v27 = vadd.f32 %v15035_v56, %v4973_v49  ;;  %v4934_v63 = vpop.permute.xlu1 %4933  ;;  %v17492_v49 = vld [vmem:[#allocation41_spill] sm:$0xff] }
 0x726   : > { %v4974_v57 = vsel %vm1181_vm2, %v4966_v30, %v4934_v63 }
 0x727   : > { %v5000_v37 = vpack.c.bf16 %v4995_v55, %v4994_v46  ;;  %v4989_v34 = vadd.f32 %v15035_v56, %v4974_v57  ;;  %v4996_v6 = vmax.f32 %v4988_v27, 0.0  ;;  %v17493_v27 = vld [vmem:[#allocation28_spill] sm:$0xff] }
 0x729   : > { %v4997_v18 = vmax.f32 %v4989_v34, 0.0  ;;  %10280 = vmatprep.mubr.msk.bf16.mxu0 %vm2999_vm15, %v5000_v37 }
 0x72b   : > { %v5001_v29 = vpack.c.bf16 %v4997_v18, %v4996_v6 }
 0x72d   : > { %10281 = vmatmul.mubr.msk.bf16.gmra.mrb[92].mxu0 %vm2999_vm15, %v5001_v29 }
 0x72e   : > { %10298 = vmatprep.mubr.msk.bf16.mxu0 %vm11824_vm11, %v17343_v44 }
 0x75d   : > { %v5214_v19 = vpop.xlane.xlu0 %5213 }
 0x75e   : > { %v5236_v11 = vsub.f32 %v14566_v39, %v5214_v19  ;;  %v17494_v19 = vld [vmem:[#allocation31_spill] sm:$0xff] }
 0x760   : > { %v5244_v21 = vmul.f32 1.442695, %v5236_v11 }
 0x761   : > { %v5220_v9 = vpop.xlane.xlu0 %5219 }
 0x762   : > { %10982 = vpow2.f32 %v5244_v21  ;;  %v5238_v42 = vsub.f32 %v14569_v17, %v5220_v9  ;;  %v17495_v9 = vld [vmem:[#allocation42_spill] sm:$0xff] }
 0x764   : > { %v5248_v12 = vmul.f32 1.442695, %v5238_v42  ;;  %v5217_v56 = vpop.xlane.xlu1 %5216 }
 0x765   : > { %v5237_v7 = vsub.f32 %v17486_v38, %v5217_v56  ;;  %v5223_v26 = vpop.xlane.xlu0 %5222 }
 0x766   : > { %10984 = vpow2.f32 %v5248_v12  ;;  %v5239_v47 = vsub.f32 %v17487_v36, %v5223_v26 }
 0x767   : > { %v5246_v35 = vmul.f32 1.442695, %v5237_v7 }
 0x768   : > { %v5250_v23 = vmul.f32 1.442695, %v5239_v47  ;;  %v5229_v61 = vpop.xlane.xlu1 %5228  ;;  %v17496_v47 = vld [vmem:[#allocation38_spill] sm:$0xff] }
 0x769   : > { %10986 = vpow2.f32 %v5246_v35  ;;  %v5241_v59 = vsub.f32 %v17488_v48, %v5229_v61  ;;  %v5226_v39 = vpop.xlane.xlu0 %5225  ;;  %v17497_v48 = vld [vmem:[#allocation44_spill] sm:$0xff] }
 0x76a   : > { %10988 = vpow2.f32 %v5250_v23  ;;  %v5240_v8 = vsub.f32 %v17489_v43, %v5226_v39 }
 0x76b   : > { %v5254_v33 = vmul.f32 1.442695, %v5241_v59 }
 0x76c   : > { %v15139_v17 = vpop.eup %10982  ;;  %v5252_v0 = vmul.f32 1.442695, %v5240_v8  ;;  %v5235_v40 = vpop.xlane.xlu1 %5234 }
 0x76d   : > { %10990 = vpow2.f32 %v5254_v33  ;;  %v5243_v50 = vsub.f32 %v17490_v2, %v5235_v40  ;;  %v5232_v60 = vpop.xlane.xlu0 %5231  ;;  %v5260_v1 = vsel %vm1181_vm2, %v15139_v17, 0.0  ;;  %v17498_v2 = vld [vmem:[#allocation43_spill] sm:$0xff] }
 0x76e   : > { %10992 = vpow2.f32 %v5252_v0  ;;  %v5242_v51 = vsub.f32 %v17491_v53, %v5232_v60  ;;  %5261 = vadd.xlane.f32.xlu0 %v5260_v1  ;;  %v17499_v53 = vld [vmem:[#allocation46_spill] sm:$0xff] }
 0x76f   : > { %v5258_v13 = vmul.f32 1.442695, %v5243_v50 }
 0x770   : > { %v15145_v5 = vpop.eup %10984  ;;  %v5256_v58 = vmul.f32 1.442695, %v5242_v51  ;;  %v5571_v16 = vpop.xlane.xlu1 %5570 }
 0x771   : > { %10994 = vpow2.f32 %v5258_v13  ;;  %v5591_v30 = vsub.f32 %v17492_v49, %v5571_v16  ;;  %v5568_v46 = vpop.xlane.xlu0 %5567  ;;  %v5266_v55 = vsel %vm1181_vm2, %v15145_v5, 0.0 }
 0x772   : > { %10996 = vpow2.f32 %v5256_v58  ;;  %v5590_v63 = vsub.f32 %v17493_v27, %v5568_v46  ;;  %5267 = vadd.xlane.f32.xlu0 %v5266_v55  ;;  %v17500_v55 = vld [vmem:[#allocation48_spill] sm:$0xff] }
 0x773   : > { %v15151_v57 = vpop.eup %10986  ;;  %v5600_v37 = vmul.f32 1.442695, %v5591_v30 }
 0x774   : > { %v15153_v34 = vpop.eup %10988  ;;  %v5598_v6 = vmul.f32 1.442695, %v5590_v63  ;;  %v5263_v18 = vsel %vm1181_vm2, %v15151_v57, 0.0  ;;  %v5577_v29 = vpop.xlane.xlu1 %5576 }
 0x775   : > { %10998 = vpow2.f32 %v5600_v37  ;;  %5264 = vadd.xlane.f32.xlu1 %v5263_v18  ;;  %v5593_v11 = vsub.f32 %v17494_v19, %v5577_v29  ;;  %v5574_v21 = vpop.xlane.xlu0 %5573  ;;  %v5269_v12 = vsel %vm1181_vm2, %v15153_v34, 0.0 }
 0x776   : > { %11000 = vpow2.f32 %v5598_v6  ;;  %v5592_v42 = vsub.f32 %v17495_v9, %v5574_v21  ;;  %v17501_v6 = vld [vmem:[#allocation45_spill] sm:$0xff] }
 0x777   : > { %v15161_v56 = vpop.eup %10990  ;;  %v5604_v38 = vmul.f32 1.442695, %v5593_v11 }
 0x778   : > { %v15163_v7 = vpop.eup %10992  ;;  %v5602_v26 = vmul.f32 1.442695, %v5592_v42  ;;  %v5583_v36 = vpop.xlane.xlu1 %5582  ;;  %v5275_v39 = vsel %vm1181_vm2, %v15161_v56, 0.0 }
 0x779   : > { %11002 = vpow2.f32 %v5604_v38  ;;  %v5595_v35 = vsub.f32 %v17496_v47, %v5583_v36  ;;  %5270 = vadd.xlane.f32.xlu1 %v5269_v12  ;;  %v5580_v23 = vpop.xlane.xlu0 %5579  ;;  %v5272_v61 = vsel %vm1181_vm2, %v15163_v7, 0.0  ;;  %v17502_v12 = vld [vmem:[#allocation47_spill] sm:$0xff]  ;;  %v17503_v47 = vld [vmem:[#allocation50_spill] sm:$0xff] }
 0x77a   : > { %11004 = vpow2.f32 %v5602_v26  ;;  %v5594_v59 = vsub.f32 %v17497_v48, %v5580_v23  ;;  %5273 = vadd.xlane.f32.xlu0 %v5272_v61 }
 0x77b   : > { %v15171_v43 = vpop.eup %10994  ;;  %v5608_v8 = vmul.f32 1.442695, %v5595_v35 }
 0x77c   : > { %v15173_v33 = vpop.eup %10996  ;;  %v5606_v0 = vmul.f32 1.442695, %v5594_v59  ;;  %v5589_v40 = vpop.xlane.xlu1 %5588  ;;  %v5281_v13 = vsel %vm1181_vm2, %v15171_v43, 0.0 }
 0x77d   : > { %11006 = vpow2.f32 %v5608_v8  ;;  %v5597_v50 = vsub.f32 %v17498_v2, %v5589_v40  ;;  %5276 = vadd.xlane.f32.xlu1 %v5275_v39  ;;  %v5586_v60 = vpop.xlane.xlu0 %5585  ;;  %v5278_v1 = vsel %vm1181_vm2, %v15173_v33, 0.0 }
 0x77e   : > { %11008 = vpow2.f32 %v5606_v0  ;;  %v5596_v51 = vsub.f32 %v17499_v53, %v5586_v60  ;;  %5279 = vadd.xlane.f32.xlu0 %v5278_v1  ;;  %v17504_v0 = vld [vmem:[#allocation49_spill] sm:$0xff]  ;;  %v17505_v60 = vld [vmem:[#allocation52_spill] sm:$0xff] }
 0x77f   : > { %v15181_v58 = vpop.eup %10998  ;;  %v5612_v16 = vmul.f32 1.442695, %v5597_v50 }
 0x780   : > { %v15183_v49 = vpop.eup %11000  ;;  %v5610_v30 = vmul.f32 1.442695, %v5596_v51  ;;  %v5901_v46 = vpop.xlane.xlu1 %5900  ;;  %v5617_v29 = vsel %vm1181_vm2, %v15181_v58, 0.0 }
 0x781   : > { %11010 = vpow2.f32 %v5612_v16  ;;  %v5921_v27 = vsub.f32 %v17500_v55, %v5901_v46  ;;  %5282 = vadd.xlane.f32.xlu1 %v5281_v13  ;;  %v5898_v63 = vpop.xlane.xlu0 %5897  ;;  %v5614_v37 = vsel %vm1181_vm2, %v15183_v49, 0.0  ;;  %v17506_v55 = vld [vmem:[#allocation51_spill] sm:$0xff] }
 0x782   : > { %11012 = vpow2.f32 %v5610_v30  ;;  %v5920_v18 = vsub.f32 %v17501_v6, %v5898_v63  ;;  %5615 = vadd.xlane.f32.xlu0 %v5614_v37  ;;  %v17507_v6 = vld [vmem:[#allocation54_spill] sm:$0xff] }
 0x783   : > { %v15191_v19 = vpop.eup %11002  ;;  %v5930_v11 = vmul.f32 1.442695, %v5921_v27 }
 0x784   : > { %v15193_v21 = vpop.eup %11004  ;;  %v5928_v9 = vmul.f32 1.442695, %v5920_v18  ;;  %v5907_v42 = vpop.xlane.xlu1 %5906  ;;  %v5623_v23 = vsel %vm1181_vm2, %v15191_v19, 0.0 }
 0x785   : > { %11014 = vpow2.f32 %v5930_v11  ;;  %v5923_v38 = vsub.f32 %v17502_v12, %v5907_v42  ;;  %5618 = vadd.xlane.f32.xlu1 %v5617_v29  ;;  %v5904_v26 = vpop.xlane.xlu0 %5903  ;;  %v5620_v36 = vsel %vm1181_vm2, %v15193_v21, 0.0 }
 0x786   : > { %11016 = vpow2.f32 %v5928_v9  ;;  %v5922_v35 = vsub.f32 %v17503_v47, %v5904_v26  ;;  %5621 = vadd.xlane.f32.xlu0 %v5620_v36  ;;  %v17508_v26 = vld [vmem:[#allocation53_spill] sm:$0xff] }
 0x787   : > { %v15201_v61 = vpop.eup %11006  ;;  %v5934_v48 = vmul.f32 1.442695, %v5923_v38 }
 0x788   : > { %v15203_v59 = vpop.eup %11008  ;;  %v5932_v39 = vmul.f32 1.442695, %v5922_v35  ;;  %v5913_v8 = vpop.xlane.xlu1 %5912  ;;  %v5629_v53 = vsel %vm1181_vm2, %v15201_v61, 0.0 }
 0x789   : > { %11018 = vpow2.f32 %v5934_v48  ;;  %v5925_v40 = vsub.f32 %v17504_v0, %v5913_v8  ;;  %5624 = vadd.xlane.f32.xlu1 %v5623_v23  ;;  %v5910_v2 = vpop.xlane.xlu0 %5909  ;;  %v5626_v50 = vsel %vm1181_vm2, %v15203_v59, 0.0  ;;  %v17509_v23 = vld [vmem:[#allocation55_spill] sm:$0xff] }
 0x78a   : > { %11020 = vpow2.f32 %v5932_v39  ;;  %v5924_v1 = vsub.f32 %v17505_v60, %v5910_v2  ;;  %5627 = vadd.xlane.f32.xlu0 %v5626_v50  ;;  %v17510_v60 = vld [vmem:[#allocation33_spill] sm:$0xff] }
 0x78b   : > { %v15211_v51 = vpop.eup %11010  ;;  %v5938_v13 = vmul.f32 1.442695, %v5925_v40 }
 0x78c   : > { %v15213_v16 = vpop.eup %11012  ;;  %v5936_v30 = vmul.f32 1.442695, %v5924_v1  ;;  %v5919_v46 = vpop.xlane.xlu1 %5918  ;;  %v5635_v29 = vsel %vm1181_vm2, %v15211_v51, 0.0 }
 0x78d   : > { %11022 = vpow2.f32 %v5938_v13  ;;  %v5927_v27 = vsub.f32 %v17506_v55, %v5919_v46  ;;  %5630 = vadd.xlane.f32.xlu1 %v5629_v53  ;;  %v5916_v63 = vpop.xlane.xlu0 %5915  ;;  %v5632_v37 = vsel %vm1181_vm2, %v15213_v16, 0.0 }
 0x78e   : > { %11024 = vpow2.f32 %v5936_v30  ;;  %v5926_v18 = vsub.f32 %v17507_v6, %v5916_v63  ;;  %5633 = vadd.xlane.f32.xlu0 %v5632_v37  ;;  %v17511_v30 = vld [vmem:[#allocation39_spill] sm:$0xff] }
 0x78f   : > { %v15221_v11 = vpop.eup %11014  ;;  %v5942_v9 = vmul.f32 1.442695, %v5927_v27 }
 0x790   : > { %v15223_v42 = vpop.eup %11016  ;;  %v5940_v12 = vmul.f32 1.442695, %v5926_v18  ;;  %v6227_v38 = vpop.xlane.xlu1 %6226  ;;  %v5947_v39 = vsel %vm1181_vm2, %v15221_v11, 0.0 }
 0x791   : > { %11026 = vpow2.f32 %v5942_v9  ;;  %v6247_v36 = vsub.f32 %v17508_v26, %v6227_v38  ;;  %5636 = vadd.xlane.f32.xlu1 %v5635_v29  ;;  %v6224_v47 = vpop.xlane.xlu0 %6223  ;;  %v5944_v35 = vsel %vm1181_vm2, %v15223_v42, 0.0  ;;  %v17512_v29 = vld [vmem:[#allocation32_spill] sm:$0xff]  ;;  %v17513_v26 = vld [vmem:[#allocation35_spill] sm:$0xff] }
 0x792   : > { %11028 = vpow2.f32 %v5940_v12  ;;  %v6246_v48 = vsub.f32 %v17509_v23, %v6224_v47  ;;  %5945 = vadd.xlane.f32.xlu0 %v5944_v35 }
 0x793   : > { %v15231_v8 = vpop.eup %11018  ;;  %v6256_v0 = vmul.f32 1.442695, %v6247_v36 }
 0x794   : > { %v15233_v40 = vpop.eup %11020  ;;  %v6254_v2 = vmul.f32 1.442695, %v6246_v48  ;;  %v6233_v50 = vpop.xlane.xlu1 %6232  ;;  %v5953_v55 = vsel %vm1181_vm2, %v15231_v8, 0.0 }
 0x795   : > { %11030 = vpow2.f32 %v6256_v0  ;;  %v6249_v1 = vsub.f32 %v17510_v60, %v6233_v50  ;;  %5948 = vadd.xlane.f32.xlu1 %v5947_v39  ;;  %v6230_v53 = vpop.xlane.xlu0 %6229  ;;  %v5950_v13 = vsel %vm1181_vm2, %v15233_v40, 0.0 }
 0x796   : > { %11032 = vpow2.f32 %v6254_v2  ;;  %v6248_v46 = vsub.f32 %v17511_v30, %v6230_v53  ;;  %5951 = vadd.xlane.f32.xlu0 %v5950_v13 }
 0x797   : > { %v15241_v27 = vpop.eup %11022  ;;  %v6260_v63 = vmul.f32 1.442695, %v6249_v1 }
 0x798   : > { %v15243_v37 = vpop.eup %11024  ;;  %v6258_v6 = vmul.f32 1.442695, %v6248_v46  ;;  %v6239_v18 = vpop.xlane.xlu1 %6238  ;;  %v5959_v47 = vsel %vm1181_vm2, %v15241_v27, 0.0 }
 0x799   : > { %11034 = vpow2.f32 %v6260_v63  ;;  %v6251_v9 = vsub.f32 %v17512_v29, %v6239_v18  ;;  %5954 = vadd.xlane.f32.xlu1 %v5953_v55  ;;  %v6236_v12 = vpop.xlane.xlu0 %6235  ;;  %v5956_v38 = vsel %vm1181_vm2, %v15243_v37, 0.0 }
 0x79a   : > { %11036 = vpow2.f32 %v6258_v6  ;;  %v6250_v36 = vsub.f32 %v17513_v26, %v6236_v12  ;;  %5957 = vadd.xlane.f32.xlu0 %v5956_v38 }
 0x79b   : > { %v15251_v35 = vpop.eup %11026  ;;  %v6264_v23 = vmul.f32 1.442695, %v6251_v9 }
 0x79c   : > { %v15253_v48 = vpop.eup %11028  ;;  %v6262_v39 = vmul.f32 1.442695, %v6250_v36  ;;  %v6245_v0 = vpop.xlane.xlu1 %6244  ;;  %v5965_v53 = vsel %vm1181_vm2, %v15251_v35, 0.0 }
 0x79d   : > { %11038 = vpow2.f32 %v6264_v23  ;;  %v6253_v2 = vsub.f32 %v14970_v41, %v6245_v0  ;;  %5960 = vadd.xlane.f32.xlu1 %v5959_v47  ;;  %v6242_v50 = vpop.xlane.xlu0 %6241  ;;  %v5962_v60 = vsel %vm1181_vm2, %v15253_v48, 0.0 }
 0x79e   : > { %11040 = vpow2.f32 %v6262_v39  ;;  %v6252_v1 = vsub.f32 %v14986_v4, %v6242_v50  ;;  %5963 = vadd.xlane.f32.xlu0 %v5962_v60 }
 0x79f   : > { %v15261_v13 = vpop.eup %11030  ;;  %v6268_v30 = vmul.f32 1.442695, %v6253_v2 }
 0x7a0   : > { %v15263_v46 = vpop.eup %11032  ;;  %v6266_v55 = vmul.f32 1.442695, %v6252_v1  ;;  %v6553_v63 = vpop.xlane.xlu1 %6552  ;;  %v6273_v41 = vsel %vm1181_vm2, %v15261_v13, 0.0 }
 0x7a1   : > { %11042 = vpow2.f32 %v6268_v30  ;;  %v6573_v6 = vsub.f32 %v14994_v62, %v6553_v63  ;;  %5966 = vadd.xlane.f32.xlu1 %v5965_v53  ;;  %v6550_v18 = vpop.xlane.xlu0 %6549  ;;  %v6270_v29 = vsel %vm1181_vm2, %v15263_v46, 0.0 }
 0x7a2   : > { %11044 = vpow2.f32 %v6266_v55  ;;  %v6572_v4 = vsub.f32 %v15008_v14, %v6550_v18  ;;  %6274 = vadd.xlane.f32.xlu0 %v6273_v41 }
 0x7a3   : > { %v15271_v9 = vpop.eup %11034  ;;  %v6582_v12 = vmul.f32 1.442695, %v6573_v6 }
 0x7a4   : > { %v15273_v38 = vpop.eup %11036  ;;  %v6580_v26 = vmul.f32 1.442695, %v6572_v4  ;;  %v6559_v36 = vpop.xlane.xlu1 %6558  ;;  %v6279_v39 = vsel %vm1181_vm2, %v15271_v9, 0.0 }
 0x7a5   : > { %11046 = vpow2.f32 %v6582_v12  ;;  %v6575_v47 = vsub.f32 %v15015_v20, %v6559_v36  ;;  %6271 = vadd.xlane.f32.xlu1 %v6270_v29  ;;  %v6556_v62 = vpop.xlane.xlu0 %6555  ;;  %v6276_v23 = vsel %vm1181_vm2, %v15273_v38, 0.0 }
 0x7a6   : > { %11048 = vpow2.f32 %v6580_v26  ;;  %v6574_v14 = vsub.f32 %v15028_v54, %v6556_v62  ;;  %6277 = vadd.xlane.f32.xlu0 %v6276_v23 }
 0x7a7   : > { %v15281_v0 = vpop.eup %11038  ;;  %v6586_v2 = vmul.f32 1.442695, %v6575_v47 }
 0x7a8   : > { %v15283_v50 = vpop.eup %11040  ;;  %v6584_v60 = vmul.f32 1.442695, %v6574_v14  ;;  %v6565_v1 = vpop.xlane.xlu1 %6564  ;;  %v6285_v20 = vsel %vm1181_vm2, %v15281_v0, 0.0 }
 0x7a9   : > { %11050 = vpow2.f32 %v6586_v2  ;;  %v6577_v53 = vsub.f32 %v15038_v32, %v6565_v1  ;;  %6280 = vadd.xlane.f32.xlu1 %v6279_v39  ;;  %v6562_v30 = vpop.xlane.xlu0 %6561  ;;  %v6282_v55 = vsel %vm1181_vm2, %v15283_v50, 0.0 }
 0x7aa   : > { %11052 = vpow2.f32 %v6584_v60  ;;  %6286 = vadd.xlane.f32.xlu0 %v6285_v20  ;;  %v6576_v54 = vsub.f32 %v15048_v52, %v6562_v30 }
 0x7ab   : > { %v15291_v63 = vpop.eup %11042  ;;  %v6590_v41 = vmul.f32 1.442695, %v6577_v53 }
 0x7ac   : > { %v15293_v6 = vpop.eup %11044  ;;  %v6588_v18 = vmul.f32 1.442695, %v6576_v54  ;;  %v6291_v4 = vsel %vm1181_vm2, %v15291_v63, 0.0 }
 0x7ad   : > { %11054 = vpow2.f32 %v6590_v41  ;;  %6283 = vadd.xlane.f32.xlu1 %v6282_v55  ;;  %v6288_v32 = vsel %vm1181_vm2, %v15293_v6, 0.0  ;;  %v6568_v30 = vpop.xlane.xlu0 %6567 }
 0x7ae   : > { %11056 = vpow2.f32 %v6588_v18  ;;  %6289 = vadd.xlane.f32.xlu0 %v6288_v32  ;;  %v6571_v18 = vpop.xlane.xlu1 %6570 }
 0x7af   : > { %v15299_v52 = vpop.eup %11046 }
 0x7b0   : > { %v15301_v29 = vpop.eup %11048  ;;  %v6599_v12 = vsel %vm1181_vm2, %v15299_v52, 0.0 }
 0x7b1   : > { %6292 = vadd.xlane.f32.xlu1 %v6291_v4  ;;  %v6596_v26 = vsel %vm1181_vm2, %v15301_v29, 0.0 }
 0x7b2   : > { %6600 = vadd.xlane.f32.xlu0 %v6599_v12 }
 0x7b3   : > { %v15307_v36 = vpop.eup %11050 }
 0x7b4   : > { %v15309_v47 = vpop.eup %11052  ;;  %v6605_v23 = vsel %vm1181_vm2, %v15307_v36, 0.0 }
 0x7b5   : > { %17514 = vst [vmem:[#allocation40_spill] sm:$0xff] %v15309_v47  ;;  %6597 = vadd.xlane.f32.xlu1 %v6596_v26  ;;  %v6602_v62 = vsel %vm1181_vm2, %v15309_v47, 0.0 }
 0x7b6   : > { %6603 = vadd.xlane.f32.xlu0 %v6602_v62 }
 0x7b7   : > { %v15315_v14 = vpop.eup %11054 }
 0x7b8   : > { %17515 = vst [vmem:[#allocation36_spill] sm:$0xff] %v15315_v14  ;;  %v15317_v39 = vpop.eup %11056  ;;  %v6611_v2 = vsel %vm1181_vm2, %v15315_v14, 0.0 }
 0x7b9   : > { %17516 = vst [vmem:[#allocation29_spill] sm:$0xff] %v15317_v39  ;;  %6606 = vadd.xlane.f32.xlu1 %v6605_v23  ;;  %v6608_v60 = vsel %vm1181_vm2, %v15317_v39, 0.0 }
 0x7ba   : > { %6612 = vadd.xlane.f32.xlu0 %v6611_v2 }
 0x7bd   : > { %6609 = vadd.xlane.f32.xlu1 %v6608_v60 }
 0x7f5   : > { %v10278_v1 = vpop.f32.mrb[88].mxu0 }
 0x7f6   : > { %v5063_v20 = vpop.f32.mrb[89].mxu0 }
 0x7f7   : > { %v10279_v53 = vpop.f32.mrb[90].mxu0 }
 0x7f8   : > { %v15323_v54 = vpack.c.bf16 %v10279_v53, %v10278_v1  ;;  %v5066_v55 = vpop.f32.mrb[91].mxu0 }
 0x7f9   : > { %v15325_v41 = vpack.c.bf16 %v5066_v55, %v5063_v20 }
 0x7fa   : > { %5707 = vrot.lane.b32.xlu1 %v15323_v54, %s11826_s6 }
 0x7fb   : > { %10285 = vmatpush3.bf16.msra.mxu1 %v15325_v41  ;;  %5659 = vrot.lane.b32.xlu0 %v15325_v41, %s11826_s6  ;;  %v5262_v32 = vpop.xlane.xlu0 %5261 }
 0x7fc   : > { %10290 = vmatprep.subr.bf16.mxu1 %v17343_v44  ;;  %11058 = vrcp.f32 %v5262_v32 }
 0x7fe   : > { %6035 = vrot.lane.b32.xlu1 %v15323_v54, %s17441_s29 }
 0x7ff   : > { %5988 = vrot.lane.b32.xlu0 %v15325_v41, %s17441_s29  ;;  %v5268_v23 = vpop.xlane.xlu0 %5267 }
 0x800   : > { %v10282_v4 = vpop.f32.mrb[92].mxu0 }
 0x801   : > { %v5079_v12 = vpop.f32.mrb[93].mxu0 }
 0x802   : > { %v5265_v26 = vpop.xlane.xlu1 %5264  ;;  %v10283_v62 = vpop.f32.mrb[94].mxu0 }
 0x803   : > { %11060 = vrcp.f32 %v5265_v26  ;;  %v15337_v2 = vpack.c.bf16 %v10283_v62, %v10282_v4  ;;  %v5082_v60 = vpop.f32.mrb[95].mxu0 }
 0x804   : > { %v15339_v1 = vpack.c.bf16 %v5082_v60, %v5079_v12 }
 0x805   : > { %5803 = vrot.lane.b32.xlu1 %v15337_v2, %s11826_s6 }
 0x806   : > { %10297 = vmatpush3.bf16.msra.mxu0 %v15339_v1  ;;  %v5271_v20 = vpop.xlane.xlu1 %5270  ;;  %5755 = vrot.lane.b32.xlu0 %v15339_v1, %s11826_s6  ;;  %v11059_v32 = vpop.eup %11058 }
 0x807   : > { %11062 = vrcp.f32 %v5271_v20  ;;  %v5274_v53 = vpop.xlane.xlu0 %5273  ;;  %10308 = vmatprep.subr.bf16.mxu0 %v17343_v44  ;;  %v5292_v12 = vmul.f32 %v11059_v32, %v15139_v17 }
 0x808   : > { %11064 = vrcp.f32 %v5268_v23 }
 0x809   : > { %11066 = vrcp.f32 %v5274_v53  ;;  %6129 = vrot.lane.b32.xlu1 %v15337_v2, %s17441_s29  ;;  %v6578_v53 = vsub.f32 %v15079_v31, %v6568_v30  ;;  %v6579_v31 = vsub.f32 %v15082_v24, %v6571_v18 }
 0x80a   : > { %v5277_v55 = vpop.xlane.xlu1 %5276  ;;  %6082 = vrot.lane.b32.xlu0 %v15339_v1, %s17441_s29 }
 0x80b   : > { %11068 = vrcp.f32 %v5277_v55  ;;  %v5280_v62 = vpop.xlane.xlu0 %5279  ;;  %v6592_v32 = vmul.f32 1.442695, %v6578_v53 }
 0x80d   : > { %v11061_v4 = vpop.eup %11060 }
 0x80e   : > { %v5293_v26 = vmul.f32 %v11061_v4, %v15151_v57  ;;  %v5283_v60 = vpop.xlane.xlu1 %5282 }
 0x80f   : > { %11070 = vrcp.f32 %v5283_v60  ;;  %v15363_v30 = vpop.xlane.xlu0 %5615 }
 0x810   : > { %v5300_v20 = vpack.c.bf16 %v5293_v26, %v5292_v12  ;;  %11072 = vrcp.f32 %v5280_v62 }
 0x811   : > { %v11063_v23 = vpop.eup %11062  ;;  %11074 = vpow2.f32 %v6592_v32 }
 0x812   : > { %v11065_v15 = vpop.eup %11064  ;;  %10287 = vmatmul.mubr.msk.bf16.vlgmr.msra.gmra.mrb[88].mxu1 %vm1181_vm2, %v5300_v20  ;;  %v5295_v17 = vmul.f32 %v11063_v23, %v15153_v34  ;;  %v15359_v57 = vpop.xlane.xlu1 %5618  ;;  %v6594_v34 = vmul.f32 1.442695, %v6579_v31 }
 0x813   : > { %v11067_v45 = vpop.eup %11066  ;;  %10291 = vmatpush3.bf16.msra.mxu1 %v15323_v54  ;;  %10292 = vmatprep.mubr.msk.bf16.mxu1 %vm11824_vm11, %v17343_v44  ;;  %v5294_v4 = vmul.f32 %v11065_v15, %v15145_v5  ;;  %v5622_v24 = vpop.xlane.xlu0 %5621 }
 0x814   : > { %10302 = vmatprep.subr.bf16.mxu1 %v17343_v44  ;;  %v5296_v12 = vmul.f32 %v11067_v45, %v15163_v7  ;;  %11076 = vpow2.f32 %v6594_v34 }
 0x815   : > { %v11069_v55 = vpop.eup %11068  ;;  %v5301_v60 = vpack.c.bf16 %v5295_v17, %v5294_v4 }
 0x816   : > { %v5297_v26 = vmul.f32 %v11069_v55, %v15161_v56  ;;  %v5625_v23 = vpop.xlane.xlu1 %5624 }
 0x817   : > { %v5628_v7 = vpop.xlane.xlu0 %5627  ;;  %11078 = vrcp.f32 %v5625_v23 }
 0x818   : > { %v5302_v62 = vpack.c.bf16 %v5297_v26, %v5296_v12  ;;  %11080 = vrcp.f32 %v15359_v57 }
 0x819   : > { %v11071_v20 = vpop.eup %11070  ;;  %11082 = vrcp.f32 %v5622_v24 }
 0x81a   : > { %10293 = vmatmul.mubr.msk.bf16.vlgmr.msra.gmra.mrb[92].mxu1 %vm1181_vm2, %v5301_v60  ;;  %10299 = vmatmul.mubr.msk.bf16.vlgmr.msra.gmra.mrb[96].mxu0 %vm1181_vm2, %v5302_v62  ;;  %v11073_v53 = vpop.eup %11072  ;;  %v5299_v45 = vmul.f32 %v11071_v20, %v15171_v43  ;;  %v5631_v5 = vpop.xlane.xlu1 %5630  ;;  %11084 = vrcp.f32 %v15363_v30 }
 0x81b   : > { %10303 = vmatpush3.bf16.msra.mxu1 %v15337_v2  ;;  %10304 = vmatprep.mubr.msk.bf16.mxu1 %vm11824_vm11, %v17343_v44  ;;  %v5298_v15 = vmul.f32 %v11073_v53, %v15173_v33  ;;  %v15379_v18 = vpop.eup %11074  ;;  %v5634_v32 = vpop.xlane.xlu0 %5633 }
 0x81c   : > { %10314 = vmatprep.subr.bf16.mxu1 %v17343_v44  ;;  %10310 = vmatprep.mubr.msk.bf16.mxu0 %vm11824_vm11, %v17343_v44  ;;  %17517 = vst [vmem:[#allocation34_spill] sm:$0xff] %v15379_v18  ;;  %v6614_v43 = vsel %vm1181_vm2, %v15379_v18, 0.0 }
 0x81d   : > { %v5303_v56 = vpack.c.bf16 %v5299_v45, %v5298_v15 }
 0x81e   : > { %v5637_v17 = vpop.xlane.xlu1 %5636  ;;  %v15385_v55 = vpop.eup %11076 }
 0x81f   : > { %17518 = vst [vmem:[#allocation30_spill] sm:$0xff] %v15385_v55  ;;  %v6617_v33 = vsel %vm1181_vm2, %v15385_v55, 0.0  ;;  %v15389_v4 = vpop.xlane.xlu0 %5945  ;;  %11086 = vrcp.f32 %v5637_v17 }
 0x820   : > { %11088 = vrcp.f32 %v5631_v5 }
 0x821   : > { %v11079_v3 = vpop.eup %11078  ;;  %11090 = vrcp.f32 %v5634_v32 }
 0x822   : > { %10305 = vmatmul.mubr.msk.bf16.vlgmr.msra.gmra.mrb[96].mxu1 %vm1181_vm2, %v5303_v56  ;;  %v5949_v31 = vpop.xlane.xlu1 %5948  ;;  %v11081_v28 = vpop.eup %11080  ;;  %v5649_v14 = vmul.f32 %v11079_v3, %v15191_v19  ;;  %11092 = vrcp.f32 %v5628_v7 }
 0x823   : > { %10316 = vmatprep.mubr.msk.bf16.mxu1 %vm11824_vm11, %v17343_v44  ;;  %v5952_v26 = vpop.xlane.xlu0 %5951  ;;  %v11083_v18 = vpop.eup %11082  ;;  %v5647_v57 = vmul.f32 %v11081_v28, %v15181_v58 }
 0x824   : > { %v11085_v23 = vpop.eup %11084  ;;  %v5648_v30 = vmul.f32 %v11083_v18, %v15193_v21 }
 0x825   : > { %v5646_v39 = vmul.f32 %v11085_v23, %v15183_v49 }
 0x826   : > { %v5955_v12 = vpop.xlane.xlu1 %5954  ;;  %v5655_v47 = vpack.c.bf16 %v5649_v14, %v5648_v30 }
 0x827   : > { %v15393_v60 = vpop.xlane.xlu0 %5957  ;;  %v5654_v5 = vpack.c.bf16 %v5647_v57, %v5646_v39  ;;  %11094 = vrcp.f32 %v5955_v12 }
 0x828   : > { %11096 = vrcp.f32 %v5949_v31 }
 0x829   : > { %6615 = vadd.xlane.f32.xlu0 %v6614_v43  ;;  %v11087_v28 = vpop.eup %11086  ;;  %11098 = vrcp.f32 %v5952_v26 }
 0x82a   : > { %v15391_v62 = vpop.xlane.xlu1 %5960  ;;  %v11089_v3 = vpop.eup %11088  ;;  %11100 = vrcp.f32 %v15389_v4 }
 0x82b   : > { %v15399_v34 = vpop.xlane.xlu0 %5963  ;;  %v11091_v49 = vpop.eup %11090  ;;  %v5651_v14 = vmul.f32 %v11089_v3, %v15201_v61 }
 0x82c   : > { %v11093_v21 = vpop.eup %11092  ;;  %v5652_v39 = vmul.f32 %v11091_v49, %v15213_v16 }
 0x82d   : > { %6618 = vadd.xlane.f32.xlu1 %v6617_v33  ;;  %v5650_v18 = vmul.f32 %v11093_v21, %v15203_v59 }
 0x82e   : > { %v15395_v20 = vpop.xlane.xlu1 %5966 }
 0x82f   : > { %v15409_v45 = vpop.xlane.xlu0 %6274  ;;  %11102 = vrcp.f32 %v15395_v20 }
 0x830   : > { %11104 = vrcp.f32 %v15391_v62 }
 0x831   : > { %v11095_v4 = vpop.eup %11094  ;;  %11106 = vrcp.f32 %v15399_v34 }
 0x832   : > { %v15407_v53 = vpop.xlane.xlu1 %6271  ;;  %v11097_v61 = vpop.eup %11096  ;;  %11108 = vrcp.f32 %v15393_v60  ;;  %v5979_v12 = vmul.f32 %v11095_v4, %v15231_v8 }
 0x833   : > { %v15419_v56 = vpop.xlane.xlu0 %6277  ;;  %v11099_v59 = vpop.eup %11098  ;;  %v5977_v26 = vmul.f32 %v11097_v61, %v15221_v11  ;;  %11110 = vrcp.f32 %v15407_v53  ;;  %v17520_v61 = vld [vmem:[#allocation29_spill] sm:$0xff] }
 0x834   : > { %v11101_v16 = vpop.eup %11100  ;;  %v5978_v62 = vmul.f32 %v11099_v59, %v15233_v40  ;;  %11112 = vrcp.f32 %v15409_v45 }
 0x835   : > { %v5976_v60 = vmul.f32 %v11101_v16, %v15223_v42 }
 0x836   : > { %v15415_v15 = vpop.xlane.xlu1 %6280  ;;  %v5985_v20 = vpack.c.bf16 %v5979_v12, %v5978_v62 }
 0x837   : > { %v15425_v43 = vpop.xlane.xlu0 %6286  ;;  %v5984_v8 = vpack.c.bf16 %v5977_v26, %v5976_v60  ;;  %11114 = vrcp.f32 %v15415_v15  ;;  %v17521_v26 = vld [vmem:[#allocation36_spill] sm:$0xff] }
 0x838   : > { %11116 = vrcp.f32 %v15419_v56 }
 0x839   : > { %v11103_v34 = vpop.eup %11102 }
 0x83a   : > { %v11105_v23 = vpop.eup %11104 }
 0x83b   : > { %v15429_v10 = vpop.xlane.xlu0 %6289  ;;  %v11107_v30 = vpop.eup %11106  ;;  %v5981_v42 = vmul.f32 %v11105_v23, %v15241_v27  ;;  %v17523_v23 = vld [vmem:[#allocation34_spill] sm:$0xff] }
 0x83c   : > { %v5982_v40 = vmul.f32 %v11107_v30, %v15253_v48 }
 0x83e   : > { %6361 = vrot.lane.b32.xlu1 %v15323_v54, %s11833_s23 }
 0x83f   : > { %6314 = vrot.lane.b32.xlu0 %v15325_v41, %s11833_s23 }
 0x842   : > { %6408 = vrot.lane.b32.xlu1 %v15339_v1, %s11833_s23 }
 0x843   : > { %6640 = vrot.lane.b32.xlu0 %v15325_v41, %s11834_s1  ;;  %v15423_v41 = vpop.xlane.xlu1 %6283 }
 0x844   : > { %11118 = vrcp.f32 %v15423_v41 }
 0x845   : > { %11120 = vrcp.f32 %v15425_v43 }
 0x846   : > { %6455 = vrot.lane.b32.xlu1 %v15337_v2, %s11833_s23 }
 0x847   : > { %6734 = vrot.lane.b32.xlu0 %v15339_v1, %s11834_s1  ;;  %v15427_v33 = vpop.xlane.xlu1 %6292  ;;  %v15433_v1 = vpop.xlane.xlu0 %6600 }
 0x848   : > { %11122 = vrcp.f32 %v15427_v33 }
 0x849   : > { %11124 = vrcp.f32 %v15429_v10 }
 0x84a   : > { %6687 = vrot.lane.b32.xlu1 %v15323_v54, %s11834_s1 }
 0x84b   : > { %v15431_v22 = vpop.xlane.xlu1 %6597 }
 0x84c   : > { %11126 = vrcp.f32 %v15431_v22 }
 0x84d   : > { %11128 = vrcp.f32 %v15433_v1 }
 0x84e   : > { %6781 = vrot.lane.b32.xlu1 %v15337_v2, %s11834_s1  ;;  %v15439_v2 = vpop.xlane.xlu0 %6603 }
 0x84f   : > { %v15437_v54 = vpop.xlane.xlu1 %6606 }
 0x850   : > { %11130 = vrcp.f32 %v15437_v54 }
 0x851   : > { %11132 = vrcp.f32 %v15439_v2 }
 0x852   : > { %v15443_v55 = vpop.xlane.xlu0 %6612 }
 0x853   : > { %v15441_v25 = vpop.xlane.xlu1 %6609 }
 0x854   : > { %11134 = vrcp.f32 %v15441_v25 }
 0x855   : > { %11136 = vrcp.f32 %v15443_v55 }
 0x86c   : > { %v5708_v24 = vpop.permute.xlu1 %5707 }
 0x86d   : > { %10315 = vmatpush3.bf16.msra.mxu1 %v5708_v24  ;;  %v5660_v17 = vpop.permute.xlu0 %5659  ;;  %v11109_v24 = vpop.eup %11108 }
 0x86e   : > { %10309 = vmatpush3.bf16.msra.mxu0 %v5660_v17  ;;  %10326 = vmatprep.subr.bf16.mxu1 %v17343_v44  ;;  %v5983_v17 = vmul.f32 %v11103_v34, %v15251_v35  ;;  %v11111_v27 = vpop.eup %11110 }
 0x86f   : > { %10320 = vmatprep.subr.bf16.mxu0 %v17343_v44  ;;  %v11113_v35 = vpop.eup %11112  ;;  %v6302_v48 = vmul.f32 %v11111_v27, %v15263_v46 }
 0x870   : > { %10317 = vmatmul.mubr.msk.bf16.vlgmr.msra.gmra.mrb[100].mxu1 %vm1181_vm2, %v5655_v47  ;;  %v6036_v58 = vpop.permute.xlu1 %6035  ;;  %v5653_v47 = vmul.f32 %v11087_v28, %v15211_v51  ;;  %v5656_v51 = vpack.c.bf16 %v5651_v14, %v5650_v18  ;;  %v5987_v28 = vpack.c.bf16 %v5983_v17, %v5982_v40  ;;  %v6303_v53 = vmul.f32 %v11113_v35, %v15261_v13 }
 0x871   : > { %10311 = vmatmul.mubr.msk.bf16.vlgmr.msra.gmra.mrb[100].mxu0 %vm1181_vm2, %v5654_v5  ;;  %10328 = vmatprep.mubr.msk.bf16.mxu1 %vm11824_vm11, %v17343_v44  ;;  %v5989_v19 = vpop.permute.xlu0 %5988  ;;  %v5980_v5 = vmul.f32 %v11109_v24, %v15243_v37 }
 0x872   : > { %10322 = vmatprep.mubr.msk.bf16.mxu0 %vm11824_vm11, %v17343_v44  ;;  %v5657_v31 = vpack.c.bf16 %v5653_v47, %v5652_v39  ;;  %v6310_v41 = vpack.c.bf16 %v6303_v53, %v6302_v48 }
 0x873   : > { %v5986_v3 = vpack.c.bf16 %v5981_v42, %v5980_v5 }
 0x877   : > { %v5804_v7 = vpop.permute.xlu1 %5803 }
 0x878   : > { %10327 = vmatpush3.bf16.msra.mxu1 %v5804_v7  ;;  %v5756_v32 = vpop.permute.xlu0 %5755 }
 0x879   : > { %10321 = vmatpush3.bf16.msra.mxu0 %v5756_v32  ;;  %10338 = vmatprep.subr.bf16.mxu1 %v17343_v44 }
 0x87a   : > { %10332 = vmatprep.subr.bf16.mxu0 %v17343_v44 }
 0x87b   : > { %10329 = vmatmul.mubr.msk.bf16.vlgmr.msra.gmra.mrb[104].mxu1 %vm1181_vm2, %v5657_v31  ;;  %v6130_v57 = vpop.permute.xlu1 %6129  ;;  %v17519_v31 = vld [vmem:[#allocation40_spill] sm:$0xff] }
 0x87c   : > { %10323 = vmatmul.mubr.msk.bf16.vlgmr.msra.gmra.mrb[104].mxu0 %vm1181_vm2, %v5656_v51  ;;  %10339 = vmatpush3.bf16.msra.mxu1 %v6036_v58  ;;  %v6083_v11 = vpop.permute.xlu0 %6082  ;;  %v11115_v58 = vpop.eup %11114 }
 0x87d   : > { %10333 = vmatpush3.bf16.msra.mxu0 %v5989_v19  ;;  %10340 = vmatprep.mubr.msk.bf16.mxu1 %vm11824_vm11, %v17343_v44  ;;  %v11117_v49 = vpop.eup %11116  ;;  %v6305_v56 = vmul.f32 %v11115_v58, %v15271_v9 }
 0x87e   : > { %10350 = vmatprep.subr.bf16.mxu1 %v17343_v44  ;;  %10334 = vmatprep.mubr.msk.bf16.mxu0 %vm11824_vm11, %v17343_v44  ;;  %v11119_v43 = vpop.eup %11118  ;;  %v6304_v46 = vmul.f32 %v11117_v49, %v15273_v38 }
 0x87f   : > { %10344 = vmatprep.subr.bf16.mxu0 %v17343_v44  ;;  %v11121_v10 = vpop.eup %11120  ;;  %v6306_v22 = vmul.f32 %v11119_v43, %v15283_v50 }
 0x880   : > { %v6311_v13 = vpack.c.bf16 %v6305_v56, %v6304_v46  ;;  %v11123_v9 = vpop.eup %11122  ;;  %v6307_v38 = vmul.f32 %v11121_v10, %v15281_v0 }
 0x881   : > { %v11125_v19 = vpop.eup %11124  ;;  %v6309_v50 = vmul.f32 %v11123_v9, %v15291_v63 }
 0x882   : > { %v6312_v54 = vpack.c.bf16 %v6307_v38, %v6306_v22  ;;  %v11127_v21 = vpop.eup %11126  ;;  %v6308_v0 = vmul.f32 %v11125_v19, %v15293_v6 }
 0x883   : > { %10341 = vmatmul.mubr.msk.bf16.vlgmr.msra.gmra.mrb[108].mxu1 %vm1181_vm2, %v5985_v20  ;;  %v11129_v14 = vpop.eup %11128  ;;  %v6628_v25 = vmul.f32 %v11127_v21, %v15301_v29  ;;  %v17522_v20 = vld [vmem:[#allocation30_spill] sm:$0xff] }
 0x884   : > { %10351 = vmatpush3.bf16.msra.mxu1 %v6130_v57  ;;  %10335 = vmatmul.mubr.msk.bf16.vlgmr.msra.gmra.mrb[108].mxu0 %vm1181_vm2, %v5984_v8  ;;  %v6313_v39 = vpack.c.bf16 %v6309_v50, %v6308_v0  ;;  %v11131_v63 = vpop.eup %11130  ;;  %v6629_v6 = vmul.f32 %v11129_v14, %v15299_v52 }
 0x885   : > { %10345 = vmatpush3.bf16.msra.mxu0 %v6083_v11  ;;  %10352 = vmatprep.mubr.msk.bf16.mxu1 %vm11824_vm11, %v17343_v44  ;;  %v11133_v7 = vpop.eup %11132  ;;  %v6631_v29 = vmul.f32 %v11131_v63, %v15307_v36 }
 0x886   : > { %10346 = vmatprep.mubr.msk.bf16.mxu0 %vm11824_vm11, %v17343_v44  ;;  %10356 = vmatprep.subr.bf16.mxu0 %v17343_v44  ;;  %v6636_v18 = vpack.c.bf16 %v6629_v6, %v6628_v25  ;;  %v11135_v32 = vpop.eup %11134  ;;  %v6630_v4 = vmul.f32 %v11133_v7, %v17519_v31 }
 0x887   : > { %10362 = vmatprep.subr.bf16.mxu1 %v17343_v44  ;;  %v11137_v52 = vpop.eup %11136  ;;  %v6632_v59 = vmul.f32 %v11135_v32, %v17520_v61 }
 0x888   : > { %v6637_v16 = vpack.c.bf16 %v6631_v29, %v6630_v4  ;;  %v6633_v36 = vmul.f32 %v11137_v52, %v17521_v26 }
 0x88a   : > { %v6638_v8 = vpack.c.bf16 %v6633_v36, %v6632_v59 }
 0x88b   : > { %10353 = vmatmul.mubr.msk.bf16.vlgmr.msra.gmra.mrb[112].mxu1 %vm1181_vm2, %v5987_v28 }
 0x88c   : > { %10347 = vmatmul.mubr.msk.bf16.vlgmr.msra.gmra.mrb[112].mxu0 %vm1181_vm2, %v5986_v3  ;;  %10364 = vmatprep.mubr.msk.bf16.mxu1 %vm11824_vm11, %v17343_v44 }
 0x88d   : > { %10358 = vmatprep.mubr.msk.bf16.mxu0 %vm11824_vm11, %v17343_v44 }
 0x8b6   : > { %v6616_v37 = vpop.xlane.xlu0 %6615 }
 0x8ba   : > { %v6619_v45 = vpop.xlane.xlu1 %6618  ;;  %v6315_v15 = vpop.permute.xlu0 %6314 }
 0x8bb   : > { %10357 = vmatpush3.bf16.msra.mxu0 %v6315_v15  ;;  %11138 = vrcp.f32 %v6619_v45 }
 0x8bc   : > { %10368 = vmatprep.subr.bf16.mxu0 %v17343_v44  ;;  %11140 = vrcp.f32 %v6616_v37 }
 0x8be   : > { %v6362_v33 = vpop.permute.xlu1 %6361  ;;  %10359 = vmatmul.mubr.msk.bf16.vlgmr.msra.gmra.mrb[116].mxu0 %vm1181_vm2, %v6310_v41  ;;  %v6641_v2 = vpop.permute.xlu0 %6640 }
 0x8bf   : > { %10363 = vmatpush3.bf16.msra.mxu1 %v6362_v33  ;;  %10370 = vmatprep.mubr.msk.bf16.mxu0 %vm11824_vm11, %v17343_v44 }
 0x8c0   : > { %10374 = vmatprep.subr.bf16.mxu1 %v17343_v44 }
 0x8c2   : > { %v6409_v1 = vpop.permute.xlu1 %6408  ;;  %10365 = vmatmul.mubr.msk.bf16.vlgmr.msra.gmra.mrb[116].mxu1 %vm1181_vm2, %v6311_v13  ;;  %v6735_v51 = vpop.permute.xlu0 %6734 }
 0x8c3   : > { %10369 = vmatpush3.bf16.msra.mxu0 %v6409_v1  ;;  %10376 = vmatprep.mubr.msk.bf16.mxu1 %vm11824_vm11, %v17343_v44 }
 0x8c4   : > { %10380 = vmatprep.subr.bf16.mxu0 %v17343_v44 }
 0x8c5   : > { %v11139_v12 = vpop.eup %11138 }
 0x8c6   : > { %v6456_v47 = vpop.permute.xlu1 %6455  ;;  %10371 = vmatmul.mubr.msk.bf16.vlgmr.msra.gmra.mrb[120].mxu0 %vm1181_vm2, %v6312_v54  ;;  %v11141_v60 = vpop.eup %11140  ;;  %v6635_v34 = vmul.f32 %v11139_v12, %v17522_v20 }
 0x8c7   : > { %10375 = vmatpush3.bf16.msra.mxu1 %v6456_v47  ;;  %10381 = vmatpush3.bf16.msra.mxu0 %v6641_v2  ;;  %v6634_v57 = vmul.f32 %v11141_v60, %v17523_v23 }
 0x8c8   : > { %10386 = vmatprep.subr.bf16.mxu1 %v17343_v44  ;;  %10382 = vmatprep.mubr.msk.bf16.mxu0 %vm11824_vm11, %v17343_v44 }
 0x8c9   : > { %10392 = vmatprep.subr.bf16.mxu0 %v17343_v44  ;;  %v6639_v30 = vpack.c.bf16 %v6635_v34, %v6634_v57  ;;  %v10653_v34 = vld [vmem:[%s17105_s11] sm:$0xff]  }
 0x8ca   : > { %v6688_v55 = vpop.permute.xlu1 %6687  ;;  %10377 = vmatmul.mubr.msk.bf16.vlgmr.msra.gmra.mrb[120].mxu1 %vm1181_vm2, %v6313_v39 }
 0x8cb   : > { %10387 = vmatpush3.bf16.msra.mxu1 %v6688_v55  ;;  %10388 = vmatprep.mubr.msk.bf16.mxu1 %vm11824_vm11, %v17343_v44 }
 0x8cc   : > { %10398 = vmatprep.subr.bf16.mxu1 %v17343_v44 }
 0x8ce   : > { %10383 = vmatmul.mubr.msk.bf16.vlgmr.msra.gmra.mrb[124].mxu0 %vm1181_vm2, %v6636_v18  ;;  %v6782_v62 = vpop.permute.xlu1 %6781 }
 0x8cf   : > { %10393 = vmatpush3.bf16.msra.mxu0 %v6735_v51  ;;  %10394 = vmatprep.mubr.msk.bf16.mxu0 %vm11824_vm11, %v17343_v44 }
 0x8d0   : > { %10404 = vmatprep.subr.bf16.mxu0 %v10653_v34 }
 0x8d2   : > { %10389 = vmatmul.mubr.msk.bf16.vlgmr.msra.gmra.mrb[124].mxu1 %vm1181_vm2, %v6637_v16 }
 0x8d3   : > { %10399 = vmatpush3.bf16.msra.mxu1 %v6782_v62  ;;  %10400 = vmatprep.mubr.msk.bf16.mxu1 %vm11824_vm11, %v17343_v44 }
 0x8d4   : > { %10418 = vmatprep.subr.bf16.mxu1 %v17343_v44 }
 0x8d6   : > { %10395 = vmatmul.mubr.msk.bf16.vlgmr.msra.gmra.mrb[128].mxu0 %vm1181_vm2, %v6638_v8 }
 0x8d7   : > { %10405 = vmatpush3.bf16.msra.mxu0 %v10653_v34 }
 0x8da   : > { %10401 = vmatmul.mubr.msk.bf16.vlgmr.msra.gmra.mrb[128].mxu1 %vm1181_vm2, %v6639_v30 }
 0x8db   : > { %10420 = vmatprep.mubr.msk.bf16.mxu1 %vm11824_vm11, %v17343_v44 }
 0x8e5   : > { %v15557_v11 = vpop.f32.mrb[88].mxu1 }
 0x8e6   : > { %v10288_v24 = vpop.f32.mrb[89].mxu1 }
 0x8e7   : > { %v15559_v17 = vpop.f32.mrb[90].mxu1  ;;  %v10654_v24 = vld [vmem:[%s17105_s11 + $0x8] sm:$0xff]  }
 0x8e8   : > { %v10289_v42 = vpop.f32.mrb[91].mxu1  ;;  %10406 = vmatprep.subr.bf16.mxu0 %v10654_v24 }
 0x8e9   : > { %10407 = vmatpush3.bf16.msra.mxu0 %v10654_v24  ;;  %v11570_v24 = vld [vmem:[%s12058_s0 + $0x130] sm:$0xff] }
 0x8ed   : > { %v15561_v40 = vpop.f32.mrb[92].mxu1  ;;  %v15563_v5 = vpop.f32.mrb[96].mxu0 }
 0x8ee   : > { %v10294_v28 = vpop.f32.mrb[93].mxu1  ;;  %v10300_v3 = vpop.f32.mrb[97].mxu0 }
 0x8ef   : > { %v15565_v27 = vpop.f32.mrb[94].mxu1  ;;  %v15567_v37 = vpop.f32.mrb[98].mxu0 }
 0x8f0   : > { %v10295_v35 = vpop.f32.mrb[95].mxu1  ;;  %v10301_v48 = vpop.f32.mrb[99].mxu0 }
 0x8f1   : > { %v10655_v48 = vld [vmem:[%s17105_s11 + $0x10] ss:$0 sps:$4 sm:$0xff]  }
 0x8f2   : > { %10565 = vmatprep.subr.msk.bf16.mxu0 %vm994_vm0, %v10655_v48 }
 0x8f5   : > { %v15569_v58 = vpop.f32.mrb[96].mxu1 }
 0x8f6   : > { %v10306_v53 = vpop.f32.mrb[97].mxu1 }
 0x8f7   : > { %v15571_v45 = vpop.f32.mrb[98].mxu1 }
 0x8f8   : > { %v10307_v15 = vpop.f32.mrb[99].mxu1 }
 0x943   : > { %v5747_v49 = vpop.f32.mrb[100].mxu1 }
 0x944   : > { %6840 = vrot.lane.b32.xlu0 %v5747_v49, %s17447_s21  ;;  %v5699_v56 = vpop.f32.mrb[100].mxu0  ;;  %v10318_v41 = vpop.f32.mrb[101].mxu1  ;;  %v7051_v49 = vsel %vm994_vm0, %v10655_v48, 0 }
 0x945   : > { %v10312_v43 = vpop.f32.mrb[101].mxu0  ;;  %v5750_v46 = vpop.f32.mrb[102].mxu1  ;;  %10409 = vmatpush3.bf16.msra.mxu0 %v7051_v49  ;;  %v11573_v49 = vld [vmem:[%s12058_s0 + $0x200] sm:$0xff] }
 0x946   : > { %6842 = vrot.lane.b32.xlu1 %v5750_v46, %s17447_s21  ;;  %v5702_v33 = vpop.f32.mrb[102].mxu0  ;;  %v10319_v10 = vpop.f32.mrb[103].mxu1  ;;  %10436 = vmatprep.subr.bf16.mxu0 %v17343_v44 }
 0x947   : > { %v10313_v22 = vpop.f32.mrb[103].mxu0 }
 0x948   : > { %6836 = vrot.lane.b32.xlu0 %v5699_v56, %s17447_s21 }
 0x94a   : > { %6838 = vrot.lane.b32.xlu1 %v5702_v33, %s17447_s21 }
 0x94e   : > { %v5843_v13 = vpop.f32.mrb[104].mxu1 }
 0x94f   : > { %v10330_v9 = vpop.f32.mrb[105].mxu1  ;;  %6848 = vrot.lane.b32.xlu0 %v5843_v13, %s17447_s21  ;;  %v5795_v38 = vpop.f32.mrb[104].mxu0  ;;  %v15610_v13 = vstv %s9746_s26  ;;  %s15638_s26 = sld [smem:[#allocation2 + $0x185]] }
 0x950   : > { %v10324_v1 = vpop.f32.mrb[105].mxu0  ;;  %v5846_v19 = vpop.f32.mrb[106].mxu1  ;;  %v15612_v9 = vstv %s9747_s22  ;;  %s15675_s22 = sld [smem:[#allocation5 + $0x180]] }
 0x951   : > { %v10331_v50 = vpop.f32.mrb[107].mxu1  ;;  %6850 = vrot.lane.b32.xlu1 %v5846_v19, %s17447_s21  ;;  %v5798_v54 = vpop.f32.mrb[106].mxu0 }
 0x952   : > { %v10325_v21 = vpop.f32.mrb[107].mxu0  ;;  %v11558_v50 = vld [vmem:[%s12058_s0] sm:$0xff] }
 0x953   : > { %6844 = vrot.lane.b32.xlu0 %v5795_v38, %s17447_s21  ;;  %v11559_v21 = vld [vmem:[%s12058_s0 + $0x10] sm:$0xff] }
 0x955   : > { %6846 = vrot.lane.b32.xlu1 %v5798_v54, %s17447_s21  ;;  %v7120_v54 = vmul.f32 %v11558_v50, %v15610_v13  ;;  %v15673_v50 = vstv %s15638_s26  ;;  %s15729_s26 = sld [smem:[#allocation2 + $0x189]] }
 0x956   : > { %v6075_v0 = vpop.f32.mrb[108].mxu1 }
 0x957   : > { %v10342_v2 = vpop.f32.mrb[109].mxu1  ;;  %6872 = vrot.lane.b32.xlu0 %v6075_v0, %s17283_s27  ;;  %v6028_v47 = vpop.f32.mrb[108].mxu0  ;;  %v7130_v0 = vmul.f32 %v11559_v21, %v15612_v9  ;;  %v11578_v21 = vld [vmem:[%s12058_s0 + $0x140] sm:$0xff] }
 0x958   : > { %v10336_v14 = vpop.f32.mrb[109].mxu0  ;;  %v6078_v25 = vpop.f32.mrb[110].mxu1 }
 0x959   : > { %v10343_v39 = vpop.f32.mrb[111].mxu1  ;;  %6874 = vrot.lane.b32.xlu1 %v6078_v25, %s17283_s27  ;;  %v6031_v63 = vpop.f32.mrb[110].mxu0  ;;  %v11560_v14 = vld [vmem:[%s12058_s0 + $0x100] sm:$0xff] }
 0x95a   : > { %v10337_v6 = vpop.f32.mrb[111].mxu0  ;;  %v7122_v25 = vmul.f32 %v11560_v14, %v15610_v13  ;;  %v11561_v39 = vld [vmem:[%s12058_s0 + $0x110] sm:$0xff]  ;;  %v11579_v14 = vld [vmem:[%s12058_s0 + $0x48] sm:$0xff] }
 0x95b   : > { %6868 = vrot.lane.b32.xlu0 %v6028_v47, %s17283_s27  ;;  %v15620_v47 = vstv %s9748_s2  ;;  %s15699_s2 = sld [smem:[#allocation2 + $0x186]] }
 0x95d   : > { %6870 = vrot.lane.b32.xlu1 %v6031_v63, %s17283_s27  ;;  %v7132_v63 = vmul.f32 %v11561_v39, %v15612_v9 }
 0x95e   : > { %v6169_v55 = vpop.f32.mrb[112].mxu1 }
 0x95f   : > { %v10354_v7 = vpop.f32.mrb[113].mxu1  ;;  %6880 = vrot.lane.b32.xlu0 %v6169_v55, %s17283_s27  ;;  %v6122_v29 = vpop.f32.mrb[112].mxu0  ;;  %v11562_v55 = vld [vmem:[%s12058_s0 + $0x8] sm:$0xff] }
 0x960   : > { %v10348_v18 = vpop.f32.mrb[113].mxu0  ;;  %v6172_v32 = vpop.f32.mrb[114].mxu1  ;;  %v7121_v7 = vmul.f32 %v11562_v55, %v15610_v13 }
 0x961   : > { %v10355_v31 = vpop.f32.mrb[115].mxu1  ;;  %6882 = vrot.lane.b32.xlu1 %v6172_v32, %s17283_s27  ;;  %v6125_v4 = vpop.f32.mrb[114].mxu0  ;;  %v7138_v32 = vadd.f32 %v7130_v0, %v7120_v54 }
 0x962   : > { %v10349_v51 = vpop.f32.mrb[115].mxu0  ;;  %v11564_v31 = vld [vmem:[%s12058_s0 + $0x20] sm:$0xff] }
 0x963   : > { %6876 = vrot.lane.b32.xlu0 %v6122_v29, %s17283_s27  ;;  %v11563_v29 = vld [vmem:[%s12058_s0 + $0x18] sm:$0xff]  ;;  %v15636_v51 = vstv %s9749_s20  ;;  %s15705_s20 = sld [smem:[#allocation2 + $0x187]] }
 0x964   : > { %v7131_v18 = vmul.f32 %v11563_v29, %v15612_v9 }
 0x965   : > { %6878 = vrot.lane.b32.xlu1 %v6125_v4, %s17283_s27  ;;  %v7148_v4 = vmul.f32 %v11564_v31, %v15620_v47 }
 0x967   : > { %v7156_v34 = vadd.f32 %v7148_v4, %v7138_v32  ;;  %v11582_v32 = vld [vmem:[%s12058_s0 + $0x228] sm:$0xff] }
 0x968   : > { %v7153_v31 = vmul.f32 %v11582_v32, %v15620_v47 }
 0x991   : > { %v6354_v52 = vpop.f32.mrb[116].mxu0 }
 0x992   : > { %v10360_v61 = vpop.f32.mrb[117].mxu0 }
 0x993   : > { %v6357_v59 = vpop.f32.mrb[118].mxu0  ;;  %v11565_v61 = vld [vmem:[%s12058_s0 + $0x120] sm:$0xff] }
 0x994   : > { %v10361_v16 = vpop.f32.mrb[119].mxu0 }
 0x995   : > { %v6401_v12 = vpop.f32.mrb[116].mxu1  ;;  %v7139_v16 = vadd.f32 %v7131_v18, %v7121_v7  ;;  %v11581_v7 = vld [vmem:[%s12058_s0 + $0x220] sm:$0xff] }
 0x996   : > { %v10366_v26 = vpop.f32.mrb[117].mxu1  ;;  %6904 = vrot.lane.b32.xlu0 %v6401_v12, %s11835_s25  ;;  %v11566_v12 = vld [vmem:[%s12058_s0 + $0x28] sm:$0xff]  ;;  %v7152_v29 = vmul.f32 %v11581_v7, %v15620_v47  ;;  %v11598_v7 = vld [vmem:[%s12058_s0 + $0x330] sm:$0xff] }
 0x997   : > { %v6404_v36 = vpop.f32.mrb[118].mxu1  ;;  %v7149_v26 = vmul.f32 %v11566_v12, %v15620_v47  ;;  %v11585_v12 = vld [vmem:[%s12058_s0 + $0x310] sm:$0xff] }
 0x998   : > { %v10367_v62 = vpop.f32.mrb[119].mxu1  ;;  %6906 = vrot.lane.b32.xlu1 %v6404_v36, %s11835_s25  ;;  %v11567_v36 = vld [vmem:[%s12058_s0 + $0x108] sm:$0xff] }
 0x999   : > { %v6448_v60 = vpop.f32.mrb[120].mxu0  ;;  %v7123_v62 = vmul.f32 %v11567_v36, %v15610_v13 }
 0x99a   : > { %6900 = vrot.lane.b32.xlu0 %v6354_v52, %s11835_s25  ;;  %v10372_v20 = vpop.f32.mrb[121].mxu0  ;;  %v7140_v52 = vadd.f32 %v7132_v63, %v7122_v25  ;;  %v11580_v63 = vld [vmem:[%s12058_s0 + $0x138] sm:$0xff] }
 0x99b   : > { %v6451_v8 = vpop.f32.mrb[122].mxu0 }
 0x99c   : > { %6902 = vrot.lane.b32.xlu1 %v6357_v59, %s11835_s25  ;;  %v10373_v23 = vpop.f32.mrb[123].mxu0  ;;  %v7150_v59 = vmul.f32 %v11565_v61, %v15620_v47 }
 0x99d   : > { %v6495_v57 = vpop.f32.mrb[120].mxu1 }
 0x99e   : > { %v10378_v30 = vpop.f32.mrb[121].mxu1  ;;  %6908 = vrot.lane.b32.xlu0 %v6448_v60, %s11835_s25  ;;  %v11568_v60 = vld [vmem:[%s12058_s0 + $0x118] sm:$0xff] }
 0x99f   : > { %v6498_v42 = vpop.f32.mrb[122].mxu1  ;;  %v7133_v20 = vmul.f32 %v11568_v60, %v15612_v9  ;;  %v7158_v30 = vadd.f32 %v7150_v59, %v7140_v52  ;;  %v11583_v52 = vld [vmem:[%s12058_s0 + $0x50] sm:$0xff]  ;;  %v11584_v59 = vld [vmem:[%s12058_s0 + $0x300] sm:$0xff] }
 0x9a0   : > { %v10379_v28 = vpop.f32.mrb[123].mxu1  ;;  %6910 = vrot.lane.b32.xlu1 %v6451_v8, %s11835_s25  ;;  %v11569_v8 = vld [vmem:[%s12058_s0 + $0x30] sm:$0xff]  ;;  %v7202_v61 = vmul.f32 %v11583_v52, %v15673_v50  ;;  %v15735_v52 = vstv %s15699_s2  ;;  %s15835_s2 = sld [smem:[#allocation2 + $0x18a]] }
 0x9a1   : > { %v6680_v3 = vpop.f32.mrb[124].mxu0  ;;  %v7166_v23 = vmul.f32 %v11569_v8, %v15636_v51  ;;  %v7157_v28 = vadd.f32 %v7149_v26, %v7139_v16  ;;  %v7141_v48 = vadd.f32 %v7133_v20, %v7123_v62  ;;  %v7126_v16 = vmul.f32 %v11584_v59, %v15610_v13  ;;  %v11586_v62 = vld [vmem:[%s12058_s0 + $0x150] sm:$0xff]  ;;  %v11587_v20 = vld [vmem:[%s12058_s0 + $0x308] sm:$0xff]  ;;  %v11588_v8 = vld [vmem:[%s12058_s0 + $0x318] sm:$0xff] }
 0x9a2   : > { %v10384_v35 = vpop.f32.mrb[125].mxu0  ;;  %v7136_v26 = vmul.f32 %v11585_v12, %v15612_v9  ;;  %v7204_v60 = vmul.f32 %v11586_v62, %v15673_v50 }
 0x9a3   : > { %v6683_v53 = vpop.f32.mrb[126].mxu0 }
 0x9a4   : > { %v10385_v15 = vpop.f32.mrb[127].mxu0 }
 0x9a5   : > { %v6727_v56 = vpop.f32.mrb[124].mxu1 }
 0x9a6   : > { %v10390_v41 = vpop.f32.mrb[125].mxu1  ;;  %6936 = vrot.lane.b32.xlu0 %v6727_v56, %s11836_s24  ;;  %v7124_v56 = vmul.f32 %v11573_v49, %v15610_v13 }
 0x9a7   : > { %v6730_v43 = vpop.f32.mrb[126].mxu1  ;;  %v11574_v41 = vld [vmem:[%s12058_s0 + $0x210] sm:$0xff] }
 0x9a8   : > { %v10391_v46 = vpop.f32.mrb[127].mxu1  ;;  %6938 = vrot.lane.b32.xlu1 %v6730_v43, %s11836_s24  ;;  %v7134_v43 = vmul.f32 %v11574_v41, %v15612_v9  ;;  %v7144_v41 = vadd.f32 %v7136_v26, %v7126_v16  ;;  %v11600_v16 = vld [vmem:[%s12058_s0 + $0x250] sm:$0xff]  ;;  %v15741_v26 = vstv %s15705_s20  ;;  %s15837_s20 = sld [smem:[#allocation2 + $0x18b]] }
 0x9a9   : > { %v6774_v33 = vpop.f32.mrb[128].mxu0  ;;  %v11575_v46 = vld [vmem:[%s12058_s0 + $0x208] sm:$0xff]  ;;  %v7206_v12 = vmul.f32 %v11600_v16, %v15673_v50 }
 0x9aa   : > { %6932 = vrot.lane.b32.xlu0 %v6680_v3, %s11836_s24  ;;  %v10396_v10 = vpop.f32.mrb[129].mxu0  ;;  %v11571_v3 = vld [vmem:[%s12058_s0 + $0x38] sm:$0xff]  ;;  %v7142_v55 = vadd.f32 %v7134_v43, %v7124_v56  ;;  %v11593_v43 = vld [vmem:[%s12058_s0 + $0x320] sm:$0xff] }
 0x9ab   : > { %v6777_v22 = vpop.f32.mrb[130].mxu0  ;;  %v7167_v35 = vmul.f32 %v11571_v3, %v15636_v51  ;;  %v11576_v10 = vld [vmem:[%s12058_s0 + $0x218] sm:$0xff]  ;;  %v11590_v3 = vld [vmem:[%s12058_s0 + $0x148] sm:$0xff] }
 0x9ac   : > { %6934 = vrot.lane.b32.xlu1 %v6683_v53, %s11836_s24  ;;  %v10397_v38 = vpop.f32.mrb[131].mxu0  ;;  %v11572_v53 = vld [vmem:[%s12058_s0 + $0x128] sm:$0xff] }
 0x9ad   : > { %v6821_v1 = vpop.f32.mrb[128].mxu1  ;;  %v7151_v15 = vmul.f32 %v11572_v53, %v15620_v47  ;;  %v7174_v38 = vadd.f32 %v7166_v23, %v7156_v34  ;;  %v7127_v34 = vmul.f32 %v11587_v20, %v15610_v13  ;;  %v7137_v23 = vmul.f32 %v11588_v8, %v15612_v9  ;;  %v11602_v20 = vld [vmem:[%s12058_s0 + $0x340] sm:$0xff] }
 0x9ae   : > { %v10402_v19 = vpop.f32.mrb[129].mxu1  ;;  %6912 = vrot.lane.b32.xlu0 %v6495_v57, %s11835_s25  ;;  %v15653_v57 = vstv %s15622_s3  ;;  %s15713_s3 = sld [smem:[#allocation2 + $0x188]] }
 0x9af   : > { %v6824_v2 = vpop.f32.mrb[130].mxu1  ;;  %v7186_v0 = vmul.f32 %v11578_v21, %v15653_v57  ;;  %v7185_v25 = vmul.f32 %v11579_v14, %v15653_v57  ;;  %v7159_v39 = vadd.f32 %v7151_v15, %v7141_v48  ;;  %v7160_v48 = vadd.f32 %v7152_v29, %v7142_v55  ;;  %v11592_v15 = vld [vmem:[%s12058_s0 + $0x238] sm:$0xff]  ;;  %v11596_v14 = vld [vmem:[%s12058_s0 + $0x240] sm:$0xff] }
 0x9b0   : > { %v10403_v6 = vpop.f32.mrb[131].mxu1  ;;  %6914 = vrot.lane.b32.xlu1 %v6498_v42, %s11835_s25  ;;  %v7168_v42 = vmul.f32 %v11570_v24, %v15636_v51  ;;  %v11589_v24 = vld [vmem:[%s12058_s0 + $0x58] sm:$0xff]  ;;  %v7171_v49 = vmul.f32 %v11592_v15, %v15636_v51  ;;  %v7172_v29 = vmul.f32 %v11598_v7, %v15636_v51  ;;  %v11612_v7 = vld [vmem:[%s12058_s0 + $0x160] sm:$0xff] }
 0x9b1   : > { %v7169_v6 = vmul.f32 %v11580_v63, %v15636_v51  ;;  %v11595_v21 = vld [vmem:[%s12058_s0 + $0x158] sm:$0xff]  ;;  %v11597_v63 = vld [vmem:[%s12058_s0 + $0x248] sm:$0xff] }
 0x9b2   : > { %6940 = vrot.lane.b32.xlu0 %v6774_v33, %s11836_s24  ;;  %v7125_v33 = vmul.f32 %v11575_v46, %v15610_v13  ;;  %v7176_v54 = vadd.f32 %v7168_v42, %v7158_v30  ;;  %v7203_v42 = vmul.f32 %v11589_v24, %v15673_v50  ;;  %v11591_v13 = vld [vmem:[%s12058_s0 + $0x230] sm:$0xff]  ;;  %v7154_v46 = vmul.f32 %v11593_v43, %v15620_v47  ;;  %v11604_v24 = vld [vmem:[%s12058_s0 + $0x60] sm:$0xff]  ;;  %v17526_v43 = vld [vmem:[#allocation20_spill] sm:$0xff] }
 0x9b3   : > { %v7170_v53 = vmul.f32 %v11591_v13, %v15636_v51  ;;  %v11606_v13 = vld [vmem:[%s12058_s0 + $0x68] sm:$0xff] }
 0x9b4   : > { %6942 = vrot.lane.b32.xlu1 %v6777_v22, %s11836_s24  ;;  %v7135_v22 = vmul.f32 %v11576_v10, %v15612_v9  ;;  %v7194_v36 = vadd.f32 %v7186_v0, %v7176_v54  ;;  %v7205_v0 = vmul.f32 %v11595_v21, %v15673_v50 }
 0x9b6   : > { %6944 = vrot.lane.b32.xlu0 %v6821_v1, %s11836_s24  ;;  %v11577_v1 = vld [vmem:[%s12058_s0 + $0x40] sm:$0xff]  ;;  %v7143_v18 = vadd.f32 %v7135_v22, %v7125_v33  ;;  %v15716_v33 = vstv %s15675_s22  ;;  %v7212_v10 = vadd.f32 %v7204_v60, %v7194_v36  ;;  %v7145_v22 = vadd.f32 %v7137_v23, %v7127_v34  ;;  %v11601_v60 = vld [vmem:[%s12058_s0 + $0x258] sm:$0xff]  ;;  %s15779_s22 = sld [smem:[#allocation5 + $0x181]] }
 0x9b7   : > { %v7184_v19 = vmul.f32 %v11577_v1, %v15653_v57  ;;  %v7190_v34 = vmul.f32 %v11602_v20, %v15653_v57  ;;  %v11603_v23 = vld [vmem:[%s12058_s0 + $0x348] sm:$0xff] }
 0x9b8   : > { %6946 = vrot.lane.b32.xlu1 %v6824_v2, %s11836_s24  ;;  %v7175_v2 = vadd.f32 %v7167_v35, %v7157_v28  ;;  %v7177_v28 = vadd.f32 %v7169_v6, %v7159_v39  ;;  %v7187_v35 = vmul.f32 %v11590_v3, %v15653_v57  ;;  %v7161_v9 = vadd.f32 %v7153_v31, %v7143_v18  ;;  %v11599_v31 = vld [vmem:[%s12058_s0 + $0x338] sm:$0xff] }
 0x9b9   : > { %v7192_v4 = vadd.f32 %v7184_v19, %v7174_v38  ;;  %v11594_v38 = vld [vmem:[%s12058_s0 + $0x328] sm:$0xff]  ;;  %v7189_v6 = vmul.f32 %v11597_v63, %v15653_v57  ;;  %v7222_v18 = vadd.f32 %v15716_v33, %v7212_v10 }
 0x9ba   : > { %v7193_v30 = vadd.f32 %v7185_v25, %v7175_v2  ;;  %v7155_v1 = vmul.f32 %v11594_v38, %v15620_v47  ;;  %v7195_v54 = vadd.f32 %v7187_v35, %v7177_v28  ;;  %v7178_v2 = vadd.f32 %v7170_v53, %v7160_v48  ;;  %v11605_v35 = vld [vmem:[%s12058_s0 + $0x70] sm:$0xff] }
 0x9bb   : > { %v7210_v56 = vadd.f32 %v7202_v61, %v7192_v4  ;;  %v7188_v25 = vmul.f32 %v11596_v14, %v15653_v57  ;;  %v7179_v39 = vadd.f32 %v7171_v49, %v7161_v9  ;;  %v7162_v47 = vadd.f32 %v7154_v46, %v7144_v41  ;;  %v11607_v9 = vld [vmem:[%s12058_s0 + $0x78] sm:$0xff]  ;;  %v11608_v38 = vld [vmem:[%s12058_s0 + $0x350] sm:$0xff] }
 0x9bc   : > { %v7211_v19 = vadd.f32 %v7203_v42, %v7193_v30  ;;  %v7163_v32 = vadd.f32 %v7155_v1, %v7145_v22  ;;  %v7173_v4 = vmul.f32 %v11599_v31, %v15636_v51  ;;  %v7213_v59 = vadd.f32 %v7205_v0, %v7195_v54 }
 0x9bd   : > { %v7220_v55 = vadd.f32 %v15716_v33, %v7210_v56  ;;  %v7196_v36 = vadd.f32 %v7188_v25, %v7178_v2  ;;  %v7197_v62 = vadd.f32 %v7189_v6, %v7179_v39  ;;  %v7207_v51 = vmul.f32 %v11601_v60, %v15673_v50  ;;  %v17525_v56 = vld [vmem:[#allocation23_spill] sm:$0xff] }
 0x9be   : > { %v7221_v61 = vadd.f32 %v15716_v33, %v7211_v19  ;;  %v7180_v8 = vadd.f32 %v7172_v29, %v7162_v47  ;;  %v7191_v30 = vmul.f32 %v11603_v23, %v15653_v57  ;;  %v7510_v42 = vmul.f32 %v11604_v24, %v15735_v52  ;;  %v17524_v57 = vld [vmem:[#allocation21_spill] sm:$0xff]  ;;  %v11609_v19 = vld [vmem:[%s12058_s0 + $0x358] sm:$0xff]  ;;  %v11610_v2 = vld [vmem:[%s12058_s0 + $0x80] sm:$0xff] }
 0x9bf   : > { %v15752_v28 = vstv %s15713_s3  ;;  %v7181_v3 = vadd.f32 %v7173_v4, %v7163_v32  ;;  %v7520_v48 = vmul.f32 %v11605_v35, %v15741_v26  ;;  %v7511_v53 = vmul.f32 %v11606_v13, %v15735_v52  ;;  %v11613_v29 = vld [vmem:[%s12058_s0 + $0x170] sm:$0xff]  ;;  %v11614_v32 = vld [vmem:[%s12058_s0 + $0x168] sm:$0xff]  ;;  %v11615_v4 = vld [vmem:[%s12058_s0 + $0x178] sm:$0xff]  ;;  %s15894_s3 = sld [smem:[#allocation5 + $0x182]] }
 0x9c0   : > { %v7521_v15 = vmul.f32 %v11607_v9, %v15741_v26  ;;  %v15761_v49 = vadd.f32 %v7220_v55, %v17524_v57  ;;  %v15764_v41 = vadd.f32 %v7222_v18, %v17525_v56  ;;  %v15767_v46 = vadd.f32 %v7221_v61, %v17526_v43  ;;  %v11611_v55 = vld [vmem:[%s12058_s0 + $0x88] sm:$0xff]  ;;  %v11617_v24 = vld [vmem:[%s12058_s0 + $0x98] sm:$0xff] }
 0x9c1   : > { %v7223_v10 = vadd.f32 %v15716_v33, %v7213_v59  ;;  %v7214_v22 = vadd.f32 %v7206_v12, %v7196_v36  ;;  %v7208_v1 = vmul.f32 %v11608_v38, %v15673_v50  ;;  %v7209_v54 = vmul.f32 %v11609_v19, %v15673_v50  ;;  %v17528_v12 = vld [vmem:[#allocation22_spill] sm:$0xff]  ;;  %v11619_v9 = vld [vmem:[%s12058_s0 + $0x188] sm:$0xff] }
 0x9c2   : > { %17527 = vst [vmem:[#allocation37_spill] sm:$0xff] %v15767_v46  ;;  %v7215_v21 = vadd.f32 %v7207_v51, %v7197_v62  ;;  %v7198_v0 = vadd.f32 %v7190_v34, %v7180_v8  ;;  %v7538_v14 = vmul.f32 %v11610_v2, %v15752_v28  ;;  %v15777_v25 = vstv %s15729_s26  ;;  %v11616_v34 = vld [vmem:[%s12058_s0 + $0x90] sm:$0xff]  ;;  %s15944_s26 = sld [smem:[#allocation2 + $0x18c]] }
 0x9c3   : > { %v7199_v39 = vadd.f32 %v7191_v30, %v7181_v3  ;;  %v7528_v63 = vadd.f32 %v7520_v48, %v7510_v42  ;;  %v7529_v6 = vadd.f32 %v7521_v15, %v7511_v53  ;;  %v7539_v47 = vmul.f32 %v11611_v55, %v15752_v28  ;;  %v11618_v3 = vld [vmem:[%s12058_s0 + $0x180] sm:$0xff] }
 0x9c4   : > { %v7512_v50 = vmul.f32 %v11612_v7, %v15735_v52  ;;  %v7522_v18 = vmul.f32 %v11613_v29, %v15741_v26  ;;  %v7513_v31 = vmul.f32 %v11614_v32, %v15735_v52  ;;  %v7523_v61 = vmul.f32 %v11615_v4, %v15741_v26  ;;  %v11624_v29 = vld [vmem:[%s12058_s0 + $0x190] sm:$0xff] }
 0x9c5   : > { %v7236_v59 = vsel %vm1181_vm2, %v15761_v49, -inf  ;;  %v7242_v16 = vsel %vm1181_vm2, %v15764_v41, -inf  ;;  %v15796_v36 = vadd.f32 %v7223_v10, %v17528_v12  ;;  %v7224_v62 = vadd.f32 %v15716_v33, %v7214_v22  ;;  %v17530_v22 = vld [vmem:[#allocation25_spill] sm:$0xff] }
 0x9c6   : > { %v7239_v60 = vsel %vm1181_vm2, %v15767_v46, -inf  ;;  %v7225_v51 = vadd.f32 %v15716_v33, %v7215_v21  ;;  %v7216_v20 = vadd.f32 %v7208_v1, %v7198_v0  ;;  %v7556_v8 = vmul.f32 %v11616_v34, %v15777_v25  ;;  %v11620_v1 = vld [vmem:[%s12058_s0 + $0x268] sm:$0xff] }
 0x9c7   : > { %17529 = vst [vmem:[#allocation41_spill] sm:$0xff] %v15796_v36  ;;  %v7217_v23 = vadd.f32 %v7209_v54, %v7199_v39  ;;  %v7546_v30 = vadd.f32 %v7538_v14, %v7528_v63  ;;  %v7557_v42 = vmul.f32 %v11617_v24, %v15777_v25  ;;  %v7540_v35 = vmul.f32 %v11618_v3, %v15752_v28  ;;  %v11621_v54 = vld [vmem:[%s12058_s0 + $0x278] sm:$0xff]  ;;  %v17532_v0 = vld [vmem:[#allocation24_spill] sm:$0xff]  ;;  %v11622_v39 = vld [vmem:[%s12058_s0 + $0x260] sm:$0xff] }
 0x9c8   : > { %v7547_v48 = vadd.f32 %v7539_v47, %v7529_v6  ;;  %v7530_v13 = vadd.f32 %v7522_v18, %v7512_v50  ;;  %v7531_v53 = vadd.f32 %v7523_v61, %v7513_v31  ;;  %v7541_v15 = vmul.f32 %v11619_v9, %v15752_v28  ;;  %v11623_v6 = vld [vmem:[%s12058_s0 + $0x270] sm:$0xff]  ;;  %v11625_v61 = vld [vmem:[%s12058_s0 + $0x198] sm:$0xff]  ;;  %v11629_v24 = vld [vmem:[%s12058_s0 + $0x280] sm:$0xff] }
 0x9c9   : > { %v7245_v10 = vsel %vm1181_vm2, %v15796_v36, -inf  ;;  %v15813_v38 = vadd.f32 %v7224_v62, %v17530_v22  ;;  %v7515_v19 = vmul.f32 %v11620_v1, %v15735_v52  ;;  %v7525_v21 = vmul.f32 %v11621_v54, %v15741_v26  ;;  %v11626_v62 = vld [vmem:[%s12058_s0 + $0x288] sm:$0xff]  ;;  %v11630_v3 = vld [vmem:[%s12058_s0 + $0x360] sm:$0xff] }
 0x9ca   : > { %v15820_v2 = vadd.f32 %v7225_v51, %v17532_v0  ;;  %v15823_v14 = vstv %s15779_s22  ;;  %v7514_v63 = vmul.f32 %v11622_v39, %v15735_v52  ;;  %v7524_v55 = vmul.f32 %v11623_v6, %v15741_v26  ;;  %v17534_v9 = vld [vmem:[#allocation27_spill] sm:$0xff]  ;;  %v11632_v6 = vld [vmem:[%s12058_s0 + $0x298] sm:$0xff]  ;;  %s15946_s22 = sld [smem:[#allocation2 + $0x18d]] }
 0x9cb   : > { %17531 = vst [vmem:[#allocation28_spill] sm:$0xff] %v15813_v38  ;;  %v7226_v47 = vadd.f32 %v15716_v33, %v7216_v20  ;;  %v7227_v7 = vadd.f32 %v15716_v33, %v7217_v23  ;;  %v7564_v50 = vadd.f32 %v7556_v8, %v7546_v30  ;;  %v7558_v18 = vmul.f32 %v11624_v29, %v15777_v25  ;;  %v11627_v20 = vld [vmem:[%s12058_s0 + $0x368] sm:$0xff]  ;;  %v11628_v8 = vld [vmem:[%s12058_s0 + $0x378] sm:$0xff] }
 0x9cc   : > { %17533 = vst [vmem:[#allocation31_spill] sm:$0xff] %v15820_v2  ;;  %v7565_v32 = vadd.f32 %v7557_v42, %v7547_v48  ;;  %v7548_v31 = vadd.f32 %v7540_v35, %v7530_v13  ;;  %v7549_v4 = vadd.f32 %v7541_v15, %v7531_v53  ;;  %v7533_v33 = vadd.f32 %v7525_v21, %v7515_v19  ;;  %v11631_v48 = vld [vmem:[%s12058_s0 + $0x370] sm:$0xff]  ;;  %v15859_v19 = vpop.permute.xlu0 %6840 }
 0x9cd   : > { %v7543_v51 = vmul.f32 %v11626_v62, %v15752_v28  ;;  %v7517_v34 = vmul.f32 %v11627_v20, %v15735_v52  ;;  %v7527_v23 = vmul.f32 %v11628_v8, %v15741_v26  ;;  %v7532_v30 = vadd.f32 %v7524_v55, %v7514_v63 }
 0x9ce   : > { %v7542_v42 = vmul.f32 %v11629_v24, %v15752_v28  ;;  %v7516_v35 = vmul.f32 %v11630_v3, %v15735_v52  ;;  %v7248_v13 = vsel %vm1181_vm2, %v15813_v38, -inf  ;;  %v7251_v53 = vsel %vm1181_vm2, %v15820_v2, -inf  ;;  %v17536_v52 = vld [vmem:[#allocation26_spill] sm:$0xff] }
 0x9cf   : > { %v15856_v15 = vadd.f32 %v7226_v47, %v17534_v9  ;;  %v7574_v1 = vadd.f32 %v15823_v14, %v7564_v50  ;;  %v15862_v54 = vadd.f32 %v7227_v7, %v17536_v52  ;;  %v7566_v21 = vadd.f32 %v7558_v18, %v7548_v31  ;;  %v11633_v50 = vld [vmem:[%s12058_s0 + $0x388] sm:$0xff]  ;;  %v11635_v31 = vld [vmem:[%s12058_s0 + $0x380] sm:$0xff]  ;;  %v11679_v2 = vld [vmem:[%s12058_s0 + $0x2f8] sm:$0xff] }
 0x9d0   : > { %v7551_v63 = vadd.f32 %v7543_v51, %v7533_v33  ;;  %v7561_v55 = vmul.f32 %v11632_v6, %v15777_v25  ;;  %v7535_v47 = vadd.f32 %v7527_v23, %v7517_v34  ;;  %v7545_v29 = vmul.f32 %v11633_v50, %v15752_v28  ;;  %v11636_v23 = vld [vmem:[%s12058_s0 + $0x398] sm:$0xff]  ;;  %v15896_v24 = vpop.permute.xlu0 %6836 }
 0x9d1   : > { %17535 = vst [vmem:[#allocation42_spill] sm:$0xff] %v15856_v15  ;;  %17537 = vst [vmem:[#allocation38_spill] sm:$0xff] %v15862_v54  ;;  %v7550_v7 = vadd.f32 %v7542_v42, %v7532_v30  ;;  %v7257_v33 = vsel %vm1181_vm2, %v15862_v54, -inf  ;;  %v15886_v51 = vstv %s15835_s2  ;;  %v15889_v20 = vstv %s15837_s20  ;;  %s15998_s2 = sld [smem:[#allocation5 + $0x183]]  ;;  %s16049_s20 = sld [smem:[#allocation2 + $0x18e]]  ;;  %v11677_v54 = vld [vmem:[%s12058_s0 + $0x1f0] sm:$0xff] }
 0x9d2   : > { %v7569_v34 = vadd.f32 %v7561_v55, %v7551_v63  ;;  %v7553_v8 = vadd.f32 %v7545_v29, %v7535_v47  ;;  %v7563_v30 = vmul.f32 %v11636_v23, %v15777_v25  ;;  %v7576_v42 = vadd.f32 %v15823_v14, %v7566_v21  ;;  %v11640_v63 = vld [vmem:[%s12058_s0 + $0xa8] sm:$0xff]  ;;  %v11641_v55 = vld [vmem:[%s12058_s0 + $0xb8] sm:$0xff] }
 0x9d3   : > { %v7877_v6 = vmul.f32 %v11640_v63, %v15886_v51  ;;  %v7887_v21 = vmul.f32 %v11641_v55, %v15889_v20 }
 0x9d4   : > { %v7579_v50 = vadd.f32 %v15823_v14, %v7569_v34  ;;  %v7571_v29 = vadd.f32 %v7563_v30, %v7553_v8  ;;  %v11643_v8 = vld [vmem:[%s12058_s0 + $0x1b0] sm:$0xff]  ;;  %v11644_v30 = vld [vmem:[%s12058_s0 + $0x1a8] sm:$0xff] }
 0x9d5   : > { %7237 = vmax.xlane.f32.xlu0 %v7236_v59  ;;  %v7559_v59 = vmul.f32 %v11625_v61, %v15777_v25  ;;  %v11634_v61 = vld [vmem:[%s12058_s0 + $0x290] sm:$0xff]  ;;  %v7895_v34 = vadd.f32 %v7887_v21, %v7877_v6  ;;  %v7888_v23 = vmul.f32 %v11643_v8, %v15889_v20  ;;  %v11648_v8 = vld [vmem:[%s12058_s0 + $0x2a0] sm:$0xff] }
 0x9d7   : > { %v7567_v39 = vadd.f32 %v7559_v59, %v7549_v4  ;;  %v7254_v4 = vsel %vm1181_vm2, %v15856_v15, -inf  ;;  %v15878_v59 = vadd.f32 %v7574_v1, %v17524_v57  ;;  %v11639_v1 = vld [vmem:[%s12058_s0 + $0xb0] sm:$0xff] }
 0x9d9   : > { %7243 = vmax.xlane.f32.xlu0 %v7242_v16  ;;  %v7526_v16 = vmul.f32 %v11631_v48, %v15741_v26  ;;  %v7575_v26 = vadd.f32 %v15823_v14, %v7565_v32  ;;  %v7560_v32 = vmul.f32 %v11634_v61, %v15777_v25  ;;  %17538 = vst [vmem:[#allocation44_spill] sm:$0xff] %v15878_v59  ;;  %v11637_v48 = vld [vmem:[%s12058_s0 + $0x390] sm:$0xff]  ;;  %v7590_v61 = vsel %vm1181_vm2, %v15878_v59, -inf }
 0x9db   : > { %v7534_v18 = vadd.f32 %v7526_v16, %v7516_v35  ;;  %v15883_v62 = vadd.f32 %v7575_v26, %v17526_v43  ;;  %v7568_v3 = vadd.f32 %v7560_v32, %v7550_v7  ;;  %v7562_v16 = vmul.f32 %v11637_v48, %v15777_v25  ;;  %v15917_v7 = vpop.permute.xlu0 %6848 }
 0x9dc   : > { %7240 = vmax.xlane.f32.xlu1 %v7239_v60  ;;  %v15869_v60 = vpop.permute.xlu1 %6842  ;;  %v7886_v26 = vmul.f32 %v11639_v1, %v15889_v20  ;;  %v15922_v32 = vadd.f32 %v7576_v42, %v17525_v56  ;;  %v7879_v48 = vmul.f32 %v11644_v30, %v15886_v51  ;;  %v11645_v42 = vld [vmem:[%s12058_s0 + $0x1b8] sm:$0xff]  ;;  %v11649_v30 = vld [vmem:[%s12058_s0 + $0x2b0] sm:$0xff] }
 0x9dd   : > { %7246 = vmax.xlane.f32.xlu0 %v7245_v10  ;;  %v7544_v10 = vmul.f32 %v11635_v31, %v15752_v28  ;;  %17539 = vst [vmem:[#allocation43_spill] sm:$0xff] %v15883_v62  ;;  %v7577_v28 = vadd.f32 %v15823_v14, %v7567_v39  ;;  %v7593_v25 = vsel %vm1181_vm2, %v15883_v62, -inf }
 0x9de   : > { %17541 = vst [vmem:[#allocation48_spill] sm:$0xff] %v15922_v32  ;;  %v7596_v1 = vsel %vm1181_vm2, %v15922_v32, -inf }
 0x9df   : > { %v7552_v35 = vadd.f32 %v7544_v10, %v7534_v18  ;;  %v15914_v47 = vadd.f32 %v7577_v28, %v17528_v12  ;;  %v7578_v18 = vadd.f32 %v15823_v14, %v7568_v3  ;;  %v15954_v6 = vpop.permute.xlu0 %6844 }
 0x9e0   : > { %7252 = vmax.xlane.f32.xlu1 %v7251_v53  ;;  %v15905_v39 = vpop.permute.xlu1 %6838 }
 0x9e1   : > { %7249 = vmax.xlane.f32.xlu0 %v7248_v13  ;;  %v11638_v13 = vld [vmem:[%s12058_s0 + $0xa0] sm:$0xff]  ;;  %17540 = vst [vmem:[#allocation46_spill] sm:$0xff] %v15914_v47  ;;  %v7570_v31 = vadd.f32 %v7562_v16, %v7552_v35  ;;  %v7599_v3 = vsel %vm1181_vm2, %v15914_v47, -inf  ;;  %v15938_v35 = vadd.f32 %v7579_v50, %v17532_v0  ;;  %v7581_v16 = vadd.f32 %v15823_v14, %v7571_v29 }
 0x9e2   : > { %v7876_v53 = vmul.f32 %v11638_v13, %v15886_v51  ;;  %v7889_v13 = vmul.f32 %v11645_v42, %v15889_v20  ;;  %v11650_v42 = vld [vmem:[%s12058_s0 + $0x3a8] sm:$0xff]  ;;  %v11662_v47 = vld [vmem:[%s12058_s0 + $0x2c0] sm:$0xff] }
 0x9e3   : > { %17542 = vst [vmem:[#allocation45_spill] sm:$0xff] %v15938_v35  ;;  %v7580_v63 = vadd.f32 %v15823_v14, %v7570_v31  ;;  %v7605_v29 = vsel %vm1181_vm2, %v15938_v35, -inf  ;;  %v11646_v14 = vld [vmem:[%s12058_s0 + $0x2a8] sm:$0xff]  ;;  %v11647_v31 = vld [vmem:[%s12058_s0 + $0x2b8] sm:$0xff] }
 0x9e4   : > { %7258 = vmax.xlane.f32.xlu1 %v7257_v33  ;;  %v7894_v10 = vadd.f32 %v7886_v26, %v7876_v53  ;;  %v15927_v28 = vpop.permute.xlu1 %6850  ;;  %v15942_v53 = vstv %s15894_s3  ;;  %v15951_v26 = vadd.f32 %v7578_v18, %v17530_v22  ;;  %v7897_v50 = vadd.f32 %v7889_v13, %v7879_v48  ;;  %v11654_v35 = vld [vmem:[%s12058_s0 + $0xc8] sm:$0xff]  ;;  %s16051_s3 = sld [smem:[#allocation2 + $0x18f]] }
 0x9e5   : > { %7255 = vmax.xlane.f32.xlu0 %v7254_v4  ;;  %v11642_v4 = vld [vmem:[%s12058_s0 + $0x1a0] sm:$0xff]  ;;  %v7905_v21 = vadd.f32 %v15942_v53, %v7895_v34  ;;  %v7881_v18 = vmul.f32 %v11646_v14, %v15886_v51  ;;  %v15972_v34 = vadd.f32 %v7580_v63, %v17534_v9  ;;  %v7890_v48 = vmul.f32 %v11649_v30, %v15889_v20 }
 0x9e6   : > { %v7878_v33 = vmul.f32 %v11642_v4, %v15886_v51  ;;  %17543 = vst [vmem:[#allocation47_spill] sm:$0xff] %v15951_v26  ;;  %v7904_v55 = vadd.f32 %v15942_v53, %v7894_v10  ;;  %v7891_v10 = vmul.f32 %v11647_v31, %v15889_v20  ;;  %v7883_v13 = vmul.f32 %v11650_v42, %v15886_v51 }
 0x9e7   : > { %17545 = vst [vmem:[#allocation49_spill] sm:$0xff] %v15972_v34  ;;  %v15986_v63 = vadd.f32 %v7905_v21, %v17526_v43  ;;  %v7907_v31 = vadd.f32 %v15942_v53, %v7897_v50  ;;  %v15993_v42 = vstv %s15944_s26  ;;  %v7608_v21 = vsel %vm1181_vm2, %v15972_v34, -inf  ;;  %v11652_v50 = vld [vmem:[%s12058_s0 + $0x3a0] sm:$0xff]  ;;  %v11655_v34 = vld [vmem:[%s12058_s0 + $0xd8] sm:$0xff]  ;;  %s16102_s26 = sld [smem:[#allocation5 + $0x184]] }
 0x9e8   : > { %7594 = vmax.xlane.f32.xlu1 %v7593_v25  ;;  %v7896_v25 = vadd.f32 %v7888_v23, %v7878_v33  ;;  %v15967_v4 = vpop.permute.xlu1 %6846  ;;  %v7602_v33 = vsel %vm1181_vm2, %v15951_v26, -inf  ;;  %v7880_v23 = vmul.f32 %v11648_v8, %v15886_v51  ;;  %v7899_v30 = vadd.f32 %v7891_v10, %v7881_v18 }
 0x9e9   : > { %7591 = vmax.xlane.f32.xlu0 %v7590_v61  ;;  %v15961_v61 = vadd.f32 %v7581_v16, %v17536_v52  ;;  %17547 = vst [vmem:[#allocation51_spill] sm:$0xff] %v15986_v63  ;;  %v16011_v26 = vadd.f32 %v7907_v31, %v17528_v12  ;;  %v8203_v32 = vmul.f32 %v11654_v35, %v15993_v42  ;;  %v11656_v31 = vld [vmem:[%s12058_s0 + $0xc0] sm:$0xff] }
 0x9ea   : > { %v7906_v14 = vadd.f32 %v15942_v53, %v7896_v25  ;;  %v7898_v25 = vadd.f32 %v7890_v48, %v7880_v23  ;;  %v8206_v59 = vmul.f32 %v11662_v47, %v15993_v42  ;;  %v16100_v62 = vstv %s16051_s3 }
 0x9eb   : > { %17544 = vst [vmem:[#allocation50_spill] sm:$0xff] %v15961_v61  ;;  %v7611_v8 = vsel %vm1181_vm2, %v15961_v61, -inf  ;;  %17548 = vst [vmem:[#allocation54_spill] sm:$0xff] %v16011_v26  ;;  %v8543_v36 = vmul.f32 %v11679_v2, %v16100_v62 }
 0x9ec   : > { %7600 = vmax.xlane.f32.xlu1 %v7599_v3  ;;  %v11651_v3 = vld [vmem:[%s12058_s0 + $0x3b8] sm:$0xff]  ;;  %v16008_v10 = vpop.permute.xlu1 %6874  ;;  %v16022_v48 = vadd.f32 %v7906_v14, %v17525_v56  ;;  %v7929_v14 = vsel %vm1181_vm2, %v16011_v26, -inf }
 0x9ed   : > { %7597 = vmax.xlane.f32.xlu0 %v7596_v1  ;;  %v7893_v16 = vmul.f32 %v11651_v3, %v15889_v20  ;;  %v15983_v1 = vadd.f32 %v7904_v55, %v17524_v57  ;;  %v16000_v55 = vpop.permute.xlu0 %6872  ;;  %v11653_v3 = vld [vmem:[%s12058_s0 + $0x3b0] sm:$0xff] }
 0x9ee   : > { %v7892_v61 = vmul.f32 %v11653_v3, %v15889_v20  ;;  %v7923_v20 = vsel %vm1181_vm2, %v15986_v63, -inf  ;;  %17549 = vst [vmem:[#allocation53_spill] sm:$0xff] %v16022_v48  ;;  %v11661_v63 = vld [vmem:[%s12058_s0 + $0x1d8] sm:$0xff] }
 0x9ef   : > { %17546 = vst [vmem:[#allocation52_spill] sm:$0xff] %v15983_v1  ;;  %v7901_v18 = vadd.f32 %v7893_v16, %v7883_v13  ;;  %v7909_v13 = vadd.f32 %v15942_v53, %v7899_v30  ;;  %v7908_v16 = vadd.f32 %v15942_v53, %v7898_v25  ;;  %v11658_v25 = vld [vmem:[%s12058_s0 + $0x1c0] sm:$0xff] }
 0x9f0   : > { %7606 = vmax.xlane.f32.xlu1 %v7605_v29  ;;  %v15996_v29 = vstv %s15946_s22  ;;  %s17589_s22 = sld [smem:[#allocation69_spill]] }
 0x9f1   : > { %7603 = vmax.xlane.f32.xlu0 %v7602_v33  ;;  %v7882_v33 = vmul.f32 %v11652_v50, %v15886_v51  ;;  %v8213_v23 = vmul.f32 %v11655_v34, %v15996_v29  ;;  %v7920_v51 = vsel %vm1181_vm2, %v15983_v1, -inf  ;;  %v8202_v34 = vmul.f32 %v11656_v31, %v15993_v42  ;;  %v16031_v3 = vpop.permute.xlu0 %6868 }
 0x9f2   : > { %v7911_v50 = vadd.f32 %v15942_v53, %v7901_v18  ;;  %v16040_v31 = vadd.f32 %v7909_v13, %v17532_v0  ;;  %v11660_v18 = vld [vmem:[%s12058_s0 + $0x1c8] sm:$0xff]  ;;  %v16058_v13 = vadd.f32 %v7908_v16, %v17530_v22 }
 0x9f3   : > { %v7900_v35 = vadd.f32 %v7892_v61, %v7882_v33  ;;  %v8221_v30 = vadd.f32 %v8213_v23, %v8203_v32  ;;  %v8204_v61 = vmul.f32 %v11658_v25, %v15993_v42  ;;  %v11659_v33 = vld [vmem:[%s12058_s0 + $0x1d0] sm:$0xff]  ;;  %v8215_v32 = vmul.f32 %v11661_v63, %v15996_v29  ;;  %v16053_v23 = vpop.permute.xlu1 %6870 }
 0x9f4   : > { %7612 = vmax.xlane.f32.xlu1 %v7611_v8  ;;  %v11657_v8 = vld [vmem:[%s12058_s0 + $0xd0] sm:$0xff]  ;;  %v8214_v1 = vmul.f32 %v11659_v33, %v15996_v29  ;;  %17550 = vst [vmem:[#allocation55_spill] sm:$0xff] %v16040_v31  ;;  %17551 = vst [vmem:[#allocation33_spill] sm:$0xff] %v16058_v13  ;;  %v7932_v47 = vsel %vm1181_vm2, %v16058_v13, -inf }
 0x9f5   : > { %7609 = vmax.xlane.f32.xlu0 %v7608_v21  ;;  %v8212_v21 = vmul.f32 %v11657_v8, %v15996_v29  ;;  %v16043_v8 = vstv %s15998_s2  ;;  %v7910_v25 = vadd.f32 %v15942_v53, %v7900_v35  ;;  %v7935_v53 = vsel %vm1181_vm2, %v16040_v31, -inf  ;;  %s9815_s2 = sshll.u32 %s11983_s5, 10 }
 0x9f6   : > { %v8231_v63 = vadd.f32 %v16043_v8, %v8221_v30  ;;  %v8222_v26 = vadd.f32 %v8214_v1, %v8204_v61  ;;  %v16075_v1 = vpop.permute.xlu0 %6880  ;;  %v11666_v61 = vld [vmem:[%s12058_s0 + $0x3c8] sm:$0xff] }
 0x9f7   : > { %v8220_v33 = vadd.f32 %v8212_v21, %v8202_v34  ;;  %v11664_v34 = vld [vmem:[%s12058_s0 + $0x2c8] sm:$0xff]  ;;  %v16080_v30 = vadd.f32 %v7910_v25, %v17534_v9 }
 0x9f8   : > { %7924 = vmax.xlane.f32.xlu1 %v7923_v20  ;;  %v8205_v20 = vmul.f32 %v11660_v18, %v15993_v42  ;;  %v16062_v18 = vadd.f32 %v7911_v50, %v17536_v52  ;;  %v8207_v21 = vmul.f32 %v11664_v34, %v15993_v42  ;;  %v11665_v50 = vld [vmem:[%s12058_s0 + $0x2d8] sm:$0xff]  ;;  %v16087_v34 = vpop.permute.xlu1 %6882  ;;  %v16092_v25 = vadd.f32 %v8231_v63, %v17526_v43 }
 0x9f9   : > { %7921 = vmax.xlane.f32.xlu0 %v7920_v51  ;;  %v7926_v51 = vsel %vm1181_vm2, %v16022_v48, -inf  ;;  %v11663_v48 = vld [vmem:[%s12058_s0 + $0x2d0] sm:$0xff]  ;;  %17553 = vst [vmem:[#allocation32_spill] sm:$0xff] %v16080_v30  ;;  %v8232_v13 = vadd.f32 %v16043_v8, %v8222_v26  ;;  %v11668_v26 = vld [vmem:[%s12058_s0 + $0x3c0] sm:$0xff] }
 0x9fa   : > { %17552 = vst [vmem:[#allocation39_spill] sm:$0xff] %v16062_v18  ;;  %v8216_v16 = vmul.f32 %v11663_v48, %v15996_v29  ;;  %v8223_v35 = vadd.f32 %v8215_v32, %v8205_v20  ;;  %v8230_v48 = vadd.f32 %v16043_v8, %v8220_v33  ;;  %v8209_v20 = vmul.f32 %v11666_v61, %v15993_v42  ;;  %v11667_v32 = vld [vmem:[%s12058_s0 + $0x3d8] sm:$0xff] }
 0x9fb   : > { %17554 = vst [vmem:[#allocation35_spill] sm:$0xff] %v16092_v25 }
 0x9fc   : > { %7930 = vmax.xlane.f32.xlu1 %v7929_v14  ;;  %v8217_v14 = vmul.f32 %v11665_v50, %v15996_v29  ;;  %v7941_v50 = vsel %vm1181_vm2, %v16062_v18, -inf  ;;  %v8224_v33 = vadd.f32 %v8216_v16, %v8206_v59  ;;  %v8233_v61 = vadd.f32 %v16043_v8, %v8223_v35  ;;  %v11669_v16 = vld [vmem:[%s12058_s0 + $0x3d0] sm:$0xff]  ;;  %v11670_v18 = vld [vmem:[%s12058_s0 + $0xe8] sm:$0xff] }
 0x9fd   : > { %7927 = vmax.xlane.f32.xlu0 %v7926_v51  ;;  %v8219_v51 = vmul.f32 %v11667_v32, %v15996_v29  ;;  %v16097_v32 = vstv %s16049_s20  ;;  %v16107_v63 = vadd.f32 %v8230_v48, %v17524_v57  ;;  %v8208_v59 = vmul.f32 %v11668_v26, %v15993_v42  ;;  %v11671_v48 = vld [vmem:[%s12058_s0 + $0xf8] sm:$0xff]  ;;  %v11672_v26 = vld [vmem:[%s12058_s0 + $0xe0] sm:$0xff] }
 0x9fe   : > { %v8225_v31 = vadd.f32 %v8217_v14, %v8207_v21  ;;  %v8218_v35 = vmul.f32 %v11669_v16, %v15996_v29  ;;  %v16113_v14 = vpop.permute.xlu0 %6876  ;;  %v8539_v15 = vmul.f32 %v11671_v48, %v16100_v62  ;;  %v8249_v42 = vsel %vm1181_vm2, %v16092_v25, -inf  ;;  %v11673_v16 = vld [vmem:[%s12058_s0 + $0xf0] sm:$0xff] }
 0x9ff   : > { %17555 = vst [vmem:[#allocation40_spill] sm:$0xff] %v16107_v63  ;;  %v8227_v21 = vadd.f32 %v8219_v51, %v8209_v20  ;;  %v16125_v29 = vadd.f32 %v8233_v61, %v17528_v12  ;;  %v8234_v20 = vadd.f32 %v16043_v8, %v8224_v33  ;;  %v16129_v51 = vpop.permute.xlu1 %6878  ;;  %v8538_v48 = vmul.f32 %v11673_v16, %v16100_v62 }
 0xa00   : > { %7936 = vmax.xlane.f32.xlu1 %v7935_v53  ;;  %v7938_v53 = vsel %vm1181_vm2, %v16080_v30, -inf  ;;  %v8529_v30 = vmul.f32 %v11670_v18, %v16097_v32  ;;  %v8246_v18 = vsel %vm1181_vm2, %v16107_v63, -inf  ;;  %v11674_v63 = vld [vmem:[%s12058_s0 + $0x1e8] sm:$0xff] }
 0xa01   : > { %7933 = vmax.xlane.f32.xlu0 %v7932_v47  ;;  %v16116_v47 = vadd.f32 %v8232_v13, %v17525_v56  ;;  %17557 = vst [vmem:[#allocation36_spill] sm:$0xff] %v16125_v29  ;;  %v8235_v13 = vadd.f32 %v16043_v8, %v8225_v31  ;;  %v8237_v61 = vadd.f32 %v16043_v8, %v8227_v21  ;;  %v8255_v21 = vsel %vm1181_vm2, %v16125_v29, -inf }
 0xa02   : > { %v8547_v33 = vadd.f32 %v8539_v15, %v8529_v30  ;;  %v16149_v16 = vadd.f32 %v8234_v20, %v17530_v22  ;;  %v8540_v29 = vmul.f32 %v11677_v54, %v16100_v62 }
 0xa03   : > { %17556 = vst [vmem:[#allocation29_spill] sm:$0xff] %v16116_v47  ;;  %v8252_v31 = vsel %vm1181_vm2, %v16116_v47, -inf  ;;  %v16155_v47 = vstv %s16102_s26  ;;  %v16165_v20 = vadd.f32 %v8237_v61, %v17536_v52 }
 0xa04   : > { %7942 = vmax.xlane.f32.xlu1 %v7941_v50  ;;  %v8226_v50 = vadd.f32 %v8218_v35, %v8208_v59  ;;  %v8531_v59 = vmul.f32 %v11674_v63, %v16097_v32  ;;  %v11675_v35 = vld [vmem:[%s12058_s0 + $0x1f8] sm:$0xff]  ;;  %17558 = vst [vmem:[#allocation30_spill] sm:$0xff] %v16149_v16  ;;  %v8258_v2 = vsel %vm1181_vm2, %v16149_v16, -inf }
 0xa05   : > { %7939 = vmax.xlane.f32.xlu0 %v7938_v53  ;;  %v8528_v53 = vmul.f32 %v11672_v26, %v16097_v32  ;;  %v8541_v26 = vmul.f32 %v11675_v35, %v16100_v62  ;;  %v11676_v35 = vld [vmem:[%s12058_s0 + $0x1e0] sm:$0xff] }
 0xa06   : > { %v8236_v30 = vadd.f32 %v16043_v8, %v8226_v50  ;;  %v8557_v8 = vadd.f32 %v16155_v47, %v8547_v33 }
 0xa07   : > { %v8546_v63 = vadd.f32 %v8538_v48, %v8528_v53  ;;  %v8549_v50 = vadd.f32 %v8541_v26, %v8531_v59  ;;  %v11680_v53 = vld [vmem:[%s12058_s0 + $0x2e0] sm:$0xff] }
 0xa08   : > { %v16138_v25 = vpop.permute.xlu0 %6904  ;;  %8250 = vmax.xlane.f32.xlu1 %v8249_v42  ;;  %v16152_v42 = vadd.f32 %v8235_v13, %v17532_v0  ;;  %v11678_v13 = vld [vmem:[%s12058_s0 + $0x2e8] sm:$0xff]  ;;  %v8532_v48 = vmul.f32 %v11680_v53, %v16097_v32  ;;  %v16183_v33 = vadd.f32 %v8236_v30, %v17534_v9  ;;  %v16191_v53 = vadd.f32 %v8557_v8, %v17526_v43  ;;  %v11682_v30 = vld [vmem:[%s12058_s0 + $0x3e0] sm:$0xff] }
 0xa09   : > { %8247 = vmax.xlane.f32.xlu0 %v8246_v18  ;;  %v8530_v18 = vmul.f32 %v11676_v35, %v16097_v32  ;;  %v8533_v38 = vmul.f32 %v11678_v13, %v16097_v32  ;;  %v11681_v35 = vld [vmem:[%s12058_s0 + $0x2f0] sm:$0xff]  ;;  %v8556_v59 = vadd.f32 %v16155_v47, %v8546_v63 }
 0xa0a   : > { %17559 = vst [vmem:[#allocation34_spill] sm:$0xff] %v16152_v42  ;;  %v16157_v15 = vpop.permute.xlu1 %6906  ;;  %v8542_v46 = vmul.f32 %v11681_v35, %v16100_v62  ;;  %v8261_v54 = vsel %vm1181_vm2, %v16152_v42, -inf  ;;  %v8559_v35 = vadd.f32 %v16155_v47, %v8549_v50  ;;  %v8534_v42 = vmul.f32 %v11682_v30, %v16097_v32  ;;  %v11683_v63 = vld [vmem:[%s12058_s0 + $0x3f0] sm:$0xff] }
 0xa0b   : > { %v8548_v26 = vadd.f32 %v8540_v29, %v8530_v18  ;;  %v8544_v29 = vmul.f32 %v11683_v63, %v16100_v62  ;;  %v11685_v18 = vld [vmem:[%s12058_s0 + $0x3f8] sm:$0xff]  ;;  %v8264_v43 = vsel %vm1181_vm2, %v16183_v33, -inf  ;;  %v16205_v8 = vadd.f32 %v8556_v59, %v17524_v57 }
 0xa0c   : > { %8256 = vmax.xlane.f32.xlu1 %v8255_v21  ;;  %v16178_v61 = vpop.permute.xlu0 %6900  ;;  %v8551_v21 = vadd.f32 %v8543_v36, %v8533_v38  ;;  %v8550_v16 = vadd.f32 %v8542_v46, %v8532_v48  ;;  %v11684_v36 = vld [vmem:[%s12058_s0 + $0x3e8] sm:$0xff]  ;;  %v6958_v59 = vsel %vm981_vm10, %v15561_v40, %v15859_v19  ;;  %v6959_v40 = vsel %vm981_vm10, %v15565_v27, %v15869_v60 }
 0xa0d   : > { %8253 = vmax.xlane.f32.xlu0 %v8252_v31  ;;  %v8267_v31 = vsel %vm1181_vm2, %v16165_v20, -inf  ;;  %v8535_v38 = vmul.f32 %v11684_v36, %v16097_v32  ;;  %v8558_v46 = vadd.f32 %v16155_v47, %v8548_v26  ;;  %v8552_v30 = vadd.f32 %v8544_v29, %v8534_v42  ;;  %v16232_v42 = vld [vmem:[%s17560_s10] ss:$0 sm:$0xff] }
 0xa0e   : > { %v16186_v13 = vpop.permute.xlu1 %6902  ;;  %v8561_v50 = vadd.f32 %v16155_v47, %v8551_v21  ;;  %v8560_v32 = vadd.f32 %v16155_v47, %v8550_v16  ;;  %v6966_v16 = vsel %vm1181_vm2, %v6958_v59, %v16000_v55  ;;  %v6967_v63 = vsel %vm1181_vm2, %v6959_v40, %v16008_v10 }
 0xa0f   : > { %v16225_v21 = vadd.f32 %v8558_v46, %v17525_v56  ;;  %v6975_v19 = vsel %vm6972_vm1, %v6966_v16, %v16138_v25  ;;  %v8562_v29 = vadd.f32 %v16155_v47, %v8552_v30  ;;  %v6956_v60 = vsel %vm981_vm10, %v15557_v11, %v15896_v24 }
 0xa10   : > { %8262 = vmax.xlane.f32.xlu1 %v8261_v54  ;;  %v8545_v54 = vmul.f32 %v11685_v18, %v16100_v62  ;;  %v16209_v48 = vpop.permute.xlu0 %6908  ;;  %v8575_v62 = vsel %vm1181_vm2, %v16191_v53, -inf  ;;  %v6976_v25 = vsel %vm6972_vm1, %v6967_v63, %v16157_v15  ;;  %v6957_v11 = vsel %vm981_vm10, %v15559_v17, %v15905_v39 }
 0xa11   : > { %8259 = vmax.xlane.f32.xlu0 %v8258_v2  ;;  %v16212_v2 = vadd.f32 %v8559_v35, %v17528_v12  ;;  %v8572_v12 = vsel %vm1181_vm2, %v16205_v8, -inf  ;;  %v16245_v35 = vadd.f32 %v8560_v32, %v17530_v22  ;;  %v8578_v10 = vsel %vm1181_vm2, %v16225_v21, -inf }
 0xa12   : > { %v8553_v57 = vadd.f32 %v8545_v54, %v8535_v38  ;;  %v16220_v26 = vpop.permute.xlu1 %6910  ;;  %v6964_v38 = vsel %vm1181_vm2, %v6956_v60, %v16031_v3  ;;  %v6965_v3 = vsel %vm1181_vm2, %v6957_v11, %v16053_v23  ;;  %v6963_v60 = vsel %vm981_vm10, %v15571_v45, %v15927_v28 }
 0xa13   : > { %v8581_v55 = vsel %vm1181_vm2, %v16212_v2, -inf  ;;  %v6973_v24 = vsel %vm6972_vm1, %v6964_v38, %v16178_v61  ;;  %v6974_v39 = vsel %vm6972_vm1, %v6965_v3, %v16186_v13 }
 0xa14   : > { %8268 = vmax.xlane.f32.xlu1 %v8267_v31  ;;  %v16235_v31 = vadd.f32 %v8561_v50, %v17532_v0  ;;  %v8563_v27 = vadd.f32 %v16155_v47, %v8553_v57  ;;  %v16277_v50 = vadd.f32 %v8562_v29, %v17534_v9 }
 0xa15   : > { %8265 = vmax.xlane.f32.xlu0 %v8264_v43  ;;  %v8584_v43 = vsel %vm1181_vm2, %v16245_v35, -inf }
 0xa16   : > { %v8587_v47 = vsel %vm1181_vm2, %v16235_v31, -inf  ;;  %v16280_v17 = vadd.f32 %v8563_v27, %v17536_v52  ;;  %v6960_v52 = vsel %vm981_vm10, %v15563_v5, %v15954_v6 }
 0xa18   : > { %v6937_v56 = vpop.permute.xlu0 %6936  ;;  %8576 = vmax.xlane.f32.xlu1 %v8575_v62  ;;  %v8593_v9 = vsel %vm1181_vm2, %v16280_v17, -inf }
 0xa19   : > { %v6984_v0 = vsel %vm6981_vm3, %v6975_v19, %v6937_v56  ;;  %8573 = vmax.xlane.f32.xlu0 %v8572_v12  ;;  %v8590_v19 = vsel %vm1181_vm2, %v16277_v50, -inf  ;;  %v6968_v56 = vsel %vm1181_vm2, %v6960_v52, %v16113_v14  ;;  %v6962_v14 = vsel %vm981_vm10, %v15569_v58, %v15917_v7 }
 0xa1a   : > { %v6999_v22 = vadd.f32 %v16232_v42, %v6984_v0  ;;  %v6939_v36 = vpop.permute.xlu1 %6938  ;;  %v6977_v63 = vsel %vm6972_vm1, %v6968_v56, %v16209_v48  ;;  %v6970_v48 = vsel %vm1181_vm2, %v6962_v14, %v16075_v1 }
 0xa1b   : > { %v6985_v18 = vsel %vm6981_vm3, %v6976_v25, %v6939_v36  ;;  %v6971_v25 = vsel %vm1181_vm2, %v6963_v60, %v16087_v34 }
 0xa1c   : > { %v7000_v15 = vadd.f32 %v16232_v42, %v6985_v18  ;;  %v6933_v54 = vpop.permute.xlu0 %6932  ;;  %8582 = vmax.xlane.f32.xlu1 %v8581_v55  ;;  %v7007_v61 = vmax.f32 %v6999_v22, 0.0  ;;  %v6961_v55 = vsel %vm981_vm10, %v15567_v37, %v15967_v4 }
 0xa1d   : > { %v6982_v46 = vsel %vm6981_vm3, %v6973_v24, %v6933_v54  ;;  %8579 = vmax.xlane.f32.xlu0 %v8578_v10  ;;  %v6969_v5 = vsel %vm1181_vm2, %v6961_v55, %v16129_v51  ;;  %v17565_v55 = vld [vmem:[#allocation38_spill] sm:$0xff] }
 0xa1e   : > { %v7008_v32 = vmax.f32 %v7000_v15, 0.0  ;;  %v6997_v62 = vadd.f32 %v16232_v42, %v6982_v46  ;;  %v6935_v30 = vpop.permute.xlu1 %6934  ;;  %v6978_v27 = vsel %vm6972_vm1, %v6969_v5, %v16220_v26  ;;  %v17566_v5 = vld [vmem:[#allocation42_spill] sm:$0xff] }
 0xa1f   : > { %v6983_v57 = vsel %vm6981_vm3, %v6974_v39, %v6935_v30  ;;  %v17562_v30 = vld [vmem:[#allocation41_spill] sm:$0xff] }
 0xa20   : > { %v7014_v23 = vpack.c.bf16 %v7008_v32, %v7007_v61  ;;  %v6998_v59 = vadd.f32 %v16232_v42, %v6983_v57  ;;  %v6913_v12 = vpop.permute.xlu0 %6912  ;;  %8588 = vmax.xlane.f32.xlu1 %v8587_v47  ;;  %v7005_v13 = vmax.f32 %v6997_v62, 0.0  ;;  %v17561_v61 = vld [vmem:[#allocation37_spill] sm:$0xff] }
 0xa21   : > { %8585 = vmax.xlane.f32.xlu0 %v8584_v43  ;;  %v6979_v58 = vsel %vm6972_vm1, %v6970_v48, %v6913_v12  ;;  %v17567_v48 = vld [vmem:[#allocation43_spill] sm:$0xff] }
 0xa22   : > { %v7006_v16 = vmax.f32 %v6998_v59, 0.0  ;;  %v6915_v40 = vpop.permute.xlu1 %6914 }
 0xa23   : > { %v6980_v1 = vsel %vm6972_vm1, %v6971_v25, %v6915_v40 }
 0xa24   : > { %v7013_v0 = vpack.c.bf16 %v7006_v16, %v7005_v13  ;;  %v6941_v29 = vpop.permute.xlu0 %6940  ;;  %8594 = vmax.xlane.f32.xlu1 %v8593_v9  ;;  %v17563_v9 = vld [vmem:[#allocation31_spill] sm:$0xff]  ;;  %v17564_v13 = vld [vmem:[#allocation28_spill] sm:$0xff] }
 0xa25   : > { %v6986_v6 = vsel %vm6981_vm3, %v6977_v63, %v6941_v29  ;;  %8591 = vmax.xlane.f32.xlu0 %v8590_v19 }
 0xa26   : > { %v7001_v37 = vadd.f32 %v16232_v42, %v6986_v6  ;;  %v6943_v4 = vpop.permute.xlu1 %6942  ;;  %10410 = vmatprep.mubr.msk.bf16.mxu0 %vm7037_vm4, %v7013_v0 }
 0xa27   : > { %v6987_v51 = vsel %vm6981_vm3, %v6978_v27, %v6943_v4  ;;  %10411 = vmatmul.mubr.msk.bf16.vlgmr.msra.gmra.mrb[132].mxu0 %vm7037_vm4, %v7014_v23 }
 0xa28   : > { %v7002_v7 = vadd.f32 %v16232_v42, %v6987_v51  ;;  %v6945_v26 = vpop.permute.xlu0 %6944  ;;  %v7009_v36 = vmax.f32 %v7001_v37, 0.0 }
 0xa29   : > { %v6988_v22 = vsel %vm6981_vm3, %v6979_v58, %v6945_v26 }
 0xa2a   : > { %v7010_v10 = vmax.f32 %v7002_v7, 0.0  ;;  %v7003_v38 = vadd.f32 %v16232_v42, %v6988_v22  ;;  %v6947_v18 = vpop.permute.xlu1 %6946  ;;  %v17568_v7 = vld [vmem:[#allocation44_spill] sm:$0xff] }
 0xa2b   : > { %v6989_v47 = vsel %vm6981_vm3, %v6980_v1, %v6947_v18  ;;  %v17569_v18 = vld [vmem:[#allocation46_spill] sm:$0xff] }
 0xa2c   : > { %v7015_v45 = vpack.c.bf16 %v7010_v10, %v7009_v36  ;;  %v7004_v28 = vadd.f32 %v16232_v42, %v6989_v47  ;;  %v7011_v11 = vmax.f32 %v7003_v38, 0.0 }
 0xa2e   : > { %v7012_v24 = vmax.f32 %v7004_v28, 0.0  ;;  %10414 = vmatprep.mubr.msk.bf16.mxu0 %vm7037_vm4, %v7015_v45  ;;  %v17570_v28 = vld [vmem:[#allocation48_spill] sm:$0xff] }
 0xa30   : > { %v7016_v15 = vpack.c.bf16 %v7012_v24, %v7011_v11 }
 0xa32   : > { %10415 = vmatmul.mubr.msk.bf16.gmra.mrb[136].mxu0 %vm7037_vm4, %v7016_v15 }
 0xa33   : > { %10438 = vmatprep.mubr.msk.bf16.mxu0 %vm11824_vm11, %v17343_v44 }
 0xa62   : > { %v7238_v34 = vpop.xlane.xlu0 %7237 }
 0xa63   : > { %v7260_v54 = vsub.f32 %v15761_v49, %v7238_v34 }
 0xa65   : > { %v7268_v43 = vmul.f32 1.442695, %v7260_v54 }
 0xa66   : > { %v7244_v3 = vpop.xlane.xlu0 %7243 }
 0xa67   : > { %11142 = vpow2.f32 %v7268_v43  ;;  %v7262_v46 = vsub.f32 %v15764_v41, %v7244_v3 }
 0xa69   : > { %v7272_v39 = vmul.f32 1.442695, %v7262_v46  ;;  %v7241_v42 = vpop.xlane.xlu1 %7240  ;;  %v17571_v46 = vld [vmem:[#allocation45_spill] sm:$0xff] }
 0xa6a   : > { %v7261_v32 = vsub.f32 %v17561_v61, %v7241_v42  ;;  %v7247_v62 = vpop.xlane.xlu0 %7246 }
 0xa6b   : > { %11144 = vpow2.f32 %v7272_v39  ;;  %v7263_v57 = vsub.f32 %v17562_v30, %v7247_v62 }
 0xa6c   : > { %v7270_v23 = vmul.f32 1.442695, %v7261_v32  ;;  %v17572_v32 = vld [vmem:[#allocation47_spill] sm:$0xff] }
 0xa6d   : > { %v7274_v59 = vmul.f32 1.442695, %v7263_v57  ;;  %v7253_v12 = vpop.xlane.xlu1 %7252 }
 0xa6e   : > { %11146 = vpow2.f32 %v7270_v23  ;;  %v7265_v52 = vsub.f32 %v17563_v9, %v7253_v12  ;;  %v7250_v49 = vpop.xlane.xlu0 %7249 }
 0xa6f   : > { %11148 = vpow2.f32 %v7274_v59  ;;  %v7264_v16 = vsub.f32 %v17564_v13, %v7250_v49 }
 0xa70   : > { %v7278_v40 = vmul.f32 1.442695, %v7265_v52  ;;  %v17573_v52 = vld [vmem:[#allocation50_spill] sm:$0xff] }
 0xa71   : > { %v16337_v41 = vpop.eup %11142  ;;  %v7276_v19 = vmul.f32 1.442695, %v7264_v16  ;;  %v7259_v56 = vpop.xlane.xlu1 %7258 }
 0xa72   : > { %11150 = vpow2.f32 %v7278_v40  ;;  %v7267_v63 = vsub.f32 %v17565_v55, %v7259_v56  ;;  %v7256_v0 = vpop.xlane.xlu0 %7255  ;;  %v7284_v29 = vsel %vm1181_vm2, %v16337_v41, 0.0  ;;  %v17574_v40 = vld [vmem:[#allocation49_spill] sm:$0xff] }
 0xa73   : > { %11152 = vpow2.f32 %v7276_v19  ;;  %v7266_v6 = vsub.f32 %v17566_v5, %v7256_v0  ;;  %7285 = vadd.xlane.f32.xlu0 %v7284_v29 }
 0xa74   : > { %v7282_v14 = vmul.f32 1.442695, %v7267_v63 }
 0xa75   : > { %v16343_v27 = vpop.eup %11144  ;;  %v7280_v37 = vmul.f32 1.442695, %v7266_v6  ;;  %v7595_v4 = vpop.xlane.xlu1 %7594  ;;  %v17575_v6 = vld [vmem:[#allocation51_spill] sm:$0xff] }
 0xa76   : > { %11154 = vpow2.f32 %v7282_v14  ;;  %v7615_v51 = vsub.f32 %v17567_v48, %v7595_v4  ;;  %v7592_v60 = vpop.xlane.xlu0 %7591  ;;  %v7290_v58 = vsel %vm1181_vm2, %v16343_v27, 0.0  ;;  %v17576_v48 = vld [vmem:[#allocation52_spill] sm:$0xff] }
 0xa77   : > { %11156 = vpow2.f32 %v7280_v37  ;;  %v7614_v26 = vsub.f32 %v17568_v7, %v7592_v60  ;;  %7291 = vadd.xlane.f32.xlu0 %v7290_v58 }
 0xa78   : > { %v16349_v25 = vpop.eup %11146  ;;  %v7624_v22 = vmul.f32 1.442695, %v7615_v51 }
 0xa79   : > { %v16351_v1 = vpop.eup %11148  ;;  %v7622_v36 = vmul.f32 1.442695, %v7614_v26  ;;  %v7287_v10 = vsel %vm1181_vm2, %v16349_v25, 0.0  ;;  %v7601_v38 = vpop.xlane.xlu1 %7600 }
 0xa7a   : > { %11158 = vpow2.f32 %v7624_v22  ;;  %7288 = vadd.xlane.f32.xlu1 %v7287_v10  ;;  %v7617_v47 = vsub.f32 %v17569_v18, %v7601_v38  ;;  %v7598_v45 = vpop.xlane.xlu0 %7597  ;;  %v7293_v24 = vsel %vm1181_vm2, %v16351_v1, 0.0  ;;  %v17577_v10 = vld [vmem:[#allocation54_spill] sm:$0xff] }
 0xa7b   : > { %11160 = vpow2.f32 %v7622_v36  ;;  %v7616_v11 = vsub.f32 %v17570_v28, %v7598_v45  ;;  %v17578_v45 = vld [vmem:[#allocation53_spill] sm:$0xff] }
 0xa7c   : > { %v16359_v15 = vpop.eup %11150  ;;  %v7628_v34 = vmul.f32 1.442695, %v7617_v47 }
 0xa7d   : > { %v16361_v54 = vpop.eup %11152  ;;  %v7626_v43 = vmul.f32 1.442695, %v7616_v11  ;;  %v7607_v3 = vpop.xlane.xlu1 %7606  ;;  %v7299_v30 = vsel %vm1181_vm2, %v16359_v15, 0.0 }
 0xa7e   : > { %11162 = vpow2.f32 %v7628_v34  ;;  %v7619_v39 = vsub.f32 %v17571_v46, %v7607_v3  ;;  %7294 = vadd.xlane.f32.xlu1 %v7293_v24  ;;  %v7604_v42 = vpop.xlane.xlu0 %7603  ;;  %v7296_v61 = vsel %vm1181_vm2, %v16361_v54, 0.0 }
 0xa7f   : > { %11164 = vpow2.f32 %v7626_v43  ;;  %v7618_v62 = vsub.f32 %v17572_v32, %v7604_v42  ;;  %7297 = vadd.xlane.f32.xlu0 %v7296_v61 }
 0xa80   : > { %v16369_v57 = vpop.eup %11154  ;;  %v7632_v23 = vmul.f32 1.442695, %v7619_v39  ;;  %v17579_v39 = vld [vmem:[#allocation55_spill] sm:$0xff] }
 0xa81   : > { %v16371_v59 = vpop.eup %11156  ;;  %v7630_v12 = vmul.f32 1.442695, %v7618_v62  ;;  %v7613_v9 = vpop.xlane.xlu1 %7612  ;;  %v7305_v56 = vsel %vm1181_vm2, %v16369_v57, 0.0  ;;  %v17580_v62 = vld [vmem:[#allocation33_spill] sm:$0xff] }
 0xa82   : > { %11166 = vpow2.f32 %v7632_v23  ;;  %v7621_v49 = vsub.f32 %v17573_v52, %v7613_v9  ;;  %7300 = vadd.xlane.f32.xlu1 %v7299_v30  ;;  %v7610_v13 = vpop.xlane.xlu0 %7609  ;;  %v7302_v16 = vsel %vm1181_vm2, %v16371_v59, 0.0 }
 0xa83   : > { %11168 = vpow2.f32 %v7630_v12  ;;  %v7620_v19 = vsub.f32 %v17574_v40, %v7610_v13  ;;  %7303 = vadd.xlane.f32.xlu0 %v7302_v16  ;;  %v17581_v16 = vld [vmem:[#allocation39_spill] sm:$0xff] }
 0xa84   : > { %v16379_v55 = vpop.eup %11158  ;;  %v7636_v63 = vmul.f32 1.442695, %v7621_v49 }
 0xa85   : > { %v16381_v0 = vpop.eup %11160  ;;  %v7634_v29 = vmul.f32 1.442695, %v7620_v19  ;;  %v7925_v5 = vpop.xlane.xlu1 %7924  ;;  %v7641_v60 = vsel %vm1181_vm2, %v16379_v55, 0.0 }
 0xa86   : > { %11170 = vpow2.f32 %v7636_v63  ;;  %v7945_v14 = vsub.f32 %v17575_v6, %v7925_v5  ;;  %7306 = vadd.xlane.f32.xlu1 %v7305_v56  ;;  %v7922_v37 = vpop.xlane.xlu0 %7921  ;;  %v7638_v4 = vsel %vm1181_vm2, %v16381_v0, 0.0  ;;  %v17582_v63 = vld [vmem:[#allocation32_spill] sm:$0xff] }
 0xa87   : > { %11172 = vpow2.f32 %v7634_v29  ;;  %v7944_v51 = vsub.f32 %v17576_v48, %v7922_v37  ;;  %7639 = vadd.xlane.f32.xlu0 %v7638_v4 }
 0xa88   : > { %v16389_v58 = vpop.eup %11162  ;;  %v7954_v7 = vmul.f32 1.442695, %v7945_v14 }
 0xa89   : > { %v16391_v26 = vpop.eup %11164  ;;  %v7952_v22 = vmul.f32 1.442695, %v7944_v51  ;;  %v7931_v36 = vpop.xlane.xlu1 %7930  ;;  %v7647_v11 = vsel %vm1181_vm2, %v16389_v58, 0.0  ;;  %v17583_v51 = vld [vmem:[#allocation35_spill] sm:$0xff] }
 0xa8a   : > { %11174 = vpow2.f32 %v7954_v7  ;;  %v7947_v38 = vsub.f32 %v17577_v10, %v7931_v36  ;;  %7642 = vadd.xlane.f32.xlu1 %v7641_v60  ;;  %v7928_v18 = vpop.xlane.xlu0 %7927  ;;  %v7644_v47 = vsel %vm1181_vm2, %v16391_v26, 0.0  ;;  %v17584_v36 = vld [vmem:[#allocation40_spill] sm:$0xff] }
 0xa8b   : > { %11176 = vpow2.f32 %v7952_v22  ;;  %v7946_v28 = vsub.f32 %v17578_v45, %v7928_v18  ;;  %7645 = vadd.xlane.f32.xlu0 %v7644_v47 }
 0xa8c   : > { %v16399_v24 = vpop.eup %11166  ;;  %v7958_v34 = vmul.f32 1.442695, %v7947_v38 }
 0xa8d   : > { %v16401_v43 = vpop.eup %11168  ;;  %v7956_v3 = vmul.f32 1.442695, %v7946_v28  ;;  %v7937_v46 = vpop.xlane.xlu1 %7936  ;;  %v7653_v23 = vsel %vm1181_vm2, %v16399_v24, 0.0 }
 0xa8e   : > { %11178 = vpow2.f32 %v7958_v34  ;;  %v7949_v42 = vsub.f32 %v17579_v39, %v7937_v46  ;;  %7648 = vadd.xlane.f32.xlu1 %v7647_v11  ;;  %v7934_v61 = vpop.xlane.xlu0 %7933  ;;  %v7650_v32 = vsel %vm1181_vm2, %v16401_v43, 0.0  ;;  %v17585_v34 = vld [vmem:[#allocation36_spill] sm:$0xff] }
 0xa8f   : > { %11180 = vpow2.f32 %v7956_v3  ;;  %v7948_v30 = vsub.f32 %v17580_v62, %v7934_v61  ;;  %7651 = vadd.xlane.f32.xlu0 %v7650_v32 }
 0xa90   : > { %v16409_v12 = vpop.eup %11170  ;;  %v7962_v9 = vmul.f32 1.442695, %v7949_v42  ;;  %v17586_v42 = vld [vmem:[#allocation29_spill] sm:$0xff] }
 0xa91   : > { %v16411_v52 = vpop.eup %11172  ;;  %v7960_v49 = vmul.f32 1.442695, %v7948_v30  ;;  %v7943_v13 = vpop.xlane.xlu1 %7942  ;;  %v7659_v5 = vsel %vm1181_vm2, %v16409_v12, 0.0 }
 0xa92   : > { %11182 = vpow2.f32 %v7962_v9  ;;  %v7951_v40 = vsub.f32 %v17581_v16, %v7943_v13  ;;  %7654 = vadd.xlane.f32.xlu1 %v7653_v23  ;;  %v7940_v19 = vpop.xlane.xlu0 %7939  ;;  %v7656_v56 = vsel %vm1181_vm2, %v16411_v52, 0.0  ;;  %v17587_v13 = vld [vmem:[#allocation34_spill] sm:$0xff] }
 0xa93   : > { %11184 = vpow2.f32 %v7960_v49  ;;  %v7950_v29 = vsub.f32 %v17582_v63, %v7940_v19  ;;  %7657 = vadd.xlane.f32.xlu0 %v7656_v56  ;;  %v17588_v56 = vld [vmem:[#allocation30_spill] sm:$0xff] }
 0xa94   : > { %v16419_v6 = vpop.eup %11174  ;;  %v7966_v14 = vmul.f32 1.442695, %v7951_v40 }
 0xa95   : > { %v16421_v37 = vpop.eup %11176  ;;  %v7964_v4 = vmul.f32 1.442695, %v7950_v29  ;;  %v8251_v48 = vpop.xlane.xlu1 %8250  ;;  %v7971_v38 = vsel %vm1181_vm2, %v16419_v6, 0.0 }
 0xa96   : > { %11186 = vpow2.f32 %v7966_v14  ;;  %v8271_v60 = vsub.f32 %v17583_v51, %v8251_v48  ;;  %7660 = vadd.xlane.f32.xlu1 %v7659_v5  ;;  %v8248_v7 = vpop.xlane.xlu0 %8247  ;;  %v7968_v22 = vsel %vm1181_vm2, %v16421_v37, 0.0 }
 0xa97   : > { %11188 = vpow2.f32 %v7964_v4  ;;  %v8270_v10 = vsub.f32 %v17584_v36, %v8248_v7  ;;  %7969 = vadd.xlane.f32.xlu0 %v7968_v22 }
 0xa98   : > { %v16429_v18 = vpop.eup %11178  ;;  %v8280_v47 = vmul.f32 1.442695, %v8271_v60 }
 0xa99   : > { %v16431_v45 = vpop.eup %11180  ;;  %v8278_v28 = vmul.f32 1.442695, %v8270_v10  ;;  %v8257_v11 = vpop.xlane.xlu1 %8256  ;;  %v7977_v32 = vsel %vm1181_vm2, %v16429_v18, 0.0 }
 0xa9a   : > { %11190 = vpow2.f32 %v8280_v47  ;;  %v8273_v3 = vsub.f32 %v17585_v34, %v8257_v11  ;;  %7972 = vadd.xlane.f32.xlu1 %v7971_v38  ;;  %v8254_v46 = vpop.xlane.xlu0 %8253  ;;  %v7974_v39 = vsel %vm1181_vm2, %v16431_v45, 0.0 }
 0xa9b   : > { %11192 = vpow2.f32 %v8278_v28  ;;  %v8272_v61 = vsub.f32 %v17586_v42, %v8254_v46  ;;  %7975 = vadd.xlane.f32.xlu0 %v7974_v39 }
 0xa9c   : > { %v16439_v62 = vpop.eup %11182  ;;  %v8284_v30 = vmul.f32 1.442695, %v8273_v3 }
 0xa9d   : > { %v16441_v23 = vpop.eup %11184  ;;  %v8282_v9 = vmul.f32 1.442695, %v8272_v61  ;;  %v8263_v49 = vpop.xlane.xlu1 %8262  ;;  %v7983_v29 = vsel %vm1181_vm2, %v16439_v62, 0.0 }
 0xa9e   : > { %11194 = vpow2.f32 %v8284_v30  ;;  %v8275_v16 = vsub.f32 %v17587_v13, %v8263_v49  ;;  %7978 = vadd.xlane.f32.xlu1 %v7977_v32  ;;  %v8260_v40 = vpop.xlane.xlu0 %8259  ;;  %v7980_v19 = vsel %vm1181_vm2, %v16441_v23, 0.0 }
 0xa9f   : > { %11196 = vpow2.f32 %v8282_v9  ;;  %v8274_v63 = vsub.f32 %v17588_v56, %v8260_v40  ;;  %7981 = vadd.xlane.f32.xlu0 %v7980_v19 }
 0xaa0   : > { %v16449_v5 = vpop.eup %11186  ;;  %v8288_v14 = vmul.f32 1.442695, %v8275_v16 }
 0xaa1   : > { %v16451_v4 = vpop.eup %11188  ;;  %v8286_v48 = vmul.f32 1.442695, %v8274_v63  ;;  %v8269_v51 = vpop.xlane.xlu1 %8268  ;;  %v7989_v10 = vsel %vm1181_vm2, %v16449_v5, 0.0 }
 0xaa2   : > { %11198 = vpow2.f32 %v8288_v14  ;;  %v8277_v60 = vsub.f32 %v16165_v20, %v8269_v51  ;;  %7984 = vadd.xlane.f32.xlu1 %v7983_v29  ;;  %v8266_v7 = vpop.xlane.xlu0 %8265  ;;  %v7986_v22 = vsel %vm1181_vm2, %v16451_v4, 0.0 }
 0xaa3   : > { %11200 = vpow2.f32 %v8286_v48  ;;  %v8276_v36 = vsub.f32 %v16183_v33, %v8266_v7  ;;  %7987 = vadd.xlane.f32.xlu0 %v7986_v22 }
 0xaa4   : > { %v16459_v38 = vpop.eup %11190  ;;  %v8292_v47 = vmul.f32 1.442695, %v8277_v60 }
 0xaa5   : > { %v16461_v28 = vpop.eup %11192  ;;  %v8290_v11 = vmul.f32 1.442695, %v8276_v36  ;;  %v8577_v34 = vpop.xlane.xlu1 %8576  ;;  %v8297_v20 = vsel %vm1181_vm2, %v16459_v38, 0.0 }
 0xaa6   : > { %11202 = vpow2.f32 %v8292_v47  ;;  %v8597_v3 = vsub.f32 %v16191_v53, %v8577_v34  ;;  %7990 = vadd.xlane.f32.xlu1 %v7989_v10  ;;  %v8574_v46 = vpop.xlane.xlu0 %8573  ;;  %v8294_v39 = vsel %vm1181_vm2, %v16461_v28, 0.0 }
 0xaa7   : > { %11204 = vpow2.f32 %v8290_v11  ;;  %v8596_v33 = vsub.f32 %v16205_v8, %v8574_v46  ;;  %8298 = vadd.xlane.f32.xlu0 %v8297_v20 }
 0xaa8   : > { %v16469_v42 = vpop.eup %11194  ;;  %v8606_v61 = vmul.f32 1.442695, %v8597_v3 }
 0xaa9   : > { %v16471_v32 = vpop.eup %11196  ;;  %v8604_v30 = vmul.f32 1.442695, %v8596_v33  ;;  %v8583_v9 = vpop.xlane.xlu1 %8582  ;;  %v8303_v16 = vsel %vm1181_vm2, %v16469_v42, 0.0 }
 0xaaa   : > { %11206 = vpow2.f32 %v8606_v61  ;;  %v8599_v49 = vsub.f32 %v16212_v2, %v8583_v9  ;;  %8295 = vadd.xlane.f32.xlu1 %v8294_v39  ;;  %v8580_v53 = vpop.xlane.xlu0 %8579  ;;  %v8300_v13 = vsel %vm1181_vm2, %v16471_v32, 0.0 }
 0xaab   : > { %11208 = vpow2.f32 %v8604_v30  ;;  %v8598_v8 = vsub.f32 %v16225_v21, %v8580_v53  ;;  %8301 = vadd.xlane.f32.xlu0 %v8300_v13 }
 0xaac   : > { %v16479_v40 = vpop.eup %11198  ;;  %v8610_v19 = vmul.f32 1.442695, %v8599_v49 }
 0xaad   : > { %v16481_v56 = vpop.eup %11200  ;;  %v8608_v63 = vmul.f32 1.442695, %v8598_v8  ;;  %v8589_v29 = vpop.xlane.xlu1 %8588  ;;  %v8309_v2 = vsel %vm1181_vm2, %v16479_v40, 0.0 }
 0xaae   : > { %11210 = vpow2.f32 %v8610_v19  ;;  %v8601_v14 = vsub.f32 %v16235_v31, %v8589_v29  ;;  %8304 = vadd.xlane.f32.xlu1 %v8303_v16  ;;  %v8586_v48 = vpop.xlane.xlu0 %8585  ;;  %v8306_v51 = vsel %vm1181_vm2, %v16481_v56, 0.0 }
 0xaaf   : > { %11212 = vpow2.f32 %v8608_v63  ;;  %8310 = vadd.xlane.f32.xlu0 %v8309_v2  ;;  %v8600_v21 = vsub.f32 %v16245_v35, %v8586_v48 }
 0xab0   : > { %v16489_v60 = vpop.eup %11202  ;;  %v8614_v7 = vmul.f32 1.442695, %v8601_v14 }
 0xab1   : > { %v16491_v22 = vpop.eup %11204  ;;  %v8612_v36 = vmul.f32 1.442695, %v8600_v21  ;;  %v8315_v10 = vsel %vm1181_vm2, %v16489_v60, 0.0  ;;  %v8595_v29 = vpop.xlane.xlu1 %8594 }
 0xab2   : > { %11214 = vpow2.f32 %v8614_v7  ;;  %8307 = vadd.xlane.f32.xlu1 %v8306_v51  ;;  %v8312_v31 = vsel %vm1181_vm2, %v16491_v22, 0.0  ;;  %v8592_v8 = vpop.xlane.xlu0 %8591 }
 0xab3   : > { %11216 = vpow2.f32 %v8612_v36  ;;  %8313 = vadd.xlane.f32.xlu0 %v8312_v31 }
 0xab4   : > { %v16497_v35 = vpop.eup %11206 }
 0xab5   : > { %v16499_v47 = vpop.eup %11208  ;;  %v8623_v11 = vsel %vm1181_vm2, %v16497_v35, 0.0 }
 0xab6   : > { %8316 = vadd.xlane.f32.xlu1 %v8315_v10  ;;  %v8620_v34 = vsel %vm1181_vm2, %v16499_v47, 0.0 }
 0xab7   : > { %8624 = vadd.xlane.f32.xlu0 %v8623_v11 }
 0xab8   : > { %v16505_v20 = vpop.eup %11210 }
 0xab9   : > { %v16507_v3 = vpop.eup %11212  ;;  %v8629_v33 = vsel %vm1181_vm2, %v16505_v20, 0.0 }
 0xaba   : > { %8621 = vadd.xlane.f32.xlu1 %v8620_v34  ;;  %v8626_v46 = vsel %vm1181_vm2, %v16507_v3, 0.0 }
 0xabb   : > { %8627 = vadd.xlane.f32.xlu0 %v8626_v46 }
 0xabc   : > { %v16513_v39 = vpop.eup %11214 }
 0xabd   : > { %v16515_v61 = vpop.eup %11216  ;;  %v8635_v30 = vsel %vm1181_vm2, %v16513_v39, 0.0 }
 0xabe   : > { %8630 = vadd.xlane.f32.xlu1 %v8629_v33  ;;  %v8632_v9 = vsel %vm1181_vm2, %v16515_v61, 0.0 }
 0xabf   : > { %8636 = vadd.xlane.f32.xlu0 %v8635_v30 }
 0xac2   : > { %8633 = vadd.xlane.f32.xlu1 %v8632_v9 }
 0xafa   : > { %v10412_v49 = vpop.f32.mrb[132].mxu0 }
 0xafb   : > { %v7087_v53 = vpop.f32.mrb[133].mxu0 }
 0xafc   : > { %v10413_v13 = vpop.f32.mrb[134].mxu0 }
 0xafd   : > { %v16521_v16 = vpack.c.bf16 %v10413_v13, %v10412_v49  ;;  %v7090_v19 = vpop.f32.mrb[135].mxu0 }
 0xafe   : > { %v16523_v63 = vpack.c.bf16 %v7090_v19, %v7087_v53 }
 0xaff   : > { %7731 = vrot.lane.b32.xlu1 %v16521_v16, %s11826_s6 }
 0xb00   : > { %10419 = vmatpush3.bf16.msra.mxu1 %v16523_v63  ;;  %7683 = vrot.lane.b32.xlu0 %v16523_v63, %s11826_s6  ;;  %v7286_v2 = vpop.xlane.xlu0 %7285 }
 0xb01   : > { %10424 = vmatprep.subr.bf16.mxu1 %v17343_v44  ;;  %11218 = vrcp.f32 %v7286_v2 }
 0xb03   : > { %8059 = vrot.lane.b32.xlu1 %v16521_v16, %s17441_s29 }
 0xb04   : > { %8012 = vrot.lane.b32.xlu0 %v16523_v63, %s17441_s29  ;;  %v7292_v7 = vpop.xlane.xlu0 %7291 }
 0xb05   : > { %v10416_v14 = vpop.f32.mrb[136].mxu0 }
 0xb06   : > { %v7103_v48 = vpop.f32.mrb[137].mxu0 }
 0xb07   : > { %v7289_v21 = vpop.xlane.xlu1 %7288  ;;  %v10417_v51 = vpop.f32.mrb[138].mxu0 }
 0xb08   : > { %11220 = vrcp.f32 %v7289_v21  ;;  %v16535_v36 = vpack.c.bf16 %v10417_v51, %v10416_v14  ;;  %v7106_v31 = vpop.f32.mrb[139].mxu0 }
 0xb09   : > { %v16537_v10 = vpack.c.bf16 %v7106_v31, %v7103_v48  ;;  %v8602_v48 = vsub.f32 %v16277_v50, %v8592_v8  ;;  %v8603_v50 = vsub.f32 %v16280_v17, %v8595_v29 }
 0xb0a   : > { %10437 = vmatpush3.bf16.msra.mxu0 %v16535_v36  ;;  %7827 = vrot.lane.b32.xlu1 %v16535_v36, %s11826_s6 }
 0xb0b   : > { %v7295_v11 = vpop.xlane.xlu1 %7294  ;;  %7779 = vrot.lane.b32.xlu0 %v16537_v10, %s11826_s6  ;;  %10448 = vmatprep.subr.bf16.mxu0 %v17343_v44  ;;  %v11219_v33 = vpop.eup %11218  ;;  %s17003_s6 = scalar_lea.hbm %s17589_s22, %s9815_s2 }
 0xb0c   : > { %11222 = vrcp.f32 %v7295_v11  ;;  %v7298_v34 = vpop.xlane.xlu0 %7297  ;;  %v7316_v49 = vmul.f32 %v11219_v33, %v16337_v41 }
 0xb0d   : > { %11224 = vrcp.f32 %v7292_v7  ;;  %v8616_v7 = vmul.f32 1.442695, %v8602_v48 }
 0xb0e   : > { %8153 = vrot.lane.b32.xlu1 %v16535_v36, %s17441_s29 }
 0xb0f   : > { %v7301_v46 = vpop.xlane.xlu1 %7300  ;;  %8106 = vrot.lane.b32.xlu0 %v16537_v10, %s17441_s29 }
 0xb10   : > { %v7304_v30 = vpop.xlane.xlu0 %7303 }
 0xb11   : > { %11226 = vrcp.f32 %v7304_v30 }
 0xb12   : > { %v11221_v9 = vpop.eup %11220  ;;  %11228 = vrcp.f32 %v7301_v46 }
 0xb13   : > { %v7317_v53 = vmul.f32 %v11221_v9, %v16349_v25  ;;  %v7307_v13 = vpop.xlane.xlu1 %7306  ;;  %v8618_v9 = vmul.f32 1.442695, %v8603_v50 }
 0xb14   : > { %11230 = vrcp.f32 %v7307_v13  ;;  %v16551_v19 = vpop.xlane.xlu0 %7639 }
 0xb15   : > { %v7324_v2 = vpack.c.bf16 %v7317_v53, %v7316_v49  ;;  %11232 = vrcp.f32 %v7298_v34 }
 0xb16   : > { %v11223_v14 = vpop.eup %11222  ;;  %11234 = vpow2.f32 %v8616_v7 }
 0xb17   : > { %v16554_v21 = vpop.xlane.xlu1 %7642  ;;  %10421 = vmatmul.mubr.msk.bf16.vlgmr.msra.gmra.mrb[132].mxu1 %vm1181_vm2, %v7324_v2  ;;  %v11225_v51 = vpop.eup %11224  ;;  %v7319_v25 = vmul.f32 %v11223_v14, %v16351_v1  ;;  %11236 = vpow2.f32 %v8618_v9 }
 0xb18   : > { %10425 = vmatpush3.bf16.msra.mxu1 %v16521_v16  ;;  %v16558_v41 = vpop.xlane.xlu0 %7645  ;;  %10426 = vmatprep.mubr.msk.bf16.mxu1 %vm11824_vm11, %v17343_v44  ;;  %v7318_v8 = vmul.f32 %v11225_v51, %v16343_v27 }
 0xb19   : > { %10430 = vmatprep.subr.bf16.mxu1 %v17343_v44 }
 0xb1a   : > { %v7325_v33 = vpack.c.bf16 %v7319_v25, %v7318_v8 }
 0xb1b   : > { %v16566_v31 = vpop.xlane.xlu1 %7648  ;;  %v11227_v11 = vpop.eup %11226 }
 0xb1c   : > { %v16568_v34 = vpop.xlane.xlu0 %7651  ;;  %v11229_v46 = vpop.eup %11228  ;;  %v7322_v49 = vmul.f32 %v11227_v11, %v16371_v59 }
 0xb1d   : > { %v7321_v29 = vmul.f32 %v11229_v46, %v16359_v15 }
 0xb1e   : > { %v11231_v30 = vpop.eup %11230 }
 0xb1f   : > { %v7323_v1 = vmul.f32 %v11231_v30, %v16369_v57  ;;  %v16572_v53 = vpop.xlane.xlu1 %7654  ;;  %10427 = vmatmul.mubr.msk.bf16.vlgmr.msra.gmra.mrb[136].mxu1 %vm1181_vm2, %v7325_v33  ;;  %v11233_v17 = vpop.eup %11232 }
 0xb20   : > { %10431 = vmatpush3.bf16.msra.mxu1 %v16537_v10  ;;  %v16576_v27 = vpop.xlane.xlu0 %7657  ;;  %10432 = vmatprep.mubr.msk.bf16.mxu1 %vm11824_vm11, %v17343_v44  ;;  %v7320_v57 = vmul.f32 %v11233_v17, %v16361_v54  ;;  %v16593_v15 = vpop.eup %11234 }
 0xb21   : > { %v7327_v13 = vpack.c.bf16 %v7323_v1, %v7322_v49  ;;  %10442 = vmatprep.subr.bf16.mxu1 %v17343_v44  ;;  %v8638_v25 = vsel %vm1181_vm2, %v16593_v15, 0.0  ;;  %v16603_v7 = vpop.eup %11236 }
 0xb22   : > { %v7326_v14 = vpack.c.bf16 %v7321_v29, %v7320_v57  ;;  %v8641_v11 = vsel %vm1181_vm2, %v16603_v7, 0.0 }
 0xb23   : > { %v16583_v59 = vpop.xlane.xlu1 %7660  ;;  %10439 = vmatmul.mubr.msk.bf16.vlgmr.msra.gmra.mrb[140].mxu0 %vm1181_vm2, %v7327_v13 }
 0xb24   : > { %v16586_v2 = vpop.xlane.xlu0 %7969  ;;  %10450 = vmatprep.mubr.msk.bf16.mxu0 %vm11824_vm11, %v17343_v44 }
 0xb27   : > { %v16590_v48 = vpop.xlane.xlu1 %7972  ;;  %10433 = vmatmul.mubr.msk.bf16.vlgmr.msra.gmra.mrb[140].mxu1 %vm1181_vm2, %v7326_v14 }
 0xb28   : > { %v16595_v51 = vpop.xlane.xlu0 %7975  ;;  %10444 = vmatprep.mubr.msk.bf16.mxu1 %vm11824_vm11, %v17343_v44 }
 0xb2b   : > { %v16599_v54 = vpop.xlane.xlu1 %7978 }
 0xb2c   : > { %v16605_v50 = vpop.xlane.xlu0 %7981 }
 0xb2e   : > { %8639 = vadd.xlane.f32.xlu0 %v8638_v25 }
 0xb2f   : > { %v16607_v8 = vpop.xlane.xlu1 %7984 }
 0xb30   : > { %v16611_v46 = vpop.xlane.xlu0 %7987 }
 0xb32   : > { %8642 = vadd.xlane.f32.xlu1 %v8641_v11 }
 0xb33   : > { %v16613_v33 = vpop.xlane.xlu1 %7990 }
 0xb34   : > { %v8299_v30 = vpop.xlane.xlu0 %8298 }
 0xb35   : > { %11238 = vrcp.f32 %v8299_v30 }
 0xb37   : > { %v8296_v9 = vpop.xlane.xlu1 %8295 }
 0xb38   : > { %11240 = vrcp.f32 %v8296_v9  ;;  %v8302_v49 = vpop.xlane.xlu0 %8301 }
 0xb39   : > { %11242 = vrcp.f32 %v8302_v49 }
 0xb3b   : > { %v8305_v1 = vpop.xlane.xlu1 %8304 }
 0xb3c   : > { %11244 = vrcp.f32 %v8305_v1  ;;  %v8311_v17 = vpop.xlane.xlu0 %8310 }
 0xb3d   : > { %11246 = vrcp.f32 %v8311_v17 }
 0xb3f   : > { %v8308_v29 = vpop.xlane.xlu1 %8307  ;;  %v11239_v13 = vpop.eup %11238 }
 0xb40   : > { %11248 = vrcp.f32 %v8308_v29  ;;  %v8314_v57 = vpop.xlane.xlu0 %8313  ;;  %v16616_v25 = vmul.f32 %v11239_v13, %v16459_v38 }
 0xb41   : > { %11250 = vrcp.f32 %v8314_v57 }
 0xb42   : > { %v11241_v14 = vpop.eup %11240 }
 0xb43   : > { %v16619_v11 = vmul.f32 %v11241_v14, %v16461_v28  ;;  %v8317_v30 = vpop.xlane.xlu1 %8316  ;;  %8385 = vrot.lane.b32.xlu1 %v16521_v16, %s11833_s23  ;;  %v11243_v9 = vpop.eup %11242 }
 0xb44   : > { %11252 = vrcp.f32 %v8317_v30  ;;  %8338 = vrot.lane.b32.xlu0 %v16523_v63, %s11833_s23  ;;  %v8625_v49 = vpop.xlane.xlu0 %8624  ;;  %v16628_v38 = vmul.f32 %v11243_v9, %v16471_v32 }
 0xb45   : > { %v8334_v1 = vpack.c.bf16 %v16616_v25, %v16619_v11  ;;  %11254 = vrcp.f32 %v8625_v49 }
 0xb46   : > { %v11245_v17 = vpop.eup %11244 }
 0xb47   : > { %v16631_v28 = vmul.f32 %v11245_v17, %v16469_v42  ;;  %v8622_v29 = vpop.xlane.xlu1 %8621  ;;  %8432 = vrot.lane.b32.xlu1 %v16537_v10, %s11833_s23  ;;  %v11247_v13 = vpop.eup %11246 }
 0xb48   : > { %11256 = vrcp.f32 %v8622_v29  ;;  %8664 = vrot.lane.b32.xlu0 %v16523_v63, %s11834_s1  ;;  %v8628_v57 = vpop.xlane.xlu0 %8627  ;;  %v16640_v32 = vmul.f32 %v11247_v13, %v16479_v40 }
 0xb49   : > { %v8335_v14 = vpack.c.bf16 %v16631_v28, %v16628_v38  ;;  %11258 = vrcp.f32 %v8628_v57 }
 0xb4a   : > { %v11249_v30 = vpop.eup %11248 }
 0xb4b   : > { %v16643_v42 = vmul.f32 %v11249_v30, %v16481_v56  ;;  %v8631_v9 = vpop.xlane.xlu1 %8630  ;;  %8479 = vrot.lane.b32.xlu1 %v16535_v36, %s11833_s23  ;;  %v11251_v49 = vpop.eup %11250 }
 0xb4c   : > { %11260 = vrcp.f32 %v8631_v9  ;;  %8758 = vrot.lane.b32.xlu0 %v16537_v10, %s11834_s1  ;;  %v8637_v63 = vpop.xlane.xlu0 %8636  ;;  %v16652_v40 = vmul.f32 %v11251_v49, %v16491_v22 }
 0xb4d   : > { %v8336_v17 = vpack.c.bf16 %v16640_v32, %v16643_v42  ;;  %11262 = vrcp.f32 %v8637_v63 }
 0xb4e   : > { %v11253_v29 = vpop.eup %11252 }
 0xb4f   : > { %v16655_v56 = vmul.f32 %v11253_v29, %v16489_v60  ;;  %8711 = vrot.lane.b32.xlu1 %v16521_v16, %s11834_s1  ;;  %v8634_v13 = vpop.xlane.xlu1 %8633  ;;  %v11255_v57 = vpop.eup %11254 }
 0xb50   : > { %11264 = vrcp.f32 %v8634_v13  ;;  %v16662_v9 = vmul.f32 %v11255_v57, %v16497_v35 }
 0xb51   : > { %v8337_v10 = vpack.c.bf16 %v16655_v56, %v16652_v40  ;;  %11266 = vrcp.f32 %v16566_v31 }
 0xb52   : > { %v11257_v30 = vpop.eup %11256  ;;  %11268 = vrcp.f32 %v16554_v21 }
 0xb53   : > { %v16665_v63 = vmul.f32 %v11257_v30, %v16499_v47  ;;  %8805 = vrot.lane.b32.xlu1 %v16535_v36, %s11834_s1  ;;  %v11259_v60 = vpop.eup %11258  ;;  %11270 = vrcp.f32 %v16558_v41  ;;  %s11838_s1 = smov [#allocation7]  }
 0xb54   : > { %v16672_v49 = vmul.f32 %v11259_v60, %v16507_v3  ;;  %11272 = vrcp.f32 %v16551_v19 }
 0xb55   : > { %v8660_v22 = vpack.c.bf16 %v16662_v9, %v16665_v63  ;;  %11274 = vrcp.f32 %v16583_v59 }
 0xb56   : > { %v11261_v16 = vpop.eup %11260  ;;  %11276 = vrcp.f32 %v16572_v53 }
 0xb57   : > { %v16675_v29 = vmul.f32 %v11261_v16, %v16505_v20  ;;  %v11263_v13 = vpop.eup %11262  ;;  %11278 = vrcp.f32 %v16576_v27 }
 0xb58   : > { %v16680_v57 = vmul.f32 %v11263_v13, %v16513_v39  ;;  %11280 = vrcp.f32 %v16568_v34 }
 0xb59   : > { %v8661_v35 = vpack.c.bf16 %v16675_v29, %v16672_v49  ;;  %11282 = vrcp.f32 %v16599_v54 }
 0xb5a   : > { %v11265_v47 = vpop.eup %11264  ;;  %11284 = vrcp.f32 %v16590_v48 }
 0xb5b   : > { %v16683_v36 = vmul.f32 %v11265_v47, %v16515_v61  ;;  %v11267_v20 = vpop.eup %11266  ;;  %11286 = vrcp.f32 %v16595_v51 }
 0xb5c   : > { %v11269_v3 = vpop.eup %11268  ;;  %v7673_v60 = vmul.f32 %v11267_v20, %v16389_v58  ;;  %11288 = vrcp.f32 %v16586_v2 }
 0xb5d   : > { %v8662_v30 = vpack.c.bf16 %v16680_v57, %v16683_v36  ;;  %v11271_v39 = vpop.eup %11270  ;;  %v7671_v31 = vmul.f32 %v11269_v3, %v16379_v55  ;;  %11290 = vrcp.f32 %v16613_v33 }
 0xb5e   : > { %v11273_v61 = vpop.eup %11272  ;;  %v7672_v21 = vmul.f32 %v11271_v39, %v16391_v26  ;;  %11292 = vrcp.f32 %v16607_v8 }
 0xb5f   : > { %v7670_v19 = vmul.f32 %v11273_v61, %v16381_v0  ;;  %v11275_v55 = vpop.eup %11274  ;;  %11294 = vrcp.f32 %v16611_v46 }
 0xb60   : > { %v7679_v59 = vpack.c.bf16 %v7673_v60, %v7672_v21  ;;  %v11277_v0 = vpop.eup %11276  ;;  %v7677_v48 = vmul.f32 %v11275_v55, %v16409_v12  ;;  %11296 = vrcp.f32 %v16605_v50 }
 0xb61   : > { %v7678_v53 = vpack.c.bf16 %v7671_v31, %v7670_v19  ;;  %v11279_v26 = vpop.eup %11278  ;;  %v7675_v54 = vmul.f32 %v11277_v0, %v16399_v24 }
 0xb62   : > { %v11281_v27 = vpop.eup %11280  ;;  %v7676_v13 = vmul.f32 %v11279_v26, %v16411_v52 }
 0xb63   : > { %v7674_v20 = vmul.f32 %v11281_v27, %v16401_v43  ;;  %v11283_v3 = vpop.eup %11282 }
 0xb64   : > { %v7681_v2 = vpack.c.bf16 %v7677_v48, %v7676_v13  ;;  %v11285_v24 = vpop.eup %11284  ;;  %v8003_v8 = vmul.f32 %v11283_v3, %v16429_v18 }
 0xb65   : > { %v7680_v12 = vpack.c.bf16 %v7675_v54, %v7674_v20  ;;  %v11287_v43 = vpop.eup %11286  ;;  %v8001_v46 = vmul.f32 %v11285_v24, %v16419_v6 }
 0xb66   : > { %v11289_v52 = vpop.eup %11288  ;;  %v8002_v50 = vmul.f32 %v11287_v43, %v16431_v45 }
 0xb67   : > { %v8000_v33 = vmul.f32 %v11289_v52, %v16421_v37  ;;  %v11291_v61 = vpop.eup %11290 }
 0xb68   : > { %v8009_v39 = vpack.c.bf16 %v8003_v8, %v8002_v50  ;;  %v11293_v60 = vpop.eup %11292  ;;  %v8007_v19 = vmul.f32 %v11291_v61, %v16449_v5 }
 0xb69   : > { %v8008_v18 = vpack.c.bf16 %v8001_v46, %v8000_v33  ;;  %v11295_v21 = vpop.eup %11294  ;;  %v8005_v37 = vmul.f32 %v11293_v60, %v16439_v62 }
 0xb6a   : > { %v8006_v45 = vmul.f32 %v11295_v21, %v16451_v4 }
 0xb71   : > { %v7732_v41 = vpop.permute.xlu1 %7731 }
 0xb72   : > { %10449 = vmatpush3.bf16.msra.mxu0 %v7732_v41  ;;  %v7684_v16 = vpop.permute.xlu0 %7683  ;;  %v11297_v41 = vpop.eup %11296 }
 0xb73   : > { %10443 = vmatpush3.bf16.msra.mxu1 %v7684_v16  ;;  %10460 = vmatprep.subr.bf16.mxu0 %v17343_v44  ;;  %v8004_v16 = vmul.f32 %v11297_v41, %v16441_v23 }
 0xb74   : > { %10454 = vmatprep.subr.bf16.mxu1 %v17343_v44 }
 0xb75   : > { %10451 = vmatmul.mubr.msk.bf16.vlgmr.msra.gmra.mrb[144].mxu0 %vm1181_vm2, %v7679_v59  ;;  %v8060_v58 = vpop.permute.xlu1 %8059  ;;  %v8011_v59 = vpack.c.bf16 %v8007_v19, %v8006_v45 }
 0xb76   : > { %10445 = vmatmul.mubr.msk.bf16.vlgmr.msra.gmra.mrb[144].mxu1 %vm1181_vm2, %v7678_v53  ;;  %10462 = vmatprep.mubr.msk.bf16.mxu0 %vm11824_vm11, %v17343_v44  ;;  %v8013_v34 = vpop.permute.xlu0 %8012  ;;  %v8010_v53 = vpack.c.bf16 %v8005_v37, %v8004_v16 }
 0xb77   : > { %10456 = vmatprep.mubr.msk.bf16.mxu1 %vm11824_vm11, %v17343_v44 }
 0xb7c   : > { %v7828_v47 = vpop.permute.xlu1 %7827 }
 0xb7d   : > { %10461 = vmatpush3.bf16.msra.mxu0 %v7828_v47  ;;  %v7780_v51 = vpop.permute.xlu0 %7779 }
 0xb7e   : > { %10455 = vmatpush3.bf16.msra.mxu1 %v7780_v51  ;;  %10472 = vmatprep.subr.bf16.mxu0 %v17343_v44 }
 0xb7f   : > { %10466 = vmatprep.subr.bf16.mxu1 %v17343_v44 }
 0xb80   : > { %10463 = vmatmul.mubr.msk.bf16.vlgmr.msra.gmra.mrb[148].mxu0 %vm1181_vm2, %v7681_v2  ;;  %v8154_v31 = vpop.permute.xlu1 %8153 }
 0xb81   : > { %10457 = vmatmul.mubr.msk.bf16.vlgmr.msra.gmra.mrb[148].mxu1 %vm1181_vm2, %v7680_v12  ;;  %10473 = vmatpush3.bf16.msra.mxu0 %v8060_v58  ;;  %v8107_v6 = vpop.permute.xlu0 %8106 }
 0xb82   : > { %10467 = vmatpush3.bf16.msra.mxu1 %v8013_v34  ;;  %10474 = vmatprep.mubr.msk.bf16.mxu0 %vm11824_vm11, %v17343_v44 }
 0xb83   : > { %10484 = vmatprep.subr.bf16.mxu0 %v17343_v44  ;;  %10468 = vmatprep.mubr.msk.bf16.mxu1 %vm11824_vm11, %v17343_v44 }
 0xb84   : > { %10478 = vmatprep.subr.bf16.mxu1 %v17343_v44 }
 0xb88   : > { %10475 = vmatmul.mubr.msk.bf16.vlgmr.msra.gmra.mrb[152].mxu0 %vm1181_vm2, %v8009_v39 }
 0xb89   : > { %10485 = vmatpush3.bf16.msra.mxu0 %v8154_v31  ;;  %10469 = vmatmul.mubr.msk.bf16.vlgmr.msra.gmra.mrb[152].mxu1 %vm1181_vm2, %v8008_v18 }
 0xb8a   : > { %10479 = vmatpush3.bf16.msra.mxu1 %v8107_v6  ;;  %10486 = vmatprep.mubr.msk.bf16.mxu0 %vm11824_vm11, %v17343_v44 }
 0xb8b   : > { %10480 = vmatprep.mubr.msk.bf16.mxu1 %vm11824_vm11, %v17343_v44  ;;  %10490 = vmatprep.subr.bf16.mxu1 %v17343_v44 }
 0xb8c   : > { %10496 = vmatprep.subr.bf16.mxu0 %v17343_v44 }
 0xb90   : > { %10487 = vmatmul.mubr.msk.bf16.vlgmr.msra.gmra.mrb[156].mxu0 %vm1181_vm2, %v8011_v59 }
 0xb91   : > { %10481 = vmatmul.mubr.msk.bf16.vlgmr.msra.gmra.mrb[156].mxu1 %vm1181_vm2, %v8010_v53  ;;  %10498 = vmatprep.mubr.msk.bf16.mxu0 %vm11824_vm11, %v17343_v44 }
 0xb92   : > { %10492 = vmatprep.mubr.msk.bf16.mxu1 %vm11824_vm11, %v17343_v44 }
 0xbbb   : > { %v8640_v62 = vpop.xlane.xlu0 %8639 }
 0xbbf   : > { %v8643_v5 = vpop.xlane.xlu1 %8642  ;;  %v8339_v55 = vpop.permute.xlu0 %8338 }
 0xbc0   : > { %10491 = vmatpush3.bf16.msra.mxu1 %v8339_v55  ;;  %11298 = vrcp.f32 %v8643_v5 }
 0xbc1   : > { %10502 = vmatprep.subr.bf16.mxu1 %v17343_v44  ;;  %11300 = vrcp.f32 %v8640_v62 }
 0xbc3   : > { %v8386_v4 = vpop.permute.xlu1 %8385  ;;  %10493 = vmatmul.mubr.msk.bf16.vlgmr.msra.gmra.mrb[160].mxu1 %vm1181_vm2, %v8334_v1  ;;  %v8665_v25 = vpop.permute.xlu0 %8664 }
 0xbc4   : > { %10497 = vmatpush3.bf16.msra.mxu0 %v8386_v4  ;;  %10504 = vmatprep.mubr.msk.bf16.mxu1 %vm11824_vm11, %v17343_v44 }
 0xbc5   : > { %10508 = vmatprep.subr.bf16.mxu0 %v17343_v44 }
 0xbc7   : > { %v8433_v23 = vpop.permute.xlu1 %8432  ;;  %10499 = vmatmul.mubr.msk.bf16.vlgmr.msra.gmra.mrb[160].mxu0 %vm1181_vm2, %v8335_v14  ;;  %v8759_v38 = vpop.permute.xlu0 %8758 }
 0xbc8   : > { %10503 = vmatpush3.bf16.msra.mxu1 %v8433_v23  ;;  %10510 = vmatprep.mubr.msk.bf16.mxu0 %vm11824_vm11, %v17343_v44 }
 0xbc9   : > { %10514 = vmatprep.subr.bf16.mxu1 %v17343_v44 }
 0xbca   : > { %v11299_v28 = vpop.eup %11298 }
 0xbcb   : > { %v8480_v11 = vpop.permute.xlu1 %8479  ;;  %10505 = vmatmul.mubr.msk.bf16.vlgmr.msra.gmra.mrb[164].mxu1 %vm1181_vm2, %v8336_v17  ;;  %v11301_v32 = vpop.eup %11300  ;;  %v8659_v42 = vmul.f32 %v11299_v28, %v16603_v7 }
 0xbcc   : > { %10509 = vmatpush3.bf16.msra.mxu0 %v8480_v11  ;;  %10515 = vmatpush3.bf16.msra.mxu1 %v8665_v25  ;;  %v8658_v17 = vmul.f32 %v11301_v32, %v16593_v15 }
 0xbcd   : > { %10520 = vmatprep.subr.bf16.mxu0 %v17343_v44  ;;  %10516 = vmatprep.mubr.msk.bf16.mxu1 %vm11824_vm11, %v17343_v44 }
 0xbce   : > { %10526 = vmatprep.subr.bf16.mxu1 %v17343_v44  ;;  %v8663_v40 = vpack.c.bf16 %v8659_v42, %v8658_v17 }
 0xbcf   : > { %v8712_v1 = vpop.permute.xlu1 %8711  ;;  %10511 = vmatmul.mubr.msk.bf16.vlgmr.msra.gmra.mrb[164].mxu0 %vm1181_vm2, %v8337_v10 }
 0xbd0   : > { %10521 = vmatpush3.bf16.msra.mxu0 %v8712_v1  ;;  %10522 = vmatprep.mubr.msk.bf16.mxu0 %vm11824_vm11, %v17343_v44 }
 0xbd1   : > { %10532 = vmatprep.subr.bf16.mxu0 %v17343_v44 }
 0xbd3   : > { %10517 = vmatmul.mubr.msk.bf16.vlgmr.msra.gmra.mrb[168].mxu1 %vm1181_vm2, %v8660_v22  ;;  %v8806_v14 = vpop.permute.xlu1 %8805 }
 0xbd4   : > { %10527 = vmatpush3.bf16.msra.mxu1 %v8759_v38  ;;  %10528 = vmatprep.mubr.msk.bf16.mxu1 %vm11824_vm11, %v17343_v44 }
 0xbd5   : > { %10538 = vmatprep.subr.bf16.mxu1 %v17343_v44 }
 0xbd7   : > { %10523 = vmatmul.mubr.msk.bf16.vlgmr.msra.gmra.mrb[168].mxu0 %vm1181_vm2, %v8661_v35 }
 0xbd8   : > { %10533 = vmatpush3.bf16.msra.mxu0 %v8806_v14  ;;  %10534 = vmatprep.mubr.msk.bf16.mxu0 %vm11824_vm11, %v17343_v44 }
 0xbd9   : > { %10548 = vmatprep.subr.bf16.mxu0 %v17343_v44 }
 0xbdb   : > { %10529 = vmatmul.mubr.msk.bf16.vlgmr.msra.gmra.mrb[172].mxu1 %vm1181_vm2, %v8662_v30 }
 0xbdc   : > { %10544 = vmatprep.mubr.msk.bf16.mxu1 %vm11824_vm11, %v17343_v44 }
 0xbdf   : > { %10535 = vmatmul.mubr.msk.bf16.vlgmr.msra.gmra.mrb[172].mxu0 %vm1181_vm2, %v8663_v40 }
 0xbe0   : > { %10552 = vmatprep.mubr.msk.bf16.mxu0 %vm11824_vm11, %v17343_v44 }
 0xbea   : > { %v16806_v56 = vpop.f32.mrb[132].mxu1 }
 0xbeb   : > { %v10422_v7 = vpop.f32.mrb[133].mxu1 }
 0xbec   : > { %v16808_v10 = vpop.f32.mrb[134].mxu1 }
 0xbed   : > { %v10423_v15 = vpop.f32.mrb[135].mxu1 }
 0xbf2   : > { %v16810_v9 = vpop.f32.mrb[136].mxu1 }
 0xbf3   : > { %v10428_v63 = vpop.f32.mrb[137].mxu1 }
 0xbf4   : > { %v16812_v22 = vpop.f32.mrb[138].mxu1 }
 0xbf5   : > { %v10429_v49 = vpop.f32.mrb[139].mxu1 }
 0xbf6   : > { %v16814_v29 = vpop.f32.mrb[140].mxu0 }
 0xbf7   : > { %v10440_v35 = vpop.f32.mrb[141].mxu0 }
 0xbf8   : > { %v16816_v57 = vpop.f32.mrb[142].mxu0 }
 0xbf9   : > { %v10441_v36 = vpop.f32.mrb[143].mxu0 }
 0xbfa   : > { %v16818_v30 = vpop.f32.mrb[140].mxu1 }
 0xbfb   : > { %v10434_v0 = vpop.f32.mrb[141].mxu1 }
 0xbfc   : > { %v16820_v58 = vpop.f32.mrb[142].mxu1 }
 0xbfd   : > { %v10435_v26 = vpop.f32.mrb[143].mxu1 }
 0xc48   : > { %v7771_v34 = vpop.f32.mrb[144].mxu0 }
 0xc49   : > { %8864 = vrot.lane.b32.xlu0 %v7771_v34, %s17447_s21  ;;  %v7723_v27 = vpop.f32.mrb[144].mxu1  ;;  %v10452_v48 = vpop.f32.mrb[145].mxu0 }
 0xc4a   : > { %v10446_v54 = vpop.f32.mrb[145].mxu1  ;;  %v7774_v13 = vpop.f32.mrb[146].mxu0 }
 0xc4b   : > { %8866 = vrot.lane.b32.xlu1 %v7774_v13, %s17447_s21  ;;  %v7726_v47 = vpop.f32.mrb[146].mxu1  ;;  %v10453_v20 = vpop.f32.mrb[147].mxu0 }
 0xc4c   : > { %v10447_v51 = vpop.f32.mrb[147].mxu1 }
 0xc4d   : > { %8860 = vrot.lane.b32.xlu0 %v7723_v27, %s17447_s21 }
 0xc4f   : > { %8862 = vrot.lane.b32.xlu1 %v7726_v47, %s17447_s21 }
 0xc53   : > { %v7867_v2 = vpop.f32.mrb[148].mxu0 }
 0xc54   : > { %v10464_v3 = vpop.f32.mrb[149].mxu0  ;;  %8872 = vrot.lane.b32.xlu0 %v7867_v2, %s17447_s21  ;;  %v7819_v12 = vpop.f32.mrb[148].mxu1 }
 0xc55   : > { %v10458_v24 = vpop.f32.mrb[149].mxu1  ;;  %v7870_v43 = vpop.f32.mrb[150].mxu0  ;;  %v10656_v3 = vld [vmem:[%s17107_s13] sm:$0xff]  }
 0xc56   : > { %v10465_v52 = vpop.f32.mrb[151].mxu0  ;;  %8874 = vrot.lane.b32.xlu1 %v7870_v43, %s17447_s21  ;;  %v7822_v8 = vpop.f32.mrb[150].mxu1  ;;  %10539 = vmatpush3.bf16.msra.mxu1 %v10656_v3  ;;  %v10658_v24 = vld [vmem:[%s17107_s13 + $0x10] ss:$0 sps:$4 sm:$0xff]  }
 0xc57   : > { %v10459_v46 = vpop.f32.mrb[151].mxu1  ;;  %10540 = vmatprep.subr.bf16.mxu1 %v17343_v44  ;;  %v9121_v43 = vsel %vm994_vm0, %v10658_v24, 0  ;;  %vm9095_vm0 = vcmask 1041409  }
 0xc58   : > { %8868 = vrot.lane.b32.xlu0 %v7819_v12, %s17447_s21  ;;  %v10657_v12 = vld [vmem:[%s17107_s13 + $0x8] sm:$0xff]  }
 0xc5a   : > { %8870 = vrot.lane.b32.xlu1 %v7822_v8, %s17447_s21  ;;  %10541 = vmatpush3.bf16.msra.mxu1 %v10657_v12 }
 0xc5b   : > { %v8099_v50 = vpop.f32.mrb[152].mxu0  ;;  %10542 = vmatprep.subr.bf16.mxu1 %v17343_v44 }
 0xc5c   : > { %v10476_v33 = vpop.f32.mrb[153].mxu0  ;;  %8896 = vrot.lane.b32.xlu0 %v8099_v50, %s17283_s27  ;;  %v8052_v39 = vpop.f32.mrb[152].mxu1 }
 0xc5d   : > { %v10470_v61 = vpop.f32.mrb[153].mxu1  ;;  %v8102_v18 = vpop.f32.mrb[154].mxu0 }
 0xc5e   : > { %v10477_v60 = vpop.f32.mrb[155].mxu0  ;;  %8898 = vrot.lane.b32.xlu1 %v8102_v18, %s17283_s27  ;;  %v8055_v31 = vpop.f32.mrb[154].mxu1  ;;  %10543 = vmatpush3.bf16.msra.mxu1 %v9121_v43 }
 0xc5f   : > { %v10471_v21 = vpop.f32.mrb[155].mxu1 }
 0xc60   : > { %8892 = vrot.lane.b32.xlu0 %v8052_v39, %s17283_s27 }
 0xc62   : > { %8894 = vrot.lane.b32.xlu1 %v8055_v31, %s17283_s27 }
 0xc63   : > { %v8193_v6 = vpop.f32.mrb[156].mxu0 }
 0xc64   : > { %v10488_v41 = vpop.f32.mrb[157].mxu0  ;;  %8904 = vrot.lane.b32.xlu0 %v8193_v6, %s17283_s27  ;;  %v8146_v19 = vpop.f32.mrb[156].mxu1 }
 0xc65   : > { %v10482_v37 = vpop.f32.mrb[157].mxu1  ;;  %v8196_v45 = vpop.f32.mrb[158].mxu0 }
 0xc66   : > { %v10489_v16 = vpop.f32.mrb[159].mxu0  ;;  %8906 = vrot.lane.b32.xlu1 %v8196_v45, %s17283_s27  ;;  %v8149_v59 = vpop.f32.mrb[158].mxu1 }
 0xc67   : > { %v10483_v53 = vpop.f32.mrb[159].mxu1 }
 0xc68   : > { %8900 = vrot.lane.b32.xlu0 %v8146_v19, %s17283_s27 }
 0xc6a   : > { %8902 = vrot.lane.b32.xlu1 %v8149_v59, %s17283_s27  ;;  %s11720_s27 = sshll.u32 %s11838_s1, 4  ;;  %s11721_s27 = int_to_ptr.vmem [resolvable:$false] %s11720_s27 }
 0xc96   : > { %v8378_v62 = vpop.f32.mrb[160].mxu1 }
 0xc97   : > { %v10494_v5 = vpop.f32.mrb[161].mxu1 }
 0xc98   : > { %v8381_v55 = vpop.f32.mrb[162].mxu1 }
 0xc99   : > { %v10495_v4 = vpop.f32.mrb[163].mxu1 }
 0xc9a   : > { %v8425_v23 = vpop.f32.mrb[160].mxu0 }
 0xc9b   : > { %v10500_v25 = vpop.f32.mrb[161].mxu0  ;;  %8928 = vrot.lane.b32.xlu0 %v8425_v23, %s11835_s25 }
 0xc9c   : > { %v8428_v11 = vpop.f32.mrb[162].mxu0 }
 0xc9d   : > { %v10501_v1 = vpop.f32.mrb[163].mxu0  ;;  %8930 = vrot.lane.b32.xlu1 %v8428_v11, %s11835_s25 }
 0xc9e   : > { %v8472_v38 = vpop.f32.mrb[164].mxu1  ;;  %v16882_v1 = vld [vmem:[%s17106_s12] ss:$0 sm:$0xff] }
 0xc9f   : > { %8924 = vrot.lane.b32.xlu0 %v8378_v62, %s11835_s25  ;;  %v10506_v28 = vpop.f32.mrb[165].mxu1 }
 0xca0   : > { %v8475_v14 = vpop.f32.mrb[166].mxu1 }
 0xca1   : > { %8926 = vrot.lane.b32.xlu1 %v8381_v55, %s11835_s25  ;;  %v10507_v32 = vpop.f32.mrb[167].mxu1 }
 0xca2   : > { %v8519_v42 = vpop.f32.mrb[164].mxu0 }
 0xca3   : > { %v10512_v17 = vpop.f32.mrb[165].mxu0  ;;  %8936 = vrot.lane.b32.xlu0 %v8519_v42, %s11835_s25 }
 0xca4   : > { %v8522_v40 = vpop.f32.mrb[166].mxu0 }
 0xca5   : > { %v10513_v7 = vpop.f32.mrb[167].mxu0  ;;  %8938 = vrot.lane.b32.xlu1 %v8522_v40, %s11835_s25 }
 0xca6   : > { %v8704_v15 = vpop.f32.mrb[168].mxu1 }
 0xca7   : > { %8932 = vrot.lane.b32.xlu0 %v8472_v38, %s11835_s25  ;;  %v10518_v63 = vpop.f32.mrb[169].mxu1 }
 0xca8   : > { %v8707_v49 = vpop.f32.mrb[170].mxu1 }
 0xca9   : > { %8934 = vrot.lane.b32.xlu1 %v8475_v14, %s11835_s25  ;;  %v10519_v35 = vpop.f32.mrb[171].mxu1 }
 0xcaa   : > { %v8751_v36 = vpop.f32.mrb[168].mxu0 }
 0xcab   : > { %v10524_v0 = vpop.f32.mrb[169].mxu0  ;;  %8960 = vrot.lane.b32.xlu0 %v8751_v36, %s11836_s24 }
 0xcac   : > { %v8754_v26 = vpop.f32.mrb[170].mxu0 }
 0xcad   : > { %v10525_v34 = vpop.f32.mrb[171].mxu0  ;;  %8962 = vrot.lane.b32.xlu1 %v8754_v26, %s11836_s24 }
 0xcae   : > { %v8798_v27 = vpop.f32.mrb[172].mxu1 }
 0xcaf   : > { %8956 = vrot.lane.b32.xlu0 %v8704_v15, %s11836_s24  ;;  %v10530_v48 = vpop.f32.mrb[173].mxu1 }
 0xcb0   : > { %v8801_v54 = vpop.f32.mrb[174].mxu1 }
 0xcb1   : > { %8958 = vrot.lane.b32.xlu1 %v8707_v49, %s11836_s24  ;;  %v10531_v13 = vpop.f32.mrb[175].mxu1 }
 0xcb2   : > { %v8845_v47 = vpop.f32.mrb[172].mxu0 }
 0xcb3   : > { %v10536_v20 = vpop.f32.mrb[173].mxu0  ;;  %8964 = vrot.lane.b32.xlu0 %v8798_v27, %s11836_s24 }
 0xcb4   : > { %v8848_v51 = vpop.f32.mrb[174].mxu0 }
 0xcb5   : > { %v10537_v2 = vpop.f32.mrb[175].mxu0  ;;  %8966 = vrot.lane.b32.xlu1 %v8801_v54, %s11836_s24 }
 0xcb7   : > { %8968 = vrot.lane.b32.xlu0 %v8845_v47, %s11836_s24 }
 0xcb9   : > { %8970 = vrot.lane.b32.xlu1 %v8848_v51, %s11836_s24  ;;  %s16873_s24 = sand.u32 1, %s11810_s30  }
 0xcba   : > { %s9587_s20 = sshll.u32 %s16873_s24, 6  ;;  %s9588_s29 = sshll.u32 %s16873_s24, 2 }
 0xcbb   : > { %v8865_v52 = vpop.permute.xlu0 %8864  ;;  %s16898_s0 = scalar_lea.vmem [#allocation7], %s9587_s20  ;;  %s16991_s25 = scalar_lea.vmem [#allocation8], %s9588_s29 }
 0xcbc   : > { %v8982_v23 = vsel %vm981_vm10, %v16810_v9, %v8865_v52  ;;  %s9403_s20 = sshll.u32 %s16898_s0, 4  ;;  %s17005_s20 = int_to_ptr.vmem [resolvable:$true] %s9403_s20 }
 0xcbd   : > { %v8867_v8 = vpop.permute.xlu1 %8866  ;;  %s11716_s23 = scalar_lea.vmem %s17005_s20, 1024  ;;  %p11723_p8 = scmp.lt.s32.totalorder %s17005_s20, %s11721_s27 }
 0xcbe   : > { %v8983_v38 = vsel %vm981_vm10, %v16812_v22, %v8867_v8  ;;  %p11717_p10 = scmp.ne.s32.totalorder %s17005_s20, %s11716_s23 }
 0xcbf   : > { %v8861_v46 = vpop.permute.xlu0 %8860 }
 0xcc0   : > { %v8980_v9 = vsel %vm981_vm10, %v16806_v56, %v8861_v46  ;;  %p11718_p0 = pnand %p11717_p10, %p17590_p12 }
 0xcc1   : > { %v8863_v50 = vpop.permute.xlu1 %8862 }
 0xcc2   : > { %v8981_v22 = vsel %vm981_vm10, %v16808_v10, %v8863_v50  ;;  %p11719_p7 = pneg %p11718_p0 }
 0xcc6   : > { %v8873_v33 = vpop.permute.xlu0 %8872 }
 0xcc7   : > { %v8986_v12 = vsel %vm981_vm10, %v16814_v29, %v8873_v33 }
 0xcc8   : > { %v16866_v39 = vpop.permute.xlu1 %8874 }
 0xcca   : > { %v8869_v61 = vpop.permute.xlu0 %8868 }
 0xccb   : > { %v8984_v36 = vsel %vm981_vm10, %v16818_v30, %v8869_v61 }
 0xccc   : > { %v8871_v18 = vpop.permute.xlu1 %8870 }
 0xccd   : > { %v8985_v20 = vsel %vm981_vm10, %v16820_v58, %v8871_v18 }
 0xcce   : > { %v8897_v60 = vpop.permute.xlu0 %8896 }
 0xccf   : > { %v8990_v11 = vsel %vm1181_vm2, %v8982_v23, %v8897_v60 }
 0xcd0   : > { %v8899_v31 = vpop.permute.xlu1 %8898 }
 0xcd1   : > { %v8991_v32 = vsel %vm1181_vm2, %v8983_v38, %v8899_v31  ;;  %v8987_v31 = vsel %vm981_vm10, %v16816_v57, %v16866_v39 }
 0xcd2   : > { %v8893_v21 = vpop.permute.xlu0 %8892 }
 0xcd3   : > { %v8988_v15 = vsel %vm1181_vm2, %v8980_v9, %v8893_v21 }
 0xcd4   : > { %v8895_v6 = vpop.permute.xlu1 %8894 }
 0xcd5   : > { %v8989_v0 = vsel %vm1181_vm2, %v8981_v22, %v8895_v6 }
 0xcd6   : > { %v8905_v41 = vpop.permute.xlu0 %8904 }
 0xcd7   : > { %v8994_v29 = vsel %vm1181_vm2, %v8986_v12, %v8905_v41 }
 0xcd8   : > { %v16868_v19 = vpop.permute.xlu1 %8906 }
 0xcda   : > { %v8901_v37 = vpop.permute.xlu0 %8900 }
 0xcdb   : > { %v8992_v13 = vsel %vm1181_vm2, %v8984_v36, %v8901_v37 }
 0xcdc   : > { %v8903_v45 = vpop.permute.xlu1 %8902 }
 0xcdd   : > { %v8993_v24 = vsel %vm1181_vm2, %v8985_v20, %v8903_v45  ;;  %v8995_v45 = vsel %vm1181_vm2, %v8987_v31, %v16868_v19 }
 0xd0d   : > { %v8929_v16 = vpop.permute.xlu0 %8928 }
 0xd0e   : > { %v8998_v28 = vsel %vm6972_vm1, %v8990_v11, %v8929_v16 }
 0xd0f   : > { %v8931_v59 = vpop.permute.xlu1 %8930 }
 0xd10   : > { %v8999_v17 = vsel %vm6972_vm1, %v8991_v32, %v8931_v59 }
 0xd11   : > { %v8925_v53 = vpop.permute.xlu0 %8924 }
 0xd12   : > { %v8996_v49 = vsel %vm6972_vm1, %v8988_v15, %v8925_v53 }
 0xd13   : > { %v8927_v62 = vpop.permute.xlu1 %8926 }
 0xd14   : > { %v8997_v10 = vsel %vm6972_vm1, %v8989_v0, %v8927_v62 }
 0xd15   : > { %v8937_v5 = vpop.permute.xlu0 %8936 }
 0xd16   : > { %v9002_v21 = vsel %vm6972_vm1, %v8994_v29, %v8937_v5 }
 0xd17   : > { %v16870_v55 = vpop.permute.xlu1 %8938 }
 0xd18   : > { %v9003_v53 = vsel %vm6972_vm1, %v8995_v45, %v16870_v55  ;;  %v9793_v45 = vld [vmem:[%s17110_s16] ss:$0 sm:$0xff] }
 0xd19   : > { %v8933_v4 = vpop.permute.xlu0 %8932 }
 0xd1a   : > { %v9000_v51 = vsel %vm6972_vm1, %v8992_v13, %v8933_v4 }
 0xd1b   : > { %v8935_v25 = vpop.permute.xlu1 %8934 }
 0xd1c   : > { %v9001_v8 = vsel %vm6972_vm1, %v8993_v24, %v8935_v25  ;;  %v10659_v24 = vld [vmem:[%s17109_s15] sm:$0xff]  }
 0xd1d   : > { %v8961_v14 = vpop.permute.xlu0 %8960  ;;  %10549 = vmatpush3.bf16.msra.mxu0 %v10659_v24 }
 0xd1e   : > { %v9006_v42 = vsel %vm6981_vm3, %v8998_v28, %v8961_v14  ;;  %10550 = vmatprep.subr.bf16.mxu0 %v17343_v44 }
 0xd1f   : > { %v9021_v40 = vadd.f32 %v16882_v1, %v9006_v42  ;;  %v8963_v7 = vpop.permute.xlu1 %8962 }
 0xd20   : > { %v9007_v63 = vsel %vm6981_vm3, %v8999_v17, %v8963_v7 }
 0xd21   : > { %9029 = vst.msk [vmem:[%s16898_s0 + $0x10] sm:$0xff] %vm7037_vm4, %v9021_v40  ;;  %v9022_v56 = vadd.f32 %v16882_v1, %v9007_v63  ;;  %v8957_v35 = vpop.permute.xlu0 %8956  ;;  %v9044_v34 = vsel %vm7037_vm4, %v9021_v40, 0.0 }
 0xd22   : > { %v9004_v26 = vsel %vm6981_vm3, %v8996_v49, %v8957_v35 }
 0xd23   : > { %9030 = vst.msk [vmem:[%s16898_s0 + $0x18] sm:$0xff] %vm7037_vm4, %v9022_v56  ;;  %v9045_v27 = vsel %vm7037_vm4, %v9022_v56, 0.0  ;;  %v9019_v48 = vadd.f32 %v16882_v1, %v9004_v26  ;;  %v8959_v54 = vpop.permute.xlu1 %8958 }
 0xd24   : > { %v9046_v47 = vadd.f32 %v9045_v27, %v9044_v34  ;;  %v9005_v30 = vsel %vm6981_vm3, %v8997_v10, %v8959_v54 }
 0xd25   : > { %9027 = vst.msk [vmem:[%s16898_s0] sm:$0xff] %vm7037_vm4, %v9019_v48  ;;  %v9020_v2 = vadd.f32 %v16882_v1, %v9005_v30  ;;  %v8965_v3 = vpop.permute.xlu0 %8964  ;;  %v9035_v58 = vsel %vm7037_vm4, %v9019_v48, 0.0 }
 0xd26   : > { %v9047_v43 = vrot.slane %v9046_v47, 4  ;;  %v9008_v52 = vsel %vm6981_vm3, %v9000_v51, %v8965_v3 }
 0xd27   : > { %9028 = vst.msk [vmem:[%s16898_s0 + $0x8] sm:$0xff] %vm7037_vm4, %v9020_v2  ;;  %v9036_v46 = vsel %vm7037_vm4, %v9020_v2, 0.0  ;;  %v9023_v50 = vadd.f32 %v16882_v1, %v9008_v52  ;;  %v8967_v61 = vpop.permute.xlu1 %8966  ;;  %v9788_v52 = vld [vmem:[%s17108_s14] ss:$0 sm:$0xff] }
 0xd28   : > { %v9048_v33 = vadd.f32 %v9047_v43, %v9046_v47  ;;  %v9037_v18 = vadd.f32 %v9036_v46, %v9035_v58  ;;  %v9009_v60 = vsel %vm6981_vm3, %v9001_v8, %v8967_v61  ;;  %v10660_v43 = vld [vmem:[%s17109_s15 + $0x8] sm:$0xff]  }
 0xd29   : > { %9031 = vst.msk [vmem:[%s16898_s0 + $0x20] sm:$0xff] %vm7037_vm4, %v9023_v50  ;;  %v9024_v6 = vadd.f32 %v16882_v1, %v9009_v60  ;;  %v8969_v37 = vpop.permute.xlu0 %8968  ;;  %v9053_v57 = vsel %vm7037_vm4, %v9023_v50, 0.0  ;;  %10551 = vmatpush3.bf16.msra.mxu0 %v10660_v43  ;;  %v11837_v60 = vmov 1966171168  }
 0xd2a   : > { %v9049_v41 = vrot.slane %v9048_v33, 2  ;;  %v9038_v16 = vrot.slane %v9037_v18, 4  ;;  %v9010_v59 = vsel %vm6981_vm3, %v9002_v21, %v8969_v37  ;;  %10556 = vmatprep.subr.bf16.mxu0 %v17343_v44  ;;  %v9233_v31 = vunpack.c.l.s4 %v11837_v60 }
 0xd2b   : > { %9032 = vst.msk [vmem:[%s16898_s0 + $0x28] sm:$0xff] %vm7037_vm4, %v9024_v6  ;;  %v9054_v39 = vsel %vm7037_vm4, %v9024_v6, 0.0  ;;  %v9025_v62 = vadd.f32 %v16882_v1, %v9010_v59  ;;  %v8971_v5 = vpop.permute.xlu1 %8970  ;;  %v9235_v21 = vlaneseq }
 0xd2c   : > { %v9050_v4 = vadd.f32 %v9049_v41, %v9048_v33  ;;  %v9039_v23 = vadd.f32 %v9038_v16, %v9037_v18  ;;  %v9055_v19 = vadd.f32 %v9054_v39, %v9053_v57  ;;  %v9011_v25 = vsel %vm6981_vm3, %v9003_v53, %v8971_v5  ;;  %v10661_v18 = vld [vmem:[%s17113_s19] sm:$0xff]  }
 0xd2d   : > { %9033 = vst.msk [vmem:[%s16898_s0 + $0x30] sm:$0xff] %vm7037_vm4, %v9025_v62  ;;  %v9026_v11 = vadd.f32 %v16882_v1, %v9011_v25  ;;  %v9062_v14 = vsel %vm7037_vm4, %v9025_v62, 0.0  ;;  %v9234_v6 = vunpack.c.0.s8 %v9233_v31  ;;  %v9236_v37 = vshrl.u32 %v9235_v21, 7  ;;  %v9798_v57 = vld [vmem:[%s17112_s18] ss:$0 sm:$0xff] }
 0xd2e   : > { %v9051_v55 = vrot.slane %v9050_v4, 1  ;;  %v9040_v38 = vrot.slane %v9039_v23, 2  ;;  %v9056_v28 = vrot.slane %v9055_v19, 4 }
 0xd2f   : > { %9034 = vst.msk [vmem:[%s16898_s0 + $0x38] sm:$0xff] %vm7037_vm4, %v9026_v11  ;;  %v9063_v32 = vsel %vm7037_vm4, %v9026_v11, 0.0  ;;  %v16979_v41 = vsub.s32 %v9234_v6, %v9236_v37  ;;  %s11722_s0 = scalar_lea.vmem %s11721_s27, 2048 }
 0xd30   : > { %v9052_v42 = vadd.f32 %v9051_v55, %v9050_v4  ;;  %v9041_v9 = vadd.f32 %v9040_v38, %v9039_v23  ;;  %v9057_v17 = vadd.f32 %v9056_v28, %v9055_v19  ;;  %v9064_v40 = vadd.f32 %v9063_v32, %v9062_v14  ;;  %p11724_p11 = scmp.lt.s32.totalorder %s11722_s0, %s11716_s23 }
 0xd32   : > { %v9042_v7 = vrot.slane %v9041_v9, 1  ;;  %v9058_v15 = vrot.slane %v9057_v17, 2  ;;  %v9065_v63 = vrot.slane %v9064_v40, 4  ;;  %v9072_v22 = vpack.c.bf16 %v9052_v42, %v9052_v42  ;;  %p11725_p13 = por %p11724_p11, %p11723_p8 }
 0xd34   : > { %v9043_v49 = vadd.f32 %v9042_v7, %v9041_v9  ;;  %v9059_v56 = vadd.f32 %v9058_v15, %v9057_v17  ;;  %v9066_v1 = vadd.f32 %v9065_v63, %v9064_v40  ;;  %v9092_v26 = vunpack.c.l.b16 %v9072_v22  ;;  %p11726_p1 = pnand %p11725_p13, %p11719_p7 }
 0xd36   : > { %v9071_v35 = vpack.c.bf16 %v9043_v49, %v9043_v49  ;;  %v9060_v36 = vrot.slane %v9059_v56, 1  ;;  %v9067_v0 = vrot.slane %v9066_v1, 2 }
 0xd38   : > { %v9091_v10 = vunpack.c.l.b16 %v9071_v35  ;;  %v9061_v34 = vadd.f32 %v9060_v36, %v9059_v56  ;;  %v9068_v27 = vadd.f32 %v9067_v0, %v9066_v1 }
 0xd3a   : > { %v9073_v48 = vpack.c.bf16 %v9061_v34, %v9061_v34  ;;  %v9069_v54 = vrot.slane %v9068_v27, 1  ;;  %v9096_v13 = vsel %vm9095_vm0, %v9092_v26, %v9091_v10 }
 0xd3c   : > { %v9093_v47 = vunpack.c.l.b16 %v9073_v48  ;;  %v9070_v30 = vadd.f32 %v9069_v54, %v9068_v27 }
 0xd3e   : > { %v9074_v20 = vpack.c.bf16 %v9070_v30, %v9070_v30  ;;  %v9098_v51 = vsel %vm9097_vm5, %v9093_v47, %v9096_v13 }
 0xd40   : > { %v9094_v2 = vunpack.c.l.b16 %v9074_v20 }
 0xd42   : > { %v9100_v3 = vsel %vm9099_vm6, %v9094_v2, %v9098_v51 }
 0xd43   : > { %v9101_v12 = vpack.c.b16 %v9100_v3, %v9100_v3 }
 0xd45   : > { %10545 = vmatmul.mubr.msk.bf16.vlgmr.msra.gmra.mrb[176].mxu1 %vm7037_vm4, %v9101_v12 }
 0xe18   : > { %v9157_v8 = vpop.f32.mrb[176].mxu1 }
 0xe19   : > { %v9158_v58 = vadd.f32 %v9788_v52, %v9157_v8  ;;  %v10546_v46 = vpop.f32.mrb[177].mxu1 }
 0xe1a   : > { %v9160_v50 = vpop.f32.mrb[178].mxu1 }
 0xe1b   : > { %v9163_v61 = vmax.f32 %v9158_v58, 0.0  ;;  %v10547_v29 = vpop.f32.mrb[179].mxu1 }
 0xe1d   : > { %v9164_v33 = vpack.c.bf16 %v9163_v61, %v9163_v61 }
 0xe1f   : > { %10553 = vmatmul.mubr.msk.bf16.vlgmr.msra.gmra.mrb[176].mxu0 %vm6981_vm3, %v9164_v33 }
 0xe20   : > { %10558 = vmatprep.mubr.msk.bf16.mxu0 %vm11824_vm11, %v17343_v44  ;;  %10557 = vmatpush3.bf16.msra.mxu0 %v10661_v18  ;;  %v9797_v44 = vld [vmem:[%s17111_s17] ss:$0 sm:$0xff] }
 0xef2   : > { %v9225_v16 = vpop.f32.mrb[176].mxu0 }
 0xef3   : > { %v9226_v59 = vadd.f32 %v9793_v45, %v9225_v16  ;;  %v10554_v53 = vpop.f32.mrb[177].mxu0 }
 0xef4   : > { %v9228_v39 = vpop.f32.mrb[178].mxu0 }
 0xef5   : > { %v9238_v62 = vrot.slane %v9226_v59, %v16979_v41  ;;  %v9272_v5 = vmul.f32 %v9797_v44, %v9226_v59  ;;  %v10555_v4 = vpop.f32.mrb[179].mxu0 }
 0xef7   : > { %v9239_v23 = vcombine.high %v9238_v62, %v9238_v62  ;;  %v9246_v19 = vrot.slane %v9238_v62, %v16979_v41  ;;  %v9280_v25 = vadd.f32 %v9798_v57, %v9272_v5 }
 0xef9   : > { %v9253_v11 = vrot.slane %v9239_v23, %v16979_v41  ;;  %v9254_v55 = vcombine.high %v9246_v19, %v9246_v19  ;;  %9261 = vst.msk [vmem:[%s16991_s25] sm:$0x1] %vm9260_vm7, %v9246_v19  ;;  %v9281_v38 = vmax.f32 %v9280_v25, 0.0 }
 0xefb   : > { %v9255_v28 = vcombine.high %v9253_v11, %v9253_v11  ;;  %9262 = vst.msk [vmem:[%s16991_s25 + $0x1] sm:$0x1] %vm9260_vm7, %v9253_v11  ;;  %9263 = vst.msk [vmem:[%s16991_s25 + $0x2] sm:$0x1] %vm9260_vm7, %v9254_v55  ;;  %v9282_v14 = vpack.c.bf16 %v9281_v38, %v9281_v38 }
 0xefd   : > { %9264 = vst.msk [vmem:[%s16991_s25 + $0x3] sm:$0x1] %vm9260_vm7, %v9255_v28  ;;  %10559 = vmatmul.mubr.msk.bf16.vlgmr.msra.gmra.mrb[180].mxu0 %vm1181_vm2, %v9282_v14 }
 0xefe   : > { %11729 = shalt.err (!%p11726_p1)
}
 0xeff   : > { %s11730_s2 = scalar_lea.hbm %s17003_s6, 1024  ;;  %s11734_s1 = scalar_lea.hbm %s17589_s22, 2048 }
 0xf00   : > { %p11731_p2 = scmp.ne.s32.totalorder %s17003_s6, %s11730_s2  ;;  %p11735_p9 = scmp.lt.u32.totalorder %s17003_s6, %s17589_s22 }
 0xf01   : > { %p11736_p5 = scmp.lt.u32.totalorder %s11734_s1, %s11730_s2  ;;  %p11738_p10 = scmp.lt.u32.totalorder %s11730_s2, %s17003_s6 }
 0xf02   : > { %p11732_p3 = pnand %p11731_p2, %p17590_p12 }
 0xf03   : > { %p11737_p6 = por %p11736_p5, %p11735_p9 }
 0xf04   : > { %p11733_p4 = pneg %p11732_p3 }
 0xf05   : > { %p11739_p0 = por %p11738_p10, %p11737_p6 }
 0xf07   : > { %p11740_p7 = pnand %p11739_p0, %p11733_p4 }
 0xf09   : > { %11743 = shalt.err (!%p11740_p7)
}
 0xf0a   : > { %s11839_s23 = smov 128   ;;  %s17591_s0 = scalar_lea.sflag [#allocation3], %s16873_s24 }
 0xf0b   : > { %10574 = dma.vmem_to_hbm [thread:$0]  (%p17590_p12), %s17005_s20, 1024, %s17003_s6, %s17591_s0, %s11839_s23, %s11839_s23, %s17447_s21  }
 0xf0c   : > { %s9816_s29 = sshll.u32 %s11983_s5, 6  ;;  %s9419_s3 = sshll.u32 %s16991_s25, 4  ;;  %s17039_s3 = int_to_ptr.vmem [resolvable:$true] %s9419_s3 }
 0xf0d   : > { %s17592_s1 = sld [smem:[#allocation70_spill]]  ;;  %s9385_s8 = scalar_lea.sflag [#allocation9], %s16873_s24 }
 0xf0e   : > { %s11744_s9 = scalar_lea.vmem %s17039_s3, 64  ;;  %s11840_s10 = smov [#allocation8]  }
 0xf0f   : > { %p11745_p8 = scmp.ne.s32.totalorder %s17039_s3, %s11744_s9  ;;  %s11748_s21 = sshll.u32 %s11840_s10, 4  ;;  %s11749_s21 = int_to_ptr.vmem [resolvable:$false] %s11748_s21 }
 0xf10   : > { %s11750_s5 = scalar_lea.vmem %s11749_s21, 128  ;;  %p11751_p1 = scmp.lt.s32.totalorder %s17039_s3, %s11749_s21 }
 0xf11   : > { %p11746_p11 = pnand %p11745_p8, %p17590_p12  ;;  %p11752_p2 = scmp.lt.s32.totalorder %s11750_s5, %s11744_s9 }
 0xf13   : > { %s17037_s27 = scalar_lea.hbm %s17592_s1, %s9816_s29  ;;  %p11747_p13 = pneg %p11746_p11 }
 0xf14   : > { %p11753_p3 = por %p11752_p2, %p11751_p1 }
 0xf16   : > { %p11754_p4 = pnand %p11753_p3, %p11747_p13 }
 0xf18   : > { %11757 = shalt.err (!%p11754_p4)
}
 0xf19   : > { %s11758_s25 = scalar_lea.hbm %s17037_s27, 64  ;;  %s11762_s10 = scalar_lea.hbm %s17592_s1, 128 }
 0xf1a   : > { %p11759_p9 = scmp.ne.s32.totalorder %s17037_s27, %s11758_s25  ;;  %p11763_p10 = scmp.lt.u32.totalorder %s17037_s27, %s17592_s1 }
 0xf1b   : > { %p11764_p0 = scmp.lt.u32.totalorder %s11762_s10, %s11758_s25  ;;  %p11766_p8 = scmp.lt.u32.totalorder %s11758_s25, %s17037_s27 }
 0xf1c   : > { %p11760_p5 = pnand %p11759_p9, %p17590_p12 }
 0xf1d   : > { %p11765_p7 = por %p11764_p0, %p11763_p10 }
 0xf1e   : > { %p11761_p6 = pneg %p11760_p5 }
 0xf1f   : > { %p11767_p11 = por %p11766_p8, %p11765_p7 }
 0xf21   : > { %p11768_p13 = pnand %p11767_p11, %p11761_p6 }
 0xf23   : > { %11771 = shalt.err (!%p11768_p13)
}
 0xf24   : > { %s11841_s9 = smov 1   ;;  %s17593_s29 = smov 16   ;;  %vm9370_vm2 = vcmask 8192  }
 0xf25   : > { %10575 = dma.vmem_to_hbm [thread:$0]  (%p17590_p12), %s17039_s3, 64, %s17037_s27, %s9385_s8, %s17593_s29, %s17593_s29, %s11841_s9  }
 0xf26   : > { %s17594_s21 = sld [smem:[#allocation67_spill]]  ;;  %s17595_s25 = sld [smem:[#allocation68_spill]] }
 0xf2c   : > { %v9799_v32 = vld [vmem:[%s17594_s21] ss:$0 sm:$0xff]  ;;  %s811_s20 = scalar_lea.vmem %s17595_s25, %s17606_s4 }
 0xfd0   : > { %v9335_v42 = vpop.f32.mrb[180].mxu0 }
 0xfd1   : > { %v9336_v9 = vadd.f32 %v9799_v32, %v9335_v42  ;;  %v10560_v17 = vpop.f32.mrb[181].mxu0 }
 0xfd2   : > { %v9338_v40 = vpop.f32.mrb[182].mxu0 }
 0xfd3   : > { %v9348_v7 = vrot.slane %v9336_v9, %v16979_v41  ;;  %v10561_v15 = vpop.f32.mrb[183].mxu0 }
 0xfd5   : > { %v9349_v63 = vcombine.high %v9348_v7, %v9348_v7  ;;  %v9356_v22 = vrot.slane %v9348_v7, %v16979_v41 }
 0xfd7   : > { %v9363_v49 = vrot.slane %v9349_v63, %v16979_v41  ;;  %v9364_v56 = vcombine.high %v9356_v22, %v9356_v22  ;;  %9371 = vst.msk [vmem:[%s811_s20] sm:$0x1] %vm9370_vm2, %v9356_v22 }
 0xfd9   : > { %v9365_v1 = vcombine.high %v9363_v49, %v9363_v49  ;;  %9372 = vst.msk [vmem:[%s811_s20 + $0x1] sm:$0x1] %vm9370_vm2, %v9363_v49  ;;  %9373 = vst.msk [vmem:[%s811_s20 + $0x2] sm:$0x1] %vm9370_vm2, %v9364_v56 }
 0xfdb   : > { %9374 = vst.msk [vmem:[%s811_s20 + $0x3] sm:$0x1] %vm9370_vm2, %v9365_v1 }
 0xfdc PF: > { %s17596_s8 = sld [smem:[#allocation16_spill]]  ;;  %s17597_s24 = sld [smem:[#allocation14_spill]] }
 0xfdd   : > { %s17598_s3 = sld [smem:[#allocation19_spill]] }
 0xfe2   : > { %p10596_p12 = scmp.ge.s32.totalorder %s17596_s8, 2  ;;  %s9441_s27 = sand.u32 1, %s17597_s24  }
 0xfe3   : > { %p17599_p1 = scmp.ne.s32.totalorder %s17598_s3, 0  ;;  %s9442_s4 = scalar_lea.sflag [#allocation3], %s9441_s27 }
 0xfe5   : > { %p10586_p2 = pnand %p10596_p12, %p17599_p1 }
 0xfe7   : > { %11797 = dma.done.wait (!%p10586_p2), %s9442_s4, 1024  }
 0xfe8   : > { %11799 = vsyncadd (!%p10586_p2), %s9442_s4, 4294966272  ;;  %s9451_s6 = scalar_lea.sflag [#allocation9], %s9441_s27 }
 0xfe9   : > { %11801 = dma.done.wait (!%p10586_p2), %s9451_s6, 64  }
 0xfea   : > { %11803 = vsyncadd (!%p10586_p2), %s9451_s6, 4294967232  ;;  %s17600_s25 = sld [smem:[#allocation17_spill]]  ;;  %s17601_s10 = sld [smem:[#allocation15_spill]] }
 0xfeb   : > { %s17602_s24 = sld [smem:[#allocation18_spill]]  ;;  %s17603_s4 = smov %s11810_s30 }
 0xff0   : > { %p39_p3 = scmp.ge.s32.totalorder %s17600_s25, 4   ;;  %s17604_s30 = smov %s17601_s10 }
 0xff2   :  { %41 = sbr.rel (!%p39_p3) target bundleno = 23 (0x17), region = 183 }
 0xff9   :  { %9456 = vsyncpa [#allocation3], 1 }
 0xffa   :  { %9458 = vsyncpa [#allocation3 + $0x1], 1 }
 0xffb   :  { %9459 = vsyncpa [#allocation9], 1 }
 0xffc   :  { %9461 = vsyncpa [#allocation9 + $0x1], 1 }
 0xffd   :  { %9462 = vsyncpa [#allocation4], 1 }
 0xffe   :  { %9464 = vsyncpa [#allocation4 + $0x1], 1 }
 0xfff   :  { %9465 = vsyncpa [#allocation6], 1 }

</bundles_post_ra>
